<compile_context>
chip_gen: v6e
topology: v6e:2x2x1
jax: 0.10.0
libtpu: 0.0.40
codegen_flags: <defaults>
</compile_context>

<pallas_src>
import functools

import jax
import jax.numpy as jnp
from jax.experimental import pallas as pl
from jax.experimental.pallas import tpu as pltpu

C_IN = 3        # image channels
C_FEAT = 8      # backbone feature channels (toy resnet width)
OCP = 128       # out-channel padding -> lane-dense MXU columns & stores
CINP = 8        # stem in-channel padding (contraction dim of the first matmul)


# ------------------------------ Pallas kernel -------------------------------

def _features_kernel(
    x00_ref, x01_ref, x10_ref, x11_ref,        # [HP2*WP2, CINP] bf16 stride-2 phases
    w1_ref, s1_ref, b1_ref,                    # [49, CINP, OCP] bf16, [1, OCP] f32 x2
    w2_ref, s2_ref, b2_ref,                    # [9, OCP, OCP]  bf16, [1, OCP] f32 x2
    w3_ref, s3_ref, b3_ref,                    # [9, OCP, OCP]  bf16, [1, OCP] f32 x2
    o_ref,                                     # [PH*PW, OCP] f32 output block
    pool_ref, ypad_ref, zpad_ref,              # VMEM f32 scratch
    *, kh, kw, wp2, oh, ow, ph, pw, ocp):
  f32 = jnp.float32
  bf16 = jnp.bfloat16

  # ---- stem: conv 7x7 / stride 2 + folded BN + ReLU ------------------------
  # Sum of KH*KW shifted matmuls.  Each stride-2 tap is a contiguous row-slice
  # of one of the four phase slabs (space-to-depth), so the input is read from
  # HBM exactly once and expanded in VMEM.  (For real channel counts, add a K
  # grid axis with an accumulator scratch; here K = CINP = 8.)
  phases = ((x00_ref, x01_ref), (x10_ref, x11_ref))
  m1 = (oh - 1) * wp2 + ow                     # flattened rows incl. wrap columns
  acc = jnp.zeros((m1, ocp), f32)
  for ki in range(kh):
    for kj in range(kw):
      src = phases[ki % 2][kj % 2]
      off = (ki // 2) * wp2 + (kj // 2)
      acc += jnp.dot(src[pl.ds(off, m1), :], w1_ref[ki * kw + kj],
                     preferred_element_type=f32)
  y1 = jnp.maximum(acc * s1_ref[...] + b1_ref[...], 0.0)

  # ---- fused maxpool 3x3 / stride 2 / pad 1 (elementwise max over taps) -----
  pool_w = ow + 2
  pool_ref[...] = jnp.zeros_like(pool_ref)     # zero pad == -inf pad post-ReLU
  for r in range(oh):                          # scatter valid rows, drop wrap cols
    pool_ref[pl.ds((r + 1) * pool_w + 1, ow), :] = y1[r * wp2:r * wp2 + ow, :]
  bw = pw + 2                                  # padded width for the block convs
  ypad_ref[...] = jnp.zeros_like(ypad_ref)     # zero-padded BasicBlock input
  for py in range(ph):
    row = None
    for di in range(3):
      for dj in range(3):
        seg = pool_ref[pl.ds((2 * py + di) * pool_w + dj, pw, stride=2), :]
        row = seg if row is None else jnp.maximum(row, seg)
    ypad_ref[pl.ds((py + 1) * bw + 1, pw), :] = row

  # ---- BasicBlock conv1: 3x3 + BN + ReLU (intermediate never leaves VMEM) ---
  m2 = (ph - 1) * bw + pw
  acc = jnp.zeros((m2, ocp), f32)
  for ki in range(3):
    for kj in range(3):
      acc += jnp.dot(ypad_ref[pl.ds(ki * bw + kj, m2), :].astype(bf16),
                     w2_ref[ki * 3 + kj], preferred_element_type=f32)
  z = jnp.maximum(acc * s2_ref[...] + b2_ref[...], 0.0)
  zpad_ref[...] = jnp.zeros_like(zpad_ref)
  for r in range(ph):
    zpad_ref[pl.ds((r + 1) * bw + 1, pw), :] = z[r * bw:r * bw + pw, :]

  # ---- BasicBlock conv2: 3x3 + BN + identity + ReLU -------------------------
  acc = jnp.zeros((m2, ocp), f32)
  for ki in range(3):
    for kj in range(3):
      acc += jnp.dot(zpad_ref[pl.ds(ki * bw + kj, m2), :].astype(bf16),
                     w3_ref[ki * 3 + kj], preferred_element_type=f32)
  for r in range(ph):
    val = acc[r * bw:r * bw + pw, :] * s3_ref[...] + b3_ref[...]
    res = ypad_ref[pl.ds((r + 1) * bw + 1, pw), :]
    o_ref[pl.ds(r * pw, pw), :] = jnp.maximum(val + res, 0.0).astype(o_ref.dtype)


# ------------------------------- host wrapper --------------------------------

def _prep_conv(w, bn, cin_pad):
  """OIHW weight + folded BN -> ([KH*KW, cin_pad, OCP] bf16 taps, f32 scale/bias)."""
  scale, bias = bn
  oc, ic, kh, kw = w.shape
  taps = jnp.transpose(w, (2, 3, 1, 0)).reshape(kh * kw, ic, oc)
  taps = jnp.pad(taps, ((0, 0), (0, cin_pad - ic), (0, OCP - oc)))
  s = jnp.pad(scale.reshape(1, oc), ((0, 0), (0, OCP - oc))).astype(jnp.float32)
  b = jnp.pad(bias.reshape(1, oc), ((0, 0), (0, OCP - oc))).astype(jnp.float32)
  return taps.astype(jnp.bfloat16), s, b


def conv_features_getter(x_nchw, params):
  """Equivalent of ConvFeaturesGetter.forward(x): NCHW in -> NCHW features out."""
  n, c, h, w = x_nchw.shape
  kh = kw = 7
  pad, stride = 3, 2
  oh = (h + 2 * pad - kh) // stride + 1
  ow = (w + 2 * pad - kw) // stride + 1
  ph = (oh + 2 - 3) // 2 + 1                   # after maxpool 3x3 / s2 / p1
  pw = (ow + 2 - 3) // 2 + 1

  # NCHW -> NHWC once at the module boundary; pad spatially and on channels.
  x = jnp.transpose(x_nchw, (0, 2, 3, 1))
  x = jnp.pad(x, ((0, 0), (pad, pad), (pad, pad), (0, CINP - c)))
  hp, wp = h + 2 * pad, w + 2 * pad
  x = jnp.pad(x, ((0, 0), (0, hp % 2), (0, wp % 2), (0, 0)))   # even padded dims
  hp, wp = hp + hp % 2, wp + wp % 2
  hp2, wp2 = hp // 2, wp // 2

  # 2x2 space-to-depth phase split (pure relayout; the input is read once).
  phases = [
      x[:, a::2, b::2, :].reshape(n, hp2 * wp2, CINP).astype(jnp.bfloat16)
      for a in (0, 1) for b in (0, 1)
  ]

  w1t, s1, b1 = _prep_conv(params["w1"], params["bn1"], CINP)
  w2t, s2, b2 = _prep_conv(params["w2"], params["bn2"], OCP)
  w3t, s3, b3 = _prep_conv(params["w3"], params["bn3"], OCP)

  kern = functools.partial(_features_kernel, kh=kh, kw=kw, wp2=wp2,
                           oh=oh, ow=ow, ph=ph, pw=pw, ocp=OCP)

  def batch_spec(shape):                       # one batch element per grid step
    return pl.BlockSpec((None,) + shape, lambda i: (i,) + (0,) * len(shape))

  def const_spec(shape):                       # VMEM-resident across grid steps
    return pl.BlockSpec(shape, lambda i: (0,) * len(shape))

  out = pl.pallas_call(
      kern,
      grid=(n,),
      in_specs=(
          [batch_spec((hp2 * wp2, CINP))] * 4
          + [const_spec((kh * kw, CINP, OCP)), const_spec((1, OCP)), const_spec((1, OCP)),
             const_spec((9, OCP, OCP)), const_spec((1, OCP)), const_spec((1, OCP)),
             const_spec((9, OCP, OCP)), const_spec((1, OCP)), const_spec((1, OCP))]
      ),
      out_specs=batch_spec((ph * pw, OCP)),
      out_shape=jax.ShapeDtypeStruct((n, ph * pw, OCP), jnp.float32),
      scratch_shapes=[
          pltpu.VMEM(((oh + 2) * (ow + 2), OCP), jnp.float32),   # pool input grid
          pltpu.VMEM(((ph + 2) * (pw + 2), OCP), jnp.float32),   # padded y (identity)
          pltpu.VMEM(((ph + 2) * (pw + 2), OCP), jnp.float32),   # padded z
      ],
      compiler_params=pltpu.CompilerParams(
          dimension_semantics=("parallel",),   # megacore: batch sharded across TCs
          vmem_limit_bytes=32 * 1024 * 1024,   # safe on v5e/v6e/v7x; raise for big tiles
      ),
  )(*phases, w1t, s1, b1, w2t, s2, b2, w3t, s3, b3)

  out = out.reshape(n, ph, pw, OCP)[..., :C_FEAT]
  return jnp.transpose(out, (0, 3, 1, 2))      # back to NCHW at the boundary


# ----------------------- parameter init (deterministic) ----------------------

def _conv_w(key, oc, ic, kh, kw):
  fan_in = ic * kh * kw
  return jax.random.normal(key, (oc, ic, kh, kw), jnp.float32) * jnp.sqrt(2.0 / fan_in)


def _bn_folded(key, c, eps=1e-5):
  k1, k2, k3, k4 = jax.random.split(key, 4)
  gamma = 1.0 + 0.1 * jax.random.normal(k1, (c,), jnp.float32)
  beta = 0.1 * jax.random.normal(k2, (c,), jnp.float32)
  mean = 0.1 * jax.random.normal(k3, (c,), jnp.float32)
  var = jnp.abs(jax.random.normal(k4, (c,), jnp.float32)) + 0.5
  scale = gamma / jnp.sqrt(var + eps)
  bias = beta - mean * scale
  return scale, bias


def init_params(key, c_in=3, c_feat=8):
  ks = jax.random.split(key, 6)
  return {
      "w1": _conv_w(ks[0], c_feat, c_in, 7, 7),
      "bn1": _bn_folded(ks[1], c_feat),
      "w2": _conv_w(ks[2], c_feat, c_feat, 3, 3),
      "bn2": _bn_folded(ks[3], c_feat),
      "w3": _conv_w(ks[4], c_feat, c_feat, 3, 3),
      "bn3": _bn_folded(ks[5], c_feat),
  }


# ----------------------------- pure-JAX reference ----------------------------
# Mirrors the kernel's numerics: bf16 matmul operands, f32 accumulation and
# f32 BN / pool / residual epilogues.

def _ref_conv(x, w, scale, bias, stride, padding, relu=True, residual=None):
  bf = lambda a: a.astype(jnp.bfloat16)
  y = jax.lax.conv_general_dilated(
      bf(x), bf(w), (stride, stride),
      [(padding, padding), (padding, padding)],
      dimension_numbers=("NCHW", "OIHW", "NCHW"),
      preferred_element_type=jnp.float32)
  y = y * scale.reshape(1, -1, 1, 1) + bias.reshape(1, -1, 1, 1)
  if residual is not None:
    y = y + residual
  if relu:
    y = jnp.maximum(y, 0.0)
  return y


def _ref_forward(x, p):
  y = _ref_conv(x, p["w1"], *p["bn1"], 2, 3)
  y = jax.lax.reduce_window(y, -jnp.inf, jax.lax.max,
                            (1, 1, 3, 3), (1, 1, 2, 2),
                            ((0, 0), (0, 0), (1, 1), (1, 1)))
  z = _ref_conv(y, p["w2"], *p["bn2"], 1, 1)
  return _ref_conv(z, p["w3"], *p["bn3"], 1, 1, residual=y)


# ------------------------------------ main -----------------------------------

if __name__ == "__main__":
  key = jax.random.PRNGKey(0)
  kx, kp = jax.random.split(key)
  x = jax.random.normal(kx, (2, C_IN, 16, 16), jnp.float32)   # NCHW, like PyTorch
  params = init_params(kp, c_in=C_IN, c_feat=C_FEAT)

  fwd = jax.jit(conv_features_getter)
  out = jax.block_until_ready(fwd(x, params))

  ref = jax.block_until_ready(_ref_forward(x, params))
  assert out.shape == (2, C_FEAT, 4, 4), out.shape
  err = float(jnp.max(jnp.abs(out - ref)))
  assert jnp.allclose(out, ref, atol=2e-2, rtol=2e-2), err

  print("KERNEL_OK")
</pallas_src>

<mosaic_0001>
module attributes {stable_mosaic.version = 11 : i64} {
  func.func @_features_kernel(%arg0: i32, %arg1: memref<1x121x8xbf16, #tpu.memory_space<vmem>>, %arg2: memref<1x121x8xbf16, #tpu.memory_space<vmem>>, %arg3: memref<1x121x8xbf16, #tpu.memory_space<vmem>>, %arg4: memref<1x121x8xbf16, #tpu.memory_space<vmem>>, %arg5: memref<49x8x128xbf16, #tpu.memory_space<vmem>>, %arg6: memref<1x128xf32, #tpu.memory_space<vmem>>, %arg7: memref<1x128xf32, #tpu.memory_space<vmem>>, %arg8: memref<9x128x128xbf16, #tpu.memory_space<vmem>>, %arg9: memref<1x128xf32, #tpu.memory_space<vmem>>, %arg10: memref<1x128xf32, #tpu.memory_space<vmem>>, %arg11: memref<9x128x128xbf16, #tpu.memory_space<vmem>>, %arg12: memref<1x128xf32, #tpu.memory_space<vmem>>, %arg13: memref<1x128xf32, #tpu.memory_space<vmem>>, %arg14: memref<1x16x128xf32, #tpu.memory_space<vmem>>, %arg15: memref<100x128xf32, #tpu.memory_space<vmem>>, %arg16: memref<36x128xf32, #tpu.memory_space<vmem>>, %arg17: memref<36x128xf32, #tpu.memory_space<vmem>>) attributes {dimension_semantics = [#tpu.dimension_semantics<parallel>], iteration_bounds = array<i64: 2>, scalar_prefetch = 0 : i64, scratch_operands = 3 : i64, tpu.core_type = #tpu.core_type<tc>, window_params = [{transform_indices = @transform_0, window_bounds = array<i64: 1, 121, 8>}, {transform_indices = @transform_1, window_bounds = array<i64: 1, 121, 8>}, {transform_indices = @transform_2, window_bounds = array<i64: 1, 121, 8>}, {transform_indices = @transform_3, window_bounds = array<i64: 1, 121, 8>}, {pipeline_mode = #tpu.pipeline_mode<synchronous>, transform_indices = @transform_4, window_bounds = array<i64: 49, 8, 128>}, {pipeline_mode = #tpu.pipeline_mode<synchronous>, transform_indices = @transform_5, window_bounds = array<i64: 1, 128>}, {pipeline_mode = #tpu.pipeline_mode<synchronous>, transform_indices = @transform_6, window_bounds = array<i64: 1, 128>}, {pipeline_mode = #tpu.pipeline_mode<synchronous>, transform_indices = @transform_7, window_bounds = array<i64: 9, 128, 128>}, {pipeline_mode = #tpu.pipeline_mode<synchronous>, transform_indices = @transform_8, window_bounds = array<i64: 1, 128>}, {pipeline_mode = #tpu.pipeline_mode<synchronous>, transform_indices = @transform_9, window_bounds = array<i64: 1, 128>}, {pipeline_mode = #tpu.pipeline_mode<synchronous>, transform_indices = @transform_10, window_bounds = array<i64: 9, 128, 128>}, {pipeline_mode = #tpu.pipeline_mode<synchronous>, transform_indices = @transform_11, window_bounds = array<i64: 1, 128>}, {pipeline_mode = #tpu.pipeline_mode<synchronous>, transform_indices = @transform_12, window_bounds = array<i64: 1, 128>}, {transform_indices = @transform_13, window_bounds = array<i64: 1, 16, 128>}]} {
    %cst = arith.constant 0.000000e+00 : f32
    %0 = vector.broadcast %cst : f32 to vector<85x128xf32>
    %c0 = arith.constant 0 : index
    %c0_0 = arith.constant 0 : index
    %c0_1 = arith.constant 0 : index
    %1 = vector.load %arg1[%c0, %c0_0, %c0_1] : memref<1x121x8xbf16, #tpu.memory_space<vmem>>, vector<1x85x8xbf16>
    %2 = vector.shape_cast %1 : vector<1x85x8xbf16> to vector<85x8xbf16>
    %c0_2 = arith.constant 0 : index
    %c0_3 = arith.constant 0 : index
    %c0_4 = arith.constant 0 : index
    %3 = vector.load %arg5[%c0_2, %c0_3, %c0_4] : memref<49x8x128xbf16, #tpu.memory_space<vmem>>, vector<1x8x128xbf16>
    %4 = vector.shape_cast %3 : vector<1x8x128xbf16> to vector<8x128xbf16>
    %cst_5 = arith.constant dense<0.000000e+00> : vector<85x128xf32>
    %5 = tpu.matmul %2, %4, %cst_5 {dimension_numbers = #tpu.dot_dimension_numbers<[1], [0], [0], [1], [0, 0, 1, 1], [], []>} : vector<85x8xbf16>, vector<8x128xbf16>, vector<85x128xf32> -> vector<85x128xf32>
    %6 = arith.addf %0, %5 : vector<85x128xf32>
    %c0_6 = arith.constant 0 : index
    %c0_7 = arith.constant 0 : index
    %c0_8 = arith.constant 0 : index
    %7 = vector.load %arg2[%c0_6, %c0_7, %c0_8] : memref<1x121x8xbf16, #tpu.memory_space<vmem>>, vector<1x85x8xbf16>
    %8 = vector.shape_cast %7 : vector<1x85x8xbf16> to vector<85x8xbf16>
    %c1 = arith.constant 1 : index
    %c0_9 = arith.constant 0 : index
    %c0_10 = arith.constant 0 : index
    %9 = vector.load %arg5[%c1, %c0_9, %c0_10] : memref<49x8x128xbf16, #tpu.memory_space<vmem>>, vector<1x8x128xbf16>
    %10 = vector.shape_cast %9 : vector<1x8x128xbf16> to vector<8x128xbf16>
    %cst_11 = arith.constant dense<0.000000e+00> : vector<85x128xf32>
    %11 = tpu.matmul %8, %10, %cst_11 {dimension_numbers = #tpu.dot_dimension_numbers<[1], [0], [0], [1], [0, 0, 1, 1], [], []>} : vector<85x8xbf16>, vector<8x128xbf16>, vector<85x128xf32> -> vector<85x128xf32>
    %12 = arith.addf %6, %11 : vector<85x128xf32>
    %c0_12 = arith.constant 0 : index
    %c1_13 = arith.constant 1 : index
    %c0_14 = arith.constant 0 : index
    %13 = vector.load %arg1[%c0_12, %c1_13, %c0_14] : memref<1x121x8xbf16, #tpu.memory_space<vmem>>, vector<1x85x8xbf16>
    %14 = vector.shape_cast %13 : vector<1x85x8xbf16> to vector<85x8xbf16>
    %c2 = arith.constant 2 : index
    %c0_15 = arith.constant 0 : index
    %c0_16 = arith.constant 0 : index
    %15 = vector.load %arg5[%c2, %c0_15, %c0_16] : memref<49x8x128xbf16, #tpu.memory_space<vmem>>, vector<1x8x128xbf16>
    %16 = vector.shape_cast %15 : vector<1x8x128xbf16> to vector<8x128xbf16>
    %cst_17 = arith.constant dense<0.000000e+00> : vector<85x128xf32>
    %17 = tpu.matmul %14, %16, %cst_17 {dimension_numbers = #tpu.dot_dimension_numbers<[1], [0], [0], [1], [0, 0, 1, 1], [], []>} : vector<85x8xbf16>, vector<8x128xbf16>, vector<85x128xf32> -> vector<85x128xf32>
    %18 = arith.addf %12, %17 : vector<85x128xf32>
    %c0_18 = arith.constant 0 : index
    %c1_19 = arith.constant 1 : index
    %c0_20 = arith.constant 0 : index
    %19 = vector.load %arg2[%c0_18, %c1_19, %c0_20] : memref<1x121x8xbf16, #tpu.memory_space<vmem>>, vector<1x85x8xbf16>
    %20 = vector.shape_cast %19 : vector<1x85x8xbf16> to vector<85x8xbf16>
    %c3 = arith.constant 3 : index
    %c0_21 = arith.constant 0 : index
    %c0_22 = arith.constant 0 : index
    %21 = vector.load %arg5[%c3, %c0_21, %c0_22] : memref<49x8x128xbf16, #tpu.memory_space<vmem>>, vector<1x8x128xbf16>
    %22 = vector.shape_cast %21 : vector<1x8x128xbf16> to vector<8x128xbf16>
    %cst_23 = arith.constant dense<0.000000e+00> : vector<85x128xf32>
    %23 = tpu.matmul %20, %22, %cst_23 {dimension_numbers = #tpu.dot_dimension_numbers<[1], [0], [0], [1], [0, 0, 1, 1], [], []>} : vector<85x8xbf16>, vector<8x128xbf16>, vector<85x128xf32> -> vector<85x128xf32>
    %24 = arith.addf %18, %23 : vector<85x128xf32>
    %c0_24 = arith.constant 0 : index
    %c2_25 = arith.constant 2 : index
    %c0_26 = arith.constant 0 : index
    %25 = vector.load %arg1[%c0_24, %c2_25, %c0_26] : memref<1x121x8xbf16, #tpu.memory_space<vmem>>, vector<1x85x8xbf16>
    %26 = vector.shape_cast %25 : vector<1x85x8xbf16> to vector<85x8xbf16>
    %c4 = arith.constant 4 : index
    %c0_27 = arith.constant 0 : index
    %c0_28 = arith.constant 0 : index
    %27 = vector.load %arg5[%c4, %c0_27, %c0_28] : memref<49x8x128xbf16, #tpu.memory_space<vmem>>, vector<1x8x128xbf16>
    %28 = vector.shape_cast %27 : vector<1x8x128xbf16> to vector<8x128xbf16>
    %cst_29 = arith.constant dense<0.000000e+00> : vector<85x128xf32>
    %29 = tpu.matmul %26, %28, %cst_29 {dimension_numbers = #tpu.dot_dimension_numbers<[1], [0], [0], [1], [0, 0, 1, 1], [], []>} : vector<85x8xbf16>, vector<8x128xbf16>, vector<85x128xf32> -> vector<85x128xf32>
    %30 = arith.addf %24, %29 : vector<85x128xf32>
    %c0_30 = arith.constant 0 : index
    %c2_31 = arith.constant 2 : index
    %c0_32 = arith.constant 0 : index
    %31 = vector.load %arg2[%c0_30, %c2_31, %c0_32] : memref<1x121x8xbf16, #tpu.memory_space<vmem>>, vector<1x85x8xbf16>
    %32 = vector.shape_cast %31 : vector<1x85x8xbf16> to vector<85x8xbf16>
    %c5 = arith.constant 5 : index
    %c0_33 = arith.constant 0 : index
    %c0_34 = arith.constant 0 : index
    %33 = vector.load %arg5[%c5, %c0_33, %c0_34] : memref<49x8x128xbf16, #tpu.memory_space<vmem>>, vector<1x8x128xbf16>
    %34 = vector.shape_cast %33 : vector<1x8x128xbf16> to vector<8x128xbf16>
    %cst_35 = arith.constant dense<0.000000e+00> : vector<85x128xf32>
    %35 = tpu.matmul %32, %34, %cst_35 {dimension_numbers = #tpu.dot_dimension_numbers<[1], [0], [0], [1], [0, 0, 1, 1], [], []>} : vector<85x8xbf16>, vector<8x128xbf16>, vector<85x128xf32> -> vector<85x128xf32>
    %36 = arith.addf %30, %35 : vector<85x128xf32>
    %c0_36 = arith.constant 0 : index
    %c3_37 = arith.constant 3 : index
    %c0_38 = arith.constant 0 : index
    %37 = vector.load %arg1[%c0_36, %c3_37, %c0_38] : memref<1x121x8xbf16, #tpu.memory_space<vmem>>, vector<1x85x8xbf16>
    %38 = vector.shape_cast %37 : vector<1x85x8xbf16> to vector<85x8xbf16>
    %c6 = arith.constant 6 : index
    %c0_39 = arith.constant 0 : index
    %c0_40 = arith.constant 0 : index
    %39 = vector.load %arg5[%c6, %c0_39, %c0_40] : memref<49x8x128xbf16, #tpu.memory_space<vmem>>, vector<1x8x128xbf16>
    %40 = vector.shape_cast %39 : vector<1x8x128xbf16> to vector<8x128xbf16>
    %cst_41 = arith.constant dense<0.000000e+00> : vector<85x128xf32>
    %41 = tpu.matmul %38, %40, %cst_41 {dimension_numbers = #tpu.dot_dimension_numbers<[1], [0], [0], [1], [0, 0, 1, 1], [], []>} : vector<85x8xbf16>, vector<8x128xbf16>, vector<85x128xf32> -> vector<85x128xf32>
    %42 = arith.addf %36, %41 : vector<85x128xf32>
    %c0_42 = arith.constant 0 : index
    %c0_43 = arith.constant 0 : index
    %c0_44 = arith.constant 0 : index
    %43 = vector.load %arg3[%c0_42, %c0_43, %c0_44] : memref<1x121x8xbf16, #tpu.memory_space<vmem>>, vector<1x85x8xbf16>
    %44 = vector.shape_cast %43 : vector<1x85x8xbf16> to vector<85x8xbf16>
    %c7 = arith.constant 7 : index
    %c0_45 = arith.constant 0 : index
    %c0_46 = arith.constant 0 : index
    %45 = vector.load %arg5[%c7, %c0_45, %c0_46] : memref<49x8x128xbf16, #tpu.memory_space<vmem>>, vector<1x8x128xbf16>
    %46 = vector.shape_cast %45 : vector<1x8x128xbf16> to vector<8x128xbf16>
    %cst_47 = arith.constant dense<0.000000e+00> : vector<85x128xf32>
    %47 = tpu.matmul %44, %46, %cst_47 {dimension_numbers = #tpu.dot_dimension_numbers<[1], [0], [0], [1], [0, 0, 1, 1], [], []>} : vector<85x8xbf16>, vector<8x128xbf16>, vector<85x128xf32> -> vector<85x128xf32>
    %48 = arith.addf %42, %47 : vector<85x128xf32>
    %c0_48 = arith.constant 0 : index
    %c0_49 = arith.constant 0 : index
    %c0_50 = arith.constant 0 : index
    %49 = vector.load %arg4[%c0_48, %c0_49, %c0_50] : memref<1x121x8xbf16, #tpu.memory_space<vmem>>, vector<1x85x8xbf16>
    %50 = vector.shape_cast %49 : vector<1x85x8xbf16> to vector<85x8xbf16>
    %c8 = arith.constant 8 : index
    %c0_51 = arith.constant 0 : index
    %c0_52 = arith.constant 0 : index
    %51 = vector.load %arg5[%c8, %c0_51, %c0_52] : memref<49x8x128xbf16, #tpu.memory_space<vmem>>, vector<1x8x128xbf16>
    %52 = vector.shape_cast %51 : vector<1x8x128xbf16> to vector<8x128xbf16>
    %cst_53 = arith.constant dense<0.000000e+00> : vector<85x128xf32>
    %53 = tpu.matmul %50, %52, %cst_53 {dimension_numbers = #tpu.dot_dimension_numbers<[1], [0], [0], [1], [0, 0, 1, 1], [], []>} : vector<85x8xbf16>, vector<8x128xbf16>, vector<85x128xf32> -> vector<85x128xf32>
    %54 = arith.addf %48, %53 : vector<85x128xf32>
    %c0_54 = arith.constant 0 : index
    %c1_55 = arith.constant 1 : index
    %c0_56 = arith.constant 0 : index
    %55 = vector.load %arg3[%c0_54, %c1_55, %c0_56] : memref<1x121x8xbf16, #tpu.memory_space<vmem>>, vector<1x85x8xbf16>
    %56 = vector.shape_cast %55 : vector<1x85x8xbf16> to vector<85x8xbf16>
    %c9 = arith.constant 9 : index
    %c0_57 = arith.constant 0 : index
    %c0_58 = arith.constant 0 : index
    %57 = vector.load %arg5[%c9, %c0_57, %c0_58] : memref<49x8x128xbf16, #tpu.memory_space<vmem>>, vector<1x8x128xbf16>
    %58 = vector.shape_cast %57 : vector<1x8x128xbf16> to vector<8x128xbf16>
    %cst_59 = arith.constant dense<0.000000e+00> : vector<85x128xf32>
    %59 = tpu.matmul %56, %58, %cst_59 {dimension_numbers = #tpu.dot_dimension_numbers<[1], [0], [0], [1], [0, 0, 1, 1], [], []>} : vector<85x8xbf16>, vector<8x128xbf16>, vector<85x128xf32> -> vector<85x128xf32>
    %60 = arith.addf %54, %59 : vector<85x128xf32>
    %c0_60 = arith.constant 0 : index
    %c1_61 = arith.constant 1 : index
    %c0_62 = arith.constant 0 : index
    %61 = vector.load %arg4[%c0_60, %c1_61, %c0_62] : memref<1x121x8xbf16, #tpu.memory_space<vmem>>, vector<1x85x8xbf16>
    %62 = vector.shape_cast %61 : vector<1x85x8xbf16> to vector<85x8xbf16>
    %c10 = arith.constant 10 : index
    %c0_63 = arith.constant 0 : index
    %c0_64 = arith.constant 0 : index
    %63 = vector.load %arg5[%c10, %c0_63, %c0_64] : memref<49x8x128xbf16, #tpu.memory_space<vmem>>, vector<1x8x128xbf16>
    %64 = vector.shape_cast %63 : vector<1x8x128xbf16> to vector<8x128xbf16>
    %cst_65 = arith.constant dense<0.000000e+00> : vector<85x128xf32>
    %65 = tpu.matmul %62, %64, %cst_65 {dimension_numbers = #tpu.dot_dimension_numbers<[1], [0], [0], [1], [0, 0, 1, 1], [], []>} : vector<85x8xbf16>, vector<8x128xbf16>, vector<85x128xf32> -> vector<85x128xf32>
    %66 = arith.addf %60, %65 : vector<85x128xf32>
    %c0_66 = arith.constant 0 : index
    %c2_67 = arith.constant 2 : index
    %c0_68 = arith.constant 0 : index
    %67 = vector.load %arg3[%c0_66, %c2_67, %c0_68] : memref<1x121x8xbf16, #tpu.memory_space<vmem>>, vector<1x85x8xbf16>
    %68 = vector.shape_cast %67 : vector<1x85x8xbf16> to vector<85x8xbf16>
    %c11 = arith.constant 11 : index
    %c0_69 = arith.constant 0 : index
    %c0_70 = arith.constant 0 : index
    %69 = vector.load %arg5[%c11, %c0_69, %c0_70] : memref<49x8x128xbf16, #tpu.memory_space<vmem>>, vector<1x8x128xbf16>
    %70 = vector.shape_cast %69 : vector<1x8x128xbf16> to vector<8x128xbf16>
    %cst_71 = arith.constant dense<0.000000e+00> : vector<85x128xf32>
    %71 = tpu.matmul %68, %70, %cst_71 {dimension_numbers = #tpu.dot_dimension_numbers<[1], [0], [0], [1], [0, 0, 1, 1], [], []>} : vector<85x8xbf16>, vector<8x128xbf16>, vector<85x128xf32> -> vector<85x128xf32>
    %72 = arith.addf %66, %71 : vector<85x128xf32>
    %c0_72 = arith.constant 0 : index
    %c2_73 = arith.constant 2 : index
    %c0_74 = arith.constant 0 : index
    %73 = vector.load %arg4[%c0_72, %c2_73, %c0_74] : memref<1x121x8xbf16, #tpu.memory_space<vmem>>, vector<1x85x8xbf16>
    %74 = vector.shape_cast %73 : vector<1x85x8xbf16> to vector<85x8xbf16>
    %c12 = arith.constant 12 : index
    %c0_75 = arith.constant 0 : index
    %c0_76 = arith.constant 0 : index
    %75 = vector.load %arg5[%c12, %c0_75, %c0_76] : memref<49x8x128xbf16, #tpu.memory_space<vmem>>, vector<1x8x128xbf16>
    %76 = vector.shape_cast %75 : vector<1x8x128xbf16> to vector<8x128xbf16>
    %cst_77 = arith.constant dense<0.000000e+00> : vector<85x128xf32>
    %77 = tpu.matmul %74, %76, %cst_77 {dimension_numbers = #tpu.dot_dimension_numbers<[1], [0], [0], [1], [0, 0, 1, 1], [], []>} : vector<85x8xbf16>, vector<8x128xbf16>, vector<85x128xf32> -> vector<85x128xf32>
    %78 = arith.addf %72, %77 : vector<85x128xf32>
    %c0_78 = arith.constant 0 : index
    %c3_79 = arith.constant 3 : index
    %c0_80 = arith.constant 0 : index
    %79 = vector.load %arg3[%c0_78, %c3_79, %c0_80] : memref<1x121x8xbf16, #tpu.memory_space<vmem>>, vector<1x85x8xbf16>
    %80 = vector.shape_cast %79 : vector<1x85x8xbf16> to vector<85x8xbf16>
    %c13 = arith.constant 13 : index
    %c0_81 = arith.constant 0 : index
    %c0_82 = arith.constant 0 : index
    %81 = vector.load %arg5[%c13, %c0_81, %c0_82] : memref<49x8x128xbf16, #tpu.memory_space<vmem>>, vector<1x8x128xbf16>
    %82 = vector.shape_cast %81 : vector<1x8x128xbf16> to vector<8x128xbf16>
    %cst_83 = arith.constant dense<0.000000e+00> : vector<85x128xf32>
    %83 = tpu.matmul %80, %82, %cst_83 {dimension_numbers = #tpu.dot_dimension_numbers<[1], [0], [0], [1], [0, 0, 1, 1], [], []>} : vector<85x8xbf16>, vector<8x128xbf16>, vector<85x128xf32> -> vector<85x128xf32>
    %84 = arith.addf %78, %83 : vector<85x128xf32>
    %c0_84 = arith.constant 0 : index
    %c11_85 = arith.constant 11 : index
    %c0_86 = arith.constant 0 : index
    %85 = vector.load %arg1[%c0_84, %c11_85, %c0_86] : memref<1x121x8xbf16, #tpu.memory_space<vmem>>, vector<1x85x8xbf16>
    %86 = vector.shape_cast %85 : vector<1x85x8xbf16> to vector<85x8xbf16>
    %c14 = arith.constant 14 : index
    %c0_87 = arith.constant 0 : index
    %c0_88 = arith.constant 0 : index
    %87 = vector.load %arg5[%c14, %c0_87, %c0_88] : memref<49x8x128xbf16, #tpu.memory_space<vmem>>, vector<1x8x128xbf16>
    %88 = vector.shape_cast %87 : vector<1x8x128xbf16> to vector<8x128xbf16>
    %cst_89 = arith.constant dense<0.000000e+00> : vector<85x128xf32>
    %89 = tpu.matmul %86, %88, %cst_89 {dimension_numbers = #tpu.dot_dimension_numbers<[1], [0], [0], [1], [0, 0, 1, 1], [], []>} : vector<85x8xbf16>, vector<8x128xbf16>, vector<85x128xf32> -> vector<85x128xf32>
    %90 = arith.addf %84, %89 : vector<85x128xf32>
    %c0_90 = arith.constant 0 : index
    %c11_91 = arith.constant 11 : index
    %c0_92 = arith.constant 0 : index
    %91 = vector.load %arg2[%c0_90, %c11_91, %c0_92] : memref<1x121x8xbf16, #tpu.memory_space<vmem>>, vector<1x85x8xbf16>
    %92 = vector.shape_cast %91 : vector<1x85x8xbf16> to vector<85x8xbf16>
    %c15 = arith.constant 15 : index
    %c0_93 = arith.constant 0 : index
    %c0_94 = arith.constant 0 : index
    %93 = vector.load %arg5[%c15, %c0_93, %c0_94] : memref<49x8x128xbf16, #tpu.memory_space<vmem>>, vector<1x8x128xbf16>
    %94 = vector.shape_cast %93 : vector<1x8x128xbf16> to vector<8x128xbf16>
    %cst_95 = arith.constant dense<0.000000e+00> : vector<85x128xf32>
    %95 = tpu.matmul %92, %94, %cst_95 {dimension_numbers = #tpu.dot_dimension_numbers<[1], [0], [0], [1], [0, 0, 1, 1], [], []>} : vector<85x8xbf16>, vector<8x128xbf16>, vector<85x128xf32> -> vector<85x128xf32>
    %96 = arith.addf %90, %95 : vector<85x128xf32>
    %c0_96 = arith.constant 0 : index
    %c12_97 = arith.constant 12 : index
    %c0_98 = arith.constant 0 : index
    %97 = vector.load %arg1[%c0_96, %c12_97, %c0_98] : memref<1x121x8xbf16, #tpu.memory_space<vmem>>, vector<1x85x8xbf16>
    %98 = vector.shape_cast %97 : vector<1x85x8xbf16> to vector<85x8xbf16>
    %c16 = arith.constant 16 : index
    %c0_99 = arith.constant 0 : index
    %c0_100 = arith.constant 0 : index
    %99 = vector.load %arg5[%c16, %c0_99, %c0_100] : memref<49x8x128xbf16, #tpu.memory_space<vmem>>, vector<1x8x128xbf16>
    %100 = vector.shape_cast %99 : vector<1x8x128xbf16> to vector<8x128xbf16>
    %cst_101 = arith.constant dense<0.000000e+00> : vector<85x128xf32>
    %101 = tpu.matmul %98, %100, %cst_101 {dimension_numbers = #tpu.dot_dimension_numbers<[1], [0], [0], [1], [0, 0, 1, 1], [], []>} : vector<85x8xbf16>, vector<8x128xbf16>, vector<85x128xf32> -> vector<85x128xf32>
    %102 = arith.addf %96, %101 : vector<85x128xf32>
    %c0_102 = arith.constant 0 : index
    %c12_103 = arith.constant 12 : index
    %c0_104 = arith.constant 0 : index
    %103 = vector.load %arg2[%c0_102, %c12_103, %c0_104] : memref<1x121x8xbf16, #tpu.memory_space<vmem>>, vector<1x85x8xbf16>
    %104 = vector.shape_cast %103 : vector<1x85x8xbf16> to vector<85x8xbf16>
    %c17 = arith.constant 17 : index
    %c0_105 = arith.constant 0 : index
    %c0_106 = arith.constant 0 : index
    %105 = vector.load %arg5[%c17, %c0_105, %c0_106] : memref<49x8x128xbf16, #tpu.memory_space<vmem>>, vector<1x8x128xbf16>
    %106 = vector.shape_cast %105 : vector<1x8x128xbf16> to vector<8x128xbf16>
    %cst_107 = arith.constant dense<0.000000e+00> : vector<85x128xf32>
    %107 = tpu.matmul %104, %106, %cst_107 {dimension_numbers = #tpu.dot_dimension_numbers<[1], [0], [0], [1], [0, 0, 1, 1], [], []>} : vector<85x8xbf16>, vector<8x128xbf16>, vector<85x128xf32> -> vector<85x128xf32>
    %108 = arith.addf %102, %107 : vector<85x128xf32>
    %c0_108 = arith.constant 0 : index
    %c13_109 = arith.constant 13 : index
    %c0_110 = arith.constant 0 : index
    %109 = vector.load %arg1[%c0_108, %c13_109, %c0_110] : memref<1x121x8xbf16, #tpu.memory_space<vmem>>, vector<1x85x8xbf16>
    %110 = vector.shape_cast %109 : vector<1x85x8xbf16> to vector<85x8xbf16>
    %c18 = arith.constant 18 : index
    %c0_111 = arith.constant 0 : index
    %c0_112 = arith.constant 0 : index
    %111 = vector.load %arg5[%c18, %c0_111, %c0_112] : memref<49x8x128xbf16, #tpu.memory_space<vmem>>, vector<1x8x128xbf16>
    %112 = vector.shape_cast %111 : vector<1x8x128xbf16> to vector<8x128xbf16>
    %cst_113 = arith.constant dense<0.000000e+00> : vector<85x128xf32>
    %113 = tpu.matmul %110, %112, %cst_113 {dimension_numbers = #tpu.dot_dimension_numbers<[1], [0], [0], [1], [0, 0, 1, 1], [], []>} : vector<85x8xbf16>, vector<8x128xbf16>, vector<85x128xf32> -> vector<85x128xf32>
    %114 = arith.addf %108, %113 : vector<85x128xf32>
    %c0_114 = arith.constant 0 : index
    %c13_115 = arith.constant 13 : index
    %c0_116 = arith.constant 0 : index
    %115 = vector.load %arg2[%c0_114, %c13_115, %c0_116] : memref<1x121x8xbf16, #tpu.memory_space<vmem>>, vector<1x85x8xbf16>
    %116 = vector.shape_cast %115 : vector<1x85x8xbf16> to vector<85x8xbf16>
    %c19 = arith.constant 19 : index
    %c0_117 = arith.constant 0 : index
    %c0_118 = arith.constant 0 : index
    %117 = vector.load %arg5[%c19, %c0_117, %c0_118] : memref<49x8x128xbf16, #tpu.memory_space<vmem>>, vector<1x8x128xbf16>
    %118 = vector.shape_cast %117 : vector<1x8x128xbf16> to vector<8x128xbf16>
    %cst_119 = arith.constant dense<0.000000e+00> : vector<85x128xf32>
    %119 = tpu.matmul %116, %118, %cst_119 {dimension_numbers = #tpu.dot_dimension_numbers<[1], [0], [0], [1], [0, 0, 1, 1], [], []>} : vector<85x8xbf16>, vector<8x128xbf16>, vector<85x128xf32> -> vector<85x128xf32>
    %120 = arith.addf %114, %119 : vector<85x128xf32>
    %c0_120 = arith.constant 0 : index
    %c14_121 = arith.constant 14 : index
    %c0_122 = arith.constant 0 : index
    %121 = vector.load %arg1[%c0_120, %c14_121, %c0_122] : memref<1x121x8xbf16, #tpu.memory_space<vmem>>, vector<1x85x8xbf16>
    %122 = vector.shape_cast %121 : vector<1x85x8xbf16> to vector<85x8xbf16>
    %c20 = arith.constant 20 : index
    %c0_123 = arith.constant 0 : index
    %c0_124 = arith.constant 0 : index
    %123 = vector.load %arg5[%c20, %c0_123, %c0_124] : memref<49x8x128xbf16, #tpu.memory_space<vmem>>, vector<1x8x128xbf16>
    %124 = vector.shape_cast %123 : vector<1x8x128xbf16> to vector<8x128xbf16>
    %cst_125 = arith.constant dense<0.000000e+00> : vector<85x128xf32>
    %125 = tpu.matmul %122, %124, %cst_125 {dimension_numbers = #tpu.dot_dimension_numbers<[1], [0], [0], [1], [0, 0, 1, 1], [], []>} : vector<85x8xbf16>, vector<8x128xbf16>, vector<85x128xf32> -> vector<85x128xf32>
    %126 = arith.addf %120, %125 : vector<85x128xf32>
    %c0_126 = arith.constant 0 : index
    %c11_127 = arith.constant 11 : index
    %c0_128 = arith.constant 0 : index
    %127 = vector.load %arg3[%c0_126, %c11_127, %c0_128] : memref<1x121x8xbf16, #tpu.memory_space<vmem>>, vector<1x85x8xbf16>
    %128 = vector.shape_cast %127 : vector<1x85x8xbf16> to vector<85x8xbf16>
    %c21 = arith.constant 21 : index
    %c0_129 = arith.constant 0 : index
    %c0_130 = arith.constant 0 : index
    %129 = vector.load %arg5[%c21, %c0_129, %c0_130] : memref<49x8x128xbf16, #tpu.memory_space<vmem>>, vector<1x8x128xbf16>
    %130 = vector.shape_cast %129 : vector<1x8x128xbf16> to vector<8x128xbf16>
    %cst_131 = arith.constant dense<0.000000e+00> : vector<85x128xf32>
    %131 = tpu.matmul %128, %130, %cst_131 {dimension_numbers = #tpu.dot_dimension_numbers<[1], [0], [0], [1], [0, 0, 1, 1], [], []>} : vector<85x8xbf16>, vector<8x128xbf16>, vector<85x128xf32> -> vector<85x128xf32>
    %132 = arith.addf %126, %131 : vector<85x128xf32>
    %c0_132 = arith.constant 0 : index
    %c11_133 = arith.constant 11 : index
    %c0_134 = arith.constant 0 : index
    %133 = vector.load %arg4[%c0_132, %c11_133, %c0_134] : memref<1x121x8xbf16, #tpu.memory_space<vmem>>, vector<1x85x8xbf16>
    %134 = vector.shape_cast %133 : vector<1x85x8xbf16> to vector<85x8xbf16>
    %c22 = arith.constant 22 : index
    %c0_135 = arith.constant 0 : index
    %c0_136 = arith.constant 0 : index
    %135 = vector.load %arg5[%c22, %c0_135, %c0_136] : memref<49x8x128xbf16, #tpu.memory_space<vmem>>, vector<1x8x128xbf16>
    %136 = vector.shape_cast %135 : vector<1x8x128xbf16> to vector<8x128xbf16>
    %cst_137 = arith.constant dense<0.000000e+00> : vector<85x128xf32>
    %137 = tpu.matmul %134, %136, %cst_137 {dimension_numbers = #tpu.dot_dimension_numbers<[1], [0], [0], [1], [0, 0, 1, 1], [], []>} : vector<85x8xbf16>, vector<8x128xbf16>, vector<85x128xf32> -> vector<85x128xf32>
    %138 = arith.addf %132, %137 : vector<85x128xf32>
    %c0_138 = arith.constant 0 : index
    %c12_139 = arith.constant 12 : index
    %c0_140 = arith.constant 0 : index
    %139 = vector.load %arg3[%c0_138, %c12_139, %c0_140] : memref<1x121x8xbf16, #tpu.memory_space<vmem>>, vector<1x85x8xbf16>
    %140 = vector.shape_cast %139 : vector<1x85x8xbf16> to vector<85x8xbf16>
    %c23 = arith.constant 23 : index
    %c0_141 = arith.constant 0 : index
    %c0_142 = arith.constant 0 : index
    %141 = vector.load %arg5[%c23, %c0_141, %c0_142] : memref<49x8x128xbf16, #tpu.memory_space<vmem>>, vector<1x8x128xbf16>
    %142 = vector.shape_cast %141 : vector<1x8x128xbf16> to vector<8x128xbf16>
    %cst_143 = arith.constant dense<0.000000e+00> : vector<85x128xf32>
    %143 = tpu.matmul %140, %142, %cst_143 {dimension_numbers = #tpu.dot_dimension_numbers<[1], [0], [0], [1], [0, 0, 1, 1], [], []>} : vector<85x8xbf16>, vector<8x128xbf16>, vector<85x128xf32> -> vector<85x128xf32>
    %144 = arith.addf %138, %143 : vector<85x128xf32>
    %c0_144 = arith.constant 0 : index
    %c12_145 = arith.constant 12 : index
    %c0_146 = arith.constant 0 : index
    %145 = vector.load %arg4[%c0_144, %c12_145, %c0_146] : memref<1x121x8xbf16, #tpu.memory_space<vmem>>, vector<1x85x8xbf16>
    %146 = vector.shape_cast %145 : vector<1x85x8xbf16> to vector<85x8xbf16>
    %c24 = arith.constant 24 : index
    %c0_147 = arith.constant 0 : index
    %c0_148 = arith.constant 0 : index
    %147 = vector.load %arg5[%c24, %c0_147, %c0_148] : memref<49x8x128xbf16, #tpu.memory_space<vmem>>, vector<1x8x128xbf16>
    %148 = vector.shape_cast %147 : vector<1x8x128xbf16> to vector<8x128xbf16>
    %cst_149 = arith.constant dense<0.000000e+00> : vector<85x128xf32>
    %149 = tpu.matmul %146, %148, %cst_149 {dimension_numbers = #tpu.dot_dimension_numbers<[1], [0], [0], [1], [0, 0, 1, 1], [], []>} : vector<85x8xbf16>, vector<8x128xbf16>, vector<85x128xf32> -> vector<85x128xf32>
    %150 = arith.addf %144, %149 : vector<85x128xf32>
    %c0_150 = arith.constant 0 : index
    %c13_151 = arith.constant 13 : index
    %c0_152 = arith.constant 0 : index
    %151 = vector.load %arg3[%c0_150, %c13_151, %c0_152] : memref<1x121x8xbf16, #tpu.memory_space<vmem>>, vector<1x85x8xbf16>
    %152 = vector.shape_cast %151 : vector<1x85x8xbf16> to vector<85x8xbf16>
    %c25 = arith.constant 25 : index
    %c0_153 = arith.constant 0 : index
    %c0_154 = arith.constant 0 : index
    %153 = vector.load %arg5[%c25, %c0_153, %c0_154] : memref<49x8x128xbf16, #tpu.memory_space<vmem>>, vector<1x8x128xbf16>
    %154 = vector.shape_cast %153 : vector<1x8x128xbf16> to vector<8x128xbf16>
    %cst_155 = arith.constant dense<0.000000e+00> : vector<85x128xf32>
    %155 = tpu.matmul %152, %154, %cst_155 {dimension_numbers = #tpu.dot_dimension_numbers<[1], [0], [0], [1], [0, 0, 1, 1], [], []>} : vector<85x8xbf16>, vector<8x128xbf16>, vector<85x128xf32> -> vector<85x128xf32>
    %156 = arith.addf %150, %155 : vector<85x128xf32>
    %c0_156 = arith.constant 0 : index
    %c13_157 = arith.constant 13 : index
    %c0_158 = arith.constant 0 : index
    %157 = vector.load %arg4[%c0_156, %c13_157, %c0_158] : memref<1x121x8xbf16, #tpu.memory_space<vmem>>, vector<1x85x8xbf16>
    %158 = vector.shape_cast %157 : vector<1x85x8xbf16> to vector<85x8xbf16>
    %c26 = arith.constant 26 : index
    %c0_159 = arith.constant 0 : index
    %c0_160 = arith.constant 0 : index
    %159 = vector.load %arg5[%c26, %c0_159, %c0_160] : memref<49x8x128xbf16, #tpu.memory_space<vmem>>, vector<1x8x128xbf16>
    %160 = vector.shape_cast %159 : vector<1x8x128xbf16> to vector<8x128xbf16>
    %cst_161 = arith.constant dense<0.000000e+00> : vector<85x128xf32>
    %161 = tpu.matmul %158, %160, %cst_161 {dimension_numbers = #tpu.dot_dimension_numbers<[1], [0], [0], [1], [0, 0, 1, 1], [], []>} : vector<85x8xbf16>, vector<8x128xbf16>, vector<85x128xf32> -> vector<85x128xf32>
    %162 = arith.addf %156, %161 : vector<85x128xf32>
    %c0_162 = arith.constant 0 : index
    %c14_163 = arith.constant 14 : index
    %c0_164 = arith.constant 0 : index
    %163 = vector.load %arg3[%c0_162, %c14_163, %c0_164] : memref<1x121x8xbf16, #tpu.memory_space<vmem>>, vector<1x85x8xbf16>
    %164 = vector.shape_cast %163 : vector<1x85x8xbf16> to vector<85x8xbf16>
    %c27 = arith.constant 27 : index
    %c0_165 = arith.constant 0 : index
    %c0_166 = arith.constant 0 : index
    %165 = vector.load %arg5[%c27, %c0_165, %c0_166] : memref<49x8x128xbf16, #tpu.memory_space<vmem>>, vector<1x8x128xbf16>
    %166 = vector.shape_cast %165 : vector<1x8x128xbf16> to vector<8x128xbf16>
    %cst_167 = arith.constant dense<0.000000e+00> : vector<85x128xf32>
    %167 = tpu.matmul %164, %166, %cst_167 {dimension_numbers = #tpu.dot_dimension_numbers<[1], [0], [0], [1], [0, 0, 1, 1], [], []>} : vector<85x8xbf16>, vector<8x128xbf16>, vector<85x128xf32> -> vector<85x128xf32>
    %168 = arith.addf %162, %167 : vector<85x128xf32>
    %c0_168 = arith.constant 0 : index
    %c22_169 = arith.constant 22 : index
    %c0_170 = arith.constant 0 : index
    %169 = vector.load %arg1[%c0_168, %c22_169, %c0_170] : memref<1x121x8xbf16, #tpu.memory_space<vmem>>, vector<1x85x8xbf16>
    %170 = vector.shape_cast %169 : vector<1x85x8xbf16> to vector<85x8xbf16>
    %c28 = arith.constant 28 : index
    %c0_171 = arith.constant 0 : index
    %c0_172 = arith.constant 0 : index
    %171 = vector.load %arg5[%c28, %c0_171, %c0_172] : memref<49x8x128xbf16, #tpu.memory_space<vmem>>, vector<1x8x128xbf16>
    %172 = vector.shape_cast %171 : vector<1x8x128xbf16> to vector<8x128xbf16>
    %cst_173 = arith.constant dense<0.000000e+00> : vector<85x128xf32>
    %173 = tpu.matmul %170, %172, %cst_173 {dimension_numbers = #tpu.dot_dimension_numbers<[1], [0], [0], [1], [0, 0, 1, 1], [], []>} : vector<85x8xbf16>, vector<8x128xbf16>, vector<85x128xf32> -> vector<85x128xf32>
    %174 = arith.addf %168, %173 : vector<85x128xf32>
    %c0_174 = arith.constant 0 : index
    %c22_175 = arith.constant 22 : index
    %c0_176 = arith.constant 0 : index
    %175 = vector.load %arg2[%c0_174, %c22_175, %c0_176] : memref<1x121x8xbf16, #tpu.memory_space<vmem>>, vector<1x85x8xbf16>
    %176 = vector.shape_cast %175 : vector<1x85x8xbf16> to vector<85x8xbf16>
    %c29 = arith.constant 29 : index
    %c0_177 = arith.constant 0 : index
    %c0_178 = arith.constant 0 : index
    %177 = vector.load %arg5[%c29, %c0_177, %c0_178] : memref<49x8x128xbf16, #tpu.memory_space<vmem>>, vector<1x8x128xbf16>
    %178 = vector.shape_cast %177 : vector<1x8x128xbf16> to vector<8x128xbf16>
    %cst_179 = arith.constant dense<0.000000e+00> : vector<85x128xf32>
    %179 = tpu.matmul %176, %178, %cst_179 {dimension_numbers = #tpu.dot_dimension_numbers<[1], [0], [0], [1], [0, 0, 1, 1], [], []>} : vector<85x8xbf16>, vector<8x128xbf16>, vector<85x128xf32> -> vector<85x128xf32>
    %180 = arith.addf %174, %179 : vector<85x128xf32>
    %c0_180 = arith.constant 0 : index
    %c23_181 = arith.constant 23 : index
    %c0_182 = arith.constant 0 : index
    %181 = vector.load %arg1[%c0_180, %c23_181, %c0_182] : memref<1x121x8xbf16, #tpu.memory_space<vmem>>, vector<1x85x8xbf16>
    %182 = vector.shape_cast %181 : vector<1x85x8xbf16> to vector<85x8xbf16>
    %c30 = arith.constant 30 : index
    %c0_183 = arith.constant 0 : index
    %c0_184 = arith.constant 0 : index
    %183 = vector.load %arg5[%c30, %c0_183, %c0_184] : memref<49x8x128xbf16, #tpu.memory_space<vmem>>, vector<1x8x128xbf16>
    %184 = vector.shape_cast %183 : vector<1x8x128xbf16> to vector<8x128xbf16>
    %cst_185 = arith.constant dense<0.000000e+00> : vector<85x128xf32>
    %185 = tpu.matmul %182, %184, %cst_185 {dimension_numbers = #tpu.dot_dimension_numbers<[1], [0], [0], [1], [0, 0, 1, 1], [], []>} : vector<85x8xbf16>, vector<8x128xbf16>, vector<85x128xf32> -> vector<85x128xf32>
    %186 = arith.addf %180, %185 : vector<85x128xf32>
    %c0_186 = arith.constant 0 : index
    %c23_187 = arith.constant 23 : index
    %c0_188 = arith.constant 0 : index
    %187 = vector.load %arg2[%c0_186, %c23_187, %c0_188] : memref<1x121x8xbf16, #tpu.memory_space<vmem>>, vector<1x85x8xbf16>
    %188 = vector.shape_cast %187 : vector<1x85x8xbf16> to vector<85x8xbf16>
    %c31 = arith.constant 31 : index
    %c0_189 = arith.constant 0 : index
    %c0_190 = arith.constant 0 : index
    %189 = vector.load %arg5[%c31, %c0_189, %c0_190] : memref<49x8x128xbf16, #tpu.memory_space<vmem>>, vector<1x8x128xbf16>
    %190 = vector.shape_cast %189 : vector<1x8x128xbf16> to vector<8x128xbf16>
    %cst_191 = arith.constant dense<0.000000e+00> : vector<85x128xf32>
    %191 = tpu.matmul %188, %190, %cst_191 {dimension_numbers = #tpu.dot_dimension_numbers<[1], [0], [0], [1], [0, 0, 1, 1], [], []>} : vector<85x8xbf16>, vector<8x128xbf16>, vector<85x128xf32> -> vector<85x128xf32>
    %192 = arith.addf %186, %191 : vector<85x128xf32>
    %c0_192 = arith.constant 0 : index
    %c24_193 = arith.constant 24 : index
    %c0_194 = arith.constant 0 : index
    %193 = vector.load %arg1[%c0_192, %c24_193, %c0_194] : memref<1x121x8xbf16, #tpu.memory_space<vmem>>, vector<1x85x8xbf16>
    %194 = vector.shape_cast %193 : vector<1x85x8xbf16> to vector<85x8xbf16>
    %c32 = arith.constant 32 : index
    %c0_195 = arith.constant 0 : index
    %c0_196 = arith.constant 0 : index
    %195 = vector.load %arg5[%c32, %c0_195, %c0_196] : memref<49x8x128xbf16, #tpu.memory_space<vmem>>, vector<1x8x128xbf16>
    %196 = vector.shape_cast %195 : vector<1x8x128xbf16> to vector<8x128xbf16>
    %cst_197 = arith.constant dense<0.000000e+00> : vector<85x128xf32>
    %197 = tpu.matmul %194, %196, %cst_197 {dimension_numbers = #tpu.dot_dimension_numbers<[1], [0], [0], [1], [0, 0, 1, 1], [], []>} : vector<85x8xbf16>, vector<8x128xbf16>, vector<85x128xf32> -> vector<85x128xf32>
    %198 = arith.addf %192, %197 : vector<85x128xf32>
    %c0_198 = arith.constant 0 : index
    %c24_199 = arith.constant 24 : index
    %c0_200 = arith.constant 0 : index
    %199 = vector.load %arg2[%c0_198, %c24_199, %c0_200] : memref<1x121x8xbf16, #tpu.memory_space<vmem>>, vector<1x85x8xbf16>
    %200 = vector.shape_cast %199 : vector<1x85x8xbf16> to vector<85x8xbf16>
    %c33 = arith.constant 33 : index
    %c0_201 = arith.constant 0 : index
    %c0_202 = arith.constant 0 : index
    %201 = vector.load %arg5[%c33, %c0_201, %c0_202] : memref<49x8x128xbf16, #tpu.memory_space<vmem>>, vector<1x8x128xbf16>
    %202 = vector.shape_cast %201 : vector<1x8x128xbf16> to vector<8x128xbf16>
    %cst_203 = arith.constant dense<0.000000e+00> : vector<85x128xf32>
    %203 = tpu.matmul %200, %202, %cst_203 {dimension_numbers = #tpu.dot_dimension_numbers<[1], [0], [0], [1], [0, 0, 1, 1], [], []>} : vector<85x8xbf16>, vector<8x128xbf16>, vector<85x128xf32> -> vector<85x128xf32>
    %204 = arith.addf %198, %203 : vector<85x128xf32>
    %c0_204 = arith.constant 0 : index
    %c25_205 = arith.constant 25 : index
    %c0_206 = arith.constant 0 : index
    %205 = vector.load %arg1[%c0_204, %c25_205, %c0_206] : memref<1x121x8xbf16, #tpu.memory_space<vmem>>, vector<1x85x8xbf16>
    %206 = vector.shape_cast %205 : vector<1x85x8xbf16> to vector<85x8xbf16>
    %c34 = arith.constant 34 : index
    %c0_207 = arith.constant 0 : index
    %c0_208 = arith.constant 0 : index
    %207 = vector.load %arg5[%c34, %c0_207, %c0_208] : memref<49x8x128xbf16, #tpu.memory_space<vmem>>, vector<1x8x128xbf16>
    %208 = vector.shape_cast %207 : vector<1x8x128xbf16> to vector<8x128xbf16>
    %cst_209 = arith.constant dense<0.000000e+00> : vector<85x128xf32>
    %209 = tpu.matmul %206, %208, %cst_209 {dimension_numbers = #tpu.dot_dimension_numbers<[1], [0], [0], [1], [0, 0, 1, 1], [], []>} : vector<85x8xbf16>, vector<8x128xbf16>, vector<85x128xf32> -> vector<85x128xf32>
    %210 = arith.addf %204, %209 : vector<85x128xf32>
    %c0_210 = arith.constant 0 : index
    %c22_211 = arith.constant 22 : index
    %c0_212 = arith.constant 0 : index
    %211 = vector.load %arg3[%c0_210, %c22_211, %c0_212] : memref<1x121x8xbf16, #tpu.memory_space<vmem>>, vector<1x85x8xbf16>
    %212 = vector.shape_cast %211 : vector<1x85x8xbf16> to vector<85x8xbf16>
    %c35 = arith.constant 35 : index
    %c0_213 = arith.constant 0 : index
    %c0_214 = arith.constant 0 : index
    %213 = vector.load %arg5[%c35, %c0_213, %c0_214] : memref<49x8x128xbf16, #tpu.memory_space<vmem>>, vector<1x8x128xbf16>
    %214 = vector.shape_cast %213 : vector<1x8x128xbf16> to vector<8x128xbf16>
    %cst_215 = arith.constant dense<0.000000e+00> : vector<85x128xf32>
    %215 = tpu.matmul %212, %214, %cst_215 {dimension_numbers = #tpu.dot_dimension_numbers<[1], [0], [0], [1], [0, 0, 1, 1], [], []>} : vector<85x8xbf16>, vector<8x128xbf16>, vector<85x128xf32> -> vector<85x128xf32>
    %216 = arith.addf %210, %215 : vector<85x128xf32>
    %c0_216 = arith.constant 0 : index
    %c22_217 = arith.constant 22 : index
    %c0_218 = arith.constant 0 : index
    %217 = vector.load %arg4[%c0_216, %c22_217, %c0_218] : memref<1x121x8xbf16, #tpu.memory_space<vmem>>, vector<1x85x8xbf16>
    %218 = vector.shape_cast %217 : vector<1x85x8xbf16> to vector<85x8xbf16>
    %c36 = arith.constant 36 : index
    %c0_219 = arith.constant 0 : index
    %c0_220 = arith.constant 0 : index
    %219 = vector.load %arg5[%c36, %c0_219, %c0_220] : memref<49x8x128xbf16, #tpu.memory_space<vmem>>, vector<1x8x128xbf16>
    %220 = vector.shape_cast %219 : vector<1x8x128xbf16> to vector<8x128xbf16>
    %cst_221 = arith.constant dense<0.000000e+00> : vector<85x128xf32>
    %221 = tpu.matmul %218, %220, %cst_221 {dimension_numbers = #tpu.dot_dimension_numbers<[1], [0], [0], [1], [0, 0, 1, 1], [], []>} : vector<85x8xbf16>, vector<8x128xbf16>, vector<85x128xf32> -> vector<85x128xf32>
    %222 = arith.addf %216, %221 : vector<85x128xf32>
    %c0_222 = arith.constant 0 : index
    %c23_223 = arith.constant 23 : index
    %c0_224 = arith.constant 0 : index
    %223 = vector.load %arg3[%c0_222, %c23_223, %c0_224] : memref<1x121x8xbf16, #tpu.memory_space<vmem>>, vector<1x85x8xbf16>
    %224 = vector.shape_cast %223 : vector<1x85x8xbf16> to vector<85x8xbf16>
    %c37 = arith.constant 37 : index
    %c0_225 = arith.constant 0 : index
    %c0_226 = arith.constant 0 : index
    %225 = vector.load %arg5[%c37, %c0_225, %c0_226] : memref<49x8x128xbf16, #tpu.memory_space<vmem>>, vector<1x8x128xbf16>
    %226 = vector.shape_cast %225 : vector<1x8x128xbf16> to vector<8x128xbf16>
    %cst_227 = arith.constant dense<0.000000e+00> : vector<85x128xf32>
    %227 = tpu.matmul %224, %226, %cst_227 {dimension_numbers = #tpu.dot_dimension_numbers<[1], [0], [0], [1], [0, 0, 1, 1], [], []>} : vector<85x8xbf16>, vector<8x128xbf16>, vector<85x128xf32> -> vector<85x128xf32>
    %228 = arith.addf %222, %227 : vector<85x128xf32>
    %c0_228 = arith.constant 0 : index
    %c23_229 = arith.constant 23 : index
    %c0_230 = arith.constant 0 : index
    %229 = vector.load %arg4[%c0_228, %c23_229, %c0_230] : memref<1x121x8xbf16, #tpu.memory_space<vmem>>, vector<1x85x8xbf16>
    %230 = vector.shape_cast %229 : vector<1x85x8xbf16> to vector<85x8xbf16>
    %c38 = arith.constant 38 : index
    %c0_231 = arith.constant 0 : index
    %c0_232 = arith.constant 0 : index
    %231 = vector.load %arg5[%c38, %c0_231, %c0_232] : memref<49x8x128xbf16, #tpu.memory_space<vmem>>, vector<1x8x128xbf16>
    %232 = vector.shape_cast %231 : vector<1x8x128xbf16> to vector<8x128xbf16>
    %cst_233 = arith.constant dense<0.000000e+00> : vector<85x128xf32>
    %233 = tpu.matmul %230, %232, %cst_233 {dimension_numbers = #tpu.dot_dimension_numbers<[1], [0], [0], [1], [0, 0, 1, 1], [], []>} : vector<85x8xbf16>, vector<8x128xbf16>, vector<85x128xf32> -> vector<85x128xf32>
    %234 = arith.addf %228, %233 : vector<85x128xf32>
    %c0_234 = arith.constant 0 : index
    %c24_235 = arith.constant 24 : index
    %c0_236 = arith.constant 0 : index
    %235 = vector.load %arg3[%c0_234, %c24_235, %c0_236] : memref<1x121x8xbf16, #tpu.memory_space<vmem>>, vector<1x85x8xbf16>
    %236 = vector.shape_cast %235 : vector<1x85x8xbf16> to vector<85x8xbf16>
    %c39 = arith.constant 39 : index
    %c0_237 = arith.constant 0 : index
    %c0_238 = arith.constant 0 : index
    %237 = vector.load %arg5[%c39, %c0_237, %c0_238] : memref<49x8x128xbf16, #tpu.memory_space<vmem>>, vector<1x8x128xbf16>
    %238 = vector.shape_cast %237 : vector<1x8x128xbf16> to vector<8x128xbf16>
    %cst_239 = arith.constant dense<0.000000e+00> : vector<85x128xf32>
    %239 = tpu.matmul %236, %238, %cst_239 {dimension_numbers = #tpu.dot_dimension_numbers<[1], [0], [0], [1], [0, 0, 1, 1], [], []>} : vector<85x8xbf16>, vector<8x128xbf16>, vector<85x128xf32> -> vector<85x128xf32>
    %240 = arith.addf %234, %239 : vector<85x128xf32>
    %c0_240 = arith.constant 0 : index
    %c24_241 = arith.constant 24 : index
    %c0_242 = arith.constant 0 : index
    %241 = vector.load %arg4[%c0_240, %c24_241, %c0_242] : memref<1x121x8xbf16, #tpu.memory_space<vmem>>, vector<1x85x8xbf16>
    %242 = vector.shape_cast %241 : vector<1x85x8xbf16> to vector<85x8xbf16>
    %c40 = arith.constant 40 : index
    %c0_243 = arith.constant 0 : index
    %c0_244 = arith.constant 0 : index
    %243 = vector.load %arg5[%c40, %c0_243, %c0_244] : memref<49x8x128xbf16, #tpu.memory_space<vmem>>, vector<1x8x128xbf16>
    %244 = vector.shape_cast %243 : vector<1x8x128xbf16> to vector<8x128xbf16>
    %cst_245 = arith.constant dense<0.000000e+00> : vector<85x128xf32>
    %245 = tpu.matmul %242, %244, %cst_245 {dimension_numbers = #tpu.dot_dimension_numbers<[1], [0], [0], [1], [0, 0, 1, 1], [], []>} : vector<85x8xbf16>, vector<8x128xbf16>, vector<85x128xf32> -> vector<85x128xf32>
    %246 = arith.addf %240, %245 : vector<85x128xf32>
    %c0_246 = arith.constant 0 : index
    %c25_247 = arith.constant 25 : index
    %c0_248 = arith.constant 0 : index
    %247 = vector.load %arg3[%c0_246, %c25_247, %c0_248] : memref<1x121x8xbf16, #tpu.memory_space<vmem>>, vector<1x85x8xbf16>
    %248 = vector.shape_cast %247 : vector<1x85x8xbf16> to vector<85x8xbf16>
    %c41 = arith.constant 41 : index
    %c0_249 = arith.constant 0 : index
    %c0_250 = arith.constant 0 : index
    %249 = vector.load %arg5[%c41, %c0_249, %c0_250] : memref<49x8x128xbf16, #tpu.memory_space<vmem>>, vector<1x8x128xbf16>
    %250 = vector.shape_cast %249 : vector<1x8x128xbf16> to vector<8x128xbf16>
    %cst_251 = arith.constant dense<0.000000e+00> : vector<85x128xf32>
    %251 = tpu.matmul %248, %250, %cst_251 {dimension_numbers = #tpu.dot_dimension_numbers<[1], [0], [0], [1], [0, 0, 1, 1], [], []>} : vector<85x8xbf16>, vector<8x128xbf16>, vector<85x128xf32> -> vector<85x128xf32>
    %252 = arith.addf %246, %251 : vector<85x128xf32>
    %c0_252 = arith.constant 0 : index
    %c33_253 = arith.constant 33 : index
    %c0_254 = arith.constant 0 : index
    %253 = vector.load %arg1[%c0_252, %c33_253, %c0_254] : memref<1x121x8xbf16, #tpu.memory_space<vmem>>, vector<1x85x8xbf16>
    %254 = vector.shape_cast %253 : vector<1x85x8xbf16> to vector<85x8xbf16>
    %c42 = arith.constant 42 : index
    %c0_255 = arith.constant 0 : index
    %c0_256 = arith.constant 0 : index
    %255 = vector.load %arg5[%c42, %c0_255, %c0_256] : memref<49x8x128xbf16, #tpu.memory_space<vmem>>, vector<1x8x128xbf16>
    %256 = vector.shape_cast %255 : vector<1x8x128xbf16> to vector<8x128xbf16>
    %cst_257 = arith.constant dense<0.000000e+00> : vector<85x128xf32>
    %257 = tpu.matmul %254, %256, %cst_257 {dimension_numbers = #tpu.dot_dimension_numbers<[1], [0], [0], [1], [0, 0, 1, 1], [], []>} : vector<85x8xbf16>, vector<8x128xbf16>, vector<85x128xf32> -> vector<85x128xf32>
    %258 = arith.addf %252, %257 : vector<85x128xf32>
    %c0_258 = arith.constant 0 : index
    %c33_259 = arith.constant 33 : index
    %c0_260 = arith.constant 0 : index
    %259 = vector.load %arg2[%c0_258, %c33_259, %c0_260] : memref<1x121x8xbf16, #tpu.memory_space<vmem>>, vector<1x85x8xbf16>
    %260 = vector.shape_cast %259 : vector<1x85x8xbf16> to vector<85x8xbf16>
    %c43 = arith.constant 43 : index
    %c0_261 = arith.constant 0 : index
    %c0_262 = arith.constant 0 : index
    %261 = vector.load %arg5[%c43, %c0_261, %c0_262] : memref<49x8x128xbf16, #tpu.memory_space<vmem>>, vector<1x8x128xbf16>
    %262 = vector.shape_cast %261 : vector<1x8x128xbf16> to vector<8x128xbf16>
    %cst_263 = arith.constant dense<0.000000e+00> : vector<85x128xf32>
    %263 = tpu.matmul %260, %262, %cst_263 {dimension_numbers = #tpu.dot_dimension_numbers<[1], [0], [0], [1], [0, 0, 1, 1], [], []>} : vector<85x8xbf16>, vector<8x128xbf16>, vector<85x128xf32> -> vector<85x128xf32>
    %264 = arith.addf %258, %263 : vector<85x128xf32>
    %c0_264 = arith.constant 0 : index
    %c34_265 = arith.constant 34 : index
    %c0_266 = arith.constant 0 : index
    %265 = vector.load %arg1[%c0_264, %c34_265, %c0_266] : memref<1x121x8xbf16, #tpu.memory_space<vmem>>, vector<1x85x8xbf16>
    %266 = vector.shape_cast %265 : vector<1x85x8xbf16> to vector<85x8xbf16>
    %c44 = arith.constant 44 : index
    %c0_267 = arith.constant 0 : index
    %c0_268 = arith.constant 0 : index
    %267 = vector.load %arg5[%c44, %c0_267, %c0_268] : memref<49x8x128xbf16, #tpu.memory_space<vmem>>, vector<1x8x128xbf16>
    %268 = vector.shape_cast %267 : vector<1x8x128xbf16> to vector<8x128xbf16>
    %cst_269 = arith.constant dense<0.000000e+00> : vector<85x128xf32>
    %269 = tpu.matmul %266, %268, %cst_269 {dimension_numbers = #tpu.dot_dimension_numbers<[1], [0], [0], [1], [0, 0, 1, 1], [], []>} : vector<85x8xbf16>, vector<8x128xbf16>, vector<85x128xf32> -> vector<85x128xf32>
    %270 = arith.addf %264, %269 : vector<85x128xf32>
    %c0_270 = arith.constant 0 : index
    %c34_271 = arith.constant 34 : index
    %c0_272 = arith.constant 0 : index
    %271 = vector.load %arg2[%c0_270, %c34_271, %c0_272] : memref<1x121x8xbf16, #tpu.memory_space<vmem>>, vector<1x85x8xbf16>
    %272 = vector.shape_cast %271 : vector<1x85x8xbf16> to vector<85x8xbf16>
    %c45 = arith.constant 45 : index
    %c0_273 = arith.constant 0 : index
    %c0_274 = arith.constant 0 : index
    %273 = vector.load %arg5[%c45, %c0_273, %c0_274] : memref<49x8x128xbf16, #tpu.memory_space<vmem>>, vector<1x8x128xbf16>
    %274 = vector.shape_cast %273 : vector<1x8x128xbf16> to vector<8x128xbf16>
    %cst_275 = arith.constant dense<0.000000e+00> : vector<85x128xf32>
    %275 = tpu.matmul %272, %274, %cst_275 {dimension_numbers = #tpu.dot_dimension_numbers<[1], [0], [0], [1], [0, 0, 1, 1], [], []>} : vector<85x8xbf16>, vector<8x128xbf16>, vector<85x128xf32> -> vector<85x128xf32>
    %276 = arith.addf %270, %275 : vector<85x128xf32>
    %c0_276 = arith.constant 0 : index
    %c35_277 = arith.constant 35 : index
    %c0_278 = arith.constant 0 : index
    %277 = vector.load %arg1[%c0_276, %c35_277, %c0_278] : memref<1x121x8xbf16, #tpu.memory_space<vmem>>, vector<1x85x8xbf16>
    %278 = vector.shape_cast %277 : vector<1x85x8xbf16> to vector<85x8xbf16>
    %c46 = arith.constant 46 : index
    %c0_279 = arith.constant 0 : index
    %c0_280 = arith.constant 0 : index
    %279 = vector.load %arg5[%c46, %c0_279, %c0_280] : memref<49x8x128xbf16, #tpu.memory_space<vmem>>, vector<1x8x128xbf16>
    %280 = vector.shape_cast %279 : vector<1x8x128xbf16> to vector<8x128xbf16>
    %cst_281 = arith.constant dense<0.000000e+00> : vector<85x128xf32>
    %281 = tpu.matmul %278, %280, %cst_281 {dimension_numbers = #tpu.dot_dimension_numbers<[1], [0], [0], [1], [0, 0, 1, 1], [], []>} : vector<85x8xbf16>, vector<8x128xbf16>, vector<85x128xf32> -> vector<85x128xf32>
    %282 = arith.addf %276, %281 : vector<85x128xf32>
    %c0_282 = arith.constant 0 : index
    %c35_283 = arith.constant 35 : index
    %c0_284 = arith.constant 0 : index
    %283 = vector.load %arg2[%c0_282, %c35_283, %c0_284] : memref<1x121x8xbf16, #tpu.memory_space<vmem>>, vector<1x85x8xbf16>
    %284 = vector.shape_cast %283 : vector<1x85x8xbf16> to vector<85x8xbf16>
    %c47 = arith.constant 47 : index
    %c0_285 = arith.constant 0 : index
    %c0_286 = arith.constant 0 : index
    %285 = vector.load %arg5[%c47, %c0_285, %c0_286] : memref<49x8x128xbf16, #tpu.memory_space<vmem>>, vector<1x8x128xbf16>
    %286 = vector.shape_cast %285 : vector<1x8x128xbf16> to vector<8x128xbf16>
    %cst_287 = arith.constant dense<0.000000e+00> : vector<85x128xf32>
    %287 = tpu.matmul %284, %286, %cst_287 {dimension_numbers = #tpu.dot_dimension_numbers<[1], [0], [0], [1], [0, 0, 1, 1], [], []>} : vector<85x8xbf16>, vector<8x128xbf16>, vector<85x128xf32> -> vector<85x128xf32>
    %288 = arith.addf %282, %287 : vector<85x128xf32>
    %c0_288 = arith.constant 0 : index
    %c36_289 = arith.constant 36 : index
    %c0_290 = arith.constant 0 : index
    %289 = vector.load %arg1[%c0_288, %c36_289, %c0_290] : memref<1x121x8xbf16, #tpu.memory_space<vmem>>, vector<1x85x8xbf16>
    %290 = vector.shape_cast %289 : vector<1x85x8xbf16> to vector<85x8xbf16>
    %c48 = arith.constant 48 : index
    %c0_291 = arith.constant 0 : index
    %c0_292 = arith.constant 0 : index
    %291 = vector.load %arg5[%c48, %c0_291, %c0_292] : memref<49x8x128xbf16, #tpu.memory_space<vmem>>, vector<1x8x128xbf16>
    %292 = vector.shape_cast %291 : vector<1x8x128xbf16> to vector<8x128xbf16>
    %cst_293 = arith.constant dense<0.000000e+00> : vector<85x128xf32>
    %293 = tpu.matmul %290, %292, %cst_293 {dimension_numbers = #tpu.dot_dimension_numbers<[1], [0], [0], [1], [0, 0, 1, 1], [], []>} : vector<85x8xbf16>, vector<8x128xbf16>, vector<85x128xf32> -> vector<85x128xf32>
    %294 = arith.addf %288, %293 : vector<85x128xf32>
    %c0_294 = arith.constant 0 : index
    %c0_295 = arith.constant 0 : index
    %295 = vector.load %arg6[%c0_294, %c0_295] : memref<1x128xf32, #tpu.memory_space<vmem>>, vector<1x128xf32>
    %296 = vector.broadcast %295 : vector<1x128xf32> to vector<85x128xf32>
    %297 = arith.mulf %294, %296 : vector<85x128xf32>
    %c0_296 = arith.constant 0 : index
    %c0_297 = arith.constant 0 : index
    %298 = vector.load %arg7[%c0_296, %c0_297] : memref<1x128xf32, #tpu.memory_space<vmem>>, vector<1x128xf32>
    %299 = vector.broadcast %298 : vector<1x128xf32> to vector<85x128xf32>
    %300 = arith.addf %297, %299 : vector<85x128xf32>
    %cst_298 = arith.constant 0.000000e+00 : f32
    %301 = vector.broadcast %cst_298 : f32 to vector<85x128xf32>
    %302 = arith.maximumf %300, %301 : vector<85x128xf32>
    %cst_299 = arith.constant 0.000000e+00 : f32
    %303 = vector.broadcast %cst_299 : f32 to vector<100x128xf32>
    %c0_300 = arith.constant 0 : index
    %c0_301 = arith.constant 0 : index
    %304 = vector.load %arg15[%c0_300, %c0_301] : memref<100x128xf32, #tpu.memory_space<vmem>>, vector<100x128xf32>
    tpu.vector_store %arg15[%c0_300, %c0_301], %303 {strides = array<i32>} : memref<100x128xf32, #tpu.memory_space<vmem>>, vector<100x128xf32>,
    %305 = vector.extract_strided_slice %302 {offsets = [0, 0], sizes = [8, 128], strides = [1, 1]} : vector<85x128xf32> to vector<8x128xf32>
    %c11_302 = arith.constant 11 : index
    %c0_303 = arith.constant 0 : index
    %306 = vector.load %arg15[%c11_302, %c0_303] : memref<100x128xf32, #tpu.memory_space<vmem>>, vector<8x128xf32>
    tpu.vector_store %arg15[%c11_302, %c0_303], %305 {strides = array<i32>} : memref<100x128xf32, #tpu.memory_space<vmem>>, vector<8x128xf32>,
    %307 = vector.extract_strided_slice %302 {offsets = [11, 0], sizes = [8, 128], strides = [1, 1]} : vector<85x128xf32> to vector<8x128xf32>
    %c21_304 = arith.constant 21 : index
    %c0_305 = arith.constant 0 : index
    %308 = vector.load %arg15[%c21_304, %c0_305] : memref<100x128xf32, #tpu.memory_space<vmem>>, vector<8x128xf32>
    tpu.vector_store %arg15[%c21_304, %c0_305], %307 {strides = array<i32>} : memref<100x128xf32, #tpu.memory_space<vmem>>, vector<8x128xf32>,
    %309 = vector.extract_strided_slice %302 {offsets = [22, 0], sizes = [8, 128], strides = [1, 1]} : vector<85x128xf32> to vector<8x128xf32>
    %c31_306 = arith.constant 31 : index
    %c0_307 = arith.constant 0 : index
    %310 = vector.load %arg15[%c31_306, %c0_307] : memref<100x128xf32, #tpu.memory_space<vmem>>, vector<8x128xf32>
    tpu.vector_store %arg15[%c31_306, %c0_307], %309 {strides = array<i32>} : memref<100x128xf32, #tpu.memory_space<vmem>>, vector<8x128xf32>,
    %311 = vector.extract_strided_slice %302 {offsets = [33, 0], sizes = [8, 128], strides = [1, 1]} : vector<85x128xf32> to vector<8x128xf32>
    %c41_308 = arith.constant 41 : index
    %c0_309 = arith.constant 0 : index
    %312 = vector.load %arg15[%c41_308, %c0_309] : memref<100x128xf32, #tpu.memory_space<vmem>>, vector<8x128xf32>
    tpu.vector_store %arg15[%c41_308, %c0_309], %311 {strides = array<i32>} : memref<100x128xf32, #tpu.memory_space<vmem>>, vector<8x128xf32>,
    %313 = vector.extract_strided_slice %302 {offsets = [44, 0], sizes = [8, 128], strides = [1, 1]} : vector<85x128xf32> to vector<8x128xf32>
    %c51 = arith.constant 51 : index
    %c0_310 = arith.constant 0 : index
    %314 = vector.load %arg15[%c51, %c0_310] : memref<100x128xf32, #tpu.memory_space<vmem>>, vector<8x128xf32>
    tpu.vector_store %arg15[%c51, %c0_310], %313 {strides = array<i32>} : memref<100x128xf32, #tpu.memory_space<vmem>>, vector<8x128xf32>,
    %315 = vector.extract_strided_slice %302 {offsets = [55, 0], sizes = [8, 128], strides = [1, 1]} : vector<85x128xf32> to vector<8x128xf32>
    %c61 = arith.constant 61 : index
    %c0_311 = arith.constant 0 : index
    %316 = vector.load %arg15[%c61, %c0_311] : memref<100x128xf32, #tpu.memory_space<vmem>>, vector<8x128xf32>
    tpu.vector_store %arg15[%c61, %c0_311], %315 {strides = array<i32>} : memref<100x128xf32, #tpu.memory_space<vmem>>, vector<8x128xf32>,
    %317 = vector.extract_strided_slice %302 {offsets = [66, 0], sizes = [8, 128], strides = [1, 1]} : vector<85x128xf32> to vector<8x128xf32>
    %c71 = arith.constant 71 : index
    %c0_312 = arith.constant 0 : index
    %318 = vector.load %arg15[%c71, %c0_312] : memref<100x128xf32, #tpu.memory_space<vmem>>, vector<8x128xf32>
    tpu.vector_store %arg15[%c71, %c0_312], %317 {strides = array<i32>} : memref<100x128xf32, #tpu.memory_space<vmem>>, vector<8x128xf32>,
    %319 = vector.extract_strided_slice %302 {offsets = [77, 0], sizes = [8, 128], strides = [1, 1]} : vector<85x128xf32> to vector<8x128xf32>
    %c81 = arith.constant 81 : index
    %c0_313 = arith.constant 0 : index
    %320 = vector.load %arg15[%c81, %c0_313] : memref<100x128xf32, #tpu.memory_space<vmem>>, vector<8x128xf32>
    tpu.vector_store %arg15[%c81, %c0_313], %319 {strides = array<i32>} : memref<100x128xf32, #tpu.memory_space<vmem>>, vector<8x128xf32>,
    %cst_314 = arith.constant 0.000000e+00 : f32
    %321 = vector.broadcast %cst_314 : f32 to vector<36x128xf32>
    %c0_315 = arith.constant 0 : index
    %c0_316 = arith.constant 0 : index
    %322 = vector.load %arg16[%c0_315, %c0_316] : memref<36x128xf32, #tpu.memory_space<vmem>>, vector<36x128xf32>
    tpu.vector_store %arg16[%c0_315, %c0_316], %321 {strides = array<i32>} : memref<36x128xf32, #tpu.memory_space<vmem>>, vector<36x128xf32>,
    %c0_317 = arith.constant 0 : index
    %c0_318 = arith.constant 0 : index
    %323 = tpu.strided_load %arg15[%c0_317, %c0_318] {strides = array<i32: 2, 1>} : memref<100x128xf32, #tpu.memory_space<vmem>>, vector<4x128xf32>
    %c1_319 = arith.constant 1 : index
    %c0_320 = arith.constant 0 : index
    %324 = tpu.strided_load %arg15[%c1_319, %c0_320] {strides = array<i32: 2, 1>} : memref<100x128xf32, #tpu.memory_space<vmem>>, vector<4x128xf32>
    %325 = arith.maximumf %323, %324 : vector<4x128xf32>
    %c2_321 = arith.constant 2 : index
    %c0_322 = arith.constant 0 : index
    %326 = tpu.strided_load %arg15[%c2_321, %c0_322] {strides = array<i32: 2, 1>} : memref<100x128xf32, #tpu.memory_space<vmem>>, vector<4x128xf32>
    %327 = arith.maximumf %325, %326 : vector<4x128xf32>
    %c10_323 = arith.constant 10 : index
    %c0_324 = arith.constant 0 : index
    %328 = tpu.strided_load %arg15[%c10_323, %c0_324] {strides = array<i32: 2, 1>} : memref<100x128xf32, #tpu.memory_space<vmem>>, vector<4x128xf32>
    %329 = arith.maximumf %327, %328 : vector<4x128xf32>
    %c11_325 = arith.constant 11 : index
    %c0_326 = arith.constant 0 : index
    %330 = tpu.strided_load %arg15[%c11_325, %c0_326] {strides = array<i32: 2, 1>} : memref<100x128xf32, #tpu.memory_space<vmem>>, vector<4x128xf32>
    %331 = arith.maximumf %329, %330 : vector<4x128xf32>
    %c12_327 = arith.constant 12 : index
    %c0_328 = arith.constant 0 : index
    %332 = tpu.strided_load %arg15[%c12_327, %c0_328] {strides = array<i32: 2, 1>} : memref<100x128xf32, #tpu.memory_space<vmem>>, vector<4x128xf32>
    %333 = arith.maximumf %331, %332 : vector<4x128xf32>
    %c20_329 = arith.constant 20 : index
    %c0_330 = arith.constant 0 : index
    %334 = tpu.strided_load %arg15[%c20_329, %c0_330] {strides = array<i32: 2, 1>} : memref<100x128xf32, #tpu.memory_space<vmem>>, vector<4x128xf32>
    %335 = arith.maximumf %333, %334 : vector<4x128xf32>
    %c21_331 = arith.constant 21 : index
    %c0_332 = arith.constant 0 : index
    %336 = tpu.strided_load %arg15[%c21_331, %c0_332] {strides = array<i32: 2, 1>} : memref<100x128xf32, #tpu.memory_space<vmem>>, vector<4x128xf32>
    %337 = arith.maximumf %335, %336 : vector<4x128xf32>
    %c22_333 = arith.constant 22 : index
    %c0_334 = arith.constant 0 : index
    %338 = tpu.strided_load %arg15[%c22_333, %c0_334] {strides = array<i32: 2, 1>} : memref<100x128xf32, #tpu.memory_space<vmem>>, vector<4x128xf32>
    %339 = arith.maximumf %337, %338 : vector<4x128xf32>
    %c7_335 = arith.constant 7 : index
    %c0_336 = arith.constant 0 : index
    %340 = vector.load %arg16[%c7_335, %c0_336] : memref<36x128xf32, #tpu.memory_space<vmem>>, vector<4x128xf32>
    tpu.vector_store %arg16[%c7_335, %c0_336], %339 {strides = array<i32>} : memref<36x128xf32, #tpu.memory_space<vmem>>, vector<4x128xf32>,
    %c20_337 = arith.constant 20 : index
    %c0_338 = arith.constant 0 : index
    %341 = tpu.strided_load %arg15[%c20_337, %c0_338] {strides = array<i32: 2, 1>} : memref<100x128xf32, #tpu.memory_space<vmem>>, vector<4x128xf32>
    %c21_339 = arith.constant 21 : index
    %c0_340 = arith.constant 0 : index
    %342 = tpu.strided_load %arg15[%c21_339, %c0_340] {strides = array<i32: 2, 1>} : memref<100x128xf32, #tpu.memory_space<vmem>>, vector<4x128xf32>
    %343 = arith.maximumf %341, %342 : vector<4x128xf32>
    %c22_341 = arith.constant 22 : index
    %c0_342 = arith.constant 0 : index
    %344 = tpu.strided_load %arg15[%c22_341, %c0_342] {strides = array<i32: 2, 1>} : memref<100x128xf32, #tpu.memory_space<vmem>>, vector<4x128xf32>
    %345 = arith.maximumf %343, %344 : vector<4x128xf32>
    %c30_343 = arith.constant 30 : index
    %c0_344 = arith.constant 0 : index
    %346 = tpu.strided_load %arg15[%c30_343, %c0_344] {strides = array<i32: 2, 1>} : memref<100x128xf32, #tpu.memory_space<vmem>>, vector<4x128xf32>
    %347 = arith.maximumf %345, %346 : vector<4x128xf32>
    %c31_345 = arith.constant 31 : index
    %c0_346 = arith.constant 0 : index
    %348 = tpu.strided_load %arg15[%c31_345, %c0_346] {strides = array<i32: 2, 1>} : memref<100x128xf32, #tpu.memory_space<vmem>>, vector<4x128xf32>
    %349 = arith.maximumf %347, %348 : vector<4x128xf32>
    %c32_347 = arith.constant 32 : index
    %c0_348 = arith.constant 0 : index
    %350 = tpu.strided_load %arg15[%c32_347, %c0_348] {strides = array<i32: 2, 1>} : memref<100x128xf32, #tpu.memory_space<vmem>>, vector<4x128xf32>
    %351 = arith.maximumf %349, %350 : vector<4x128xf32>
    %c40_349 = arith.constant 40 : index
    %c0_350 = arith.constant 0 : index
    %352 = tpu.strided_load %arg15[%c40_349, %c0_350] {strides = array<i32: 2, 1>} : memref<100x128xf32, #tpu.memory_space<vmem>>, vector<4x128xf32>
    %353 = arith.maximumf %351, %352 : vector<4x128xf32>
    %c41_351 = arith.constant 41 : index
    %c0_352 = arith.constant 0 : index
    %354 = tpu.strided_load %arg15[%c41_351, %c0_352] {strides = array<i32: 2, 1>} : memref<100x128xf32, #tpu.memory_space<vmem>>, vector<4x128xf32>
    %355 = arith.maximumf %353, %354 : vector<4x128xf32>
    %c42_353 = arith.constant 42 : index
    %c0_354 = arith.constant 0 : index
    %356 = tpu.strided_load %arg15[%c42_353, %c0_354] {strides = array<i32: 2, 1>} : memref<100x128xf32, #tpu.memory_space<vmem>>, vector<4x128xf32>
    %357 = arith.maximumf %355, %356 : vector<4x128xf32>
    %c13_355 = arith.constant 13 : index
    %c0_356 = arith.constant 0 : index
    %358 = vector.load %arg16[%c13_355, %c0_356] : memref<36x128xf32, #tpu.memory_space<vmem>>, vector<4x128xf32>
    tpu.vector_store %arg16[%c13_355, %c0_356], %357 {strides = array<i32>} : memref<36x128xf32, #tpu.memory_space<vmem>>, vector<4x128xf32>,
    %c40_357 = arith.constant 40 : index
    %c0_358 = arith.constant 0 : index
    %359 = tpu.strided_load %arg15[%c40_357, %c0_358] {strides = array<i32: 2, 1>} : memref<100x128xf32, #tpu.memory_space<vmem>>, vector<4x128xf32>
    %c41_359 = arith.constant 41 : index
    %c0_360 = arith.constant 0 : index
    %360 = tpu.strided_load %arg15[%c41_359, %c0_360] {strides = array<i32: 2, 1>} : memref<100x128xf32, #tpu.memory_space<vmem>>, vector<4x128xf32>
    %361 = arith.maximumf %359, %360 : vector<4x128xf32>
    %c42_361 = arith.constant 42 : index
    %c0_362 = arith.constant 0 : index
    %362 = tpu.strided_load %arg15[%c42_361, %c0_362] {strides = array<i32: 2, 1>} : memref<100x128xf32, #tpu.memory_space<vmem>>, vector<4x128xf32>
    %363 = arith.maximumf %361, %362 : vector<4x128xf32>
    %c50 = arith.constant 50 : index
    %c0_363 = arith.constant 0 : index
    %364 = tpu.strided_load %arg15[%c50, %c0_363] {strides = array<i32: 2, 1>} : memref<100x128xf32, #tpu.memory_space<vmem>>, vector<4x128xf32>
    %365 = arith.maximumf %363, %364 : vector<4x128xf32>
    %c51_364 = arith.constant 51 : index
    %c0_365 = arith.constant 0 : index
    %366 = tpu.strided_load %arg15[%c51_364, %c0_365] {strides = array<i32: 2, 1>} : memref<100x128xf32, #tpu.memory_space<vmem>>, vector<4x128xf32>
    %367 = arith.maximumf %365, %366 : vector<4x128xf32>
    %c52 = arith.constant 52 : index
    %c0_366 = arith.constant 0 : index
    %368 = tpu.strided_load %arg15[%c52, %c0_366] {strides = array<i32: 2, 1>} : memref<100x128xf32, #tpu.memory_space<vmem>>, vector<4x128xf32>
    %369 = arith.maximumf %367, %368 : vector<4x128xf32>
    %c60 = arith.constant 60 : index
    %c0_367 = arith.constant 0 : index
    %370 = tpu.strided_load %arg15[%c60, %c0_367] {strides = array<i32: 2, 1>} : memref<100x128xf32, #tpu.memory_space<vmem>>, vector<4x128xf32>
    %371 = arith.maximumf %369, %370 : vector<4x128xf32>
    %c61_368 = arith.constant 61 : index
    %c0_369 = arith.constant 0 : index
    %372 = tpu.strided_load %arg15[%c61_368, %c0_369] {strides = array<i32: 2, 1>} : memref<100x128xf32, #tpu.memory_space<vmem>>, vector<4x128xf32>
    %373 = arith.maximumf %371, %372 : vector<4x128xf32>
    %c62 = arith.constant 62 : index
    %c0_370 = arith.constant 0 : index
    %374 = tpu.strided_load %arg15[%c62, %c0_370] {strides = array<i32: 2, 1>} : memref<100x128xf32, #tpu.memory_space<vmem>>, vector<4x128xf32>
    %375 = arith.maximumf %373, %374 : vector<4x128xf32>
    %c19_371 = arith.constant 19 : index
    %c0_372 = arith.constant 0 : index
    %376 = vector.load %arg16[%c19_371, %c0_372] : memref<36x128xf32, #tpu.memory_space<vmem>>, vector<4x128xf32>
    tpu.vector_store %arg16[%c19_371, %c0_372], %375 {strides = array<i32>} : memref<36x128xf32, #tpu.memory_space<vmem>>, vector<4x128xf32>,
    %c60_373 = arith.constant 60 : index
    %c0_374 = arith.constant 0 : index
    %377 = tpu.strided_load %arg15[%c60_373, %c0_374] {strides = array<i32: 2, 1>} : memref<100x128xf32, #tpu.memory_space<vmem>>, vector<4x128xf32>
    %c61_375 = arith.constant 61 : index
    %c0_376 = arith.constant 0 : index
    %378 = tpu.strided_load %arg15[%c61_375, %c0_376] {strides = array<i32: 2, 1>} : memref<100x128xf32, #tpu.memory_space<vmem>>, vector<4x128xf32>
    %379 = arith.maximumf %377, %378 : vector<4x128xf32>
    %c62_377 = arith.constant 62 : index
    %c0_378 = arith.constant 0 : index
    %380 = tpu.strided_load %arg15[%c62_377, %c0_378] {strides = array<i32: 2, 1>} : memref<100x128xf32, #tpu.memory_space<vmem>>, vector<4x128xf32>
    %381 = arith.maximumf %379, %380 : vector<4x128xf32>
    %c70 = arith.constant 70 : index
    %c0_379 = arith.constant 0 : index
    %382 = tpu.strided_load %arg15[%c70, %c0_379] {strides = array<i32: 2, 1>} : memref<100x128xf32, #tpu.memory_space<vmem>>, vector<4x128xf32>
    %383 = arith.maximumf %381, %382 : vector<4x128xf32>
    %c71_380 = arith.constant 71 : index
    %c0_381 = arith.constant 0 : index
    %384 = tpu.strided_load %arg15[%c71_380, %c0_381] {strides = array<i32: 2, 1>} : memref<100x128xf32, #tpu.memory_space<vmem>>, vector<4x128xf32>
    %385 = arith.maximumf %383, %384 : vector<4x128xf32>
    %c72 = arith.constant 72 : index
    %c0_382 = arith.constant 0 : index
    %386 = tpu.strided_load %arg15[%c72, %c0_382] {strides = array<i32: 2, 1>} : memref<100x128xf32, #tpu.memory_space<vmem>>, vector<4x128xf32>
    %387 = arith.maximumf %385, %386 : vector<4x128xf32>
    %c80 = arith.constant 80 : index
    %c0_383 = arith.constant 0 : index
    %388 = tpu.strided_load %arg15[%c80, %c0_383] {strides = array<i32: 2, 1>} : memref<100x128xf32, #tpu.memory_space<vmem>>, vector<4x128xf32>
    %389 = arith.maximumf %387, %388 : vector<4x128xf32>
    %c81_384 = arith.constant 81 : index
    %c0_385 = arith.constant 0 : index
    %390 = tpu.strided_load %arg15[%c81_384, %c0_385] {strides = array<i32: 2, 1>} : memref<100x128xf32, #tpu.memory_space<vmem>>, vector<4x128xf32>
    %391 = arith.maximumf %389, %390 : vector<4x128xf32>
    %c82 = arith.constant 82 : index
    %c0_386 = arith.constant 0 : index
    %392 = tpu.strided_load %arg15[%c82, %c0_386] {strides = array<i32: 2, 1>} : memref<100x128xf32, #tpu.memory_space<vmem>>, vector<4x128xf32>
    %393 = arith.maximumf %391, %392 : vector<4x128xf32>
    %c25_387 = arith.constant 25 : index
    %c0_388 = arith.constant 0 : index
    %394 = vector.load %arg16[%c25_387, %c0_388] : memref<36x128xf32, #tpu.memory_space<vmem>>, vector<4x128xf32>
    tpu.vector_store %arg16[%c25_387, %c0_388], %393 {strides = array<i32>} : memref<36x128xf32, #tpu.memory_space<vmem>>, vector<4x128xf32>,
    %cst_389 = arith.constant 0.000000e+00 : f32
    %395 = vector.broadcast %cst_389 : f32 to vector<22x128xf32>
    %c0_390 = arith.constant 0 : index
    %c0_391 = arith.constant 0 : index
    %396 = vector.load %arg16[%c0_390, %c0_391] : memref<36x128xf32, #tpu.memory_space<vmem>>, vector<22x128xf32>
    %397 = arith.truncf %396 : vector<22x128xf32> to vector<22x128xbf16>
    %c0_392 = arith.constant 0 : index
    %c0_393 = arith.constant 0 : index
    %c0_394 = arith.constant 0 : index
    %398 = vector.load %arg8[%c0_392, %c0_393, %c0_394] : memref<9x128x128xbf16, #tpu.memory_space<vmem>>, vector<1x128x128xbf16>
    %399 = vector.shape_cast %398 : vector<1x128x128xbf16> to vector<128x128xbf16>
    %cst_395 = arith.constant dense<0.000000e+00> : vector<22x128xf32>
    %400 = tpu.matmul %397, %399, %cst_395 {dimension_numbers = #tpu.dot_dimension_numbers<[1], [0], [0], [1], [0, 0, 1, 1], [], []>} : vector<22x128xbf16>, vector<128x128xbf16>, vector<22x128xf32> -> vector<22x128xf32>
    %401 = arith.addf %395, %400 : vector<22x128xf32>
    %c1_396 = arith.constant 1 : index
    %c0_397 = arith.constant 0 : index
    %402 = vector.load %arg16[%c1_396, %c0_397] : memref<36x128xf32, #tpu.memory_space<vmem>>, vector<22x128xf32>
    %403 = arith.truncf %402 : vector<22x128xf32> to vector<22x128xbf16>
    %c1_398 = arith.constant 1 : index
    %c0_399 = arith.constant 0 : index
    %c0_400 = arith.constant 0 : index
    %404 = vector.load %arg8[%c1_398, %c0_399, %c0_400] : memref<9x128x128xbf16, #tpu.memory_space<vmem>>, vector<1x128x128xbf16>
    %405 = vector.shape_cast %404 : vector<1x128x128xbf16> to vector<128x128xbf16>
    %cst_401 = arith.constant dense<0.000000e+00> : vector<22x128xf32>
    %406 = tpu.matmul %403, %405, %cst_401 {dimension_numbers = #tpu.dot_dimension_numbers<[1], [0], [0], [1], [0, 0, 1, 1], [], []>} : vector<22x128xbf16>, vector<128x128xbf16>, vector<22x128xf32> -> vector<22x128xf32>
    %407 = arith.addf %401, %406 : vector<22x128xf32>
    %c2_402 = arith.constant 2 : index
    %c0_403 = arith.constant 0 : index
    %408 = vector.load %arg16[%c2_402, %c0_403] : memref<36x128xf32, #tpu.memory_space<vmem>>, vector<22x128xf32>
    %409 = arith.truncf %408 : vector<22x128xf32> to vector<22x128xbf16>
    %c2_404 = arith.constant 2 : index
    %c0_405 = arith.constant 0 : index
    %c0_406 = arith.constant 0 : index
    %410 = vector.load %arg8[%c2_404, %c0_405, %c0_406] : memref<9x128x128xbf16, #tpu.memory_space<vmem>>, vector<1x128x128xbf16>
    %411 = vector.shape_cast %410 : vector<1x128x128xbf16> to vector<128x128xbf16>
    %cst_407 = arith.constant dense<0.000000e+00> : vector<22x128xf32>
    %412 = tpu.matmul %409, %411, %cst_407 {dimension_numbers = #tpu.dot_dimension_numbers<[1], [0], [0], [1], [0, 0, 1, 1], [], []>} : vector<22x128xbf16>, vector<128x128xbf16>, vector<22x128xf32> -> vector<22x128xf32>
    %413 = arith.addf %407, %412 : vector<22x128xf32>
    %c6_408 = arith.constant 6 : index
    %c0_409 = arith.constant 0 : index
    %414 = vector.load %arg16[%c6_408, %c0_409] : memref<36x128xf32, #tpu.memory_space<vmem>>, vector<22x128xf32>
    %415 = arith.truncf %414 : vector<22x128xf32> to vector<22x128xbf16>
    %c3_410 = arith.constant 3 : index
    %c0_411 = arith.constant 0 : index
    %c0_412 = arith.constant 0 : index
    %416 = vector.load %arg8[%c3_410, %c0_411, %c0_412] : memref<9x128x128xbf16, #tpu.memory_space<vmem>>, vector<1x128x128xbf16>
    %417 = vector.shape_cast %416 : vector<1x128x128xbf16> to vector<128x128xbf16>
    %cst_413 = arith.constant dense<0.000000e+00> : vector<22x128xf32>
    %418 = tpu.matmul %415, %417, %cst_413 {dimension_numbers = #tpu.dot_dimension_numbers<[1], [0], [0], [1], [0, 0, 1, 1], [], []>} : vector<22x128xbf16>, vector<128x128xbf16>, vector<22x128xf32> -> vector<22x128xf32>
    %419 = arith.addf %413, %418 : vector<22x128xf32>
    %c7_414 = arith.constant 7 : index
    %c0_415 = arith.constant 0 : index
    %420 = vector.load %arg16[%c7_414, %c0_415] : memref<36x128xf32, #tpu.memory_space<vmem>>, vector<22x128xf32>
    %421 = arith.truncf %420 : vector<22x128xf32> to vector<22x128xbf16>
    %c4_416 = arith.constant 4 : index
    %c0_417 = arith.constant 0 : index
    %c0_418 = arith.constant 0 : index
    %422 = vector.load %arg8[%c4_416, %c0_417, %c0_418] : memref<9x128x128xbf16, #tpu.memory_space<vmem>>, vector<1x128x128xbf16>
    %423 = vector.shape_cast %422 : vector<1x128x128xbf16> to vector<128x128xbf16>
    %cst_419 = arith.constant dense<0.000000e+00> : vector<22x128xf32>
    %424 = tpu.matmul %421, %423, %cst_419 {dimension_numbers = #tpu.dot_dimension_numbers<[1], [0], [0], [1], [0, 0, 1, 1], [], []>} : vector<22x128xbf16>, vector<128x128xbf16>, vector<22x128xf32> -> vector<22x128xf32>
    %425 = arith.addf %419, %424 : vector<22x128xf32>
    %c8_420 = arith.constant 8 : index
    %c0_421 = arith.constant 0 : index
    %426 = vector.load %arg16[%c8_420, %c0_421] : memref<36x128xf32, #tpu.memory_space<vmem>>, vector<22x128xf32>
    %427 = arith.truncf %426 : vector<22x128xf32> to vector<22x128xbf16>
    %c5_422 = arith.constant 5 : index
    %c0_423 = arith.constant 0 : index
    %c0_424 = arith.constant 0 : index
    %428 = vector.load %arg8[%c5_422, %c0_423, %c0_424] : memref<9x128x128xbf16, #tpu.memory_space<vmem>>, vector<1x128x128xbf16>
    %429 = vector.shape_cast %428 : vector<1x128x128xbf16> to vector<128x128xbf16>
    %cst_425 = arith.constant dense<0.000000e+00> : vector<22x128xf32>
    %430 = tpu.matmul %427, %429, %cst_425 {dimension_numbers = #tpu.dot_dimension_numbers<[1], [0], [0], [1], [0, 0, 1, 1], [], []>} : vector<22x128xbf16>, vector<128x128xbf16>, vector<22x128xf32> -> vector<22x128xf32>
    %431 = arith.addf %425, %430 : vector<22x128xf32>
    %c12_426 = arith.constant 12 : index
    %c0_427 = arith.constant 0 : index
    %432 = vector.load %arg16[%c12_426, %c0_427] : memref<36x128xf32, #tpu.memory_space<vmem>>, vector<22x128xf32>
    %433 = arith.truncf %432 : vector<22x128xf32> to vector<22x128xbf16>
    %c6_428 = arith.constant 6 : index
    %c0_429 = arith.constant 0 : index
    %c0_430 = arith.constant 0 : index
    %434 = vector.load %arg8[%c6_428, %c0_429, %c0_430] : memref<9x128x128xbf16, #tpu.memory_space<vmem>>, vector<1x128x128xbf16>
    %435 = vector.shape_cast %434 : vector<1x128x128xbf16> to vector<128x128xbf16>
    %cst_431 = arith.constant dense<0.000000e+00> : vector<22x128xf32>
    %436 = tpu.matmul %433, %435, %cst_431 {dimension_numbers = #tpu.dot_dimension_numbers<[1], [0], [0], [1], [0, 0, 1, 1], [], []>} : vector<22x128xbf16>, vector<128x128xbf16>, vector<22x128xf32> -> vector<22x128xf32>
    %437 = arith.addf %431, %436 : vector<22x128xf32>
    %c13_432 = arith.constant 13 : index
    %c0_433 = arith.constant 0 : index
    %438 = vector.load %arg16[%c13_432, %c0_433] : memref<36x128xf32, #tpu.memory_space<vmem>>, vector<22x128xf32>
    %439 = arith.truncf %438 : vector<22x128xf32> to vector<22x128xbf16>
    %c7_434 = arith.constant 7 : index
    %c0_435 = arith.constant 0 : index
    %c0_436 = arith.constant 0 : index
    %440 = vector.load %arg8[%c7_434, %c0_435, %c0_436] : memref<9x128x128xbf16, #tpu.memory_space<vmem>>, vector<1x128x128xbf16>
    %441 = vector.shape_cast %440 : vector<1x128x128xbf16> to vector<128x128xbf16>
    %cst_437 = arith.constant dense<0.000000e+00> : vector<22x128xf32>
    %442 = tpu.matmul %439, %441, %cst_437 {dimension_numbers = #tpu.dot_dimension_numbers<[1], [0], [0], [1], [0, 0, 1, 1], [], []>} : vector<22x128xbf16>, vector<128x128xbf16>, vector<22x128xf32> -> vector<22x128xf32>
    %443 = arith.addf %437, %442 : vector<22x128xf32>
    %c14_438 = arith.constant 14 : index
    %c0_439 = arith.constant 0 : index
    %444 = vector.load %arg16[%c14_438, %c0_439] : memref<36x128xf32, #tpu.memory_space<vmem>>, vector<22x128xf32>
    %445 = arith.truncf %444 : vector<22x128xf32> to vector<22x128xbf16>
    %c8_440 = arith.constant 8 : index
    %c0_441 = arith.constant 0 : index
    %c0_442 = arith.constant 0 : index
    %446 = vector.load %arg8[%c8_440, %c0_441, %c0_442] : memref<9x128x128xbf16, #tpu.memory_space<vmem>>, vector<1x128x128xbf16>
    %447 = vector.shape_cast %446 : vector<1x128x128xbf16> to vector<128x128xbf16>
    %cst_443 = arith.constant dense<0.000000e+00> : vector<22x128xf32>
    %448 = tpu.matmul %445, %447, %cst_443 {dimension_numbers = #tpu.dot_dimension_numbers<[1], [0], [0], [1], [0, 0, 1, 1], [], []>} : vector<22x128xbf16>, vector<128x128xbf16>, vector<22x128xf32> -> vector<22x128xf32>
    %449 = arith.addf %443, %448 : vector<22x128xf32>
    %c0_444 = arith.constant 0 : index
    %c0_445 = arith.constant 0 : index
    %450 = vector.load %arg9[%c0_444, %c0_445] : memref<1x128xf32, #tpu.memory_space<vmem>>, vector<1x128xf32>
    %451 = vector.broadcast %450 : vector<1x128xf32> to vector<22x128xf32>
    %452 = arith.mulf %449, %451 : vector<22x128xf32>
    %c0_446 = arith.constant 0 : index
    %c0_447 = arith.constant 0 : index
    %453 = vector.load %arg10[%c0_446, %c0_447] : memref<1x128xf32, #tpu.memory_space<vmem>>, vector<1x128xf32>
    %454 = vector.broadcast %453 : vector<1x128xf32> to vector<22x128xf32>
    %455 = arith.addf %452, %454 : vector<22x128xf32>
    %cst_448 = arith.constant 0.000000e+00 : f32
    %456 = vector.broadcast %cst_448 : f32 to vector<22x128xf32>
    %457 = arith.maximumf %455, %456 : vector<22x128xf32>
    %cst_449 = arith.constant 0.000000e+00 : f32
    %458 = vector.broadcast %cst_449 : f32 to vector<36x128xf32>
    %c0_450 = arith.constant 0 : index
    %c0_451 = arith.constant 0 : index
    %459 = vector.load %arg17[%c0_450, %c0_451] : memref<36x128xf32, #tpu.memory_space<vmem>>, vector<36x128xf32>
    tpu.vector_store %arg17[%c0_450, %c0_451], %458 {strides = array<i32>} : memref<36x128xf32, #tpu.memory_space<vmem>>, vector<36x128xf32>,
    %460 = vector.extract_strided_slice %457 {offsets = [0, 0], sizes = [4, 128], strides = [1, 1]} : vector<22x128xf32> to vector<4x128xf32>
    %c7_452 = arith.constant 7 : index
    %c0_453 = arith.constant 0 : index
    %461 = vector.load %arg17[%c7_452, %c0_453] : memref<36x128xf32, #tpu.memory_space<vmem>>, vector<4x128xf32>
    tpu.vector_store %arg17[%c7_452, %c0_453], %460 {strides = array<i32>} : memref<36x128xf32, #tpu.memory_space<vmem>>, vector<4x128xf32>,
    %462 = vector.extract_strided_slice %457 {offsets = [6, 0], sizes = [4, 128], strides = [1, 1]} : vector<22x128xf32> to vector<4x128xf32>
    %c13_454 = arith.constant 13 : index
    %c0_455 = arith.constant 0 : index
    %463 = vector.load %arg17[%c13_454, %c0_455] : memref<36x128xf32, #tpu.memory_space<vmem>>, vector<4x128xf32>
    tpu.vector_store %arg17[%c13_454, %c0_455], %462 {strides = array<i32>} : memref<36x128xf32, #tpu.memory_space<vmem>>, vector<4x128xf32>,
    %464 = vector.extract_strided_slice %457 {offsets = [12, 0], sizes = [4, 128], strides = [1, 1]} : vector<22x128xf32> to vector<4x128xf32>
    %c19_456 = arith.constant 19 : index
    %c0_457 = arith.constant 0 : index
    %465 = vector.load %arg17[%c19_456, %c0_457] : memref<36x128xf32, #tpu.memory_space<vmem>>, vector<4x128xf32>
    tpu.vector_store %arg17[%c19_456, %c0_457], %464 {strides = array<i32>} : memref<36x128xf32, #tpu.memory_space<vmem>>, vector<4x128xf32>,
    %466 = vector.extract_strided_slice %457 {offsets = [18, 0], sizes = [4, 128], strides = [1, 1]} : vector<22x128xf32> to vector<4x128xf32>
    %c25_458 = arith.constant 25 : index
    %c0_459 = arith.constant 0 : index
    %467 = vector.load %arg17[%c25_458, %c0_459] : memref<36x128xf32, #tpu.memory_space<vmem>>, vector<4x128xf32>
    tpu.vector_store %arg17[%c25_458, %c0_459], %466 {strides = array<i32>} : memref<36x128xf32, #tpu.memory_space<vmem>>, vector<4x128xf32>,
    %cst_460 = arith.constant 0.000000e+00 : f32
    %468 = vector.broadcast %cst_460 : f32 to vector<22x128xf32>
    %c0_461 = arith.constant 0 : index
    %c0_462 = arith.constant 0 : index
    %469 = vector.load %arg17[%c0_461, %c0_462] : memref<36x128xf32, #tpu.memory_space<vmem>>, vector<22x128xf32>
    %470 = arith.truncf %469 : vector<22x128xf32> to vector<22x128xbf16>
    %c0_463 = arith.constant 0 : index
    %c0_464 = arith.constant 0 : index
    %c0_465 = arith.constant 0 : index
    %471 = vector.load %arg11[%c0_463, %c0_464, %c0_465] : memref<9x128x128xbf16, #tpu.memory_space<vmem>>, vector<1x128x128xbf16>
    %472 = vector.shape_cast %471 : vector<1x128x128xbf16> to vector<128x128xbf16>
    %cst_466 = arith.constant dense<0.000000e+00> : vector<22x128xf32>
    %473 = tpu.matmul %470, %472, %cst_466 {dimension_numbers = #tpu.dot_dimension_numbers<[1], [0], [0], [1], [0, 0, 1, 1], [], []>} : vector<22x128xbf16>, vector<128x128xbf16>, vector<22x128xf32> -> vector<22x128xf32>
    %474 = arith.addf %468, %473 : vector<22x128xf32>
    %c1_467 = arith.constant 1 : index
    %c0_468 = arith.constant 0 : index
    %475 = vector.load %arg17[%c1_467, %c0_468] : memref<36x128xf32, #tpu.memory_space<vmem>>, vector<22x128xf32>
    %476 = arith.truncf %475 : vector<22x128xf32> to vector<22x128xbf16>
    %c1_469 = arith.constant 1 : index
    %c0_470 = arith.constant 0 : index
    %c0_471 = arith.constant 0 : index
    %477 = vector.load %arg11[%c1_469, %c0_470, %c0_471] : memref<9x128x128xbf16, #tpu.memory_space<vmem>>, vector<1x128x128xbf16>
    %478 = vector.shape_cast %477 : vector<1x128x128xbf16> to vector<128x128xbf16>
    %cst_472 = arith.constant dense<0.000000e+00> : vector<22x128xf32>
    %479 = tpu.matmul %476, %478, %cst_472 {dimension_numbers = #tpu.dot_dimension_numbers<[1], [0], [0], [1], [0, 0, 1, 1], [], []>} : vector<22x128xbf16>, vector<128x128xbf16>, vector<22x128xf32> -> vector<22x128xf32>
    %480 = arith.addf %474, %479 : vector<22x128xf32>
    %c2_473 = arith.constant 2 : index
    %c0_474 = arith.constant 0 : index
    %481 = vector.load %arg17[%c2_473, %c0_474] : memref<36x128xf32, #tpu.memory_space<vmem>>, vector<22x128xf32>
    %482 = arith.truncf %481 : vector<22x128xf32> to vector<22x128xbf16>
    %c2_475 = arith.constant 2 : index
    %c0_476 = arith.constant 0 : index
    %c0_477 = arith.constant 0 : index
    %483 = vector.load %arg11[%c2_475, %c0_476, %c0_477] : memref<9x128x128xbf16, #tpu.memory_space<vmem>>, vector<1x128x128xbf16>
    %484 = vector.shape_cast %483 : vector<1x128x128xbf16> to vector<128x128xbf16>
    %cst_478 = arith.constant dense<0.000000e+00> : vector<22x128xf32>
    %485 = tpu.matmul %482, %484, %cst_478 {dimension_numbers = #tpu.dot_dimension_numbers<[1], [0], [0], [1], [0, 0, 1, 1], [], []>} : vector<22x128xbf16>, vector<128x128xbf16>, vector<22x128xf32> -> vector<22x128xf32>
    %486 = arith.addf %480, %485 : vector<22x128xf32>
    %c6_479 = arith.constant 6 : index
    %c0_480 = arith.constant 0 : index
    %487 = vector.load %arg17[%c6_479, %c0_480] : memref<36x128xf32, #tpu.memory_space<vmem>>, vector<22x128xf32>
    %488 = arith.truncf %487 : vector<22x128xf32> to vector<22x128xbf16>
    %c3_481 = arith.constant 3 : index
    %c0_482 = arith.constant 0 : index
    %c0_483 = arith.constant 0 : index
    %489 = vector.load %arg11[%c3_481, %c0_482, %c0_483] : memref<9x128x128xbf16, #tpu.memory_space<vmem>>, vector<1x128x128xbf16>
    %490 = vector.shape_cast %489 : vector<1x128x128xbf16> to vector<128x128xbf16>
    %cst_484 = arith.constant dense<0.000000e+00> : vector<22x128xf32>
    %491 = tpu.matmul %488, %490, %cst_484 {dimension_numbers = #tpu.dot_dimension_numbers<[1], [0], [0], [1], [0, 0, 1, 1], [], []>} : vector<22x128xbf16>, vector<128x128xbf16>, vector<22x128xf32> -> vector<22x128xf32>
    %492 = arith.addf %486, %491 : vector<22x128xf32>
    %c7_485 = arith.constant 7 : index
    %c0_486 = arith.constant 0 : index
    %493 = vector.load %arg17[%c7_485, %c0_486] : memref<36x128xf32, #tpu.memory_space<vmem>>, vector<22x128xf32>
    %494 = arith.truncf %493 : vector<22x128xf32> to vector<22x128xbf16>
    %c4_487 = arith.constant 4 : index
    %c0_488 = arith.constant 0 : index
    %c0_489 = arith.constant 0 : index
    %495 = vector.load %arg11[%c4_487, %c0_488, %c0_489] : memref<9x128x128xbf16, #tpu.memory_space<vmem>>, vector<1x128x128xbf16>
    %496 = vector.shape_cast %495 : vector<1x128x128xbf16> to vector<128x128xbf16>
    %cst_490 = arith.constant dense<0.000000e+00> : vector<22x128xf32>
    %497 = tpu.matmul %494, %496, %cst_490 {dimension_numbers = #tpu.dot_dimension_numbers<[1], [0], [0], [1], [0, 0, 1, 1], [], []>} : vector<22x128xbf16>, vector<128x128xbf16>, vector<22x128xf32> -> vector<22x128xf32>
    %498 = arith.addf %492, %497 : vector<22x128xf32>
    %c8_491 = arith.constant 8 : index
    %c0_492 = arith.constant 0 : index
    %499 = vector.load %arg17[%c8_491, %c0_492] : memref<36x128xf32, #tpu.memory_space<vmem>>, vector<22x128xf32>
    %500 = arith.truncf %499 : vector<22x128xf32> to vector<22x128xbf16>
    %c5_493 = arith.constant 5 : index
    %c0_494 = arith.constant 0 : index
    %c0_495 = arith.constant 0 : index
    %501 = vector.load %arg11[%c5_493, %c0_494, %c0_495] : memref<9x128x128xbf16, #tpu.memory_space<vmem>>, vector<1x128x128xbf16>
    %502 = vector.shape_cast %501 : vector<1x128x128xbf16> to vector<128x128xbf16>
    %cst_496 = arith.constant dense<0.000000e+00> : vector<22x128xf32>
    %503 = tpu.matmul %500, %502, %cst_496 {dimension_numbers = #tpu.dot_dimension_numbers<[1], [0], [0], [1], [0, 0, 1, 1], [], []>} : vector<22x128xbf16>, vector<128x128xbf16>, vector<22x128xf32> -> vector<22x128xf32>
    %504 = arith.addf %498, %503 : vector<22x128xf32>
    %c12_497 = arith.constant 12 : index
    %c0_498 = arith.constant 0 : index
    %505 = vector.load %arg17[%c12_497, %c0_498] : memref<36x128xf32, #tpu.memory_space<vmem>>, vector<22x128xf32>
    %506 = arith.truncf %505 : vector<22x128xf32> to vector<22x128xbf16>
    %c6_499 = arith.constant 6 : index
    %c0_500 = arith.constant 0 : index
    %c0_501 = arith.constant 0 : index
    %507 = vector.load %arg11[%c6_499, %c0_500, %c0_501] : memref<9x128x128xbf16, #tpu.memory_space<vmem>>, vector<1x128x128xbf16>
    %508 = vector.shape_cast %507 : vector<1x128x128xbf16> to vector<128x128xbf16>
    %cst_502 = arith.constant dense<0.000000e+00> : vector<22x128xf32>
    %509 = tpu.matmul %506, %508, %cst_502 {dimension_numbers = #tpu.dot_dimension_numbers<[1], [0], [0], [1], [0, 0, 1, 1], [], []>} : vector<22x128xbf16>, vector<128x128xbf16>, vector<22x128xf32> -> vector<22x128xf32>
    %510 = arith.addf %504, %509 : vector<22x128xf32>
    %c13_503 = arith.constant 13 : index
    %c0_504 = arith.constant 0 : index
    %511 = vector.load %arg17[%c13_503, %c0_504] : memref<36x128xf32, #tpu.memory_space<vmem>>, vector<22x128xf32>
    %512 = arith.truncf %511 : vector<22x128xf32> to vector<22x128xbf16>
    %c7_505 = arith.constant 7 : index
    %c0_506 = arith.constant 0 : index
    %c0_507 = arith.constant 0 : index
    %513 = vector.load %arg11[%c7_505, %c0_506, %c0_507] : memref<9x128x128xbf16, #tpu.memory_space<vmem>>, vector<1x128x128xbf16>
    %514 = vector.shape_cast %513 : vector<1x128x128xbf16> to vector<128x128xbf16>
    %cst_508 = arith.constant dense<0.000000e+00> : vector<22x128xf32>
    %515 = tpu.matmul %512, %514, %cst_508 {dimension_numbers = #tpu.dot_dimension_numbers<[1], [0], [0], [1], [0, 0, 1, 1], [], []>} : vector<22x128xbf16>, vector<128x128xbf16>, vector<22x128xf32> -> vector<22x128xf32>
    %516 = arith.addf %510, %515 : vector<22x128xf32>
    %c14_509 = arith.constant 14 : index
    %c0_510 = arith.constant 0 : index
    %517 = vector.load %arg17[%c14_509, %c0_510] : memref<36x128xf32, #tpu.memory_space<vmem>>, vector<22x128xf32>
    %518 = arith.truncf %517 : vector<22x128xf32> to vector<22x128xbf16>
    %c8_511 = arith.constant 8 : index
    %c0_512 = arith.constant 0 : index
    %c0_513 = arith.constant 0 : index
    %519 = vector.load %arg11[%c8_511, %c0_512, %c0_513] : memref<9x128x128xbf16, #tpu.memory_space<vmem>>, vector<1x128x128xbf16>
    %520 = vector.shape_cast %519 : vector<1x128x128xbf16> to vector<128x128xbf16>
    %cst_514 = arith.constant dense<0.000000e+00> : vector<22x128xf32>
    %521 = tpu.matmul %518, %520, %cst_514 {dimension_numbers = #tpu.dot_dimension_numbers<[1], [0], [0], [1], [0, 0, 1, 1], [], []>} : vector<22x128xbf16>, vector<128x128xbf16>, vector<22x128xf32> -> vector<22x128xf32>
    %522 = arith.addf %516, %521 : vector<22x128xf32>
    %523 = vector.extract_strided_slice %522 {offsets = [0, 0], sizes = [4, 128], strides = [1, 1]} : vector<22x128xf32> to vector<4x128xf32>
    %c0_515 = arith.constant 0 : index
    %c0_516 = arith.constant 0 : index
    %524 = vector.load %arg12[%c0_515, %c0_516] : memref<1x128xf32, #tpu.memory_space<vmem>>, vector<1x128xf32>
    %525 = vector.broadcast %524 : vector<1x128xf32> to vector<4x128xf32>
    %526 = arith.mulf %523, %525 : vector<4x128xf32>
    %c0_517 = arith.constant 0 : index
    %c0_518 = arith.constant 0 : index
    %527 = vector.load %arg13[%c0_517, %c0_518] : memref<1x128xf32, #tpu.memory_space<vmem>>, vector<1x128xf32>
    %528 = vector.broadcast %527 : vector<1x128xf32> to vector<4x128xf32>
    %529 = arith.addf %526, %528 : vector<4x128xf32>
    %c7_519 = arith.constant 7 : index
    %c0_520 = arith.constant 0 : index
    %530 = vector.load %arg16[%c7_519, %c0_520] : memref<36x128xf32, #tpu.memory_space<vmem>>, vector<4x128xf32>
    %531 = arith.addf %529, %530 : vector<4x128xf32>
    %cst_521 = arith.constant 0.000000e+00 : f32
    %532 = vector.broadcast %cst_521 : f32 to vector<4x128xf32>
    %533 = arith.maximumf %531, %532 : vector<4x128xf32>
    %c0_522 = arith.constant 0 : index
    %c0_523 = arith.constant 0 : index
    %c0_524 = arith.constant 0 : index
    %534 = vector.load %arg14[%c0_522, %c0_523, %c0_524] : memref<1x16x128xf32, #tpu.memory_space<vmem>>, vector<1x4x128xf32>
    %535 = vector.shape_cast %534 : vector<1x4x128xf32> to vector<4x128xf32>
    %536 = vector.shape_cast %533 : vector<4x128xf32> to vector<1x4x128xf32>
    tpu.vector_store %arg14[%c0_522, %c0_523, %c0_524], %536 {strides = array<i32>} : memref<1x16x128xf32, #tpu.memory_space<vmem>>, vector<1x4x128xf32>,
    %537 = vector.extract_strided_slice %522 {offsets = [6, 0], sizes = [4, 128], strides = [1, 1]} : vector<22x128xf32> to vector<4x128xf32>
    %c0_525 = arith.constant 0 : index
    %c0_526 = arith.constant 0 : index
    %538 = vector.load %arg12[%c0_525, %c0_526] : memref<1x128xf32, #tpu.memory_space<vmem>>, vector<1x128xf32>
    %539 = vector.broadcast %538 : vector<1x128xf32> to vector<4x128xf32>
    %540 = arith.mulf %537, %539 : vector<4x128xf32>
    %c0_527 = arith.constant 0 : index
    %c0_528 = arith.constant 0 : index
    %541 = vector.load %arg13[%c0_527, %c0_528] : memref<1x128xf32, #tpu.memory_space<vmem>>, vector<1x128xf32>
    %542 = vector.broadcast %541 : vector<1x128xf32> to vector<4x128xf32>
    %543 = arith.addf %540, %542 : vector<4x128xf32>
    %c13_529 = arith.constant 13 : index
    %c0_530 = arith.constant 0 : index
    %544 = vector.load %arg16[%c13_529, %c0_530] : memref<36x128xf32, #tpu.memory_space<vmem>>, vector<4x128xf32>
    %545 = arith.addf %543, %544 : vector<4x128xf32>
    %cst_531 = arith.constant 0.000000e+00 : f32
    %546 = vector.broadcast %cst_531 : f32 to vector<4x128xf32>
    %547 = arith.maximumf %545, %546 : vector<4x128xf32>
    %c0_532 = arith.constant 0 : index
    %c4_533 = arith.constant 4 : index
    %c0_534 = arith.constant 0 : index
    %548 = vector.load %arg14[%c0_532, %c4_533, %c0_534] : memref<1x16x128xf32, #tpu.memory_space<vmem>>, vector<1x4x128xf32>
    %549 = vector.shape_cast %548 : vector<1x4x128xf32> to vector<4x128xf32>
    %550 = vector.shape_cast %547 : vector<4x128xf32> to vector<1x4x128xf32>
    tpu.vector_store %arg14[%c0_532, %c4_533, %c0_534], %550 {strides = array<i32>} : memref<1x16x128xf32, #tpu.memory_space<vmem>>, vector<1x4x128xf32>,
    %551 = vector.extract_strided_slice %522 {offsets = [12, 0], sizes = [4, 128], strides = [1, 1]} : vector<22x128xf32> to vector<4x128xf32>
    %c0_535 = arith.constant 0 : index
    %c0_536 = arith.constant 0 : index
    %552 = vector.load %arg12[%c0_535, %c0_536] : memref<1x128xf32, #tpu.memory_space<vmem>>, vector<1x128xf32>
    %553 = vector.broadcast %552 : vector<1x128xf32> to vector<4x128xf32>
    %554 = arith.mulf %551, %553 : vector<4x128xf32>
    %c0_537 = arith.constant 0 : index
    %c0_538 = arith.constant 0 : index
    %555 = vector.load %arg13[%c0_537, %c0_538] : memref<1x128xf32, #tpu.memory_space<vmem>>, vector<1x128xf32>
    %556 = vector.broadcast %555 : vector<1x128xf32> to vector<4x128xf32>
    %557 = arith.addf %554, %556 : vector<4x128xf32>
    %c19_539 = arith.constant 19 : index
    %c0_540 = arith.constant 0 : index
    %558 = vector.load %arg16[%c19_539, %c0_540] : memref<36x128xf32, #tpu.memory_space<vmem>>, vector<4x128xf32>
    %559 = arith.addf %557, %558 : vector<4x128xf32>
    %cst_541 = arith.constant 0.000000e+00 : f32
    %560 = vector.broadcast %cst_541 : f32 to vector<4x128xf32>
    %561 = arith.maximumf %559, %560 : vector<4x128xf32>
    %c0_542 = arith.constant 0 : index
    %c8_543 = arith.constant 8 : index
    %c0_544 = arith.constant 0 : index
    %562 = vector.load %arg14[%c0_542, %c8_543, %c0_544] : memref<1x16x128xf32, #tpu.memory_space<vmem>>, vector<1x4x128xf32>
    %563 = vector.shape_cast %562 : vector<1x4x128xf32> to vector<4x128xf32>
    %564 = vector.shape_cast %561 : vector<4x128xf32> to vector<1x4x128xf32>
    tpu.vector_store %arg14[%c0_542, %c8_543, %c0_544], %564 {strides = array<i32>} : memref<1x16x128xf32, #tpu.memory_space<vmem>>, vector<1x4x128xf32>,
    %565 = vector.extract_strided_slice %522 {offsets = [18, 0], sizes = [4, 128], strides = [1, 1]} : vector<22x128xf32> to vector<4x128xf32>
    %c0_545 = arith.constant 0 : index
    %c0_546 = arith.constant 0 : index
    %566 = vector.load %arg12[%c0_545, %c0_546] : memref<1x128xf32, #tpu.memory_space<vmem>>, vector<1x128xf32>
    %567 = vector.broadcast %566 : vector<1x128xf32> to vector<4x128xf32>
    %568 = arith.mulf %565, %567 : vector<4x128xf32>
    %c0_547 = arith.constant 0 : index
    %c0_548 = arith.constant 0 : index
    %569 = vector.load %arg13[%c0_547, %c0_548] : memref<1x128xf32, #tpu.memory_space<vmem>>, vector<1x128xf32>
    %570 = vector.broadcast %569 : vector<1x128xf32> to vector<4x128xf32>
    %571 = arith.addf %568, %570 : vector<4x128xf32>
    %c25_549 = arith.constant 25 : index
    %c0_550 = arith.constant 0 : index
    %572 = vector.load %arg16[%c25_549, %c0_550] : memref<36x128xf32, #tpu.memory_space<vmem>>, vector<4x128xf32>
    %573 = arith.addf %571, %572 : vector<4x128xf32>
    %cst_551 = arith.constant 0.000000e+00 : f32
    %574 = vector.broadcast %cst_551 : f32 to vector<4x128xf32>
    %575 = arith.maximumf %573, %574 : vector<4x128xf32>
    %c0_552 = arith.constant 0 : index
    %c12_553 = arith.constant 12 : index
    %c0_554 = arith.constant 0 : index
    %576 = vector.load %arg14[%c0_552, %c12_553, %c0_554] : memref<1x16x128xf32, #tpu.memory_space<vmem>>, vector<1x4x128xf32>
    %577 = vector.shape_cast %576 : vector<1x4x128xf32> to vector<4x128xf32>
    %578 = vector.shape_cast %575 : vector<4x128xf32> to vector<1x4x128xf32>
    tpu.vector_store %arg14[%c0_552, %c12_553, %c0_554], %578 {strides = array<i32>} : memref<1x16x128xf32, #tpu.memory_space<vmem>>, vector<1x4x128xf32>,
    return
  }
  func.func @transform_0(%arg0: i32) -> (i32, i32, i32) {
    %c0_i32 = arith.constant 0 : i32
    %c0_i32_0 = arith.constant 0 : i32
    %c0_i32_1 = arith.constant 0 : i32
    return %arg0, %c0_i32, %c0_i32_0 : i32, i32, i32
  }
  func.func @transform_1(%arg0: i32) -> (i32, i32, i32) {
    %c0_i32 = arith.constant 0 : i32
    %c0_i32_0 = arith.constant 0 : i32
    %c0_i32_1 = arith.constant 0 : i32
    return %arg0, %c0_i32, %c0_i32_0 : i32, i32, i32
  }
  func.func @transform_2(%arg0: i32) -> (i32, i32, i32) {
    %c0_i32 = arith.constant 0 : i32
    %c0_i32_0 = arith.constant 0 : i32
    %c0_i32_1 = arith.constant 0 : i32
    return %arg0, %c0_i32, %c0_i32_0 : i32, i32, i32
  }
  func.func @transform_3(%arg0: i32) -> (i32, i32, i32) {
    %c0_i32 = arith.constant 0 : i32
    %c0_i32_0 = arith.constant 0 : i32
    %c0_i32_1 = arith.constant 0 : i32
    return %arg0, %c0_i32, %c0_i32_0 : i32, i32, i32
  }
  func.func @transform_4(%arg0: i32) -> (i32, i32, i32) {
    %c0_i32 = arith.constant 0 : i32
    %c0_i32_0 = arith.constant 0 : i32
    %c0_i32_1 = arith.constant 0 : i32
    %c0_i32_2 = arith.constant 0 : i32
    return %c0_i32, %c0_i32_0, %c0_i32_1 : i32, i32, i32
  }
  func.func @transform_5(%arg0: i32) -> (i32, i32) {
    %c0_i32 = arith.constant 0 : i32
    %c0_i32_0 = arith.constant 0 : i32
    %c0_i32_1 = arith.constant 0 : i32
    return %c0_i32, %c0_i32_0 : i32, i32
  }
  func.func @transform_6(%arg0: i32) -> (i32, i32) {
    %c0_i32 = arith.constant 0 : i32
    %c0_i32_0 = arith.constant 0 : i32
    %c0_i32_1 = arith.constant 0 : i32
    return %c0_i32, %c0_i32_0 : i32, i32
  }
  func.func @transform_7(%arg0: i32) -> (i32, i32, i32) {
    %c0_i32 = arith.constant 0 : i32
    %c0_i32_0 = arith.constant 0 : i32
    %c0_i32_1 = arith.constant 0 : i32
    %c0_i32_2 = arith.constant 0 : i32
    return %c0_i32, %c0_i32_0, %c0_i32_1 : i32, i32, i32
  }
  func.func @transform_8(%arg0: i32) -> (i32, i32) {
    %c0_i32 = arith.constant 0 : i32
    %c0_i32_0 = arith.constant 0 : i32
    %c0_i32_1 = arith.constant 0 : i32
    return %c0_i32, %c0_i32_0 : i32, i32
  }
  func.func @transform_9(%arg0: i32) -> (i32, i32) {
    %c0_i32 = arith.constant 0 : i32
    %c0_i32_0 = arith.constant 0 : i32
    %c0_i32_1 = arith.constant 0 : i32
    return %c0_i32, %c0_i32_0 : i32, i32
  }
  func.func @transform_10(%arg0: i32) -> (i32, i32, i32) {
    %c0_i32 = arith.constant 0 : i32
    %c0_i32_0 = arith.constant 0 : i32
    %c0_i32_1 = arith.constant 0 : i32
    %c0_i32_2 = arith.constant 0 : i32
    return %c0_i32, %c0_i32_0, %c0_i32_1 : i32, i32, i32
  }
  func.func @transform_11(%arg0: i32) -> (i32, i32) {
    %c0_i32 = arith.constant 0 : i32
    %c0_i32_0 = arith.constant 0 : i32
    %c0_i32_1 = arith.constant 0 : i32
    return %c0_i32, %c0_i32_0 : i32, i32
  }
  func.func @transform_12(%arg0: i32) -> (i32, i32) {
    %c0_i32 = arith.constant 0 : i32
    %c0_i32_0 = arith.constant 0 : i32
    %c0_i32_1 = arith.constant 0 : i32
    return %c0_i32, %c0_i32_0 : i32, i32
  }
  func.func @transform_13(%arg0: i32) -> (i32, i32, i32) {
    %c0_i32 = arith.constant 0 : i32
    %c0_i32_0 = arith.constant 0 : i32
    %c0_i32_1 = arith.constant 0 : i32
    return %arg0, %c0_i32, %c0_i32_0 : i32, i32, i32
  }
}

</mosaic_0001>

<bundles_post_ra>
// kernel: conv_features_getter.1
= control target key start
LH: loop header
LB: loop body
LE: loop exit
PB: predicated region body
PF: predicated region fallthrough
CT: control target
= control target key end

     0   :  { %s13734_s25 = smov 0   ;;  %s17082_s0 = inlined_call_operand.vmem [shape: bf16[2,121,8], index: 0, kind: input, shape index: {}]   ;;  %s17083_s1 = inlined_call_operand.vmem [shape: bf16[2,121,8], index: 1, kind: input, shape index: {}]   ;;  %s17084_s2 = inlined_call_operand.vmem [shape: bf16[2,121,8], index: 2, kind: input, shape index: {}]   ;;  %s17085_s3 = inlined_call_operand.vmem [shape: bf16[2,121,8], index: 3, kind: input, shape index: {}]   ;;  %s17086_s4 = inlined_call_operand.vmem [shape: bf16[49,8,128], index: 4, kind: input, shape index: {}]   ;;  %s17087_s5 = inlined_call_operand.vmem [shape: f32[1,128], index: 5, kind: input, shape index: {}]   ;;  %s17088_s6 = inlined_call_operand.vmem [shape: f32[1,128], index: 6, kind: input, shape index: {}]   ;;  %s17089_s7 = inlined_call_operand.vmem [shape: bf16[9,128,128], index: 7, kind: input, shape index: {}]   ;;  %s17090_s8 = inlined_call_operand.vmem [shape: f32[1,128], index: 8, kind: input, shape index: {}]   ;;  %s17091_s9 = inlined_call_operand.vmem [shape: f32[1,128], index: 9, kind: input, shape index: {}]   ;;  %s17092_s10 = inlined_call_operand.vmem [shape: bf16[9,128,128], index: 10, kind: input, shape index: {}]   ;;  %s17093_s11 = inlined_call_operand.vmem [shape: f32[1,128], index: 11, kind: input, shape index: {}]   ;;  %s17094_s12 = inlined_call_operand.vmem [shape: f32[1,128], index: 12, kind: input, shape index: {}]   ;;  %s17095_s13 = inlined_call_operand.vmem [shape: f32[2,16,128], index: 13, kind: output, shape index: {}]  }
   0x1 LB: > { %s10797_s26 = sadd.s32 4294967295, %s13661_s25   ;;  %p10801_p0 = scmp.ge.s32.totalorder %s13661_s25, 1  ;;  %s13661_s25 = sphi %s13734_s25, %s23_s25  }
   0x2   : > { %p417_p1 = scmp.lt.s32.totalorder %s13661_s25, 3 }
   0x4   : > { %p418_p2 = pnand %p10801_p0, %p417_p1 }
   0x6   : > { %421 = sbr.rel (%p418_p2) target bundleno = 1520 (0x5f0), region = 72 }
   0xb   : > { %v10812_v0 = vld [vmem:[%s17086_s4 + $0x4] sm:$0xf]  ;;  %vm574_vm0 = vcmask 1043456   ;;  %p476_p3 = scmp.lt.s32.totalorder %s10797_s26, 1  ;;  %v513_v2 = vld [vmem:[%s17086_s4] sm:$0xf] }
   0xc   : > { %13299 = vmatprep.subr.msk.bf16.mxu1 %vm574_vm0, %v10812_v0  ;;  %v576_v1 = vsel %vm574_vm0, %v10812_v0, 0  ;;  %13298 = vmatprep.subr.msk.bf16.mxu0 %vm574_vm0, %v10812_v0  ;;  %v10837_v3 = vld [vmem:[%s17086_s4 + $0x8] sm:$0xf]  ;;  %vm555_vm1 = vcmask 64512   ;;  %v705_v6 = vsel %vm574_vm0, %v513_v2, 0  ;;  %vm1108_vm3 = vcmask 1046528  }
   0xd   : > { %13297 = vmatpush3.bf16.msra.mxu1 %v576_v1  ;;  %s17146_s26 = smov (!%p476_p3, %s10797_s26), 1  ;;  %12251 = vmatpush3.bf16.msra.mxu0 %v576_v1  ;;  %v10844_v9 = vld [vmem:[%s17086_s4 + $0xc] sm:$0xf]  ;;  %v850_v13 = vsel %vm574_vm0, %v10837_v3, 0  ;;  %v10851_v15 = vld [vmem:[%s17086_s4 + $0x10] sm:$0xf] }
   0xe   : > { %13300 = vmatprep.subr.msk.bf16.mxu1 %vm574_vm0, %v513_v2  ;;  %13301 = vmatprep.subr.msk.bf16.mxu0 %vm574_vm0, %v10837_v3  ;;  %s13759_s16 = sshll.u32 %s17146_s26, 6  ;;  %vm789_vm2 = vsmask.f32 7424  ;;  %v1139_v42 = vsel %vm574_vm0, %v10851_v15, 0  ;;  %v1005_v45 = vsel %vm574_vm0, %v10844_v9, 0  ;;  %vm2998_vm5 = vcmask 1045504  }
   0xf   : > { %s13765_s19 = scalar_lea.vmem %s17083_s1, %s13759_s16  ;;  %s13787_s24 = scalar_lea.vmem %s17082_s0, %s13759_s16  ;;  %v10860_v48 = vld [vmem:[%s17086_s4 + $0x14] sm:$0xf]  ;;  %v10869_v50 = vld [vmem:[%s17086_s4 + $0x18] sm:$0xf]  ;;  %vm1367_vm4 = vsmask.f32 6400 }
  0x10   : > { %v13768_v4 = vld [vmem:[%s13765_s19 + $0x10] sm:$0xff]   ;;  %v13771_v5 = vld [vmem:[%s13765_s19 + $0x18] sm:$0xff]   ;;  %v514_v7 = vld [vmem:[%s13765_s19] sm:$0xf]  ;;  %s13867_s17 = scalar_lea.vmem %s17085_s3, %s13759_s16  ;;  %s13888_s23 = scalar_lea.vmem %s17084_s2, %s13759_s16  ;;  %vm3291_vm6 = vsmask.f32 5376 }
  0x11   : > { %12256 = vmatprep.mubr.msk.bf16.mxu1 %vm555_vm1, %v13768_v4  ;;  %v13778_v8 = vld [vmem:[%s13765_s19 + $0x4] sm:$0xf]  ;;  %v13795_v11 = vld [vmem:[%s13765_s19 + $0x8] sm:$0xff]   ;;  %v502_v17 = vld [vmem:[%s13787_s24] sm:$0xf]  ;;  %v1247_v3 = vrot.slane %v13771_v5, 1 }
  0x12   : > { %12257 = vmatmul.mubr.msk.bf16.vlgmr.msra.gmra.mxu1 %vm555_vm1, %v13771_v5  ;;  %v13792_v10 = vcombine.low %v514_v7, %v13778_v8  ;;  %v13798_v12 = vld [vmem:[%s13765_s19 + $0x20] sm:$0xff]   ;;  %v13804_v14 = vld [vmem:[%s13787_s24 + $0x8] sm:$0xff]   ;;  %v13819_v18 = vld [vmem:[%s13787_s24 + $0x10] sm:$0xff]   ;;  %v951_v60 = vshll.u32 %v13795_v11, 16  ;;  %vm3634_vm7 = vcmask 1044480  }
  0x13   : > { %12265 = vmatpush3.bf16.msra.mxu1 %v705_v6  ;;  %12260 = vmatprep.mubr.msk.bf16.mxu1 %vm555_vm1, %v13798_v12  ;;  %v13815_v16 = vld [vmem:[%s13765_s19 + $0x28] ss:$0 sps:$4 sm:$0x77]   ;;  %v503_v19 = vld [vmem:[%s13787_s24 + $0x4] sm:$0xf]  ;;  %v796_v20 = vshll.u32 %v13804_v14, 16 }
  0x14   : > { %12252 = vmatprep.mubr.msk.bf16.mxu0 %vm555_vm1, %v13792_v10  ;;  %13302 = vmatprep.subr.msk.bf16.mxu1 %vm574_vm0, %v10844_v9  ;;  %v10825_v21 = vcombine.low %v502_v17, %v503_v19  ;;  %v800_v22 = vshrl.u32 %v13804_v14, 16  ;;  %v803_v23 = vshll.u32 %v13819_v18, 16  ;;  %v13829_v25 = vld [vmem:[%s13787_s24 + $0x18] sm:$0xff]   ;;  %v807_v30 = vshrl.u32 %v13819_v18, 16  ;;  %v13841_v33 = vld [vmem:[%s13787_s24 + $0x20] sm:$0xff]  }
  0x15   : > { %12253 = vmatmul.mubr.msk.bf16.vlgmr.msra.gmra.mxu0 %vm555_vm1, %v13795_v11  ;;  %v798_v24 = vrot.slane %v796_v20, 1  ;;  %v810_v31 = vshll.u32 %v13829_v25, 16  ;;  %v13369_v36 = vld [vmem:[%s13787_s24 + $0x28] ss:$0 sps:$4 sm:$0x77]   ;;  %v817_v38 = vshll.u32 %v13841_v33, 16 }
  0x16   : > { %12279 = vmatpush3.bf16.msra.mxu0 %v850_v13  ;;  %v790_v26 = vshrl.u32 %v10825_v21, 16  ;;  %v792_v27 = vshll.u32 %v10825_v21, 16  ;;  %v805_v28 = vrot.slane %v803_v23, 1  ;;  %v814_v40 = vshrl.u32 %v13829_v25, 16  ;;  %v1098_v54 = vld [vmem:[%s13787_s24] sm:$0xe] }
  0x17   : > { %13303 = vmatprep.subr.msk.bf16.mxu0 %vm574_vm0, %v10851_v15  ;;  %v802_v29 = vor.u32 %v800_v22, %v798_v24  ;;  %v812_v35 = vrot.slane %v810_v31, 1  ;;  %v821_v43 = vshrl.u32 %v13841_v33, 16  ;;  %v824_v44 = vshll.u32 %v13369_v36, 16 }
  0x18   : > { %v794_v32 = vrot.slane %v792_v27, 1  ;;  %v809_v34 = vor.u32 %v807_v30, %v805_v28  ;;  %v819_v47 = vrot.slane %v817_v38, 1  ;;  %v947_v53 = vshll.u32 %v13792_v10, 16 }
  0x19   : > { %v806_v39 = vsel %vm789_vm2, %v802_v29, %v805_v28  ;;  %v816_v49 = vor.u32 %v814_v40, %v812_v35  ;;  %v826_v52 = vrot.slane %v824_v44, 1  ;;  %v13893_v57 = vcombine.low %v1098_v54, %v503_v19 }
  0x1a   : > { %12261 = vmatmul.mubr.msk.bf16.gmra.mxu1 %vm555_vm1, %v13815_v16  ;;  %v795_v37 = vor.u32 %v794_v32, %v790_v26  ;;  %v813_v46 = vsel %vm789_vm2, %v809_v34, %v812_v35  ;;  %v823_v51 = vor.u32 %v821_v43, %v819_v47  ;;  %v945_v58 = vshrl.u32 %v13792_v10, 16 }
  0x1b   : > { %12266 = vmatprep.mubr.msk.bf16.mxu1 %vm555_vm1, %v10825_v21  ;;  %v820_v55 = vsel %vm789_vm2, %v816_v49, %v819_v47  ;;  %v949_v59 = vrot.slane %v947_v53, 1  ;;  %v828_v61 = vshrl.u32 %v13369_v36, 16  ;;  %v1109_v62 = vrot.slane %v13893_v57, 1 }
  0x1c   : > { %v799_v41 = vsel %vm789_vm2, %v795_v37, %v798_v24  ;;  %v827_v56 = vsel %vm789_vm2, %v823_v51, %v826_v52  ;;  %v1110_v63 = vrot.slane %v13804_v14, 1  ;;  %v953_v1 = vrot.slane %v951_v60, 1 }
  0x1d   : > { %12280 = vmatprep.mubr.msk.bf16.mxu0 %vm555_vm1, %v799_v41  ;;  %v950_v0 = vor.u32 %v949_v59, %v945_v58  ;;  %v830_v2 = vor.u32 %v828_v61, %v826_v52  ;;  %v1249_v6 = vrot.slane %v13798_v12, 1  ;;  %v955_v9 = vshrl.u32 %v13795_v11, 16  ;;  %v13933_v41 = vld [vmem:[%s13787_s24 + $0x28] ss:$0 sps:$4 sm:$0xff]   ;;  %v1232_v58 = vld [vmem:[%s13765_s19] sm:$0xe] }
  0x1e   : > { %12281 = vmatmul.mubr.msk.bf16.vlgmr.msra.gmra.mxu0 %vm555_vm1, %v806_v39  ;;  %v1111_v7 = vsel %vm1108_vm3, %v1109_v62, %v1110_v63  ;;  %v958_v10 = vshll.u32 %v13768_v4, 16  ;;  %v962_v17 = vshrl.u32 %v13768_v4, 16  ;;  %v965_v19 = vshll.u32 %v13771_v5, 16 }
  0x1f   : > { %12307 = vmatpush3.bf16.msra.mxu0 %v1139_v42  ;;  %12284 = vmatprep.mubr.msk.bf16.mxu0 %vm555_vm1, %v813_v46  ;;  %v954_v13 = vsel %vm789_vm2, %v950_v0, %v953_v1  ;;  %v13916_v15 = vsel %vm1108_vm3, %v1247_v3, %v1249_v6  ;;  %v1112_v21 = vrot.slane %v13819_v18, 1  ;;  %v957_v24 = vor.u32 %v955_v9, %v953_v1  ;;  %v10876_v46 = vld [vmem:[%s17086_s4 + $0x1c] sm:$0xf] }
  0x20   : > { %13305 = vmatprep.subr.msk.bf16.mxu0 %vm574_vm0, %v10869_v50  ;;  %v960_v26 = vrot.slane %v958_v10, 1  ;;  %v1114_v27 = vrot.slane %v13829_v25, 1  ;;  %v967_v29 = vrot.slane %v965_v19, 1  ;;  %v1272_v34 = vsel %vm574_vm0, %v10860_v48, 0 }
  0x21   : > { %v1113_v32 = vsel %vm1108_vm3, %v1110_v63, %v1112_v21  ;;  %v972_v35 = vshll.u32 %v13798_v12, 16  ;;  %v1420_v37 = vsel %vm574_vm0, %v10869_v50, 0  ;;  %v969_v39 = vshrl.u32 %v13771_v5, 16 }
  0x22   : > { %12267 = vmatmul.mubr.msk.bf16.vlgmr.msra.gmra.mxu1 %vm555_vm1, %v13804_v14  ;;  %v964_v28 = vor.u32 %v962_v17, %v960_v26  ;;  %v1115_v42 = vsel %vm1108_vm3, %v1112_v21, %v1114_v27  ;;  %v976_v44 = vshrl.u32 %v13798_v12, 16  ;;  %v1116_v49 = vrot.slane %v13841_v33, 1  ;;  %v14029_v12 = vld [vmem:[%s13888_s23 + $0x4] sm:$0xf] }
  0x23   : > { %12293 = vmatpush3.bf16.msra.mxu1 %v1005_v45  ;;  %12270 = vmatprep.mubr.msk.bf16.mxu1 %vm555_vm1, %v13819_v18  ;;  %v979_v45 = vshll.u32 %v13815_v16, 16  ;;  %v974_v50 = vrot.slane %v972_v35, 1  ;;  %v1369_v51 = vshrl.u32 %v13893_v57, 16  ;;  %v971_v52 = vor.u32 %v969_v39, %v967_v29 }
  0x24   : > { %13304 = vmatprep.subr.msk.bf16.mxu1 %vm574_vm0, %v10860_v48  ;;  %v968_v47 = vsel %vm789_vm2, %v964_v28, %v967_v29  ;;  %v10889_v48 = vld [vmem:[%s17086_s4 + $0x20] sm:$0xf]  ;;  %v1118_v53 = vrot.slane %v13933_v41, 1  ;;  %v1372_v54 = vshll.u32 %v13893_v57, 16  ;;  %v1117_v59 = vsel %vm1108_vm3, %v1114_v27, %v1116_v49 }
  0x25   : > { %v1371_v60 = vrot.slane %v1369_v51, 1  ;;  %v1376_v61 = vrot.slane %v800_v22, 1  ;;  %v975_v62 = vsel %vm789_vm2, %v971_v52, %v974_v50  ;;  %v1377_v0 = vrot.slane %v796_v20, 2  ;;  %v10916_v51 = vld [vmem:[%s17086_s4 + $0x2c] sm:$0xf] }
  0x26   : > { %12285 = vmatmul.mubr.msk.bf16.gmra.mxu0 %vm555_vm1, %v820_v55  ;;  %v978_v55 = vor.u32 %v976_v44, %v974_v50  ;;  %v1119_v63 = vsel %vm1108_vm3, %v1116_v49, %v1118_v53  ;;  %v1374_v57 = vrot.slane %v1372_v54, 2  ;;  %v10861_v1 = vcombine.low %v1232_v58, %v13778_v8  ;;  %v1513_v44 = vld [vmem:[%s13888_s23] sm:$0xf]  ;;  %v14049_v50 = vld [vmem:[%s13888_s23 + $0x10] sm:$0xff]   ;;  %v14064_v54 = vld [vmem:[%s13867_s17 + $0x18] sm:$0xff]  }
  0x27   : > { %12288 = vmatprep.mubr.msk.bf16.mxu0 %vm555_vm1, %v827_v56  ;;  %v981_v56 = vrot.slane %v979_v45, 1  ;;  %v983_v22 = vshrl.u32 %v13815_v16, 16  ;;  %v1378_v9 = vor.u32 %v1377_v0, %v1376_v61  ;;  %v1243_v14 = vrot.slane %v13795_v11, 1  ;;  %v10925_v52 = vld [vmem:[%s17086_s4 + $0x30] sm:$0xf]  ;;  %v14073_v58 = vld [vmem:[%s13867_s17 + $0x20] sm:$0xff]  }
  0x28   : > { %v1242_v10 = vrot.slane %v10861_v1, 1  ;;  %v1381_v8 = vrot.slane %v803_v23, 2  ;;  %v1380_v20 = vrot.slane %v807_v30, 1  ;;  %v1384_v16 = vrot.slane %v814_v40, 1  ;;  %v14079_v61 = vld [vmem:[%s13888_s23 + $0x20] sm:$0xff]  }
  0x29   : > { %v1385_v21 = vrot.slane %v810_v31, 2  ;;  %v1245_v18 = vrot.slane %v13768_v4, 1  ;;  %v1393_v23 = vshrl.u32 %v13933_v41, 16  ;;  %v1396_v30 = vshll.u32 %v13933_v41, 16  ;;  %v1666_v41 = vld [vmem:[%s13867_s17] sm:$0xf] }
  0x2a   : > { %12271 = vmatmul.mubr.msk.bf16.gmra.mxu1 %vm555_vm1, %v13829_v25  ;;  %v1244_v19 = vsel %vm1108_vm3, %v1242_v10, %v1243_v14  ;;  %v1382_v11 = vor.u32 %v1381_v8, %v1380_v20  ;;  %v1726_v25 = vsel %vm574_vm0, %v10889_v48, 0  ;;  %v1573_v4 = vsel %vm574_vm0, %v10876_v46, 0 }
  0x2b   : > { %12274 = vmatprep.mubr.msk.bf16.mxu1 %vm555_vm1, %v13841_v33  ;;  %v1386_v40 = vor.u32 %v1385_v21, %v1384_v16  ;;  %v1246_v27 = vsel %vm1108_vm3, %v1243_v14, %v1245_v18  ;;  %v1395_v28 = vrot.slane %v1393_v23, 1  ;;  %v1398_v29 = vrot.slane %v1396_v30, 2  ;;  %v10902_v33 = vld [vmem:[%s17086_s4 + $0x24] sm:$0xf] }
  0x2c   : > { %v1383_v31 = vsel %vm1367_vm4, %v1378_v9, %v1382_v11  ;;  %v1248_v35 = vsel %vm1108_vm3, %v1245_v18, %v1247_v3  ;;  %v10877_v45 = vcombine.low %v1513_v44, %v14029_v12  ;;  %v1881_v49 = vsel %vm574_vm0, %v10902_v33, 0  ;;  %v14096_v14 = vld [vmem:[%s13888_s23 + $0x28] ss:$0 sps:$4 sm:$0x77]  }
  0x2d   : > { %v1399_v5 = vor.u32 %v1398_v29, %v1395_v28  ;;  %v1834_v20 = vshll.u32 %v14049_v50, 16  ;;  %v1838_v18 = vshrl.u32 %v14049_v50, 16  ;;  %v2169_v28 = vsel %vm574_vm0, %v10916_v51, 0 }
  0x2e   : > { %12289 = vmatmul.mubr.msk.bf16.gmra.mxu0 %vm555_vm1, %v830_v2  ;;  %v982_v2 = vsel %vm789_vm2, %v978_v55, %v981_v56  ;;  %v1823_v55 = vshll.u32 %v10877_v45, 16  ;;  %v2302_v29 = vsel %vm574_vm0, %v10925_v52, 0  ;;  %v1852_v44 = vshrl.u32 %v14079_v61, 16 }
  0x2f   : > { %12308 = vmatprep.mubr.msk.bf16.mxu0 %vm555_vm1, %v1111_v7  ;;  %v1375_v7 = vor.u32 %v1374_v57, %v1371_v60  ;;  %v1821_v57 = vshrl.u32 %v10877_v45, 16  ;;  %vm5307_vm8 = vsmask.f32 4352 }
  0x30   : > { %v1825_v0 = vrot.slane %v1823_v55, 1 }
  0x31   : > { %v1379_v17 = vsel %vm1367_vm4, %v1375_v7, %v1378_v9  ;;  %v14091_v7 = vld [vmem:[%s13867_s17 + $0x28] ss:$0 sps:$4 sm:$0x77]  }
  0x32   : > { %12275 = vmatmul.mubr.msk.bf16.gmra.mxu1 %vm555_vm1, %v13369_v36  ;;  %v961_v36 = vsel %vm789_vm2, %v957_v24, %v960_v26  ;;  %v1388_v24 = vrot.slane %v821_v43, 1  ;;  %v1389_v26 = vrot.slane %v817_v38, 2  ;;  %v10909_v43 = vld [vmem:[%s17086_s4 + $0x28] sm:$0xf]  ;;  %v1826_v10 = vor.u32 %v1825_v0, %v1821_v57 }
  0x33   : > { %12294 = vmatprep.mubr.msk.bf16.mxu1 %vm555_vm1, %v954_v13  ;;  %v985_v13 = vor.u32 %v983_v22, %v981_v56  ;;  %v14070_v56 = vld [vmem:[%s13888_s23 + $0x18] sm:$0xff]  }
  0x34   : > { %v1390_v38 = vor.u32 %v1389_v26, %v1388_v24  ;;  %v1841_v23 = vshll.u32 %v14070_v56, 16  ;;  %v1848_v26 = vshll.u32 %v14079_v61, 16 }
  0x36   : > { %12309 = vmatmul.mubr.msk.bf16.vlgmr.msra.gmra.mxu0 %vm555_vm1, %v1113_v32  ;;  %v1387_v32 = vsel %vm1367_vm4, %v1382_v11, %v1386_v40 }
  0x37   : > { %12335 = vmatpush3.bf16.msra.mxu0 %v1420_v37  ;;  %12312 = vmatprep.mubr.msk.bf16.mxu0 %vm555_vm1, %v1115_v42  ;;  %v1400_v37 = vsel %vm1367_vm4, %v1390_v38, %v1399_v5  ;;  %v14025_v42 = vld [vmem:[%s13867_s17 + $0x4] sm:$0xf] }
  0x38   : > { %13307 = vmatprep.subr.msk.bf16.mxu0 %vm574_vm0, %v10889_v48  ;;  %v14045_v48 = vld [vmem:[%s13867_s17 + $0x10] sm:$0xff]  }
  0x39   : > { %v1989_v1 = vshll.u32 %v14045_v48, 16  ;;  %v1993_v11 = vshrl.u32 %v14045_v48, 16 }
  0x3a   : > { %12295 = vmatmul.mubr.msk.bf16.vlgmr.msra.gmra.mxu1 %vm555_vm1, %v961_v36  ;;  %v1391_v36 = vsel %vm1367_vm4, %v1386_v40, %v1390_v38  ;;  %v1836_v40 = vrot.slane %v1834_v20, 1  ;;  %v1855_v38 = vshll.u32 %v14096_v14, 16 }
  0x3b   : > { %12321 = vmatpush3.bf16.msra.mxu1 %v1272_v34  ;;  %12298 = vmatprep.mubr.msk.bf16.mxu1 %vm555_vm1, %v968_v47  ;;  %v13372_v34 = vld [vmem:[%s13765_s19 + $0x28] ss:$0 sps:$4 sm:$0xff]   ;;  %v2036_v47 = vsel %vm574_vm0, %v10909_v43, 0  ;;  %v1991_v16 = vrot.slane %v1989_v1, 1 }
  0x3c   : > { %13306 = vmatprep.subr.msk.bf16.mxu1 %vm574_vm0, %v10876_v46  ;;  %v1251_v3 = vrot.slane %v13372_v34, 1  ;;  %v14041_v46 = vld [vmem:[%s13888_s23 + $0x8] sm:$0xff]  }
  0x3d   : > { %v1827_v60 = vshll.u32 %v14041_v46, 16 }
  0x3e   : > { %12313 = vmatmul.mubr.msk.bf16.gmra.mxu0 %vm555_vm1, %v1117_v59  ;;  %v1252_v39 = vsel %vm1108_vm3, %v1249_v6, %v1251_v3  ;;  %v10890_v6 = vcombine.low %v1666_v41, %v14025_v42  ;;  %v1850_v41 = vrot.slane %v1848_v26, 1 }
  0x3f   : > { %12316 = vmatprep.mubr.msk.bf16.mxu0 %vm555_vm1, %v1119_v63  ;;  %v1829_v22 = vrot.slane %v1827_v60, 1 }
  0x41   : > { %v1830_v21 = vsel %vm789_vm2, %v1826_v10, %v1829_v22  ;;  %v1859_v10 = vshrl.u32 %v14096_v14, 16 }
  0x42   : > { %12299 = vmatmul.mubr.msk.bf16.gmra.mxu1 %vm555_vm1, %v975_v62  ;;  %v1976_v62 = vshrl.u32 %v10890_v6, 16 }
  0x43   : > { %12302 = vmatprep.mubr.msk.bf16.mxu1 %vm555_vm1, %v982_v2 }
  0x46   : > { %12317 = vmatmul.mubr.msk.bf16.gmra.mxu0 %vm555_vm1, %v1118_v53  ;;  %v1978_v53 = vshll.u32 %v10890_v6, 16 }
  0x47   : > { %12336 = vmatprep.mubr.msk.bf16.mxu0 %vm555_vm1, %v1379_v17  ;;  %v1831_v17 = vshrl.u32 %v14041_v46, 16 }
  0x48   : > { %v1980_v63 = vrot.slane %v1978_v53, 1 }
  0x4a   : > { %12303 = vmatmul.mubr.msk.bf16.gmra.mxu1 %vm555_vm1, %v985_v13  ;;  %v1981_v9 = vor.u32 %v1980_v63, %v1976_v62  ;;  %v2129_v62 = vld [vmem:[%s13888_s23] sm:$0xe] }
  0x4b   : > { %12322 = vmatprep.mubr.msk.bf16.mxu1 %vm555_vm1, %v1244_v19  ;;  %v1996_v19 = vshll.u32 %v14064_v54, 16 }
  0x4d   : > { %v1998_v24 = vrot.slane %v1996_v19, 1 }
  0x4e   : > { %12337 = vmatmul.mubr.msk.bf16.vlgmr.msra.gmra.mxu0 %vm555_vm1, %v1383_v31  ;;  %v1833_v31 = vor.u32 %v1831_v17, %v1829_v22 }
  0x4f   : > { %12363 = vmatpush3.bf16.msra.mxu0 %v1726_v25  ;;  %12340 = vmatprep.mubr.msk.bf16.mxu0 %vm555_vm1, %v1387_v32  ;;  %v2003_v25 = vshll.u32 %v14073_v58, 16  ;;  %v1843_v32 = vrot.slane %v1841_v23, 1 }
  0x50   : > { %13309 = vmatprep.subr.msk.bf16.mxu0 %vm574_vm0, %v10909_v43  ;;  %v1837_v43 = vsel %vm789_vm2, %v1833_v31, %v1836_v40  ;;  %v14187_v31 = vld [vmem:[%s13888_s23 + $0x28] ss:$0 sps:$4 sm:$0xff]  }
  0x52   : > { %12323 = vmatmul.mubr.msk.bf16.vlgmr.msra.gmra.mxu1 %vm555_vm1, %v1246_v27  ;;  %v1995_v27 = vor.u32 %v1993_v11, %v1991_v16  ;;  %v2142_v11 = vrot.slane %v14049_v50, 1 }
  0x53   : > { %12349 = vmatpush3.bf16.msra.mxu1 %v1573_v4  ;;  %12326 = vmatprep.mubr.msk.bf16.mxu1 %vm555_vm1, %v1248_v35  ;;  %v1840_v4 = vor.u32 %v1838_v18, %v1836_v40  ;;  %v2000_v35 = vshrl.u32 %v14064_v54, 16  ;;  %v14183_v40 = vld [vmem:[%s13867_s17 + $0x28] ss:$0 sps:$4 sm:$0xff]  }
  0x54   : > { %13308 = vmatprep.subr.msk.bf16.mxu1 %vm574_vm0, %v10902_v33  ;;  %v2010_v33 = vshll.u32 %v14091_v7, 16 }
  0x56   : > { %12341 = vmatmul.mubr.msk.bf16.gmra.mxu0 %vm555_vm1, %v1391_v36  ;;  %v2007_v36 = vshrl.u32 %v14073_v58, 16 }
  0x57   : > { %12344 = vmatprep.mubr.msk.bf16.mxu0 %vm555_vm1, %v1400_v37  ;;  %v10934_v37 = vld [vmem:[%s17086_s4 + $0x34] sm:$0xf] }
  0x5a   : > { %12327 = vmatmul.mubr.msk.bf16.gmra.mxu1 %vm555_vm1, %v13916_v15  ;;  %v14038_v15 = vld [vmem:[%s13867_s17 + $0x8] sm:$0xff]  }
  0x5b   : > { %12330 = vmatprep.mubr.msk.bf16.mxu1 %vm555_vm1, %v1252_v39  ;;  %v1982_v59 = vshll.u32 %v14038_v15, 16  ;;  %v1986_v8 = vshrl.u32 %v14038_v15, 16  ;;  %v1999_v39 = vsel %vm789_vm2, %v1995_v27, %v1998_v24 }
  0x5d   : > { %v1984_v2 = vrot.slane %v1982_v59, 1  ;;  %v1854_v59 = vor.u32 %v1852_v44, %v1850_v41 }
  0x5e   : > { %12345 = vmatmul.mubr.msk.bf16.gmra.mxu0 %vm555_vm1, %v1399_v5  ;;  %v2005_v5 = vrot.slane %v2003_v25, 1  ;;  %v13390_v25 = vld [vmem:[%s13787_s24 + $0xc] sm:$0xff]  }
  0x5f   : > { %12364 = vmatprep.mubr.msk.bf16.mxu0 %vm555_vm1, %v10890_v6  ;;  %v1985_v13 = vsel %vm789_vm2, %v1981_v9, %v1984_v2  ;;  %v1988_v30 = vor.u32 %v1986_v8, %v1984_v2  ;;  %v10941_v6 = vld [vmem:[%s17086_s4 + $0x38] sm:$0xf]  ;;  %v14160_v2 = vcombine.low %v2129_v62, %v14029_v12  ;;  %v2014_v9 = vshrl.u32 %v14091_v7, 16  ;;  %v13392_v62 = vld [vmem:[%s13787_s24 + $0x1c] sm:$0xff]  }
  0x60   : > { %v2009_v55 = vor.u32 %v2007_v36, %v2005_v5  ;;  %v2148_v36 = vrot.slane %v14187_v31, 1 }
  0x61   : > { %v1992_v34 = vsel %vm789_vm2, %v1988_v30, %v1991_v16  ;;  %v2139_v12 = vrot.slane %v14160_v2, 1  ;;  %v2277_v30 = vrot.slane %v14064_v54, 1 }
  0x62   : > { %12331 = vmatmul.mubr.msk.bf16.gmra.mxu1 %vm555_vm1, %v1251_v3  ;;  %v1845_v3 = vshrl.u32 %v14070_v56, 16 }
  0x63   : > { %12350 = vmatprep.mubr.msk.bf16.mxu1 %vm555_vm1, %v10877_v45  ;;  %v1844_v45 = vsel %vm789_vm2, %v1840_v4, %v1843_v32  ;;  %v13391_v4 = vld [vmem:[%s13787_s24 + $0x14] sm:$0xff]  }
  0x64   : > { %v1847_v53 = vor.u32 %v1845_v3, %v1843_v32 }
  0x66   : > { %12365 = vmatmul.mubr.msk.bf16.vlgmr.msra.gmra.mxu0 %vm555_vm1, %v14038_v15  ;;  %v1851_v57 = vsel %vm789_vm2, %v1847_v53, %v1850_v41  ;;  %v2595_v41 = vshll.u32 %v13390_v25, 16  ;;  %v2405_v53 = vrot.slane %v1831_v17, 1  ;;  %v2406_v17 = vrot.slane %v1827_v60, 2 }
  0x67   : > { %12391 = vmatpush3.bf16.msra.mxu0 %v2036_v47  ;;  %12368 = vmatprep.mubr.msk.bf16.mxu0 %vm555_vm1, %v14045_v48  ;;  %v2002_v47 = vor.u32 %v2000_v35, %v1998_v24 }
  0x68   : > { %13311 = vmatprep.subr.msk.bf16.mxu0 %vm574_vm0, %v10925_v52  ;;  %v2262_v52 = vld [vmem:[%s13867_s17] sm:$0xe] }
  0x69   : > { %v2006_v63 = vsel %vm789_vm2, %v2002_v47, %v2005_v5  ;;  %v10926_v1 = vcombine.low %v2262_v52, %v14025_v42  ;;  %v2273_v42 = vrot.slane %v14038_v15, 1  ;;  %v2275_v15 = vrot.slane %v14045_v48, 1  ;;  %v10954_v5 = vld [vmem:[%s17086_s4 + $0x3c] sm:$0xf] }
  0x6a   : > { %12351 = vmatmul.mubr.msk.bf16.vlgmr.msra.gmra.mxu1 %vm555_vm1, %v14041_v46  ;;  %v2398_v47 = vshrl.u32 %v14160_v2, 16  ;;  %v2401_v52 = vshll.u32 %v14160_v2, 16 }
  0x6b   : > { %12377 = vmatpush3.bf16.msra.mxu1 %v1881_v49  ;;  %12354 = vmatprep.mubr.msk.bf16.mxu1 %vm555_vm1, %v14049_v50  ;;  %v2012_v49 = vrot.slane %v2010_v33, 1  ;;  %v2272_v8 = vrot.slane %v10926_v1, 1  ;;  %v2276_v48 = vsel %vm1108_vm3, %v2273_v42, %v2275_v15  ;;  %v2278_v35 = vsel %vm1108_vm3, %v2275_v15, %v2277_v30 }
  0x6c   : > { %13310 = vmatprep.subr.msk.bf16.mxu1 %vm574_vm0, %v10916_v51  ;;  %v1857_v51 = vrot.slane %v1855_v38, 1  ;;  %v2146_v33 = vrot.slane %v14079_v61, 1  ;;  %v2281_v38 = vrot.slane %v14183_v40, 1  ;;  %v2403_v1 = vrot.slane %v2401_v52, 2 }
  0x6d   : > { %v2013_v0 = vsel %vm789_vm2, %v2009_v55, %v2012_v49  ;;  %v2016_v19 = vor.u32 %v2014_v9, %v2012_v49  ;;  %v2274_v16 = vsel %vm1108_vm3, %v2272_v8, %v2273_v42  ;;  %v2597_v55 = vrot.slane %v2595_v41, 2  ;;  %v13393_v8 = vld [vmem:[%s13787_s24 + $0x24] sm:$0xff]  }
  0x6e   : > { %12369 = vmatmul.mubr.msk.bf16.gmra.mxu0 %vm555_vm1, %v14064_v54  ;;  %v1858_v22 = vsel %vm789_vm2, %v1854_v59, %v1857_v51  ;;  %v2279_v54 = vrot.slane %v14073_v58, 1  ;;  %v2400_v59 = vrot.slane %v2398_v47, 1  ;;  %v2149_v2 = vsel %vm1108_vm3, %v2146_v33, %v2148_v36 }
  0x6f   : > { %12372 = vmatprep.mubr.msk.bf16.mxu0 %vm555_vm1, %v14073_v58  ;;  %v10967_v58 = vld [vmem:[%s17086_s4 + $0x40] sm:$0xf]  ;;  %v2619_v15 = vshrl.u32 %v13393_v8, 16  ;;  %v2622_v40 = vshll.u32 %v13393_v8, 16 }
  0x70   : > { %v2404_v42 = vor.u32 %v2403_v1, %v2400_v59  ;;  %v13403_v8 = vld [vmem:[%s13765_s19 + $0x1c] sm:$0xff]  }
  0x72   : > { %12355 = vmatmul.mubr.msk.bf16.gmra.mxu1 %vm555_vm1, %v14070_v56 }
  0x73   : > { %12358 = vmatprep.mubr.msk.bf16.mxu1 %vm555_vm1, %v14079_v61  ;;  %v14265_v61 = vld [vmem:[%s17086_s4 + $0x48] sm:$0xf] }
  0x76   : > { %12373 = vmatmul.mubr.msk.bf16.gmra.mxu0 %vm555_vm1, %v14091_v7  ;;  %v1861_v7 = vor.u32 %v1859_v10, %v1857_v51  ;;  %v2604_v51 = vshll.u32 %v13391_v4, 16  ;;  %v2610_v10 = vshrl.u32 %v13392_v62, 16 }
  0x77   : > { %12392 = vmatprep.mubr.msk.bf16.mxu0 %vm555_vm1, %v1985_v13  ;;  %v2140_v13 = vrot.slane %v14041_v46, 1  ;;  %v2409_v46 = vrot.slane %v1838_v18, 1  ;;  %v2413_v18 = vrot.slane %v1845_v3, 1  ;;  %v2422_v3 = vshrl.u32 %v14187_v31, 16 }
  0x79   : > { %v2143_v32 = vsel %vm1108_vm3, %v2140_v13, %v2142_v11 }
  0x7a   : > { %12359 = vmatmul.mubr.msk.bf16.gmra.mxu1 %vm555_vm1, %v14096_v14  ;;  %v13389_v14 = vld [vmem:[%s13787_s24 + $0x4] sm:$0xfe]  }
  0x7b   : > { %12378 = vmatprep.mubr.msk.bf16.mxu1 %vm555_vm1, %v1830_v21  ;;  %v2141_v21 = vsel %vm1108_vm3, %v2139_v12, %v2140_v13  ;;  %v2584_v24 = vshrl.u32 %v13389_v14, 16  ;;  %v2587_v27 = vshll.u32 %v13389_v14, 16  ;;  %v2407_v12 = vor.u32 %v2406_v17, %v2405_v53  ;;  %v14273_v53 = vld [vmem:[%s13787_s24 + $0x8] sm:$0xf] }
  0x7c   : > { %v2613_v13 = vshll.u32 %v13392_v62, 16  ;;  %v2612_v14 = vrot.slane %v2610_v10, 1  ;;  %v14280_v62 = vld [vmem:[%s13787_s24 + $0xc] sm:$0xff]  }
  0x7e   : > { %12393 = vmatmul.mubr.msk.bf16.vlgmr.msra.gmra.mxu0 %vm555_vm1, %v1992_v34  ;;  %v2655_v34 = vsel %vm574_vm0, %v10941_v6, 0 }
  0x7f   : > { %12419 = vmatpush3.bf16.msra.mxu0 %v2302_v29  ;;  %12396 = vmatprep.mubr.msk.bf16.mxu0 %vm555_vm1, %v1999_v39  ;;  %v2144_v29 = vrot.slane %v14070_v56, 1  ;;  %v2589_v39 = vrot.slane %v2587_v27, 2  ;;  %v2425_v56 = vshll.u32 %v14187_v31, 16  ;;  %v14259_v31 = vld [vmem:[%s17086_s4 + $0x44] sm:$0xf] }
  0x80   : > { %13313 = vmatprep.subr.msk.bf16.mxu0 %vm574_vm0, %v10941_v6 }
  0x81   : > { %v2145_v6 = vsel %vm1108_vm3, %v2142_v11, %v2144_v29  ;;  %v2408_v11 = vsel %vm1367_vm4, %v2404_v42, %v2407_v12  ;;  %v2427_v41 = vrot.slane %v2425_v56, 2 }
  0x82   : > { %12379 = vmatmul.mubr.msk.bf16.vlgmr.msra.gmra.mxu1 %vm555_vm1, %v1837_v43  ;;  %v2592_v43 = vshrl.u32 %v13390_v25, 16  ;;  %v2414_v25 = vrot.slane %v1841_v23, 2  ;;  %v3029_v23 = vsel %vm574_vm0, %v10967_v58, 0 }
  0x83   : > { %12405 = vmatpush3.bf16.msra.mxu1 %v2169_v28  ;;  %12382 = vmatprep.mubr.msk.bf16.mxu1 %vm555_vm1, %v1844_v45  ;;  %v2449_v28 = vsel %vm574_vm0, %v10934_v37, 0  ;;  %v2601_v45 = vshrl.u32 %v13391_v4, 16 }
  0x84   : > { %13312 = vmatprep.subr.msk.bf16.mxu1 %vm574_vm0, %v10934_v37  ;;  %v2586_v37 = vrot.slane %v2584_v24, 1  ;;  %v2594_v49 = vrot.slane %v2592_v43, 1  ;;  %v2861_v24 = vsel %vm574_vm0, %v10954_v5, 0 }
  0x85   : > { %v2603_v60 = vrot.slane %v2601_v45, 1  ;;  %v2954_v45 = vld [vmem:[%s13787_s24 + $0x4] sm:$0xc] }
  0x86   : > { %12397 = vmatmul.mubr.msk.bf16.gmra.mxu0 %vm555_vm1, %v2006_v63  ;;  %v2280_v63 = vsel %vm1108_vm3, %v2277_v30, %v2279_v54  ;;  %v2598_v9 = vor.u32 %v2597_v55, %v2594_v49  ;;  %v2615_v30 = vrot.slane %v2613_v13, 2 }
  0x87   : > { %12400 = vmatprep.mubr.msk.bf16.mxu0 %vm555_vm1, %v2013_v0  ;;  %v2282_v0 = vsel %vm1108_vm3, %v2279_v54, %v2281_v38  ;;  %v13399_v54 = vld [vmem:[%s13765_s19 + $0xc] sm:$0xff]  }
  0x88   : > { %v2616_v4 = vor.u32 %v2615_v30, %v2612_v14  ;;  %v2798_v47 = vshrl.u32 %v13399_v54, 16  ;;  %v2801_v49 = vshll.u32 %v13399_v54, 16  ;;  %v2816_v14 = vshrl.u32 %v13403_v8, 16  ;;  %v2965_v30 = vld [vmem:[%s13787_s24 + $0x30] sm:$0x1] }
  0x8a   : > { %12383 = vmatmul.mubr.msk.bf16.gmra.mxu1 %vm555_vm1, %v1851_v57  ;;  %v2147_v57 = vsel %vm1108_vm3, %v2144_v29, %v2146_v33  ;;  %v13398_v29 = vld [vmem:[%s13765_s19 + $0x4] sm:$0xfe]   ;;  %v2417_v33 = vrot.slane %v1852_v44, 1  ;;  %v2800_v1 = vrot.slane %v2798_v47, 1  ;;  %v2803_v17 = vrot.slane %v2801_v49, 2 }
  0x8b   : > { %12386 = vmatprep.mubr.msk.bf16.mxu1 %vm555_vm1, %v1858_v22  ;;  %v2590_v22 = vor.u32 %v2589_v39, %v2586_v37  ;;  %v2424_v39 = vrot.slane %v2422_v3, 1 }
  0x8d   : > { %v2428_v55 = vor.u32 %v2427_v41, %v2424_v39 }
  0x8e   : > { %12401 = vmatmul.mubr.msk.bf16.gmra.mxu0 %vm555_vm1, %v2016_v19  ;;  %v2606_v19 = vrot.slane %v2604_v51, 2 }
  0x8f   : > { %12420 = vmatprep.mubr.msk.bf16.mxu0 %vm555_vm1, %v2274_v16  ;;  %v13394_v16 = vld [vmem:[%s13787_s24 + $0x2c] ss:$0 sps:$4 sm:$0xff]  }
  0x90   : > { %v2607_v50 = vor.u32 %v2606_v19, %v2603_v60  ;;  %v2628_v27 = vshrl.u32 %v13394_v16, 16  ;;  %v14299_v60 = vld [vmem:[%s13787_s24 + $0x14] sm:$0xff]  }
  0x92   : > { %12387 = vmatmul.mubr.msk.bf16.gmra.mxu1 %vm555_vm1, %v1861_v7  ;;  %v2410_v7 = vrot.slane %v1834_v20, 2  ;;  %v2617_v37 = vsel %vm1367_vm4, %v2607_v50, %v2616_v4 }
  0x93   : > { %12406 = vmatprep.mubr.msk.bf16.mxu1 %vm555_vm1, %v2141_v21  ;;  %v2599_v21 = vsel %vm1367_vm4, %v2590_v22, %v2598_v9 }
  0x94   : > { %v2411_v20 = vor.u32 %v2410_v7, %v2409_v46  ;;  %v2804_v7 = vor.u32 %v2803_v17, %v2800_v1  ;;  %v14355_v17 = vld [vmem:[%s13765_s19 + $0xc] sm:$0xff]  }
  0x96   : > { %12421 = vmatmul.mubr.msk.bf16.vlgmr.msra.gmra.mxu0 %vm555_vm1, %v2276_v48  ;;  %v2621_v48 = vrot.slane %v2619_v15, 1  ;;  %v2412_v43 = vsel %vm1367_vm4, %v2407_v12, %v2411_v20  ;;  %v3000_v12 = vrot.slane %v14280_v62, 2  ;;  %v2819_v15 = vshll.u32 %v13403_v8, 16 }
  0x97   : > { %12447 = vmatpush3.bf16.msra.mxu0 %v2655_v34  ;;  %12424 = vmatprep.mubr.msk.bf16.mxu0 %vm555_vm1, %v2278_v35  ;;  %v2415_v34 = vor.u32 %v2414_v25, %v2413_v18  ;;  %v2608_v35 = vsel %vm1367_vm4, %v2598_v9, %v2607_v50  ;;  %v14288_v9 = vcombine.low %v2954_v45, %v14273_v53  ;;  %v13406_v50 = vld [vmem:[%s13765_s19 + $0x2c] ss:$0 sps:$4 sm:$0xff]  }
  0x98   : > { %13315 = vmatprep.subr.msk.bf16.mxu0 %vm574_vm0, %v10967_v58  ;;  %v2790_v58 = vshrl.u32 %v13398_v29, 16 }
  0x99   : > { %v2416_v44 = vsel %vm1367_vm4, %v2411_v20, %v2415_v34  ;;  %v2999_v42 = vrot.slane %v14288_v9, 2  ;;  %v3002_v20 = vrot.slane %v14299_v60, 2 }
  0x9a   : > { %12407 = vmatmul.mubr.msk.bf16.vlgmr.msra.gmra.mxu1 %vm555_vm1, %v2143_v32  ;;  %v2624_v32 = vrot.slane %v2622_v40, 2 }
  0x9b   : > { %12433 = vmatpush3.bf16.msra.mxu1 %v2449_v28  ;;  %12410 = vmatprep.mubr.msk.bf16.mxu1 %vm555_vm1, %v2145_v6  ;;  %v2631_v28 = vshll.u32 %v13394_v16, 16  ;;  %v2793_v6 = vshll.u32 %v13398_v29, 16  ;;  %v13404_v16 = vld [vmem:[%s13765_s19 + $0x24] sm:$0xff]   ;;  %v3001_v40 = vsel %vm2998_vm5, %v2999_v42, %v3000_v12  ;;  %v2821_v29 = vrot.slane %v2819_v15, 2 }
  0x9c   : > { %13314 = vmatprep.subr.msk.bf16.mxu1 %vm574_vm0, %v10954_v5  ;;  %v2630_v5 = vrot.slane %v2628_v27, 1  ;;  %v14315_v27 = vld [vmem:[%s13787_s24 + $0x24] sm:$0xff]   ;;  %v2828_v3 = vshll.u32 %v13404_v16, 16  ;;  %v3003_v54 = vsel %vm2998_vm5, %v3000_v12, %v3002_v20 }
  0x9e   : > { %12425 = vmatmul.mubr.msk.bf16.gmra.mxu0 %vm555_vm1, %v2280_v63  ;;  %v13400_v63 = vld [vmem:[%s13765_s19 + $0x14] sm:$0xff]   ;;  %v2830_v39 = vrot.slane %v2828_v3, 2  ;;  %v3331_v3 = vshll.u32 %v14315_v27, 16 }
  0x9f   : > { %12428 = vmatprep.mubr.msk.bf16.mxu0 %vm555_vm1, %v2282_v0  ;;  %v2795_v0 = vrot.slane %v2793_v6, 2  ;;  %v2807_v13 = vshrl.u32 %v13400_v63, 16  ;;  %v2810_v46 = vshll.u32 %v13400_v63, 16  ;;  %v14337_v6 = vld [vmem:[%s13765_s19 + $0x4] sm:$0xfc]  }
  0xa1   : > { %v2809_v18 = vrot.slane %v2807_v13, 1  ;;  %v2812_v25 = vrot.slane %v2810_v46, 2 }
  0xa2   : > { %12411 = vmatmul.mubr.msk.bf16.gmra.mxu1 %vm555_vm1, %v2147_v57  ;;  %v2792_v57 = vrot.slane %v2790_v58, 1  ;;  %v3304_v58 = vshll.u32 %v14280_v62, 16 }
  0xa3   : > { %12414 = vmatprep.mubr.msk.bf16.mxu1 %vm555_vm1, %v2149_v2 }
  0xa4   : > { %v2796_v19 = vor.u32 %v2795_v0, %v2792_v57  ;;  %v3306_v57 = vrot.slane %v3304_v58, 3  ;;  %v3310_v0 = vshrl.u32 %v14299_v60, 16 }
  0xa6   : > { %12429 = vmatmul.mubr.msk.bf16.gmra.mxu0 %vm555_vm1, %v2281_v38  ;;  %v2418_v38 = vrot.slane %v1848_v26, 2  ;;  %v2625_v26 = vor.u32 %v2624_v32, %v2621_v48  ;;  %v3196_v48 = vsel %vm574_vm0, %v14259_v31, 0 }
  0xa7   : > { %12448 = vmatprep.mubr.msk.bf16.mxu0 %vm555_vm1, %v2599_v21  ;;  %v14303_v21 = vld [vmem:[%s13787_s24 + $0x1c] sm:$0xff]  }
  0xa8   : > { %v2419_v51 = vor.u32 %v2418_v38, %v2417_v33  ;;  %v2626_v59 = vsel %vm1367_vm4, %v2616_v4, %v2625_v26  ;;  %v2825_v4 = vshrl.u32 %v13404_v16, 16  ;;  %v3004_v32 = vrot.slane %v14303_v21, 2 }
  0xa9   : > { %v3293_v33 = vshrl.u32 %v14288_v9, 16  ;;  %v3364_v38 = vsel %vm574_vm0, %v14265_v61, 0  ;;  %v3319_v12 = vshrl.u32 %v14303_v21, 16  ;;  %v3322_v13 = vshll.u32 %v14303_v21, 16 }
  0xaa   : > { %12415 = vmatmul.mubr.msk.bf16.gmra.mxu1 %vm555_vm1, %v2148_v36  ;;  %v2633_v36 = vrot.slane %v2631_v28, 2  ;;  %v2420_v2 = vsel %vm1367_vm4, %v2415_v34, %v2419_v51  ;;  %v2429_v10 = vsel %vm1367_vm4, %v2419_v51, %v2428_v55  ;;  %v2818_v28 = vrot.slane %v2816_v14, 1  ;;  %v11007_v51 = vld [vmem:[%s17086_s4 + $0x50] sm:$0xf] }
  0xab   : > { %12434 = vmatprep.mubr.msk.bf16.mxu1 %vm555_vm1, %v2408_v11  ;;  %v14306_v11 = vld [vmem:[%s13787_s24 + $0x2c] sm:$0xf]  ;;  %v2834_v34 = vshrl.u32 %v13406_v50, 16  ;;  %v3005_v45 = vsel %vm2998_vm5, %v3002_v20, %v3004_v32  ;;  %v3295_v49 = vrot.slane %v3293_v33, 2  ;;  %v3167_v14 = vrot.slane %v14355_v17, 2 }
  0xac   : > { %v2634_v52 = vor.u32 %v2633_v36, %v2630_v5  ;;  %v14320_v56 = vcombine.low %v14306_v11, %v2965_v30  ;;  %v3296_v5 = vshll.u32 %v14288_v9, 16  ;;  %v3301_v36 = vshrl.u32 %v14280_v62, 16 }
  0xad   : > { %v3166_v9 = vrot.slane %v14337_v6, 2  ;;  %v3312_v30 = vrot.slane %v3310_v0, 2 }
  0xae   : > { %12449 = vmatmul.mubr.msk.bf16.vlgmr.msra.gmra.mxu0 %vm555_vm1, %v2608_v35  ;;  %v2635_v22 = vsel %vm1367_vm4, %v2625_v26, %v2634_v52  ;;  %v2837_v35 = vshll.u32 %v13406_v50, 16  ;;  %v3008_v41 = vrot.slane %v14320_v56, 2  ;;  %v3624_v50 = vld [vmem:[%s13787_s24 + $0x4] sm:$0x8] }
  0xaf   : > { %12475 = vmatpush3.bf16.msra.mxu0 %v3029_v23  ;;  %12452 = vmatprep.mubr.msk.bf16.mxu0 %vm555_vm1, %v2617_v37  ;;  %v2813_v23 = vor.u32 %v2812_v25, %v2809_v18  ;;  %v3006_v37 = vrot.slane %v14315_v27, 2  ;;  %v3321_v18 = vrot.slane %v3319_v12, 2  ;;  %v3328_v25 = vshrl.u32 %v14315_v27, 16 }
  0xb0   : > { %13317 = vmatprep.subr.msk.bf16.mxu0 %vm574_vm0, %v14265_v61  ;;  %v14342_v61 = vld [vmem:[%s17086_s4 + $0x4c] sm:$0xf]  ;;  %v2839_v47 = vrot.slane %v2837_v35, 2  ;;  %v11008_v33 = vcombine.low %v3624_v50, %v14273_v53 }
  0xb1   : > { %v2814_v26 = vsel %vm1367_vm4, %v2804_v7, %v2813_v23  ;;  %v3009_v42 = vsel %vm2998_vm5, %v3006_v37, %v3008_v41  ;;  %v3330_v53 = vrot.slane %v3328_v25, 2 }
  0xb2   : > { %12435 = vmatmul.mubr.msk.bf16.vlgmr.msra.gmra.mxu1 %vm555_vm1, %v2412_v43  ;;  %v2822_v43 = vor.u32 %v2821_v29, %v2818_v28  ;;  %v14389_v28 = vld [vmem:[%s13765_s19 + $0x24] sm:$0xff]  }
  0xb3   : > { %12461 = vmatpush3.bf16.msra.mxu1 %v2861_v24  ;;  %12438 = vmatprep.mubr.msk.bf16.mxu1 %vm555_vm1, %v2416_v44  ;;  %v2805_v24 = vsel %vm1367_vm4, %v2796_v19, %v2804_v7  ;;  %v2836_v44 = vrot.slane %v2834_v34, 1  ;;  %v14397_v34 = vld [vmem:[%s13765_s19 + $0x2c] sm:$0x1f]  }
  0xb4   : > { %13316 = vmatprep.subr.msk.bf16.mxu1 %vm574_vm0, %v14259_v31  ;;  %v2827_v31 = vrot.slane %v2825_v4, 1  ;;  %v3324_v4 = vrot.slane %v3322_v13, 3 }
  0xb5   : > { %v2840_v1 = vor.u32 %v2839_v47, %v2836_v44 }
  0xb6   : > { %12453 = vmatmul.mubr.msk.bf16.gmra.mxu0 %vm555_vm1, %v2626_v59  ;;  %v3303_v59 = vrot.slane %v3301_v36, 2  ;;  %v2831_v63 = vor.u32 %v2830_v39, %v2827_v31  ;;  %v3665_v31 = vsel %vm574_vm0, %v11007_v51, 0 }
  0xb7   : > { %12456 = vmatprep.mubr.msk.bf16.mxu0 %vm555_vm1, %v2635_v22  ;;  %v3313_v22 = vshll.u32 %v14299_v60, 16 }
  0xb8   : > { %v2832_v8 = vsel %vm1367_vm4, %v2822_v43, %v2831_v63  ;;  %v2841_v46 = vsel %vm1367_vm4, %v2831_v63, %v2840_v1  ;;  %v3307_v16 = vor.u32 %v3306_v57, %v3303_v59  ;;  %v3460_v59 = vshrl.u32 %v14337_v6, 16 }
  0xb9   : > { %v3463_v63 = vshll.u32 %v14337_v6, 16 }
  0xba   : > { %12439 = vmatmul.mubr.msk.bf16.gmra.mxu1 %vm555_vm1, %v2420_v2  ;;  %v14360_v2 = vld [vmem:[%s13765_s19 + $0x14] sm:$0xff]  }
  0xbb   : > { %12442 = vmatprep.mubr.msk.bf16.mxu1 %vm555_vm1, %v2429_v10  ;;  %v3007_v10 = vsel %vm2998_vm5, %v3004_v32, %v3006_v37  ;;  %v3169_v15 = vrot.slane %v14360_v2, 2  ;;  %v3340_v32 = vshll.u32 %v14320_v56, 16  ;;  %v3531_v37 = vsel %vm574_vm0, %v14342_v61, 0 }
  0xbd   : > { %v3342_v58 = vrot.slane %v3340_v32, 3 }
  0xbe   : > { %12457 = vmatmul.mubr.msk.bf16.gmra.mxu0 %vm555_vm1, %v2634_v52  ;;  %v2823_v52 = vsel %vm1367_vm4, %v2813_v23, %v2822_v43  ;;  %v3168_v43 = vsel %vm2998_vm5, %v3166_v9, %v3167_v14  ;;  %v3170_v9 = vsel %vm2998_vm5, %v3167_v14, %v3169_v15 }
  0xbf   : > { %12476 = vmatprep.mubr.msk.bf16.mxu0 %vm555_vm1, %v3001_v40  ;;  %v3315_v40 = vrot.slane %v3313_v22, 3  ;;  %v3471_v22 = vshll.u32 %v14355_v17, 16 }
  0xc1   : > { %v3316_v36 = vor.u32 %v3315_v40, %v3312_v30  ;;  %v3473_v30 = vrot.slane %v3471_v22, 3  ;;  %v11029_v40 = vld [vmem:[%s17086_s4 + $0x58] sm:$0xf] }
  0xc2   : > { %12443 = vmatmul.mubr.msk.bf16.gmra.mxu1 %vm555_vm1, %v2428_v55  ;;  %v3298_v55 = vrot.slane %v3296_v5, 3 }
  0xc3   : > { %12462 = vmatprep.mubr.msk.bf16.mxu1 %vm555_vm1, %v2805_v24  ;;  %v14386_v24 = vld [vmem:[%s13765_s19 + $0x1c] sm:$0xff]   ;;  %v3317_v0 = vsel %vm3291_vm6, %v3307_v16, %v3316_v36 }
  0xc4   : > { %v3299_v7 = vor.u32 %v3298_v55, %v3295_v49  ;;  %v3325_v49 = vor.u32 %v3324_v4, %v3321_v18  ;;  %v3638_v55 = vrot.slane %v14299_v60, 3 }
  0xc6   : > { %12477 = vmatmul.mubr.msk.bf16.vlgmr.msra.gmra.mxu0 %vm555_vm1, %v3003_v54  ;;  %v3308_v35 = vsel %vm3291_vm6, %v3299_v7, %v3307_v16  ;;  %v3326_v12 = vsel %vm3291_vm6, %v3316_v36, %v3325_v49  ;;  %v14441_v16 = vrot.slane %v3460_v59, 2 }
  0xc7   : > { %12503 = vmatpush3.bf16.msra.mxu0 %v3364_v38  ;;  %12480 = vmatprep.mubr.msk.bf16.mxu0 %vm555_vm1, %v3005_v45  ;;  %v3635_v45 = vrot.slane %v11008_v33, 3 }
  0xc8   : > { %13319 = vmatprep.subr.msk.bf16.mxu0 %vm574_vm0, %v11007_v51 }
  0xca   : > { %12463 = vmatmul.mubr.msk.bf16.vlgmr.msra.gmra.mxu1 %vm555_vm1, %v2814_v26  ;;  %v3333_v26 = vrot.slane %v3331_v3, 3 }
  0xcb   : > { %12489 = vmatpush3.bf16.msra.mxu1 %v3196_v48  ;;  %12466 = vmatprep.mubr.msk.bf16.mxu1 %vm555_vm1, %v2823_v52  ;;  %v3337_v48 = vshrl.u32 %v14320_v56, 16  ;;  %v3171_v56 = vrot.slane %v14386_v24, 2  ;;  %v3636_v52 = vrot.slane %v14280_v62, 3  ;;  %v13420_v62 = vld [vmem:[%s13888_s23 + $0x14] sm:$0xff]  }
  0xcc   : > { %13318 = vmatprep.subr.msk.bf16.mxu1 %vm574_vm0, %v14342_v61  ;;  %v3175_v61 = vrot.slane %v14397_v34, 2  ;;  %v3334_v6 = vor.u32 %v3333_v26, %v3330_v53 }
  0xcd   : > { %v3339_v44 = vrot.slane %v3337_v48, 2 }
  0xce   : > { %12481 = vmatmul.mubr.msk.bf16.gmra.mxu0 %vm555_vm1, %v3007_v10  ;;  %v3477_v10 = vshrl.u32 %v14360_v2, 16 }
  0xcf   : > { %12484 = vmatprep.mubr.msk.bf16.mxu0 %vm555_vm1, %v3009_v42  ;;  %v14449_v25 = vor.u32 %v3342_v58, %v3339_v44 }
  0xd0   : > { %v3479_v32 = vrot.slane %v3477_v10, 2 }
  0xd1   : > { %v3344_v53 = vsel %vm3291_vm6, %v3334_v6, %v14449_v25 }
  0xd2   : > { %v14374_v19 = vpop.f32.mrf.mxu1  ;;  %12467 = vmatmul.mubr.msk.bf16.gmra.mxu1 %vm555_vm1, %v2832_v8  ;;  %v3480_v8 = vshll.u32 %v14360_v2, 16  ;;  %v14443_v2 = vrot.slane %v3463_v63, 3 }
  0xd3   : > { %12470 = vmatprep.mubr.msk.bf16.mxu1 %vm555_vm1, %v2841_v46  ;;  %v3172_v46 = vsel %vm2998_vm5, %v3169_v15, %v3171_v56 }
  0xd4   : > { %v14383_v20 = vpop.f32.mrf.mxu1 }
  0xd5   : > { %v12254_v29 = vpop.f32.mrf.mxu0 }
  0xd6   : > { %v14392_v23 = vpop.f32.mrf.mxu1  ;;  %12485 = vmatmul.mubr.msk.bf16.gmra.mxu0 %vm555_vm1, %v3008_v41  ;;  %v3173_v41 = vrot.slane %v14389_v28, 2 }
  0xd7   : > { %v612_v54 = vpop.f32.mrf.mxu0  ;;  %12504 = vmatprep.mubr.msk.bf16.mxu0 %vm555_vm1, %v3308_v35  ;;  %v3482_v35 = vrot.slane %v3480_v8, 3  ;;  %v3466_v8 = vor.u32 %v14443_v2, %v14441_v16 }
  0xd8   : > { %v14401_v38 = vpop.f32.mrf.mxu1  ;;  %v3176_v44 = vsel %vm2998_vm5, %v3173_v41, %v3175_v61 }
  0xd9   : > { %v14407_v5 = vpop.f32.mrf.mxu0 }
  0xda   : > { %v14412_v39 = vpop.f32.mrf.mxu1  ;;  %12471 = vmatmul.mubr.msk.bf16.gmra.mxu1 %vm555_vm1, %v2840_v1  ;;  %v3468_v1 = vshrl.u32 %v14355_v17, 16  ;;  %v11016_v17 = vld [vmem:[%s17086_s4 + $0x54] sm:$0xf] }
  0xdb   : > { %12490 = vmatprep.mubr.msk.bf16.mxu1 %vm555_vm1, %v3168_v43  ;;  %v615_v51 = vpop.f32.mrf.mxu0  ;;  %v3625_v43 = vld [vmem:[%s13787_s24 + $0x30] sm:$0x3]  ;;  %v14483_v22 = vsel %vm574_vm0, %v11016_v17, 0 }
  0xdc   : > { %v14420_v47 = vpop.f32.mrf.mxu1  ;;  %v3470_v14 = vrot.slane %v3468_v1, 2 }
  0xde   : > { %v12263_v57 = vpop.f32.mrf.mxu1  ;;  %v12282_v13 = vpop.f32.mrf.mxu0  ;;  %12505 = vmatmul.mubr.msk.bf16.vlgmr.msra.gmra.mxu0 %vm555_vm1, %v3317_v0  ;;  %v11009_v0 = vcombine.low %v14306_v11, %v3625_v43  ;;  %v3642_v11 = vrot.slane %v14315_v27, 3 }
  0xdf   : > { %12531 = vmatpush3.bf16.msra.mxu0 %v3665_v31  ;;  %12508 = vmatprep.mubr.msk.bf16.mxu0 %vm555_vm1, %v3326_v12  ;;  %v3174_v31 = vsel %vm2998_vm5, %v3171_v56, %v3173_v41  ;;  %v3486_v56 = vshrl.u32 %v14386_v24, 16  ;;  %v3489_v41 = vshll.u32 %v14386_v24, 16  ;;  %v3495_v57 = vshrl.u32 %v14389_v28, 16 }
  0xe0   : > { %v14432_v42 = vpop.f32.mrf.mxu1  ;;  %v886_v18 = vpop.f32.mrf.mxu0  ;;  %13321 = vmatprep.subr.msk.bf16.mxu0 %vm574_vm0, %v11029_v40  ;;  %v14490_v12 = vor.u32 %v3482_v35, %v3479_v32  ;;  %v3507_v32 = vshll.u32 %v14397_v34, 16  ;;  %v13418_v35 = vld [vmem:[%s13888_s23 + $0x4] sm:$0xfe]  }
  0xe1   : > { %v3491_v16 = vrot.slane %v3489_v41, 3  ;;  %v14501_v2 = vrot.slane %v3495_v57, 2 }
  0xe2   : > { %v12268_v7 = vpop.f32.mrf.mxu1  ;;  %12491 = vmatmul.mubr.msk.bf16.vlgmr.msra.gmra.mxu1 %vm555_vm1, %v3170_v9  ;;  %v12283_v4 = vpop.f32.mrf.mxu0  ;;  %v3640_v9 = vrot.slane %v14303_v21, 3 }
  0xe3   : > { %v750_v15 = vadd.f32 %v12268_v7, %v12254_v29  ;;  %12517 = vmatpush3.bf16.msra.mxu1 %v3531_v37  ;;  %12494 = vmatprep.mubr.msk.bf16.mxu1 %vm555_vm1, %v3172_v46  ;;  %v3335_v29 = vsel %vm3291_vm6, %v3325_v49, %v3334_v6  ;;  %v3488_v7 = vrot.slane %v3486_v56, 2 }
  0xe4   : > { %v741_v50 = vpop.f32.mrf.mxu1  ;;  %13320 = vmatprep.subr.msk.bf16.mxu1 %vm574_vm0, %v11016_v17  ;;  %v889_v36 = vpop.f32.mrf.mxu0  ;;  %v14497_v17 = vsel %vm574_vm0, %v11029_v40, 0  ;;  %v3504_v40 = vshrl.u32 %v14397_v34, 16  ;;  %v3803_v34 = vshll.u32 %v13418_v35, 16 }
  0xe5   : > { %v742_v3 = vadd.f32 %v741_v50, %v612_v54  ;;  %v14453_v48 = vadd.f32 %v12282_v13, %v750_v15  ;;  %v13416_v13 = vld [vmem:[%s13867_s17 + $0xc] sm:$0xff]   ;;  %v13417_v50 = vld [vmem:[%s13867_s17 + $0x14] sm:$0xff]  }
  0xe6   : > { %v12269_v33 = vpop.f32.mrf.mxu1  ;;  %v12286_v58 = vpop.f32.mrf.mxu0  ;;  %12509 = vmatmul.mubr.msk.bf16.gmra.mxu0 %vm555_vm1, %v3335_v29  ;;  %v4023_v56 = vshrl.u32 %v13417_v50, 16 }
  0xe7   : > { %v753_v37 = vadd.f32 %v12269_v33, %v14407_v5  ;;  %v14462_v26 = vadd.f32 %v886_v18, %v742_v3  ;;  %v3637_v5 = vsel %vm3634_vm7, %v3635_v45, %v3636_v52  ;;  %12512 = vmatprep.mubr.msk.bf16.mxu0 %vm555_vm1, %v3344_v53 }
  0xe8   : > { %v744_v54 = vpop.f32.mrf.mxu1  ;;  %v902_v45 = vpop.f32.mrf.mxu0 }
  0xe9   : > { %v745_v49 = vadd.f32 %v744_v54, %v615_v51  ;;  %v14471_v59 = vadd.f32 %v12283_v4, %v753_v37  ;;  %v3498_v51 = vshll.u32 %v14389_v28, 16  ;;  %v3474_v28 = vor.u32 %v3473_v30, %v3470_v14 }
  0xea   : > { %v12272_v63 = vpop.f32.mrf.mxu1  ;;  %12495 = vmatmul.mubr.msk.bf16.gmra.mxu1 %vm555_vm1, %v3174_v31  ;;  %v12287_v6 = vpop.f32.mrf.mxu0  ;;  %v14505_v30 = vrot.slane %v11009_v0, 3  ;;  %v4014_v37 = vshrl.u32 %v13416_v13, 16  ;;  %v14516_v31 = vld [vmem:[%s13888_s23 + $0xc] sm:$0xff]   ;;  %v3639_v54 = vsel %vm3634_vm7, %v3636_v52, %v3638_v55 }
  0xeb   : > { %v766_v1 = vadd.f32 %v12272_v63, %v14374_v19  ;;  %12498 = vmatprep.mubr.msk.bf16.mxu1 %vm555_vm1, %v3176_v44  ;;  %v14486_v10 = vadd.f32 %v889_v36, %v745_v49  ;;  %v13415_v19 = vld [vmem:[%s13867_s17 + $0x4] sm:$0xfe]   ;;  %v14503_v14 = vrot.slane %v3498_v51, 3  ;;  %v3475_v29 = vsel %vm3291_vm6, %v3466_v8, %v3474_v28 }
  0xec   : > { %v757_v24 = vpop.f32.mrf.mxu1  ;;  %v905_v4 = vpop.f32.mrf.mxu0  ;;  %v4006_v43 = vshrl.u32 %v13415_v19, 16  ;;  %v4009_v36 = vshll.u32 %v13415_v19, 16  ;;  %v3484_v44 = vsel %vm3291_vm6, %v3474_v28, %v14490_v12  ;;  %v4026_v63 = vshll.u32 %v13417_v50, 16 }
  0xed   : > { %v758_v46 = vadd.f32 %v757_v24, %v14383_v20  ;;  %v14499_v18 = vadd.f32 %v12286_v58, %v766_v1  ;;  %v3800_v51 = vshrl.u32 %v13418_v35, 16  ;;  %v3808_v1 = vshrl.u32 %v14516_v31, 16 }
  0xee   : > { %v12273_v15 = vpop.f32.mrf.mxu1  ;;  %v12290_v53 = vpop.f32.mrf.mxu0  ;;  %12513 = vmatmul.mubr.msk.bf16.gmra.mxu0 %vm555_vm1, %v14449_v25  ;;  %v14534_v25 = vor.u32 %v3491_v16, %v3488_v7  ;;  %v14547_v19 = vrot.slane %v4009_v36, 2  ;;  %v14556_v7 = vrot.slane %v4023_v56, 1  ;;  %v3811_v16 = vshll.u32 %v14516_v31, 16  ;;  %v14580_v31 = vld [vmem:[%s17086_s4 + $0x5c] sm:$0xf] }
  0xef   : > { %v769_v3 = vadd.f32 %v12273_v15, %v14392_v23  ;;  %v14509_v20 = vadd.f32 %v902_v45, %v758_v46  ;;  %12532 = vmatprep.mubr.msk.bf16.mxu0 %vm555_vm1, %v3637_v5  ;;  %v3509_v45 = vrot.slane %v3507_v32, 3  ;;  %v14541_v5 = vrot.slane %v4006_v43, 1 }
  0xf0   : > { %v760_v33 = vpop.f32.mrf.mxu1  ;;  %v918_v41 = vpop.f32.mrf.mxu0  ;;  %v14558_v15 = vrot.slane %v4026_v63, 2  ;;  %v3641_v35 = vsel %vm3634_vm7, %v3638_v55, %v3640_v9  ;;  %v3643_v63 = vsel %vm3634_vm7, %v3640_v9, %v3642_v11  ;;  %v3645_v9 = vsel %vm3634_vm7, %v3642_v11, %v14505_v30 }
  0xf1   : > { %v761_v23 = vadd.f32 %v760_v33, %v14401_v38  ;;  %v14528_v58 = vadd.f32 %v12287_v6, %v769_v3  ;;  %v4017_v38 = vshll.u32 %v13416_v13, 16  ;;  %v14552_v13 = vld [vmem:[%s13867_s17 + $0x1c] sm:$0xff]   ;;  %v14565_v3 = vrot.slane %v3803_v34, 2 }
  0xf2   : > { %v12276_v49 = vpop.f32.mrf.mxu1  ;;  %12499 = vmatmul.mubr.msk.bf16.gmra.mxu1 %vm555_vm1, %v3175_v61  ;;  %v3506_v61 = vrot.slane %v3504_v40, 2  ;;  %v12291_v24 = vpop.f32.mrf.mxu0  ;;  %v3817_v40 = vshrl.u32 %v13420_v62, 16  ;;  %v3810_v33 = vrot.slane %v3808_v1, 1  ;;  %v4032_v60 = vshrl.u32 %v14552_v13, 16 }
  0xf3   : > { %v782_v52 = vadd.f32 %v12276_v49, %v14412_v39  ;;  %12518 = vmatprep.mubr.msk.bf16.mxu1 %vm555_vm1, %v3475_v29  ;;  %v14539_v57 = vadd.f32 %v905_v4, %v761_v23  ;;  %v14549_v39 = vrot.slane %v4014_v37, 1  ;;  %v14554_v46 = vrot.slane %v4017_v38, 2 }
  0xf4   : > { %v773_v0 = vpop.f32.mrf.mxu1  ;;  %v921_v50 = vpop.f32.mrf.mxu0  ;;  %v14563_v4 = vrot.slane %v3800_v51, 1  ;;  %v3820_v29 = vshll.u32 %v13420_v62, 16  ;;  %v3493_v37 = vsel %vm3291_vm6, %v14490_v12, %v14534_v25  ;;  %v14591_v12 = vld [vmem:[%s17086_s4 + $0x60] sm:$0xf]  ;;  %v14598_v38 = vrot.slane %v3817_v40, 1 }
  0xf5   : > { %v774_v8 = vadd.f32 %v773_v0, %v14420_v47  ;;  %v14545_v28 = vadd.f32 %v12290_v53, %v782_v52  ;;  %v13422_v53 = vld [vmem:[%s13867_s17 + $0x24] sm:$0xff]   ;;  %v14618_v52 = vrot.slane %v4032_v60, 1  ;;  %v4035_v51 = vshll.u32 %v14552_v13, 16 }
  0xf6   : > { %v12277_v6 = vpop.f32.mrf.mxu1  ;;  %v12310_v43 = vpop.f32.mrf.mxu0  ;;  %12533 = vmatmul.mubr.msk.bf16.vlgmr.msra.gmra.mxu0 %vm555_vm1, %v3639_v54  ;;  %v4041_v34 = vshrl.u32 %v13422_v53, 16  ;;  %v4044_v0 = vshll.u32 %v13422_v53, 16  ;;  %v4012_v27 = vor.u32 %v14547_v19, %v14541_v5  ;;  %v4020_v11 = vor.u32 %v14554_v46, %v14549_v39 }
  0xf7   : > { %v14561_v47 = vadd.f32 %v918_v41, %v774_v8  ;;  %12559 = vmatpush3.bf16.msra.mxu0 %v14497_v17  ;;  %12536 = vmatprep.mubr.msk.bf16.mxu0 %vm555_vm1, %v3641_v35  ;;  %v4037_v19 = vrot.slane %v4035_v51, 2 }
  0xf8   : > { %v776_v32 = vpop.f32.mrf.mxu1  ;;  %v1175_v23 = vpop.f32.mrf.mxu0  ;;  %13323 = vmatprep.subr.msk.bf16.mxu0 %vm574_vm0, %v14591_v12  ;;  %v14650_v39 = vrot.slane %v4041_v34, 1  ;;  %v4046_v60 = vrot.slane %v4044_v0, 2  ;;  %v4021_v53 = vsel %vm1367_vm4, %v4012_v27, %v4020_v11 }
  0xf9   : > { %v777_v36 = vadd.f32 %v776_v32, %v14432_v42  ;;  %v3501_v42 = vor.u32 %v14503_v14, %v14501_v2  ;;  %v14601_v2 = vor.u32 %v3509_v45, %v3506_v61  ;;  %v14605_v14 = vrot.slane %v3820_v29, 2 }
  0xfa   : > { %v12296_v55 = vpop.f32.mrf.mxu1  ;;  %12519 = vmatmul.mubr.msk.bf16.vlgmr.msra.gmra.mxu1 %vm555_vm1, %v3484_v44  ;;  %v3813_v44 = vrot.slane %v3811_v16, 2  ;;  %v12311_v56 = vpop.f32.mrf.mxu0  ;;  %v3806_v32 = vor.u32 %v14565_v3, %v14563_v4  ;;  %v13425_v4 = vld [vmem:[%s13867_s17 + $0x2c] ss:$0 sps:$4 sm:$0xff]  }
  0xfb   : > { %v1089_v54 = vadd.f32 %v12296_v55, %v14453_v48  ;;  %12545 = vmatpush3.bf16.msra.mxu1 %v14483_v22  ;;  %v14596_v49 = vadd.f32 %v921_v50, %v777_v36  ;;  %12522 = vmatprep.mubr.msk.bf16.mxu1 %vm555_vm1, %v3493_v37  ;;  %v13423_v48 = vld [vmem:[%s13888_s23 + $0x1c] sm:$0xff]   ;;  %v3502_v21 = vsel %vm3291_vm6, %v14534_v25, %v3501_v42  ;;  %v13424_v50 = vld [vmem:[%s13888_s23 + $0x24] sm:$0xff]   ;;  %v4050_v51 = vshrl.u32 %v13425_v4, 16 }
  0xfc   : > { %v1041_v17 = vpop.f32.mrf.mxu1  ;;  %13322 = vmatprep.subr.msk.bf16.mxu1 %vm574_vm0, %v14580_v31  ;;  %v1178_v61 = vpop.f32.mrf.mxu0  ;;  %v3511_v24 = vsel %vm3291_vm6, %v3501_v42, %v14601_v2  ;;  %v3826_v25 = vshrl.u32 %v13423_v48, 16  ;;  %v3829_v6 = vshll.u32 %v13423_v48, 16  ;;  %v3814_v35 = vor.u32 %v3813_v44, %v3810_v33  ;;  %v13426_v42 = vld [vmem:[%s13888_s23 + $0x2c] ss:$0 sps:$4 sm:$0xff]  }
  0xfd   : > { %v1087_v22 = vadd.f32 %v1041_v17, %v14462_v26  ;;  %v14614_v62 = vadd.f32 %v12310_v43, %v1089_v54  ;;  %v3835_v17 = vshrl.u32 %v13424_v50, 16  ;;  %v3838_v48 = vshll.u32 %v13424_v50, 16 }
  0xfe   : > { %v12297_v41 = vpop.f32.mrf.mxu1  ;;  %v12314_v8 = vpop.f32.mrf.mxu0  ;;  %12537 = vmatmul.mubr.msk.bf16.gmra.mxu0 %vm555_vm1, %v3643_v63  ;;  %v3815_v55 = vsel %vm1367_vm4, %v3806_v32, %v3814_v35  ;;  %v3828_v54 = vrot.slane %v3826_v25, 1  ;;  %v3831_v44 = vrot.slane %v3829_v6, 2  ;;  %v4029_v63 = vor.u32 %v14558_v15, %v14556_v7 }
  0xff   : > { %v1090_v26 = vadd.f32 %v12297_v41, %v14471_v59  ;;  %v14628_v45 = vadd.f32 %v1175_v23, %v1087_v22  ;;  %12540 = vmatprep.mubr.msk.bf16.mxu0 %vm555_vm1, %v3645_v9  ;;  %v3823_v41 = vor.u32 %v14605_v14, %v14598_v38  ;;  %v4053_v34 = vshll.u32 %v13425_v4, 16 }
 0x100   : > { %v1044_v1 = vpop.f32.mrf.mxu1  ;;  %v1191_v40 = vpop.f32.mrf.mxu0  ;;  %v4411_v15 = vsel %vm574_vm0, %v14591_v12, 0  ;;  %v3832_v38 = vor.u32 %v3831_v44, %v3828_v54 }
 0x101   : > { %v1088_v59 = vadd.f32 %v1044_v1, %v14486_v10  ;;  %v14634_v13 = vadd.f32 %v12311_v56, %v1090_v26  ;;  %v3847_v26 = vshll.u32 %v13426_v42, 16  ;;  %v3824_v25 = vsel %vm1367_vm4, %v3814_v35, %v3823_v41  ;;  %v4170_v35 = vld [vmem:[%s13888_s23 + $0x4] sm:$0xc] }
 0x102   : > { %v12300_v16 = vpop.f32.mrf.mxu1  ;;  %12523 = vmatmul.mubr.msk.bf16.gmra.mxu1 %vm555_vm1, %v3502_v21  ;;  %v12315_v36 = vpop.f32.mrf.mxu0  ;;  %v4038_v21 = vor.u32 %v4037_v19, %v14618_v52  ;;  %v4052_v52 = vrot.slane %v4050_v51, 1  ;;  %v4055_v6 = vrot.slane %v4053_v34, 2  ;;  %v3833_v32 = vsel %vm1367_vm4, %v3823_v41, %v3832_v38 }
 0x103   : > { %v1093_v10 = vadd.f32 %v12300_v16, %v14499_v18  ;;  %12526 = vmatprep.mubr.msk.bf16.mxu1 %vm555_vm1, %v3511_v24  ;;  %v14647_v29 = vadd.f32 %v1178_v61, %v1088_v59  ;;  %v14656_v18 = vsel %vm574_vm0, %v14580_v31, 0  ;;  %v3844_v61 = vshrl.u32 %v13426_v42, 16  ;;  %v14727_v42 = vld [vmem:[%s13867_s17 + $0x14] sm:$0xff]  }
 0x104   : > { %v1057_v43 = vpop.f32.mrf.mxu1  ;;  %v1194_v3 = vpop.f32.mrf.mxu0  ;;  %v3837_v24 = vrot.slane %v3835_v17, 1  ;;  %v4039_v12 = vsel %vm1367_vm4, %v4029_v63, %v4038_v21  ;;  %v3849_v50 = vrot.slane %v3847_v26, 2 }
 0x105   : > { %v1091_v5 = vadd.f32 %v1057_v43, %v14509_v20  ;;  %v14652_v46 = vadd.f32 %v12314_v8, %v1093_v10  ;;  %v3840_v8 = vrot.slane %v3838_v48, 2  ;;  %v3846_v27 = vrot.slane %v3844_v61, 1  ;;  %v14702_v43 = vld [vmem:[%s13888_s23 + $0x8] sm:$0xf] }
 0x106   : > { %v12301_v37 = vpop.f32.mrf.mxu1  ;;  %v12318_v56 = vpop.f32.mrf.mxu0  ;;  %12541 = vmatmul.mubr.msk.bf16.gmra.mxu0 %vm555_vm1, %v14505_v30  ;;  %v14735_v17 = vcombine.low %v4170_v35, %v14702_v43 }
 0x107   : > { %v1094_v33 = vadd.f32 %v12301_v37, %v14528_v58  ;;  %v14662_v20 = vadd.f32 %v1191_v40, %v1091_v5  ;;  %12560 = vmatprep.mubr.msk.bf16.mxu0 %vm555_vm1, %v4021_v53  ;;  %v4047_v5 = vor.u32 %v4046_v60, %v14650_v39  ;;  %v3841_v19 = vor.u32 %v3840_v8, %v3837_v24  ;;  %v14709_v37 = vld [vmem:[%s17086_s4 + $0x68] sm:$0xf]  ;;  %v14718_v53 = vld [vmem:[%s13867_s17 + $0xc] sm:$0xff]   ;;  %v14766_v24 = vld [vmem:[%s13867_s17 + $0x1c] sm:$0xff]  }
 0x108   : > { %v1060_v23 = vpop.f32.mrf.mxu1  ;;  %v1207_v0 = vpop.f32.mrf.mxu0  ;;  %v4382_v61 = vrot.slane %v14718_v53, 2  ;;  %v14769_v8 = vld [vmem:[%s13888_s23 + $0x2c] sm:$0xf] }
 0x109   : > { %v1092_v31 = vadd.f32 %v1060_v23, %v14539_v57  ;;  %v14668_v22 = vadd.f32 %v12315_v36, %v1094_v33  ;;  %v14715_v33 = vld [vmem:[%s13867_s17 + $0x4] sm:$0xfc]   ;;  %v4048_v44 = vsel %vm1367_vm4, %v4038_v21, %v4047_v5  ;;  %v4384_v21 = vrot.slane %v14727_v42, 2 }
 0x10a   : > { %v12304_v58 = vpop.f32.mrf.mxu1  ;;  %12527 = vmatmul.mubr.msk.bf16.gmra.mxu1 %vm555_vm1, %v14601_v2  ;;  %v12319_v9 = vpop.f32.mrf.mxu0 }
 0x10b   : > { %v1097_v30 = vadd.f32 %v12304_v58, %v14545_v28  ;;  %12546 = vmatprep.mubr.msk.bf16.mxu1 %vm555_vm1, %v3815_v55  ;;  %v14679_v57 = vadd.f32 %v1194_v3, %v1092_v31  ;;  %v4030_v28 = vsel %vm1367_vm4, %v4020_v11, %v4029_v63  ;;  %v14695_v11 = vld [vmem:[%s17086_s4 + $0x64] sm:$0xf]  ;;  %v4056_v3 = vor.u32 %v4055_v6, %v4052_v52  ;;  %v14741_v58 = vld [vmem:[%s13888_s23 + $0xc] sm:$0xff]   ;;  %v14744_v63 = vld [vmem:[%s13888_s23 + $0x14] sm:$0xff]  }
 0x10c   : > { %v1073_v2 = vpop.f32.mrf.mxu1  ;;  %v1210_v59 = vpop.f32.mrf.mxu0  ;;  %v3850_v55 = vor.u32 %v3849_v50, %v3846_v27  ;;  %v3842_v31 = vsel %vm1367_vm4, %v3832_v38, %v3841_v19  ;;  %v4214_v9 = vrot.slane %v14735_v17, 2  ;;  %v4217_v38 = vrot.slane %v14744_v63, 2  ;;  %v14774_v6 = vld [vmem:[%s13867_s17 + $0x24] sm:$0xff]   ;;  %v14785_v50 = vld [vmem:[%s13867_s17 + $0x2c] sm:$0x1f]  }
 0x10d   : > { %v1095_v7 = vadd.f32 %v1073_v2, %v14561_v47  ;;  %v14685_v14 = vadd.f32 %v12318_v56, %v1097_v30  ;;  %v14782_v27 = vld [vmem:[%s13888_s23 + $0x24] sm:$0xff]  }
 0x10e   : > { %v12305_v1 = vpop.f32.mrf.mxu1  ;;  %v12338_v40 = vpop.f32.mrf.mxu0  ;;  %12561 = vmatmul.mubr.msk.bf16.vlgmr.msra.gmra.mxu0 %vm555_vm1, %v4030_v28  ;;  %v3851_v34 = vsel %vm1367_vm4, %v3841_v19, %v3850_v55 }
 0x10f   : > { %v14689_v16 = vadd.f32 %v1207_v0, %v1095_v7  ;;  %12587 = vmatpush3.bf16.msra.mxu0 %v4411_v15  ;;  %12564 = vmatprep.mubr.msk.bf16.mxu0 %vm555_vm1, %v4039_v12  ;;  %v4215_v15 = vrot.slane %v14741_v58, 2  ;;  %v14779_v12 = vld [vmem:[%s13888_s23 + $0x1c] sm:$0xff]  }
 0x110   : > { %v1076_v47 = vpop.f32.mrf.mxu1  ;;  %13325 = vmatprep.subr.msk.bf16.mxu0 %vm574_vm0, %v14709_v37 }
 0x111   : > { %v1096_v10 = vadd.f32 %v1076_v47, %v14596_v49  ;;  %v1456_v49 = vpop.f32.mrf.mxu0 }
 0x112   : > { %v12324_v36 = vpop.f32.mrf.mxu1  ;;  %12547 = vmatmul.mubr.msk.bf16.vlgmr.msra.gmra.mxu1 %vm555_vm1, %v3824_v25 }
 0x113   : > { %v1356_v4 = vadd.f32 %v12324_v36, %v14614_v62  ;;  %12573 = vmatpush3.bf16.msra.mxu1 %v14656_v18  ;;  %v14720_v39 = vadd.f32 %v1210_v59, %v1096_v10  ;;  %12550 = vmatprep.mubr.msk.bf16.mxu1 %vm555_vm1, %v3833_v32  ;;  %v12339_v62 = vpop.f32.mrf.mxu0  ;;  %v4181_v59 = vld [vmem:[%s13888_s23 + $0x30] sm:$0x1] }
 0x114   : > { %v1308_v60 = vpop.f32.mrf.mxu1  ;;  %13324 = vmatprep.subr.msk.bf16.mxu1 %vm574_vm0, %v14695_v11 }
 0x115   : > { %v1354_v18 = vadd.f32 %v1308_v60, %v14628_v45  ;;  %v14729_v23 = vadd.f32 %v12338_v40, %v1356_v4  ;;  %v1459_v48 = vpop.f32.mrf.mxu0  ;;  %v4057_v45 = vsel %vm1367_vm4, %v4047_v5, %v4056_v3  ;;  %v14793_v5 = vcombine.low %v14769_v8, %v4181_v59 }
 0x116   : > { %v12325_v54 = vpop.f32.mrf.mxu1  ;;  %12565 = vmatmul.mubr.msk.bf16.gmra.mxu0 %vm555_vm1, %v4048_v44 }
 0x117   : > { %v1357_v56 = vadd.f32 %v12325_v54, %v14634_v13  ;;  %v14746_v41 = vadd.f32 %v1456_v49, %v1354_v18  ;;  %v12342_v0 = vpop.f32.mrf.mxu0  ;;  %v4381_v13 = vrot.slane %v14715_v33, 2  ;;  %12568 = vmatprep.mubr.msk.bf16.mxu0 %vm555_vm1, %v4057_v45 }
 0x118   : > { %v1311_v51 = vpop.f32.mrf.mxu1 }
 0x119   : > { %v1355_v30 = vadd.f32 %v1311_v51, %v14647_v29  ;;  %v14753_v26 = vadd.f32 %v12339_v62, %v1357_v56  ;;  %v1472_v29 = vpop.f32.mrf.mxu0  ;;  %v4383_v32 = vsel %vm2998_vm5, %v4381_v13, %v4382_v61  ;;  %v4386_v62 = vrot.slane %v14766_v24, 2 }
 0x11a   : > { %v12328_v2 = vpop.f32.mrf.mxu1  ;;  %12551 = vmatmul.mubr.msk.bf16.gmra.mxu1 %vm555_vm1, %v3842_v31  ;;  %v4221_v56 = vrot.slane %v14782_v27, 2  ;;  %v4223_v31 = vrot.slane %v14793_v5, 2  ;;  %v4682_v13 = vshrl.u32 %v14718_v53, 16 }
 0x11b   : > { %v1360_v7 = vadd.f32 %v12328_v2, %v14652_v46  ;;  %12554 = vmatprep.mubr.msk.bf16.mxu1 %vm555_vm1, %v3851_v34  ;;  %v14763_v1 = vadd.f32 %v1459_v48, %v1355_v30  ;;  %v12343_v25 = vpop.f32.mrf.mxu0  ;;  %v4219_v48 = vrot.slane %v14779_v12, 2  ;;  %v4677_v34 = vshll.u32 %v14715_v33, 16 }
 0x11c   : > { %v1324_v28 = vpop.f32.mrf.mxu1  ;;  %v4385_v30 = vsel %vm2998_vm5, %v4382_v61, %v4384_v21  ;;  %v4685_v2 = vshll.u32 %v14718_v53, 16  ;;  %v14835_v61 = vld [vmem:[%s17086_s4 + $0x70] sm:$0xf] }
 0x11d   : > { %v1358_v52 = vadd.f32 %v1324_v28, %v14662_v20  ;;  %v14776_v46 = vadd.f32 %v12342_v0, %v1360_v7  ;;  %v1475_v40 = vpop.f32.mrf.mxu0  ;;  %v4216_v20 = vsel %vm2998_vm5, %v4214_v9, %v4215_v15 }
 0x11e   : > { %v12329_v47 = vpop.f32.mrf.mxu1  ;;  %12569 = vmatmul.mubr.msk.bf16.gmra.mxu0 %vm555_vm1, %v4056_v3  ;;  %v4388_v3 = vrot.slane %v14774_v6, 2 }
 0x11f   : > { %v1361_v10 = vadd.f32 %v12329_v47, %v14668_v22  ;;  %v14789_v35 = vadd.f32 %v1472_v29, %v1358_v52  ;;  %v12346_v19 = vpop.f32.mrf.mxu0  ;;  %12588 = vmatprep.mubr.msk.bf16.mxu0 %vm555_vm1, %v4383_v32  ;;  %v4578_v22 = vsel %vm574_vm0, %v14695_v11, 0  ;;  %v4390_v11 = vrot.slane %v14785_v50, 2 }
 0x120   : > { %v1327_v36 = vpop.f32.mrf.mxu1  ;;  %v4218_v29 = vsel %vm2998_vm5, %v4215_v15, %v4217_v38  ;;  %v4220_v15 = vsel %vm2998_vm5, %v4217_v38, %v4219_v48  ;;  %v4222_v38 = vsel %vm2998_vm5, %v4219_v48, %v4221_v56 }
 0x121   : > { %v1359_v49 = vadd.f32 %v1327_v36, %v14679_v57  ;;  %v14797_v4 = vadd.f32 %v12343_v25, %v1361_v10  ;;  %v1488_v18 = vpop.f32.mrf.mxu0  ;;  %v4745_v57 = vsel %vm574_vm0, %v14709_v37, 0  ;;  %v4674_v37 = vshrl.u32 %v14715_v33, 16 }
 0x122   : > { %v12332_v60 = vpop.f32.mrf.mxu1  ;;  %12555 = vmatmul.mubr.msk.bf16.gmra.mxu1 %vm555_vm1, %v3850_v55  ;;  %v4387_v33 = vsel %vm2998_vm5, %v4384_v21, %v4386_v62  ;;  %v4510_v10 = vshll.u32 %v14735_v17, 16  ;;  %v4515_v36 = vshrl.u32 %v14741_v58, 16 }
 0x123   : > { %v1364_v54 = vadd.f32 %v12332_v60, %v14685_v14  ;;  %12574 = vmatprep.mubr.msk.bf16.mxu1 %vm555_vm1, %v4216_v20  ;;  %v14809_v44 = vadd.f32 %v1475_v40, %v1359_v49  ;;  %v12347_v45 = vpop.f32.mrf.mxu0  ;;  %v4507_v40 = vshrl.u32 %v14735_v17, 16  ;;  %v4691_v49 = vshrl.u32 %v14727_v42, 16 }
 0x124   : > { %v1340_v55 = vpop.f32.mrf.mxu1  ;;  %v4694_v17 = vshll.u32 %v14727_v42, 16  ;;  %v4224_v42 = vsel %vm2998_vm5, %v4221_v56, %v4223_v31 }
 0x125   : > { %v1362_v14 = vadd.f32 %v1340_v55, %v14689_v16  ;;  %v14816_v51 = vadd.f32 %v12346_v19, %v1364_v54  ;;  %v1491_v9 = vpop.f32.mrf.mxu0  ;;  %v14829_v16 = vld [vmem:[%s17086_s4 + $0x6c] sm:$0xf]  ;;  %v4684_v54 = vrot.slane %v4682_v13, 2 }
 0x126   : > { %v12333_v0 = vpop.f32.mrf.mxu1  ;;  %12589 = vmatmul.mubr.msk.bf16.vlgmr.msra.gmra.mxu0 %vm555_vm1, %v4385_v30  ;;  %v4512_v30 = vrot.slane %v4510_v10, 3  ;;  %v4703_v10 = vshll.u32 %v14766_v24, 16 }
 0x127   : > { %v14824_v7 = vadd.f32 %v1488_v18, %v1362_v14  ;;  %v12366_v59 = vpop.f32.mrf.mxu0  ;;  %12615 = vmatpush3.bf16.msra.mxu0 %v4745_v57  ;;  %12592 = vmatprep.mubr.msk.bf16.mxu0 %vm555_vm1, %v4387_v33  ;;  %v4679_v18 = vrot.slane %v4677_v34, 3  ;;  %v4687_v57 = vrot.slane %v4685_v2, 3  ;;  %v4509_v0 = vrot.slane %v4507_v40, 2 }
 0x128   : > { %v1343_v28 = vpop.f32.mrf.mxu1  ;;  %13327 = vmatprep.subr.msk.bf16.mxu0 %vm574_vm0, %v14835_v61  ;;  %v4693_v2 = vrot.slane %v4691_v49, 2  ;;  %v4524_v33 = vshrl.u32 %v14744_v63, 16  ;;  %v4700_v40 = vshrl.u32 %v14766_v24, 16  ;;  %v4709_v24 = vshrl.u32 %v14774_v6, 16 }
 0x129   : > { %v1363_v53 = vadd.f32 %v1343_v28, %v14720_v39  ;;  %v1762_v52 = vpop.f32.mrf.mxu0  ;;  %v4389_v39 = vsel %vm2998_vm5, %v4386_v62, %v4388_v3  ;;  %v4676_v62 = vrot.slane %v4674_v37, 2  ;;  %v4517_v37 = vrot.slane %v4515_v36, 2 }
 0x12a   : > { %v12352_v25 = vpop.f32.mrf.mxu1  ;;  %12575 = vmatmul.mubr.msk.bf16.vlgmr.msra.gmra.mxu1 %vm555_vm1, %v4218_v29  ;;  %v4688_v29 = vor.u32 %v4687_v57, %v4684_v54  ;;  %v4696_v28 = vrot.slane %v4694_v17, 3  ;;  %v4526_v49 = vrot.slane %v4524_v33, 2  ;;  %v4702_v57 = vrot.slane %v4700_v40, 2 }
 0x12b   : > { %v1657_v47 = vadd.f32 %v12352_v25, %v14729_v23  ;;  %12601 = vmatpush3.bf16.msra.mxu1 %v4578_v22  ;;  %v14843_v21 = vadd.f32 %v1491_v9, %v1363_v53  ;;  %12578 = vmatprep.mubr.msk.bf16.mxu1 %vm555_vm1, %v4220_v15  ;;  %v4518_v23 = vshll.u32 %v14741_v58, 16  ;;  %v12367_v20 = vpop.f32.mrf.mxu0  ;;  %v4680_v56 = vor.u32 %v4679_v18, %v4676_v62 }
 0x12c   : > { %v1609_v32 = vpop.f32.mrf.mxu1  ;;  %13326 = vmatprep.subr.msk.bf16.mxu1 %vm574_vm0, %v14829_v16  ;;  %v4551_v33 = vshrl.u32 %v14793_v5, 16 }
 0x12d   : > { %v1655_v19 = vadd.f32 %v1609_v32, %v14746_v41  ;;  %v14857_v60 = vadd.f32 %v12366_v59, %v1657_v47  ;;  %v1765_v55 = vpop.f32.mrf.mxu0  ;;  %v4391_v41 = vsel %vm2998_vm5, %v4388_v3, %v4390_v11  ;;  %v4520_v34 = vrot.slane %v4518_v23, 3 }
 0x12e   : > { %v12353_v22 = vpop.f32.mrf.mxu1  ;;  %12593 = vmatmul.mubr.msk.bf16.gmra.mxu0 %vm555_vm1, %v4389_v39 }
 0x12f   : > { %v1658_v48 = vadd.f32 %v12353_v22, %v14753_v26  ;;  %v14868_v45 = vadd.f32 %v1762_v52, %v1655_v19  ;;  %v12370_v13 = vpop.f32.mrf.mxu0  ;;  %12596 = vmatprep.mubr.msk.bf16.mxu0 %vm555_vm1, %v4391_v41  ;;  %v4513_v52 = vor.u32 %v4512_v30, %v4509_v0  ;;  %v4521_v47 = vor.u32 %v4520_v34, %v4517_v37 }
 0x130   : > { %v1612_v14 = vpop.f32.mrf.mxu1  ;;  %v4697_v19 = vor.u32 %v4696_v28, %v4693_v2  ;;  %v4545_v37 = vshll.u32 %v14782_v27, 16  ;;  %v4718_v34 = vshrl.u32 %v14785_v50, 16  ;;  %v4711_v28 = vrot.slane %v4709_v24, 2 }
 0x131   : > { %v1656_v26 = vadd.f32 %v1612_v14, %v14763_v1  ;;  %v14872_v9 = vadd.f32 %v12367_v20, %v1658_v48  ;;  %v1778_v59 = vpop.f32.mrf.mxu0  ;;  %v4527_v1 = vshll.u32 %v14744_v63, 16  ;;  %v4689_v20 = vsel %vm3291_vm6, %v4680_v56, %v4688_v29 }
 0x132   : > { %v12356_v3 = vpop.f32.mrf.mxu1  ;;  %12579 = vmatmul.mubr.msk.bf16.gmra.mxu1 %vm555_vm1, %v4222_v38  ;;  %v4533_v38 = vshrl.u32 %v14779_v12, 16  ;;  %v4522_v54 = vsel %vm3291_vm6, %v4513_v52, %v4521_v47  ;;  %v4712_v48 = vshll.u32 %v14774_v6, 16  ;;  %v4542_v6 = vshrl.u32 %v14782_v27, 16 }
 0x133   : > { %v1661_v53 = vadd.f32 %v12356_v3, %v14776_v46  ;;  %12582 = vmatprep.mubr.msk.bf16.mxu1 %vm555_vm1, %v4224_v42  ;;  %v14880_v15 = vadd.f32 %v1765_v55, %v1656_v26  ;;  %v12371_v32 = vpop.f32.mrf.mxu0  ;;  %v4536_v46 = vshll.u32 %v14779_v12, 16  ;;  %v4529_v62 = vrot.slane %v4527_v1, 3 }
 0x134   : > { %v1625_v25 = vpop.f32.mrf.mxu1  ;;  %v4705_v55 = vrot.slane %v4703_v10, 3  ;;  %v4698_v26 = vsel %vm3291_vm6, %v4688_v29, %v4697_v19  ;;  %v4714_v1 = vrot.slane %v4712_v48, 3  ;;  %v4544_v52 = vrot.slane %v4542_v6, 2 }
 0x135   : > { %v1659_v39 = vadd.f32 %v1625_v25, %v14789_v35  ;;  %v14887_v36 = vadd.f32 %v12370_v13, %v1661_v53  ;;  %v1781_v17 = vpop.f32.mrf.mxu0  ;;  %v4538_v14 = vrot.slane %v4536_v46, 3  ;;  %v4530_v2 = vor.u32 %v4529_v62, %v4526_v49 }
 0x136   : > { %v12357_v23 = vpop.f32.mrf.mxu1  ;;  %12597 = vmatmul.mubr.msk.bf16.gmra.mxu0 %vm555_vm1, %v4390_v11  ;;  %v4721_v11 = vshll.u32 %v14785_v50, 16  ;;  %v4706_v56 = vor.u32 %v4705_v55, %v4702_v57  ;;  %v4547_v40 = vrot.slane %v4545_v37, 3  ;;  %v4720_v10 = vrot.slane %v4718_v34, 2  ;;  %v4971_v55 = vld [vmem:[%s13787_s24 + $0x8] sm:$0x8] }
 0x137   : > { %v1662_v22 = vadd.f32 %v12357_v23, %v14797_v4  ;;  %v14892_v18 = vadd.f32 %v1778_v59, %v1659_v39  ;;  %v12374_v41 = vpop.f32.mrf.mxu0  ;;  %v4535_v4 = vrot.slane %v4533_v38, 2  ;;  %12616 = vmatprep.mubr.msk.bf16.mxu0 %vm555_vm1, %v4689_v20  ;;  %v4554_v59 = vshll.u32 %v14793_v5, 16  ;;  %v4838_v37 = vld [vmem:[%s13888_s23 + $0x4] sm:$0x8] }
 0x138   : > { %v1628_v35 = vpop.f32.mrf.mxu1  ;;  %v4531_v38 = vsel %vm3291_vm6, %v4521_v47, %v4530_v2  ;;  %v5045_v46 = vsel %vm574_vm0, %v14835_v61, 0  ;;  %v4707_v20 = vsel %vm3291_vm6, %v4697_v19, %v4706_v56  ;;  %v4553_v49 = vrot.slane %v4551_v33, 2  ;;  %v14934_v61 = vld [vmem:[%s17086_s4 + $0x74] sm:$0xf] }
 0x139   : > { %v1660_v42 = vadd.f32 %v1628_v35, %v14809_v44  ;;  %v14900_v0 = vadd.f32 %v12371_v32, %v1662_v22  ;;  %v1794_v44 = vpop.f32.mrf.mxu0  ;;  %v4539_v25 = vor.u32 %v4538_v14, %v4535_v4  ;;  %v4723_v32 = vrot.slane %v4721_v11, 3  ;;  %v14951_v4 = vld [vmem:[%s13787_s24 + $0xc] sm:$0xf]  ;;  %v14954_v14 = vld [vmem:[%s13787_s24 + $0x10] sm:$0xf] }
 0x13a   : > { %v12360_v30 = vpop.f32.mrf.mxu1  ;;  %12583 = vmatmul.mubr.msk.bf16.gmra.mxu1 %vm555_vm1, %v4223_v31  ;;  %v4548_v19 = vor.u32 %v4547_v40, %v4544_v52  ;;  %v14995_v40 = vld [vmem:[%s13787_s24 + $0x1c] sm:$0xf] }
 0x13b   : > { %v1665_v13 = vadd.f32 %v12360_v30, %v14816_v51  ;;  %12602 = vmatprep.mubr.msk.bf16.mxu1 %vm555_vm1, %v4522_v54  ;;  %v14913_v3 = vadd.f32 %v1781_v17, %v1660_v42  ;;  %v12375_v53 = vpop.f32.mrf.mxu0  ;;  %v4556_v17 = vrot.slane %v4554_v59, 3  ;;  %v4540_v47 = vsel %vm3291_vm6, %v4530_v2, %v4539_v25  ;;  %v14957_v30 = vld [vmem:[%s13787_s24 + $0x14] sm:$0xf] }
 0x13c   : > { %v1641_v31 = vpop.f32.mrf.mxu1  ;;  %v14937_v35 = vor.u32 %v4723_v32, %v4720_v10  ;;  %v11083_v53 = vcombine.low %v4838_v37, %v14702_v43  ;;  %v14992_v43 = vld [vmem:[%s13787_s24 + $0x18] sm:$0xf] }
 0x13d   : > { %v1663_v50 = vadd.f32 %v1641_v31, %v14824_v7  ;;  %v14918_v51 = vadd.f32 %v12374_v41, %v1665_v13  ;;  %v1797_v39 = vpop.f32.mrf.mxu0  ;;  %v4878_v7 = vsel %vm574_vm0, %v14829_v16, 0  ;;  %v4715_v16 = vor.u32 %v4714_v1, %v4711_v28 }
 0x13e   : > { %v12361_v29 = vpop.f32.mrf.mxu1  ;;  %12617 = vmatmul.mubr.msk.bf16.vlgmr.msra.gmra.mxu0 %vm555_vm1, %v4698_v26  ;;  %v4557_v42 = vor.u32 %v4556_v17, %v4553_v49  ;;  %v4549_v13 = vsel %vm3291_vm6, %v4539_v25, %v4548_v19  ;;  %v14973_v28 = vcombine.low %v4971_v55, %v14951_v4 }
 0x13f   : > { %v14923_v23 = vadd.f32 %v1794_v44, %v1663_v50  ;;  %v12394_v22 = vpop.f32.mrf.mxu0  ;;  %12643 = vmatpush3.bf16.msra.mxu0 %v5045_v46  ;;  %12620 = vmatprep.mubr.msk.bf16.mxu0 %vm555_vm1, %v4707_v20  ;;  %v4716_v44 = vsel %vm3291_vm6, %v4706_v56, %v4715_v16  ;;  %v4725_v26 = vsel %vm3291_vm6, %v4715_v16, %v14937_v35  ;;  %v4849_v46 = vrot.slane %v14741_v58, 3  ;;  %v15007_v20 = vld [vmem:[%s13787_s24 + $0x24] sm:$0xf] }
 0x140   : > { %v1644_v5 = vpop.f32.mrf.mxu1  ;;  %v4558_v59 = vsel %vm3291_vm6, %v4548_v19, %v4557_v42 }
 0x141   : > { %v1664_v62 = vadd.f32 %v1644_v5, %v14843_v21  ;;  %v14942_v21 = vld [vmem:[%s17086_s4 + $0x78] sm:$0xf]  ;;  %v2072_v54 = vpop.f32.mrf.mxu0 }
 0x142   : > { %v12380_v24 = vpop.f32.mrf.mxu1  ;;  %12603 = vmatmul.mubr.msk.bf16.vlgmr.msra.gmra.mxu1 %vm555_vm1, %v4531_v38  ;;  %13329 = vmatprep.subr.msk.bf16.mxu0 %vm574_vm0, %v14942_v21  ;;  %v4848_v38 = vrot.slane %v11083_v53, 3 }
 0x143   : > { %v1965_v57 = vadd.f32 %v12380_v24, %v14857_v60  ;;  %12629 = vmatpush3.bf16.msra.mxu1 %v4878_v7  ;;  %v14947_v48 = vadd.f32 %v1797_v39, %v1664_v62  ;;  %12606 = vmatprep.mubr.msk.bf16.mxu1 %vm555_vm1, %v4540_v47  ;;  %v12395_v60 = vpop.f32.mrf.mxu0 }
 0x144   : > { %v1917_v41 = vpop.f32.mrf.mxu1  ;;  %13328 = vmatprep.subr.msk.bf16.mxu1 %vm574_vm0, %v14934_v61  ;;  %v4850_v16 = vsel %vm3634_vm7, %v4848_v38, %v4849_v46 }
 0x145   : > { %v1963_v6 = vadd.f32 %v1917_v41, %v14868_v45  ;;  %v14963_v34 = vadd.f32 %v12394_v22, %v1965_v57  ;;  %v2075_v2 = vpop.f32.mrf.mxu0  ;;  %v14977_v45 = vcombine.low %v14954_v14, %v14957_v30  ;;  %v15013_v22 = vcombine.low %v14992_v43, %v14995_v40 }
 0x146   : > { %v12381_v11 = vpop.f32.mrf.mxu1  ;;  %12621 = vmatmul.mubr.msk.bf16.gmra.mxu0 %vm555_vm1, %v4716_v44  ;;  %v4982_v44 = vld [vmem:[%s13787_s24 + $0x34] sm:$0x3] }
 0x147   : > { %v1966_v31 = vadd.f32 %v12381_v11, %v14872_v9  ;;  %v14979_v33 = vadd.f32 %v2072_v54, %v1963_v6  ;;  %v12398_v50 = vpop.f32.mrf.mxu0  ;;  %12624 = vmatprep.mubr.msk.bf16.mxu0 %vm555_vm1, %v4725_v26  ;;  %v5016_v10 = vrot.slane %v14977_v45, 3  ;;  %v5018_v41 = vrot.slane %v15013_v22, 3  ;;  %v15036_v6 = vld [vmem:[%s13787_s24 + $0x2c] sm:$0xf] }
 0x148   : > { %v1920_v56 = vpop.f32.mrf.mxu1 }
 0x149   : > { %v1964_v9 = vadd.f32 %v1920_v56, %v14880_v15  ;;  %v14985_v1 = vadd.f32 %v12395_v60, %v1966_v31  ;;  %v2088_v29 = vpop.f32.mrf.mxu0  ;;  %v5015_v15 = vrot.slane %v14973_v28, 3  ;;  %v15033_v60 = vld [vmem:[%s13787_s24 + $0x28] sm:$0xf] }
 0x14a   : > { %v12384_v25 = vpop.f32.mrf.mxu1  ;;  %12607 = vmatmul.mubr.msk.bf16.gmra.mxu1 %vm555_vm1, %v4549_v13  ;;  %v15051_v56 = vcombine.low %v15033_v60, %v15036_v6 }
 0x14b   : > { %v1969_v52 = vadd.f32 %v12384_v25, %v14887_v36  ;;  %12610 = vmatprep.mubr.msk.bf16.mxu1 %vm555_vm1, %v4558_v59  ;;  %v14999_v32 = vadd.f32 %v2075_v2, %v1964_v9  ;;  %v12399_v5 = vpop.f32.mrf.mxu0  ;;  %v15004_v36 = vld [vmem:[%s13787_s24 + $0x20] sm:$0xf]  ;;  %v5017_v58 = vsel %vm3634_vm7, %v5015_v15, %v5016_v10  ;;  %v4839_v59 = vld [vmem:[%s13888_s23 + $0x30] sm:$0x3] }
 0x14c   : > { %v1933_v39 = vpop.f32.mrf.mxu1  ;;  %v15022_v19 = vcombine.low %v15004_v36, %v15007_v20  ;;  %v11084_v38 = vcombine.low %v14769_v8, %v4839_v59 }
 0x14d   : > { %v1967_v7 = vadd.f32 %v1933_v39, %v14892_v18  ;;  %v15009_v49 = vadd.f32 %v12398_v50, %v1969_v52  ;;  %v2091_v62 = vpop.f32.mrf.mxu0  ;;  %v5019_v50 = vsel %vm3634_vm7, %v5016_v10, %v5018_v41 }
 0x14e   : > { %v12385_v17 = vpop.f32.mrf.mxu1  ;;  %12625 = vmatmul.mubr.msk.bf16.gmra.mxu0 %vm555_vm1, %v14937_v35  ;;  %v15042_v35 = vld [vmem:[%s13787_s24 + $0x30] sm:$0xf]  ;;  %v5020_v26 = vrot.slane %v15022_v19, 3 }
 0x14f   : > { %v1970_v47 = vadd.f32 %v12385_v17, %v14900_v0  ;;  %v15017_v24 = vadd.f32 %v2088_v29, %v1967_v7  ;;  %v12402_v54 = vpop.f32.mrf.mxu0  ;;  %12644 = vmatprep.mubr.msk.bf16.mxu0 %vm555_vm1, %v5017_v58  ;;  %v15059_v9 = vcombine.low %v15042_v35, %v4982_v44  ;;  %v15078_v17 = vld [vmem:[%s17086_s4 + $0x7c] sm:$0xf]  ;;  %v15109_v44 = vld [vmem:[%s13765_s19 + $0x10] sm:$0xf] }
 0x150   : > { %v1936_v18 = vpop.f32.mrf.mxu1  ;;  %v5021_v39 = vsel %vm3634_vm7, %v5018_v41, %v5020_v26  ;;  %v5138_v41 = vld [vmem:[%s13765_s19 + $0x8] sm:$0x8] }
 0x151   : > { %v1968_v57 = vadd.f32 %v1936_v18, %v14913_v3  ;;  %v15027_v0 = vadd.f32 %v12399_v5, %v1970_v47  ;;  %v2104_v37 = vpop.f32.mrf.mxu0  ;;  %v4851_v3 = vrot.slane %v14744_v63, 3  ;;  %v5024_v8 = vrot.slane %v15059_v9, 3 }
 0x152   : > { %v12388_v55 = vpop.f32.mrf.mxu1  ;;  %12611 = vmatmul.mubr.msk.bf16.gmra.mxu1 %vm555_vm1, %v4557_v42  ;;  %v5317_v47 = vshrl.u32 %v14977_v45, 16 }
 0x153   : > { %v1973_v11 = vadd.f32 %v12388_v55, %v14918_v51  ;;  %12630 = vmatprep.mubr.msk.bf16.mxu1 %vm555_vm1, %v4850_v16  ;;  %v15045_v42 = vadd.f32 %v2091_v62, %v1968_v57  ;;  %v12403_v2 = vpop.f32.mrf.mxu0  ;;  %v4853_v51 = vrot.slane %v14779_v12, 3  ;;  %v4852_v29 = vsel %vm3634_vm7, %v4849_v46, %v4851_v3 }
 0x154   : > { %v1949_v13 = vpop.f32.mrf.mxu1  ;;  %v5212_v12 = vsel %vm574_vm0, %v14934_v61, 0  ;;  %v5022_v46 = vrot.slane %v15051_v56, 3  ;;  %v5312_v62 = vshll.u32 %v14973_v28, 16  ;;  %v5320_v16 = vshll.u32 %v14977_v45, 16 }
 0x155   : > { %v1971_v31 = vadd.f32 %v1949_v13, %v14923_v23  ;;  %v15055_v53 = vadd.f32 %v12402_v54, %v1973_v11  ;;  %v2107_v25 = vpop.f32.mrf.mxu0  ;;  %v5380_v23 = vsel %vm574_vm0, %v14942_v21, 0  ;;  %v4854_v7 = vsel %vm3634_vm7, %v4851_v3, %v4853_v51  ;;  %v15106_v3 = vld [vmem:[%s13765_s19 + $0xc] sm:$0xf]  ;;  %v15112_v13 = vld [vmem:[%s13765_s19 + $0x14] sm:$0xf] }
 0x156   : > { %v12389_v63 = vpop.f32.mrf.mxu1  ;;  %12645 = vmatmul.mubr.msk.bf16.vlgmr.msra.gmra.mxu0 %vm555_vm1, %v5019_v50  ;;  %v4855_v21 = vrot.slane %v14782_v27, 3  ;;  %v15088_v27 = vld [vmem:[%s17086_s4 + $0x80] sm:$0xf]  ;;  %v15096_v57 = vrot.slane %v11084_v38, 3  ;;  %v5326_v55 = vshrl.u32 %v15013_v22, 16  ;;  %v5023_v11 = vsel %vm3634_vm7, %v5020_v26, %v5022_v46 }
 0x157   : > { %v15064_v52 = vadd.f32 %v2104_v37, %v1971_v31  ;;  %v12422_v10 = vpop.f32.mrf.mxu0  ;;  %12671 = vmatpush3.bf16.msra.mxu0 %v5380_v23  ;;  %12648 = vmatprep.mubr.msk.bf16.mxu0 %vm555_vm1, %v5021_v39  ;;  %v5314_v26 = vrot.slane %v5312_v62, 4  ;;  %v5319_v63 = vrot.slane %v5317_v47, 3  ;;  %v15128_v39 = vcombine.low %v5138_v41, %v15106_v3 }
 0x158   : > { %v1952_v15 = vpop.f32.mrf.mxu1  ;;  %v4856_v45 = vsel %vm3634_vm7, %v4853_v51, %v4855_v21  ;;  %13331 = vmatprep.subr.msk.bf16.mxu0 %vm574_vm0, %v15088_v27  ;;  %v15132_v38 = vcombine.low %v15109_v44, %v15112_v13  ;;  %v5338_v41 = vshll.u32 %v15022_v19, 16 }
 0x159   : > { %v1972_v5 = vadd.f32 %v1952_v15, %v14947_v48  ;;  %v5309_v48 = vshrl.u32 %v14973_v28, 16  ;;  %v2338_v58 = vpop.f32.mrf.mxu0 }
 0x15a   : > { %v12408_v61 = vpop.f32.mrf.mxu1  ;;  %12631 = vmatmul.mubr.msk.bf16.vlgmr.msra.gmra.mxu1 %vm555_vm1, %v4852_v29  ;;  %v5329_v29 = vshll.u32 %v15013_v22, 16  ;;  %v5328_v22 = vrot.slane %v5326_v55, 3  ;;  %v5335_v55 = vshrl.u32 %v15022_v19, 16 }
 0x15b   : > { %v2253_v18 = vadd.f32 %v12408_v61, %v14963_v34  ;;  %12657 = vmatpush3.bf16.msra.mxu1 %v5212_v12  ;;  %v15093_v54 = vadd.f32 %v2107_v25, %v1972_v5  ;;  %12634 = vmatprep.mubr.msk.bf16.mxu1 %vm555_vm1, %v4854_v7  ;;  %v12423_v34 = vpop.f32.mrf.mxu0  ;;  %v5311_v59 = vrot.slane %v5309_v48, 3  ;;  %v5322_v25 = vrot.slane %v5320_v16, 4  ;;  %v15144_v61 = vld [vmem:[%s13765_s19 + $0x1c] sm:$0xf] }
 0x15c   : > { %v2205_v28 = vpop.f32.mrf.mxu1  ;;  %13330 = vmatprep.subr.msk.bf16.mxu1 %vm574_vm0, %v15078_v17  ;;  %v4858_v12 = vsel %vm3634_vm7, %v4855_v21, %v15096_v57  ;;  %v15141_v21 = vld [vmem:[%s13765_s19 + $0x18] sm:$0xf]  ;;  %v5331_v47 = vrot.slane %v5329_v29, 4  ;;  %v5182_v16 = vrot.slane %v15128_v39, 3  ;;  %v5340_v29 = vrot.slane %v5338_v41, 4 }
 0x15d   : > { %v2251_v37 = vadd.f32 %v2205_v28, %v14979_v33  ;;  %v15114_v2 = vadd.f32 %v12422_v10, %v2253_v18  ;;  %v5025_v33 = vsel %vm3634_vm7, %v5022_v46, %v5024_v8  ;;  %v2341_v51 = vpop.f32.mrf.mxu0  ;;  %v5315_v7 = vor.u32 %v5314_v26, %v5311_v59 }
 0x15e   : > { %v12409_v31 = vpop.f32.mrf.mxu1  ;;  %12649 = vmatmul.mubr.msk.bf16.gmra.mxu0 %vm555_vm1, %v5023_v11  ;;  %v5183_v28 = vrot.slane %v15132_v38, 3 }
 0x15f   : > { %v2254_v50 = vadd.f32 %v12409_v31, %v14985_v1  ;;  %v15123_v23 = vadd.f32 %v2338_v58, %v2251_v37  ;;  %v12426_v10 = vpop.f32.mrf.mxu0  ;;  %12652 = vmatprep.mubr.msk.bf16.mxu0 %vm555_vm1, %v5025_v33  ;;  %v15162_v31 = vld [vmem:[%s13765_s19 + $0x20] sm:$0xf]  ;;  %v15165_v33 = vld [vmem:[%s13765_s19 + $0x24] sm:$0xf] }
 0x160   : > { %v2208_v15 = vpop.f32.mrf.mxu1 }
 0x161   : > { %v2252_v1 = vadd.f32 %v2208_v15, %v14999_v32  ;;  %v15136_v5 = vadd.f32 %v12423_v34, %v2254_v50  ;;  %v2354_v48 = vpop.f32.mrf.mxu0  ;;  %v5323_v32 = vor.u32 %v5322_v25, %v5319_v63  ;;  %v5184_v50 = vsel %vm3634_vm7, %v5182_v16, %v5183_v28 }
 0x162   : > { %v12412_v46 = vpop.f32.mrf.mxu1  ;;  %12635 = vmatmul.mubr.msk.bf16.gmra.mxu1 %vm555_vm1, %v4856_v45  ;;  %v5337_v25 = vrot.slane %v5335_v55, 3 }
 0x163   : > { %v2257_v62 = vadd.f32 %v12412_v46, %v15009_v49  ;;  %12638 = vmatprep.mubr.msk.bf16.mxu1 %vm555_vm1, %v4858_v12  ;;  %v15148_v58 = vadd.f32 %v2341_v51, %v2252_v1  ;;  %v12427_v34 = vpop.f32.mrf.mxu0  ;;  %v15157_v49 = vcombine.low %v15141_v21, %v15144_v61  ;;  %v5324_v63 = vsel %vm5307_vm8, %v5315_v7, %v5323_v32 }
 0x164   : > { %v2221_v18 = vpop.f32.mrf.mxu1  ;;  %v5341_v41 = vor.u32 %v5340_v29, %v5337_v25 }
 0x165   : > { %v2255_v37 = vadd.f32 %v2221_v18, %v15017_v24  ;;  %v15159_v11 = vadd.f32 %v12426_v10, %v2257_v62  ;;  %v2357_v59 = vpop.f32.mrf.mxu0  ;;  %v5332_v24 = vor.u32 %v5331_v47, %v5328_v22  ;;  %v15179_v10 = vcombine.low %v15162_v31, %v15165_v33  ;;  %v15194_v62 = vld [vmem:[%s13765_s19 + $0x2c] sm:$0xf] }
 0x166   : > { %v12413_v45 = vpop.f32.mrf.mxu1  ;;  %12653 = vmatmul.mubr.msk.bf16.gmra.mxu0 %vm555_vm1, %v5024_v8  ;;  %v5344_v8 = vshrl.u32 %v15051_v56, 16  ;;  %v5353_v47 = vshrl.u32 %v15059_v9, 16 }
 0x167   : > { %v2258_v26 = vadd.f32 %v12413_v45, %v15027_v0  ;;  %v15169_v19 = vadd.f32 %v2354_v48, %v2255_v37  ;;  %v12430_v15 = vpop.f32.mrf.mxu0  ;;  %v5185_v0 = vrot.slane %v15157_v49, 3  ;;  %12672 = vmatprep.mubr.msk.bf16.mxu0 %vm555_vm1, %v5324_v63  ;;  %v15191_v48 = vld [vmem:[%s13765_s19 + $0x28] sm:$0xf]  ;;  %v5333_v55 = vsel %vm5307_vm8, %v5323_v32, %v5332_v24 }
 0x168   : > { %v2224_v51 = vpop.f32.mrf.mxu1  ;;  %v15214_v32 = vcombine.low %v15191_v48, %v15194_v62  ;;  %v5355_v29 = vrot.slane %v5353_v47, 3  ;;  %v15230_v47 = vld [vmem:[%s17086_s4 + $0x84] sm:$0xf] }
 0x169   : > { %v2256_v12 = vadd.f32 %v2224_v51, %v15045_v42  ;;  %v15181_v1 = vadd.f32 %v12427_v34, %v2258_v26  ;;  %v5347_v42 = vshll.u32 %v15051_v56, 16  ;;  %v2370_v46 = vpop.f32.mrf.mxu0  ;;  %v15202_v56 = vld [vmem:[%s13765_s19 + $0x30] sm:$0xf]  ;;  %v5149_v34 = vld [vmem:[%s13765_s19 + $0x34] sm:$0x3]  ;;  %v5186_v45 = vsel %vm3634_vm7, %v5183_v28, %v5185_v0 }
 0x16a   : > { %v12416_v22 = vpop.f32.mrf.mxu1  ;;  %12639 = vmatmul.mubr.msk.bf16.gmra.mxu1 %vm555_vm1, %v15096_v57  ;;  %v5356_v57 = vshll.u32 %v15059_v9, 16  ;;  %v5187_v26 = vrot.slane %v15179_v10, 3  ;;  %v5670_v9 = vsel %vm574_vm0, %v15088_v27, 0  ;;  %v5342_v27 = vsel %vm5307_vm8, %v5332_v24, %v5341_v41  ;;  %v15237_v24 = vld [vmem:[%s17086_s4 + $0x88] sm:$0xf] }
 0x16b   : > { %v2261_v7 = vadd.f32 %v12416_v22, %v15055_v53  ;;  %12658 = vmatprep.mubr.msk.bf16.mxu1 %vm555_vm1, %v5184_v50  ;;  %v15198_v18 = vadd.f32 %v2357_v59, %v2256_v12  ;;  %v12431_v53 = vpop.f32.mrf.mxu0  ;;  %v5346_v59 = vrot.slane %v5344_v8, 3  ;;  %v5349_v50 = vrot.slane %v5347_v42, 4 }
 0x16c   : > { %v2237_v16 = vpop.f32.mrf.mxu1  ;;  %v5358_v12 = vrot.slane %v5356_v57, 4  ;;  %v5547_v22 = vsel %vm574_vm0, %v15078_v17, 0  ;;  %v5189_v17 = vrot.slane %v15214_v32, 3 }
 0x16d   : > { %v2259_v37 = vadd.f32 %v2237_v16, %v15064_v52  ;;  %v15208_v63 = vadd.f32 %v12430_v15, %v2261_v7  ;;  %v2373_v25 = vpop.f32.mrf.mxu0  ;;  %v15217_v52 = vcombine.low %v15202_v56, %v5149_v34  ;;  %v5188_v7 = vsel %vm3634_vm7, %v5185_v0, %v5187_v26 }
 0x16e   : > { %v12417_v51 = vpop.f32.mrf.mxu1  ;;  %12673 = vmatmul.mubr.msk.bf16.vlgmr.msra.gmra.mxu0 %vm555_vm1, %v5333_v55  ;;  %v5350_v57 = vor.u32 %v5349_v50, %v5346_v59  ;;  %v5359_v16 = vor.u32 %v5358_v12, %v5355_v29 }
 0x16f   : > { %v15219_v28 = vadd.f32 %v2370_v46, %v2259_v37  ;;  %v12450_v8 = vpop.f32.mrf.mxu0  ;;  %12699 = vmatpush3.bf16.msra.mxu0 %v5670_v9  ;;  %12676 = vmatprep.mubr.msk.bf16.mxu0 %vm555_vm1, %v5342_v27  ;;  %v5191_v55 = vrot.slane %v15217_v52, 3  ;;  %v5476_v37 = vshrl.u32 %v15128_v39, 16  ;;  %v5484_v51 = vshrl.u32 %v15132_v38, 16 }
 0x170   : > { %v2240_v15 = vpop.f32.mrf.mxu1  ;;  %v5487_v9 = vshll.u32 %v15132_v38, 16  ;;  %13333 = vmatprep.subr.msk.bf16.mxu0 %vm574_vm0, %v15237_v24  ;;  %v5351_v29 = vsel %vm5307_vm8, %v5341_v41, %v5350_v57  ;;  %v5360_v38 = vsel %vm5307_vm8, %v5350_v57, %v5359_v16 }
 0x171   : > { %v2260_v42 = vadd.f32 %v2240_v15, %v15093_v54  ;;  %v2691_v54 = vpop.f32.mrf.mxu0 }
 0x172   : > { %v12436_v46 = vpop.f32.mrf.mxu1  ;;  %12659 = vmatmul.mubr.msk.bf16.vlgmr.msra.gmra.mxu1 %vm555_vm1, %v5186_v45  ;;  %v5479_v45 = vshll.u32 %v15128_v39, 16  ;;  %v5190_v39 = vsel %vm3634_vm7, %v5187_v26, %v5189_v17 }
 0x173   : > { %v2533_v0 = vadd.f32 %v12436_v46, %v15114_v2  ;;  %12685 = vmatpush3.bf16.msra.mxu1 %v5547_v22  ;;  %v15242_v34 = vadd.f32 %v2373_v25, %v2260_v42  ;;  %12662 = vmatprep.mubr.msk.bf16.mxu1 %vm555_vm1, %v5188_v7  ;;  %v12451_v2 = vpop.f32.mrf.mxu0  ;;  %v5192_v22 = vsel %vm3634_vm7, %v5189_v17, %v5191_v55  ;;  %v5486_v7 = vrot.slane %v5484_v51, 3 }
 0x174   : > { %v2485_v53 = vpop.f32.mrf.mxu1  ;;  %13332 = vmatprep.subr.msk.bf16.mxu1 %vm574_vm0, %v15230_v47  ;;  %v5481_v42 = vrot.slane %v5479_v45, 4  ;;  %v5489_v46 = vrot.slane %v5487_v9, 4 }
 0x175   : > { %v2531_v59 = vadd.f32 %v2485_v53, %v15123_v23  ;;  %v15252_v50 = vadd.f32 %v12450_v8, %v2533_v0  ;;  %v2694_v12 = vpop.f32.mrf.mxu0  ;;  %v5478_v8 = vrot.slane %v5476_v37, 3  ;;  %v5496_v53 = vshll.u32 %v15157_v49, 16 }
 0x176   : > { %v12437_v25 = vpop.f32.mrf.mxu1  ;;  %12677 = vmatmul.mubr.msk.bf16.gmra.mxu0 %vm555_vm1, %v5351_v29  ;;  %v5490_v51 = vor.u32 %v5489_v46, %v5486_v7 }
 0x177   : > { %v2534_v15 = vadd.f32 %v12437_v25, %v15136_v5  ;;  %v15263_v23 = vadd.f32 %v2691_v54, %v2531_v59  ;;  %v12454_v0 = vpop.f32.mrf.mxu0  ;;  %12680 = vmatprep.mubr.msk.bf16.mxu0 %vm555_vm1, %v5360_v38  ;;  %v5493_v54 = vshrl.u32 %v15157_v49, 16  ;;  %v5502_v59 = vshrl.u32 %v15179_v10, 16 }
 0x178   : > { %v2488_v27 = vpop.f32.mrf.mxu1  ;;  %v5505_v25 = vshll.u32 %v15179_v10, 16  ;;  %v5498_v38 = vrot.slane %v5496_v53, 4 }
 0x179   : > { %v2532_v41 = vadd.f32 %v2488_v27, %v15148_v58  ;;  %v15267_v26 = vadd.f32 %v12451_v2, %v2534_v15  ;;  %v2707_v57 = vpop.f32.mrf.mxu0  ;;  %v5482_v58 = vor.u32 %v5481_v42, %v5478_v8  ;;  %v5495_v15 = vrot.slane %v5493_v54, 3 }
 0x17a   : > { %v12440_v5 = vpop.f32.mrf.mxu1  ;;  %12663 = vmatmul.mubr.msk.bf16.gmra.mxu1 %vm555_vm1, %v5190_v39  ;;  %v15284_v39 = vcombine.low %v14951_v4, %v14954_v14  ;;  %v5504_v42 = vrot.slane %v5502_v59, 3  ;;  %v5507_v7 = vrot.slane %v5505_v25, 4  ;;  %v5511_v14 = vshrl.u32 %v15214_v32, 16 }
 0x17b   : > { %v2537_v17 = vadd.f32 %v12440_v5, %v15159_v11  ;;  %12666 = vmatprep.mubr.msk.bf16.mxu1 %vm555_vm1, %v5192_v22  ;;  %v15275_v37 = vadd.f32 %v2694_v12, %v2532_v41  ;;  %v12455_v9 = vpop.f32.mrf.mxu0  ;;  %v5948_v25 = vsel %vm574_vm0, %v15237_v24, 0 }
 0x17c   : > { %v2501_v45 = vpop.f32.mrf.mxu1  ;;  %v5508_v53 = vor.u32 %v5507_v7, %v5504_v42 }
 0x17d   : > { %v2535_v2 = vadd.f32 %v2501_v45, %v15169_v19  ;;  %v15280_v29 = vadd.f32 %v12454_v0, %v2537_v17  ;;  %v2710_v49 = vpop.f32.mrf.mxu0  ;;  %v5491_v19 = vsel %vm5307_vm8, %v5482_v58, %v5490_v51  ;;  %v15309_v17 = vcombine.low %v14957_v30, %v14992_v43 }
 0x17e   : > { %v12441_v11 = vpop.f32.mrf.mxu1  ;;  %12681 = vmatmul.mubr.msk.bf16.gmra.mxu0 %vm555_vm1, %v5359_v16  ;;  %v5513_v58 = vrot.slane %v5511_v14, 3 }
 0x17f   : > { %v2538_v12 = vadd.f32 %v12441_v11, %v15181_v1  ;;  %v15287_v22 = vadd.f32 %v2707_v57, %v2535_v2  ;;  %v12458_v8 = vpop.f32.mrf.mxu0  ;;  %12700 = vmatprep.mubr.msk.bf16.mxu0 %vm555_vm1, %v15284_v39  ;;  %v5514_v1 = vshll.u32 %v15214_v32, 16  ;;  %v5520_v57 = vshrl.u32 %v15217_v52, 16 }
 0x180   : > { %v2504_v27 = vpop.f32.mrf.mxu1 }
 0x181   : > { %v2536_v10 = vadd.f32 %v2504_v27, %v15198_v18  ;;  %v15292_v46 = vadd.f32 %v12455_v9, %v2538_v12  ;;  %v2723_v0 = vpop.f32.mrf.mxu0  ;;  %v5499_v18 = vor.u32 %v5498_v38, %v5495_v15  ;;  %v5516_v9 = vrot.slane %v5514_v1, 4  ;;  %v15338_v15 = vld [vmem:[%s17086_s4 + $0x90] sm:$0xf] }
 0x182   : > { %v12444_v4 = vpop.f32.mrf.mxu1  ;;  %12667 = vmatmul.mubr.msk.bf16.gmra.mxu1 %vm555_vm1, %v5191_v55  ;;  %v5523_v55 = vshll.u32 %v15217_v52, 16  ;;  %v15319_v52 = vcombine.low %v14995_v40, %v15004_v36  ;;  %v5522_v11 = vrot.slane %v5520_v57, 3  ;;  %v15332_v40 = vld [vmem:[%s17086_s4 + $0x8c] sm:$0xf]  ;;  %v5890_v27 = vshll.u32 %v15284_v39, 16 }
 0x183   : > { %v2541_v16 = vadd.f32 %v12444_v4, %v15208_v63  ;;  %12686 = vmatprep.mubr.msk.bf16.mxu1 %vm555_vm1, %v5491_v19  ;;  %v15303_v41 = vadd.f32 %v2710_v49, %v2536_v10  ;;  %v12459_v54 = vpop.f32.mrf.mxu0  ;;  %v5500_v59 = vsel %vm5307_vm8, %v5490_v51, %v5499_v18  ;;  %v5509_v24 = vsel %vm5307_vm8, %v5499_v18, %v5508_v53 }
 0x184   : > { %v2517_v5 = vpop.f32.mrf.mxu1  ;;  %v5525_v49 = vrot.slane %v5523_v55, 4 }
 0x185   : > { %v2539_v32 = vadd.f32 %v2517_v5, %v15219_v28  ;;  %v15312_v45 = vadd.f32 %v12458_v8, %v2541_v16  ;;  %v2726_v2 = vpop.f32.mrf.mxu0  ;;  %v5793_v28 = vsel %vm574_vm0, %v15230_v47, 0  ;;  %v5517_v47 = vor.u32 %v5516_v9, %v5513_v58 }
 0x186   : > { %v12445_v63 = vpop.f32.mrf.mxu1  ;;  %12701 = vmatmul.mubr.msk.bf16.vlgmr.msra.gmra.mxu0 %vm555_vm1, %v15309_v17  ;;  %v5526_v10 = vor.u32 %v5525_v49, %v5522_v11  ;;  %v5894_v16 = vshll.u32 %v15309_v17, 16  ;;  %v5898_v11 = vshrl.u32 %v15309_v17, 16 }
 0x187   : > { %v15321_v30 = vadd.f32 %v2723_v0, %v2539_v32  ;;  %v12478_v12 = vpop.f32.mrf.mxu0  ;;  %12727 = vmatpush3.bf16.msra.mxu0 %v5948_v25  ;;  %12704 = vmatprep.mubr.msk.bf16.mxu0 %vm555_vm1, %v15319_v52  ;;  %v5518_v1 = vsel %vm5307_vm8, %v5508_v53, %v5517_v47  ;;  %v15361_v0 = vcombine.low %v15036_v6, %v15042_v35 }
 0x188   : > { %v2520_v43 = vpop.f32.mrf.mxu1  ;;  %13335 = vmatprep.subr.msk.bf16.mxu0 %vm574_vm0, %v15338_v15  ;;  %v5527_v55 = vsel %vm5307_vm8, %v5517_v47, %v5526_v10  ;;  %v5896_v63 = vrot.slane %v5894_v16, 1 }
 0x189   : > { %v2540_v51 = vadd.f32 %v2520_v43, %v15242_v34  ;;  %v3065_v38 = vpop.f32.mrf.mxu0  ;;  %v5901_v43 = vshll.u32 %v15319_v52, 16 }
 0x18a   : > { %v12464_v36 = vpop.f32.mrf.mxu1  ;;  %12687 = vmatmul.mubr.msk.bf16.vlgmr.msra.gmra.mxu1 %vm555_vm1, %v5500_v59  ;;  %v15383_v59 = vld [vmem:[%s13787_s24 + $0x34] ss:$0 sps:$4 sm:$0x77]  }
 0x18b   : > { %v2945_v34 = vadd.f32 %v12464_v36, %v15252_v50  ;;  %12713 = vmatpush3.bf16.msra.mxu1 %v5793_v28  ;;  %v15344_v19 = vadd.f32 %v2726_v2, %v2540_v51  ;;  %12690 = vmatprep.mubr.msk.bf16.mxu1 %vm555_vm1, %v5509_v24  ;;  %v12479_v42 = vpop.f32.mrf.mxu0  ;;  %v15352_v50 = vcombine.low %v15007_v20, %v15033_v60  ;;  %v5888_v20 = vshrl.u32 %v15284_v39, 16 }
 0x18c   : > { %v2897_v8 = vpop.f32.mrf.mxu1  ;;  %13334 = vmatprep.subr.msk.bf16.mxu1 %vm574_vm0, %v15332_v40  ;;  %v5892_v60 = vrot.slane %v5890_v27, 1  ;;  %v11145_v51 = vcombine.low %v15106_v3, %v15109_v44  ;;  %v5905_v36 = vshrl.u32 %v15319_v52, 16  ;;  %v5900_v3 = vor.u32 %v5898_v11, %v5896_v63  ;;  %v15453_v11 = vld [vmem:[%s13867_s17 + $0x14] sm:$0xf] }
 0x18d   : > { %v2943_v7 = vadd.f32 %v2897_v8, %v15263_v23  ;;  %v15354_v4 = vadd.f32 %v12478_v12, %v2945_v34  ;;  %v3068_v18 = vpop.f32.mrf.mxu0  ;;  %v5908_v47 = vshll.u32 %v15352_v50, 16 }
 0x18e   : > { %v12465_v14 = vpop.f32.mrf.mxu1  ;;  %12705 = vmatmul.mubr.msk.bf16.gmra.mxu0 %vm555_vm1, %v15352_v50  ;;  %v5893_v53 = vor.u32 %v5892_v60, %v5888_v20  ;;  %v5912_v20 = vshrl.u32 %v15352_v50, 16  ;;  %v5919_v60 = vshrl.u32 %v15361_v0, 16  ;;  %v11147_v50 = vcombine.low %v15144_v61, %v15162_v31 }
 0x18f   : > { %v2946_v23 = vadd.f32 %v12465_v14, %v15267_v26  ;;  %v15366_v5 = vadd.f32 %v3065_v38, %v2943_v7  ;;  %v12482_v54 = vpop.f32.mrf.mxu0  ;;  %12708 = vmatprep.mubr.msk.bf16.mxu0 %vm555_vm1, %v15361_v0  ;;  %v5910_v14 = vrot.slane %v5908_v47, 1 }
 0x190   : > { %v2900_v57 = vpop.f32.mrf.mxu1  ;;  %v5897_v12 = vsel %vm789_vm2, %v5893_v53, %v5896_v63  ;;  %v15438_v53 = vld [vmem:[%s17086_s4 + $0x98] sm:$0xf] }
 0x191   : > { %v2944_v6 = vadd.f32 %v2900_v57, %v15275_v37  ;;  %v15372_v35 = vadd.f32 %v12479_v42, %v2946_v23  ;;  %v3081_v26 = vpop.f32.mrf.mxu0  ;;  %v5922_v57 = vshll.u32 %v15383_v59, 16  ;;  %v5914_v61 = vor.u32 %v5912_v20, %v5910_v14 }
 0x192   : > { %v12468_v32 = vpop.f32.mrf.mxu1  ;;  %12691 = vmatmul.mubr.msk.bf16.gmra.mxu1 %vm555_vm1, %v5518_v1  ;;  %v11146_v1 = vcombine.low %v15112_v13, %v15141_v21  ;;  %v6115_v21 = vsel %vm574_vm0, %v15332_v40, 0 }
 0x193   : > { %v2949_v39 = vadd.f32 %v12468_v32, %v15280_v29  ;;  %12694 = vmatprep.mubr.msk.bf16.mxu1 %vm555_vm1, %v5527_v55  ;;  %v15379_v58 = vadd.f32 %v3068_v18, %v2944_v6  ;;  %v12483_v2 = vpop.f32.mrf.mxu0  ;;  %v5924_v40 = vrot.slane %v5922_v57, 1  ;;  %v13464_v57 = vld [vmem:[%s13765_s19 + $0x34] ss:$0 sps:$4 sm:$0x77]  }
 0x194   : > { %v2913_v9 = vpop.f32.mrf.mxu1 }
 0x195   : > { %v2947_v37 = vadd.f32 %v2913_v9, %v15287_v22  ;;  %v15385_v25 = vadd.f32 %v12482_v54, %v2949_v39  ;;  %v3084_v29 = vpop.f32.mrf.mxu0  ;;  %v6282_v54 = vsel %vm574_vm0, %v15338_v15, 0  ;;  %v15432_v15 = vld [vmem:[%s17086_s4 + $0x94] sm:$0xf]  ;;  %v6208_v9 = vld [vmem:[%s13867_s17 + $0x8] sm:$0x8] }
 0x196   : > { %v12469_v28 = vpop.f32.mrf.mxu1  ;;  %12709 = vmatmul.mubr.msk.bf16.gmra.mxu0 %vm555_vm1, %v15383_v59 }
 0x197   : > { %v2950_v49 = vadd.f32 %v12469_v28, %v15292_v46  ;;  %v15393_v24 = vadd.f32 %v3081_v26, %v2947_v37  ;;  %v12486_v38 = vpop.f32.mrf.mxu0  ;;  %v5903_v46 = vrot.slane %v5901_v43, 1  ;;  %12728 = vmatprep.mubr.msk.bf16.mxu0 %vm555_vm1, %v5897_v12  ;;  %v15450_v28 = vld [vmem:[%s13867_s17 + $0x10] sm:$0xf]  ;;  %v15460_v12 = vld [vmem:[%s13888_s23 + $0xc] sm:$0xf] }
 0x198   : > { %v2916_v22 = vpop.f32.mrf.mxu1 }
 0x199   : > { %v2948_v17 = vadd.f32 %v2916_v22, %v15303_v41  ;;  %v15400_v34 = vadd.f32 %v12483_v2, %v2950_v49  ;;  %v3097_v44 = vpop.f32.mrf.mxu0  ;;  %v5907_v7 = vor.u32 %v5905_v36, %v5903_v46  ;;  %v5915_v41 = vshll.u32 %v15361_v0, 16  ;;  %v15444_v2 = vld [vmem:[%s13867_s17 + $0xc] sm:$0xf]  ;;  %v15466_v22 = vld [vmem:[%s13888_s23 + $0x14] sm:$0xf] }
 0x19a   : > { %v12472_v27 = vpop.f32.mrf.mxu1  ;;  %12695 = vmatmul.mubr.msk.bf16.gmra.mxu1 %vm555_vm1, %v5526_v10 }
 0x19b   : > { %v2953_v52 = vadd.f32 %v12472_v27, %v15312_v45  ;;  %12714 = vmatprep.mubr.msk.bf16.mxu1 %vm555_vm1, %v11145_v51  ;;  %v15406_v8 = vadd.f32 %v3084_v29, %v2948_v17  ;;  %v12487_v16 = vpop.f32.mrf.mxu0  ;;  %v5904_v45 = vsel %vm789_vm2, %v5900_v3, %v5903_v46  ;;  %v5917_v32 = vrot.slane %v5915_v41, 1  ;;  %v6041_v29 = vld [vmem:[%s13888_s23 + $0x8] sm:$0x8]  ;;  %v15463_v51 = vld [vmem:[%s13888_s23 + $0x10] sm:$0xf] }
 0x19c   : > { %v2929_v42 = vpop.f32.mrf.mxu1  ;;  %v11148_v17 = vcombine.low %v15165_v33, %v15191_v48  ;;  %v15489_v48 = vcombine.low %v6041_v29, %v15460_v12 }
 0x19d   : > { %v2951_v10 = vadd.f32 %v2929_v42, %v15321_v30  ;;  %v15412_v18 = vadd.f32 %v12486_v38, %v2953_v52  ;;  %v3100_v55 = vpop.f32.mrf.mxu0  ;;  %v5911_v30 = vsel %vm789_vm2, %v5907_v7, %v5910_v14  ;;  %v5921_v31 = vor.u32 %v5919_v60, %v5917_v32 }
 0x19e   : > { %v12473_v23 = vpop.f32.mrf.mxu1  ;;  %12729 = vmatmul.mubr.msk.bf16.vlgmr.msra.gmra.mxu0 %vm555_vm1, %v5904_v45  ;;  %v5918_v38 = vsel %vm789_vm2, %v5914_v61, %v5917_v32  ;;  %v15484_v52 = vcombine.low %v15450_v28, %v15453_v11  ;;  %v5926_v7 = vshrl.u32 %v15383_v59, 16  ;;  %v15513_v45 = vld [vmem:[%s13888_s23 + $0x18] sm:$0xf] }
 0x19f   : > { %v15420_v6 = vadd.f32 %v3097_v44, %v2951_v10  ;;  %v12506_v0 = vpop.f32.mrf.mxu0  ;;  %12755 = vmatpush3.bf16.msra.mxu0 %v6282_v54  ;;  %12732 = vmatprep.mubr.msk.bf16.mxu0 %vm555_vm1, %v5911_v30  ;;  %v5925_v46 = vsel %vm789_vm2, %v5921_v31, %v5924_v40  ;;  %v15480_v44 = vcombine.low %v6208_v9, %v15444_v2 }
 0x1a0   : > { %v2932_v13 = vpop.f32.mrf.mxu1  ;;  %13337 = vmatprep.subr.msk.bf16.mxu0 %vm574_vm0, %v15438_v53  ;;  %v6253_v23 = vrot.slane %v15484_v52, 3  ;;  %v5928_v32 = vor.u32 %v5926_v7, %v5924_v40  ;;  %v6219_v7 = vld [vmem:[%s13867_s17 + $0x34] sm:$0x3] }
 0x1a1   : > { %v2952_v26 = vadd.f32 %v2932_v13, %v15344_v19  ;;  %v3400_v19 = vpop.f32.mrf.mxu0  ;;  %v6252_v59 = vrot.slane %v15480_v44, 3  ;;  %v15524_v13 = vld [vmem:[%s13867_s17 + $0x20] sm:$0xf] }
 0x1a2   : > { %v12492_v39 = vpop.f32.mrf.mxu1  ;;  %12715 = vmatmul.mubr.msk.bf16.vlgmr.msra.gmra.mxu1 %vm555_vm1, %v11146_v1  ;;  %v15503_v1 = vld [vmem:[%s13867_s17 + $0x18] sm:$0xf] }
 0x1a3   : > { %v3280_v63 = vadd.f32 %v12492_v39, %v15354_v4  ;;  %12741 = vmatpush3.bf16.msra.mxu1 %v6115_v21  ;;  %v15446_v37 = vadd.f32 %v3100_v55, %v2952_v26  ;;  %12718 = vmatprep.mubr.msk.bf16.mxu1 %vm555_vm1, %v11147_v50  ;;  %v12507_v4 = vpop.f32.mrf.mxu0  ;;  %v6085_v55 = vrot.slane %v15489_v48, 3  ;;  %v15528_v50 = vld [vmem:[%s13867_s17 + $0x24] sm:$0xf]  ;;  %v15534_v26 = vld [vmem:[%s13867_s17 + $0x2c] sm:$0xf]  ;;  %v6254_v9 = vsel %vm3634_vm7, %v6252_v59, %v6253_v23 }
 0x1a4   : > { %v3232_v43 = vpop.f32.mrf.mxu1  ;;  %13336 = vmatprep.subr.msk.bf16.mxu1 %vm574_vm0, %v15432_v15  ;;  %17108 = vst [vmem:[#allocation6_spill] sm:$0xff] %v15528_v50  ;;  %17110 = vst [vmem:[#allocation8_spill] sm:$0xff] %v15534_v26 }
 0x1a5   : > { %v3278_v49 = vadd.f32 %v3232_v43, %v15366_v5  ;;  %v15468_v36 = vadd.f32 %v12506_v0, %v3280_v63  ;;  %v11149_v5 = vcombine.low %v15194_v62, %v15202_v56  ;;  %v3403_v27 = vpop.f32.mrf.mxu0  ;;  %v15493_v62 = vcombine.low %v15463_v51, %v15466_v22  ;;  %v15531_v0 = vld [vmem:[%s13867_s17 + $0x28] sm:$0xf]  ;;  %v15546_v63 = vld [vmem:[%s13888_s23 + $0x24] sm:$0xf] }
 0x1a6   : > { %v12493_v47 = vpop.f32.mrf.mxu1  ;;  %12733 = vmatmul.mubr.msk.bf16.gmra.mxu0 %vm555_vm1, %v5918_v38  ;;  %17109 = vst [vmem:[#allocation7_spill] sm:$0xff] %v15531_v0  ;;  %17111 = vst [vmem:[#allocation9_spill] sm:$0xff] %v15546_v63  ;;  %v15566_v38 = vld [vmem:[%s13888_s23 + $0x28] sm:$0xf] }
 0x1a7   : > { %v3281_v3 = vadd.f32 %v12493_v47, %v15372_v35  ;;  %v15486_v42 = vadd.f32 %v3400_v19, %v3278_v49  ;;  %v12510_v56 = vpop.f32.mrf.mxu0  ;;  %12736 = vmatprep.mubr.msk.bf16.mxu0 %vm555_vm1, %v5925_v46  ;;  %v6086_v54 = vrot.slane %v15493_v62, 3  ;;  %v15543_v19 = vld [vmem:[%s13888_s23 + $0x20] sm:$0xf]  ;;  %v15559_v47 = vcombine.low %v15524_v13, %v15528_v50  ;;  %17112 = vst [vmem:[#allocation10_spill] sm:$0xff] %v15566_v38 }
 0x1a8   : > { %v3235_v33 = vpop.f32.mrf.mxu1 }
 0x1a9   : > { %v3279_v35 = vadd.f32 %v3235_v33, %v15379_v58  ;;  %v15498_v14 = vadd.f32 %v12507_v4, %v3281_v3  ;;  %v3416_v16 = vpop.f32.mrf.mxu0  ;;  %v15508_v58 = vld [vmem:[%s13867_s17 + $0x1c] sm:$0xf]  ;;  %v6087_v49 = vsel %vm3634_vm7, %v6085_v55, %v6086_v54 }
 0x1aa   : > { %v12496_v41 = vpop.f32.mrf.mxu1  ;;  %12719 = vmatmul.mubr.msk.bf16.gmra.mxu1 %vm555_vm1, %v11148_v17  ;;  %v15540_v31 = vcombine.low %v15503_v1, %v15508_v58  ;;  %v15569_v17 = vld [vmem:[%s13888_s23 + $0x2c] sm:$0xf] }
 0x1ab   : > { %v3284_v10 = vadd.f32 %v12496_v41, %v15385_v25  ;;  %12722 = vmatprep.mubr.msk.bf16.mxu1 %vm555_vm1, %v11149_v5  ;;  %v15515_v20 = vadd.f32 %v3403_v27, %v3279_v35  ;;  %v15519_v25 = vld [vmem:[%s13888_s23 + $0x1c] sm:$0xf]  ;;  %v12511_v21 = vpop.f32.mrf.mxu0  ;;  %17113 = vst [vmem:[#allocation11_spill] sm:$0xff] %v15569_v17  ;;  %v15575_v27 = vcombine.low %v15543_v19, %v15546_v63  ;;  %v15583_v35 = vld [vmem:[%s13867_s17 + $0x30] sm:$0xf] }
 0x1ac   : > { %v3248_v60 = vpop.f32.mrf.mxu1  ;;  %17107 = vst [vmem:[#allocation5_spill] sm:$0xff] %v15519_v25  ;;  %v15552_v43 = vcombine.low %v15513_v45, %v15519_v25  ;;  %17114 = vst [vmem:[#allocation12_spill] sm:$0xff] %v15583_v35 }
 0x1ad   : > { %v3282_v30 = vadd.f32 %v3248_v60, %v15393_v24  ;;  %v15536_v39 = vadd.f32 %v12510_v56, %v3284_v10  ;;  %v3419_v24 = vpop.f32.mrf.mxu0  ;;  %v6255_v56 = vrot.slane %v15540_v31, 3  ;;  %v15591_v10 = vcombine.low %v15566_v38, %v15569_v17  ;;  %v15596_v60 = vld [vmem:[%s13888_s23 + $0x30] sm:$0xf] }
 0x1ae   : > { %v12497_v61 = vpop.f32.mrf.mxu1  ;;  %12737 = vmatmul.mubr.msk.bf16.gmra.mxu0 %vm555_vm1, %v5928_v32  ;;  %17115 = vst [vmem:[#allocation13_spill] sm:$0xff] %v15596_v60  ;;  %v6381_v17 = vshll.u32 %v15489_v48, 16 }
 0x1af   : > { %v3285_v40 = vadd.f32 %v12497_v61, %v15400_v34  ;;  %v15554_v29 = vadd.f32 %v3416_v16, %v3282_v30  ;;  %v15563_v34 = vcombine.low %v15531_v0, %v15534_v26  ;;  %v12514_v46 = vpop.f32.mrf.mxu0  ;;  %12756 = vmatprep.mubr.msk.bf16.mxu0 %vm555_vm1, %v6254_v9  ;;  %v6088_v16 = vrot.slane %v15552_v43, 3 }
 0x1b0   : > { %v3251_v4 = vpop.f32.mrf.mxu1  ;;  %v6090_v61 = vrot.slane %v15575_v27, 3  ;;  %v6383_v38 = vrot.slane %v6381_v17, 4  ;;  %v6398_v17 = vshll.u32 %v15552_v43, 16 }
 0x1b1   : > { %v3283_v5 = vadd.f32 %v3251_v4, %v15406_v8  ;;  %v15577_v3 = vadd.f32 %v12511_v21, %v3285_v40  ;;  %v3432_v41 = vpop.f32.mrf.mxu0  ;;  %v6257_v21 = vrot.slane %v15559_v47, 3  ;;  %v6259_v30 = vrot.slane %v15563_v34, 3 }
 0x1b2   : > { %v12500_v33 = vpop.f32.mrf.mxu1  ;;  %12723 = vmatmul.mubr.msk.bf16.gmra.mxu1 %vm555_vm1, %v13464_v57  ;;  %v6052_v57 = vld [vmem:[%s13888_s23 + $0x34] sm:$0x3]  ;;  %v15604_v40 = vcombine.low %v15583_v35, %v6219_v7  ;;  %v6256_v4 = vsel %vm3634_vm7, %v6253_v23, %v6255_v56 }
 0x1b3   : > { %v3288_v8 = vadd.f32 %v12500_v33, %v15412_v18  ;;  %12742 = vmatprep.mubr.msk.bf16.mxu1 %vm555_vm1, %v6087_v49  ;;  %v15593_v59 = vadd.f32 %v3419_v24, %v3283_v5  ;;  %v12515_v32 = vpop.f32.mrf.mxu0  ;;  %v15610_v49 = vcombine.low %v15596_v60, %v6052_v57  ;;  %v6089_v33 = vsel %vm3634_vm7, %v6086_v54, %v6088_v16 }
 0x1b4   : > { %v3264_v55 = vpop.f32.mrf.mxu1  ;;  %v6616_v32 = vsel %vm574_vm0, %v15438_v53, 0  ;;  %v6260_v54 = vsel %vm3634_vm7, %v6257_v21, %v6259_v30  ;;  %v6378_v53 = vshrl.u32 %v15489_v48, 16  ;;  %v6386_v60 = vshrl.u32 %v15493_v62, 16 }
 0x1b5   : > { %v3286_v18 = vadd.f32 %v3264_v55, %v15420_v6  ;;  %v15606_v9 = vadd.f32 %v12514_v46, %v3288_v8  ;;  %v3435_v5 = vpop.f32.mrf.mxu0  ;;  %v6092_v6 = vrot.slane %v15591_v10, 3  ;;  %v6449_v46 = vsel %vm574_vm0, %v15432_v15, 0 }
 0x1b6   : > { %v12501_v24 = vpop.f32.mrf.mxu1  ;;  %v6258_v8 = vsel %vm3634_vm7, %v6255_v56, %v6257_v21  ;;  %12757 = vmatmul.mubr.msk.bf16.vlgmr.msra.gmra.mxu0 %vm555_vm1, %v6256_v4  ;;  %v6545_v56 = vshrl.u32 %v15480_v44, 16  ;;  %v6553_v21 = vshrl.u32 %v15484_v52, 16  ;;  %v6388_v50 = vrot.slane %v6386_v60, 3 }
 0x1b7   : > { %v15616_v55 = vadd.f32 %v3432_v41, %v3286_v18  ;;  %v12534_v23 = vpop.f32.mrf.mxu0  ;;  %v6091_v24 = vsel %vm3634_vm7, %v6088_v16, %v6090_v61  ;;  %v15629_v41 = vld [vmem:[%s17086_s4 + $0x9c] sm:$0xf]  ;;  %12783 = vmatpush3.bf16.msra.mxu0 %v6616_v32  ;;  %v15639_v16 = vld [vmem:[%s17086_s4 + $0xa0] sm:$0xf]  ;;  %12760 = vmatprep.mubr.msk.bf16.mxu0 %vm555_vm1, %v6258_v8  ;;  %v6556_v32 = vshll.u32 %v15484_v52, 16  ;;  %v17116_v52 = vrot.slane %v15604_v40, 3 }
 0x1b8   : > { %v3267_v7 = vpop.f32.mrf.mxu1  ;;  %v6562_v8 = vshrl.u32 %v15540_v31, 16  ;;  %13339 = vmatprep.subr.msk.bf16.mxu0 %vm574_vm0, %v15639_v16  ;;  %v6555_v35 = vrot.slane %v6553_v21, 3  ;;  %v6395_v21 = vshrl.u32 %v15552_v43, 16  ;;  %v6404_v43 = vshrl.u32 %v15575_v27, 16 }
 0x1b9   : > { %v3287_v57 = vadd.f32 %v3267_v7, %v15446_v37  ;;  %v6548_v37 = vshll.u32 %v15480_v44, 16  ;;  %v3701_v4 = vpop.f32.mrf.mxu0  ;;  %v6558_v63 = vrot.slane %v6556_v32, 4 }
 0x1ba   : > { %v12520_v18 = vpop.f32.mrf.mxu1  ;;  %12743 = vmatmul.mubr.msk.bf16.vlgmr.msra.gmra.mxu1 %vm555_vm1, %v6089_v33  ;;  %v6093_v33 = vsel %vm3634_vm7, %v6090_v61, %v6092_v6 }
 0x1bb   : > { %v3615_v7 = vadd.f32 %v12520_v18, %v15468_v36  ;;  %12769 = vmatpush3.bf16.msra.mxu1 %v6449_v46  ;;  %v15645_v15 = vadd.f32 %v3435_v5, %v3287_v57  ;;  %12746 = vmatprep.mubr.msk.bf16.mxu1 %vm555_vm1, %v6091_v24  ;;  %v6389_v36 = vshll.u32 %v15493_v62, 16  ;;  %v12535_v46 = vpop.f32.mrf.mxu0  ;;  %v6262_v5 = vsel %vm3634_vm7, %v6259_v30, %v17116_v52 }
 0x1bc   : > { %v3567_v44 = vpop.f32.mrf.mxu1  ;;  %13338 = vmatprep.subr.msk.bf16.mxu1 %vm574_vm0, %v15629_v41  ;;  %v17117_v62 = vrot.slane %v15610_v49, 3  ;;  %v6547_v18 = vrot.slane %v6545_v56, 3  ;;  %v6550_v26 = vrot.slane %v6548_v37, 4  ;;  %v6565_v30 = vshll.u32 %v15540_v31, 16 }
 0x1bd   : > { %v3613_v61 = vadd.f32 %v3567_v44, %v15486_v42  ;;  %v15659_v57 = vadd.f32 %v12534_v23, %v3615_v7  ;;  %v3704_v42 = vpop.f32.mrf.mxu0  ;;  %v6380_v7 = vrot.slane %v6378_v53, 3  ;;  %v6391_v0 = vrot.slane %v6389_v36, 4 }
 0x1be   : > { %v12521_v48 = vpop.f32.mrf.mxu1  ;;  %v6095_v24 = vsel %vm3634_vm7, %v6092_v6, %v17117_v62  ;;  %12761 = vmatmul.mubr.msk.bf16.gmra.mxu0 %vm555_vm1, %v6260_v54  ;;  %v6564_v31 = vrot.slane %v6562_v8, 3  ;;  %v6559_v54 = vor.u32 %v6558_v63, %v6555_v35  ;;  %v6397_v35 = vrot.slane %v6395_v21, 3 }
 0x1bf   : > { %v3616_v44 = vadd.f32 %v12521_v48, %v15498_v14  ;;  %v15668_v52 = vadd.f32 %v3701_v4, %v3613_v61  ;;  %v12538_v25 = vpop.f32.mrf.mxu0  ;;  %12764 = vmatprep.mubr.msk.bf16.mxu0 %vm555_vm1, %v6262_v5  ;;  %v6551_v14 = vor.u32 %v6550_v26, %v6547_v18  ;;  %v6384_v36 = vor.u32 %v6383_v38, %v6380_v7 }
 0x1c0   : > { %v3570_v23 = vpop.f32.mrf.mxu1  ;;  %v6574_v26 = vshll.u32 %v15559_v47, 16  ;;  %v6400_v48 = vrot.slane %v6398_v17, 4  ;;  %v6413_v21 = vshrl.u32 %v15591_v10, 16  ;;  %v6416_v17 = vshll.u32 %v15591_v10, 16 }
 0x1c1   : > { %v3614_v6 = vadd.f32 %v3570_v23, %v15515_v20  ;;  %v15672_v56 = vadd.f32 %v12535_v46, %v3616_v44  ;;  %v3717_v60 = vpop.f32.mrf.mxu0  ;;  %v6567_v20 = vrot.slane %v6565_v30, 4  ;;  %v6571_v46 = vshrl.u32 %v15559_v47, 16 }
 0x1c2   : > { %v12524_v37 = vpop.f32.mrf.mxu1  ;;  %12747 = vmatmul.mubr.msk.bf16.gmra.mxu1 %vm555_vm1, %v6093_v33  ;;  %v6392_v33 = vor.u32 %v6391_v0, %v6388_v50  ;;  %v6560_v50 = vsel %vm5307_vm8, %v6551_v14, %v6559_v54  ;;  %v17118_v44 = vrot.slane %v15604_v40, 3  ;;  %v6401_v14 = vor.u32 %v6400_v48, %v6397_v35 }
 0x1c3   : > { %v3619_v53 = vadd.f32 %v12524_v37, %v15536_v39  ;;  %12750 = vmatprep.mubr.msk.bf16.mxu1 %vm555_vm1, %v6095_v24  ;;  %v15680_v4 = vadd.f32 %v3704_v42, %v3614_v6  ;;  %v12539_v61 = vpop.f32.mrf.mxu0  ;;  %v6407_v39 = vshll.u32 %v15575_v27, 16  ;;  %v6568_v0 = vor.u32 %v6567_v20, %v6564_v31 }
 0x1c4   : > { %v3583_v32 = vpop.f32.mrf.mxu1  ;;  %v6573_v18 = vrot.slane %v6571_v46, 3  ;;  %v6576_v42 = vrot.slane %v6574_v26, 4  ;;  %v6580_v27 = vshrl.u32 %v15563_v34, 16  ;;  %v17119_v37 = vrot.slane %v15610_v49, 3 }
 0x1c5   : > { %v3617_v5 = vadd.f32 %v3583_v32, %v15554_v29  ;;  %v15687_v8 = vadd.f32 %v12538_v25, %v3619_v53  ;;  %v3720_v62 = vpop.f32.mrf.mxu0  ;;  %v6393_v29 = vsel %vm5307_vm8, %v6384_v36, %v6392_v33  ;;  %v6409_v23 = vrot.slane %v6407_v39, 4 }
 0x1c6   : > { %v12525_v63 = vpop.f32.mrf.mxu1  ;;  %12765 = vmatmul.mubr.msk.bf16.gmra.mxu0 %vm555_vm1, %v17118_v44  ;;  %v6583_v31 = vshll.u32 %v15563_v34, 16  ;;  %v6589_v53 = vshrl.u32 %v15604_v40, 16  ;;  %v6592_v20 = vshll.u32 %v15604_v40, 16  ;;  %v6569_v46 = vsel %vm5307_vm8, %v6559_v54, %v6568_v0 }
 0x1c7   : > { %v3620_v38 = vadd.f32 %v12525_v63, %v15577_v3  ;;  %v15691_v24 = vadd.f32 %v3717_v60, %v3617_v5  ;;  %v12542_v25 = vpop.f32.mrf.mxu0  ;;  %v6406_v3 = vrot.slane %v6404_v43, 3  ;;  %12784 = vmatprep.mubr.msk.bf16.mxu0 %vm555_vm1, %v6560_v50  ;;  %v6577_v26 = vor.u32 %v6576_v42, %v6573_v18 }
 0x1c8   : > { %v3586_v47 = vpop.f32.mrf.mxu1  ;;  %v6422_v34 = vshrl.u32 %v15610_v49, 16  ;;  %v6582_v63 = vrot.slane %v6580_v27, 3  ;;  %v6585_v35 = vrot.slane %v6583_v31, 4  ;;  %v6415_v48 = vrot.slane %v6413_v21, 3 }
 0x1c9   : > { %v3618_v30 = vadd.f32 %v3586_v47, %v15593_v59  ;;  %v15699_v7 = vadd.f32 %v12539_v61, %v3620_v38  ;;  %v3733_v60 = vpop.f32.mrf.mxu0  ;;  %v6425_v61 = vshll.u32 %v15610_v49, 16  ;;  %v6410_v43 = vor.u32 %v6409_v23, %v6406_v3  ;;  %v15740_v3 = vld [vmem:[%s17086_s4 + $0xa8] sm:$0xf] }
 0x1ca   : > { %v12528_v6 = vpop.f32.mrf.mxu1  ;;  %12751 = vmatmul.mubr.msk.bf16.gmra.mxu1 %vm555_vm1, %v17119_v37  ;;  %v6402_v38 = vsel %vm5307_vm8, %v6392_v33, %v6401_v14  ;;  %v6591_v50 = vrot.slane %v6589_v53, 3  ;;  %v6594_v47 = vrot.slane %v6592_v20, 4  ;;  %v6424_v18 = vrot.slane %v6422_v34, 3  ;;  %v15734_v33 = vld [vmem:[%s17086_s4 + $0xa4] sm:$0xf] }
 0x1cb   : > { %v3623_v59 = vadd.f32 %v12528_v6, %v15606_v9  ;;  %12770 = vmatprep.mubr.msk.bf16.mxu1 %vm555_vm1, %v6393_v29  ;;  %v15712_v32 = vadd.f32 %v3720_v62, %v3618_v30  ;;  %v12543_v10 = vpop.f32.mrf.mxu0  ;;  %v6862_v9 = vsel %vm574_vm0, %v15639_v16, 0  ;;  %v6418_v62 = vrot.slane %v6416_v17, 4 }
 0x1cc   : > { %v3599_v36 = vpop.f32.mrf.mxu1  ;;  %v6578_v16 = vsel %vm5307_vm8, %v6568_v0, %v6577_v26  ;;  %v6427_v42 = vrot.slane %v6425_v61, 4  ;;  %v6411_v44 = vsel %vm5307_vm8, %v6401_v14, %v6410_v43  ;;  %v6595_v6 = vor.u32 %v6594_v47, %v6591_v50 }
 0x1cd   : > { %v3621_v5 = vadd.f32 %v3599_v36, %v15616_v55  ;;  %v15720_v39 = vadd.f32 %v12542_v25, %v3623_v59  ;;  %v3736_v54 = vpop.f32.mrf.mxu0  ;;  %v6739_v55 = vsel %vm574_vm0, %v15629_v41, 0  ;;  %v6586_v41 = vor.u32 %v6585_v35, %v6582_v63 }
 0x1ce   : > { %v12529_v40 = vpop.f32.mrf.mxu1  ;;  %12785 = vmatmul.mubr.msk.bf16.vlgmr.msra.gmra.mxu0 %vm555_vm1, %v6569_v46  ;;  %v6419_v0 = vor.u32 %v6418_v62, %v6415_v48  ;;  %v6428_v31 = vor.u32 %v6427_v42, %v6424_v18  ;;  %v7110_v18 = vld [vmem:[%s13787_s24 + $0x10] sm:$0xf]  ;;  %v15796_v42 = vld [vmem:[%s13787_s24 + $0x14] sm:$0xf] }
 0x1cf   : > { %v15723_v49 = vadd.f32 %v3733_v60, %v3621_v5  ;;  %v12562_v25 = vpop.f32.mrf.mxu0  ;;  %12811 = vmatpush3.bf16.msra.mxu0 %v6862_v9  ;;  %12788 = vmatprep.mubr.msk.bf16.mxu0 %vm555_vm1, %v6578_v16  ;;  %v6587_v59 = vsel %vm5307_vm8, %v6577_v26, %v6586_v41  ;;  %v6596_v46 = vsel %vm5307_vm8, %v6586_v41, %v6595_v6 }
 0x1d0   : > { %v3602_v29 = vpop.f32.mrf.mxu1  ;;  %13341 = vmatprep.subr.msk.bf16.mxu0 %vm574_vm0, %v15740_v3  ;;  %v6420_v36 = vsel %vm5307_vm8, %v6410_v43, %v6419_v0 }
 0x1d1   : > { %v3622_v27 = vadd.f32 %v3602_v29, %v15645_v15  ;;  %v4113_v23 = vpop.f32.mrf.mxu0 }
 0x1d2   : > { %v12548_v30 = vpop.f32.mrf.mxu1  ;;  %12771 = vmatmul.mubr.msk.bf16.vlgmr.msra.gmra.mxu1 %vm555_vm1, %v6402_v38 }
 0x1d3   : > { %v3955_v15 = vadd.f32 %v12548_v30, %v15659_v57  ;;  %12797 = vmatpush3.bf16.msra.mxu1 %v6739_v55  ;;  %v15744_v37 = vadd.f32 %v3736_v54, %v3622_v27  ;;  %12774 = vmatprep.mubr.msk.bf16.mxu1 %vm555_vm1, %v6411_v44  ;;  %v12563_v21 = vpop.f32.mrf.mxu0  ;;  %v11218_v54 = vcombine.low %v15444_v2, %v15450_v28 }
 0x1d4   : > { %v3907_v14 = vpop.f32.mrf.mxu1  ;;  %13340 = vmatprep.subr.msk.bf16.mxu1 %vm574_vm0, %v15734_v33 }
 0x1d5   : > { %v3953_v17 = vadd.f32 %v3907_v14, %v15668_v52  ;;  %v15750_v60 = vadd.f32 %v12562_v25, %v3955_v15  ;;  %v4116_v53 = vpop.f32.mrf.mxu0  ;;  %v6429_v52 = vsel %vm5307_vm8, %v6419_v0, %v6428_v31  ;;  %v7217_v0 = vsel %vm574_vm0, %v15740_v3, 0 }
 0x1d6   : > { %v12549_v57 = vpop.f32.mrf.mxu1  ;;  %12789 = vmatmul.mubr.msk.bf16.gmra.mxu0 %vm555_vm1, %v6587_v59 }
 0x1d7   : > { %v3956_v20 = vadd.f32 %v12549_v57, %v15672_v56  ;;  %v15758_v34 = vadd.f32 %v4113_v23, %v3953_v17  ;;  %v12566_v10 = vpop.f32.mrf.mxu0  ;;  %12792 = vmatprep.mubr.msk.bf16.mxu0 %vm555_vm1, %v6596_v46  ;;  %v11220_v23 = vcombine.low %v15508_v58, %v15524_v13  ;;  %v15825_v58 = vld [vmem:[%s17086_s4 + $0xac] sm:$0xf] }
 0x1d8   : > { %v3910_v61 = vpop.f32.mrf.mxu1 }
 0x1d9   : > { %v3954_v5 = vadd.f32 %v3910_v61, %v15680_v4  ;;  %v15763_v9 = vadd.f32 %v12563_v21, %v3956_v20  ;;  %v4129_v56 = vpop.f32.mrf.mxu0  ;;  %v17122_v20 = vld [vmem:[#allocation6_spill] sm:$0xff] }
 0x1da   : > { %v12552_v26 = vpop.f32.mrf.mxu1  ;;  %12775 = vmatmul.mubr.msk.bf16.gmra.mxu1 %vm555_vm1, %v6420_v36 }
 0x1db   : > { %v3959_v43 = vadd.f32 %v12552_v26, %v15687_v8  ;;  %12778 = vmatprep.mubr.msk.bf16.mxu1 %vm555_vm1, %v6429_v52  ;;  %v15769_v40 = vadd.f32 %v4116_v53, %v3954_v5  ;;  %v12567_v35 = vpop.f32.mrf.mxu0  ;;  %v15779_v8 = vcombine.low %v15460_v12, %v15463_v51  ;;  %v17123_v52 = vld [vmem:[#allocation10_spill] sm:$0xff]  ;;  %v17125_v26 = vld [vmem:[#allocation12_spill] sm:$0xff] }
 0x1dc   : > { %v3923_v63 = vpop.f32.mrf.mxu1 }
 0x1dd   : > { %v3957_v48 = vadd.f32 %v3923_v63, %v15691_v24  ;;  %v15772_v62 = vadd.f32 %v12566_v10, %v3959_v43  ;;  %v4132_v38 = vpop.f32.mrf.mxu0  ;;  %v6959_v57 = vshll.u32 %v15779_v8, 16  ;;  %v17124_v10 = vld [vmem:[#allocation9_spill] sm:$0xff] }
 0x1de   : > { %v12553_v4 = vpop.f32.mrf.mxu1  ;;  %12793 = vmatmul.mubr.msk.bf16.gmra.mxu0 %vm555_vm1, %v6595_v6  ;;  %v15855_v5 = vcombine.low %v17124_v10, %v17123_v52  ;;  %v17127_v63 = vld [vmem:[#allocation13_spill] sm:$0xff] }
 0x1df   : > { %v3960_v50 = vadd.f32 %v12553_v4, %v15699_v7  ;;  %v15781_v47 = vadd.f32 %v4129_v56, %v3957_v48  ;;  %v12570_v55 = vpop.f32.mrf.mxu0  ;;  %12812 = vmatprep.mubr.msk.bf16.mxu0 %vm555_vm1, %v11218_v54  ;;  %v17126_v56 = vld [vmem:[#allocation8_spill] sm:$0xff] }
 0x1e0   : > { %v3926_v29 = vpop.f32.mrf.mxu1  ;;  %v11222_v43 = vcombine.low %v17126_v56, %v17125_v26  ;;  %v15912_v26 = vld [vmem:[%s13787_s24 + $0x30] sm:$0xff]  }
 0x1e1   : > { %v3958_v24 = vadd.f32 %v3926_v29, %v15712_v32  ;;  %v15785_v16 = vadd.f32 %v12567_v35, %v3960_v50  ;;  %v4145_v28 = vpop.f32.mrf.mxu0  ;;  %v11219_v32 = vcombine.low %v15453_v11, %v15503_v1  ;;  %v11238_v11 = vcombine.low %v7110_v18, %v15796_v42  ;;  %v17128_v35 = vld [vmem:[#allocation11_spill] sm:$0xff]  ;;  %v15866_v29 = vld [vmem:[%s13787_s24 + $0x20] sm:$0xff]  }
 0x1e2   : > { %v12556_v2 = vpop.f32.mrf.mxu1  ;;  %12779 = vmatmul.mubr.msk.bf16.gmra.mxu1 %vm555_vm1, %v6428_v31  ;;  %v15861_v48 = vcombine.low %v17128_v35, %v17127_v63  ;;  %v7171_v52 = vshrl.u32 %v15866_v29, 16  ;;  %v6977_v63 = vshll.u32 %v15855_v5, 16 }
 0x1e3   : > { %v3963_v12 = vadd.f32 %v12556_v2, %v15720_v39  ;;  %12798 = vmatprep.mubr.msk.bf16.mxu1 %vm555_vm1, %v15779_v8  ;;  %v15792_v51 = vadd.f32 %v4132_v38, %v3958_v24  ;;  %v12571_v25 = vpop.f32.mrf.mxu0  ;;  %v15805_v39 = vcombine.low %v15466_v22, %v15513_v45  ;;  %v17120_v22 = vld [vmem:[#allocation5_spill] sm:$0xff]  ;;  %v7154_v31 = vshll.u32 %v11238_v11, 16 }
 0x1e4   : > { %v3939_v7 = vpop.f32.mrf.mxu1  ;;  %v15818_v45 = vcombine.low %v17120_v22, %v15543_v19  ;;  %v15835_v19 = vld [vmem:[%s17086_s4 + $0xb0] sm:$0xf]  ;;  %v7152_v38 = vshrl.u32 %v11238_v11, 16  ;;  %v6957_v2 = vshrl.u32 %v15779_v8, 16 }
 0x1e5   : > { %v3961_v27 = vadd.f32 %v3939_v7, %v15723_v49  ;;  %v15801_v44 = vadd.f32 %v12570_v55, %v3963_v12  ;;  %v4148_v41 = vpop.f32.mrf.mxu0  ;;  %v7017_v49 = vsel %vm574_vm0, %v15734_v33, 0  ;;  %v15830_v33 = vld [vmem:[%s13787_s24 + $0x18] sm:$0xff]   ;;  %v7156_v50 = vrot.slane %v7154_v31, 1 }
 0x1e6   : > { %v12557_v30 = vpop.f32.mrf.mxu1  ;;  %12813 = vmatmul.mubr.msk.bf16.vlgmr.msra.gmra.mxu0 %vm555_vm1, %v11219_v32  ;;  %v6963_v12 = vshll.u32 %v15805_v39, 16  ;;  %v6967_v22 = vshrl.u32 %v15805_v39, 16 }
 0x1e7   : > { %v15811_v15 = vadd.f32 %v4145_v28, %v3961_v27  ;;  %v12590_v6 = vpop.f32.mrf.mxu0  ;;  %12839 = vmatpush3.bf16.msra.mxu0 %v7217_v0  ;;  %12816 = vmatprep.mubr.msk.bf16.mxu0 %vm555_vm1, %v11220_v23  ;;  %v6961_v28 = vrot.slane %v6959_v57, 1  ;;  %v7163_v27 = vshrl.u32 %v15830_v33, 16  ;;  %v7167_v0 = vshll.u32 %v15866_v29, 16 }
 0x1e8   : > { %v3942_v1 = vpop.f32.mrf.mxu1  ;;  %13343 = vmatprep.subr.msk.bf16.mxu0 %vm574_vm0, %v15835_v19 }
 0x1e9   : > { %v3962_v3 = vadd.f32 %v3942_v1, %v15744_v37  ;;  %v4447_v14 = vpop.f32.mrf.mxu0  ;;  %v6962_v1 = vor.u32 %v6961_v28, %v6957_v2 }
 0x1ea   : > { %v12576_v13 = vpop.f32.mrf.mxu1  ;;  %12799 = vmatmul.mubr.msk.bf16.vlgmr.msra.gmra.mxu1 %vm555_vm1, %v15805_v39 }
 0x1eb   : > { %v4328_v37 = vadd.f32 %v12576_v13, %v15750_v60  ;;  %12825 = vmatpush3.bf16.msra.mxu1 %v7017_v49  ;;  %v15839_v21 = vadd.f32 %v4148_v41, %v3962_v3  ;;  %12802 = vmatprep.mubr.msk.bf16.mxu1 %vm555_vm1, %v15818_v45  ;;  %v12591_v59 = vpop.f32.mrf.mxu0  ;;  %v17121_v60 = vld [vmem:[#allocation7_spill] sm:$0xff]  ;;  %v7157_v41 = vor.u32 %v7156_v50, %v7152_v38  ;;  %v6965_v49 = vrot.slane %v6963_v12, 1 }
 0x1ec   : > { %v4280_v17 = vpop.f32.mrf.mxu1  ;;  %13342 = vmatprep.subr.msk.bf16.mxu1 %vm574_vm0, %v15825_v58  ;;  %v11221_v36 = vcombine.low %v17122_v20, %v17121_v60  ;;  %v7169_v60 = vrot.slane %v7167_v0, 1 }
 0x1ed   : > { %v4326_v53 = vadd.f32 %v4280_v17, %v15758_v34  ;;  %v15849_v46 = vadd.f32 %v12590_v6, %v4328_v37  ;;  %v7159_v34 = vshll.u32 %v15830_v33, 16  ;;  %v4450_v4 = vpop.f32.mrf.mxu0  ;;  %v15891_v6 = vld [vmem:[%s13787_s24 + $0x28] sm:$0xff]   ;;  %v15898_v17 = vld [vmem:[%s13888_s23 + $0x34] ss:$0 sps:$4 sm:$0x77]  }
 0x1ee   : > { %v12577_v61 = vpop.f32.mrf.mxu1  ;;  %12817 = vmatmul.mubr.msk.bf16.gmra.mxu0 %vm555_vm1, %v11221_v36  ;;  %v6966_v36 = vsel %vm789_vm2, %v6962_v1, %v6965_v49  ;;  %v7175_v10 = vshll.u32 %v15891_v6, 16  ;;  %v7173_v28 = vor.u32 %v7171_v52, %v7169_v60  ;;  %v7179_v1 = vshrl.u32 %v15891_v6, 16 }
 0x1ef   : > { %v4329_v54 = vadd.f32 %v12577_v61, %v15763_v9  ;;  %v15868_v55 = vadd.f32 %v4447_v14, %v4326_v53  ;;  %v12594_v7 = vpop.f32.mrf.mxu0  ;;  %v6970_v9 = vshll.u32 %v15818_v45, 16  ;;  %12820 = vmatprep.mubr.msk.bf16.mxu0 %vm555_vm1, %v11222_v43  ;;  %v7161_v8 = vrot.slane %v7159_v34, 1 }
 0x1f0   : > { %v4283_v24 = vpop.f32.mrf.mxu1  ;;  %v6969_v61 = vor.u32 %v6967_v22, %v6965_v49  ;;  %v6974_v43 = vshrl.u32 %v15818_v45, 16  ;;  %v7177_v12 = vrot.slane %v7175_v10, 1  ;;  %v6981_v49 = vshrl.u32 %v15855_v5, 16 }
 0x1f1   : > { %v4327_v18 = vadd.f32 %v4283_v24, %v15769_v40  ;;  %v15874_v32 = vadd.f32 %v12591_v59, %v4329_v54  ;;  %v4463_v30 = vpop.f32.mrf.mxu0  ;;  %v6972_v37 = vrot.slane %v6970_v9, 1  ;;  %v7165_v57 = vor.u32 %v7163_v27, %v7161_v8 }
 0x1f2   : > { %v12580_v25 = vpop.f32.mrf.mxu1  ;;  %12803 = vmatmul.mubr.msk.bf16.gmra.mxu1 %vm555_vm1, %v15855_v5  ;;  %v7162_v39 = vsel %vm789_vm2, %v7157_v41, %v7161_v8  ;;  %v6984_v22 = vshll.u32 %v15861_v48, 16 }
 0x1f3   : > { %v4332_v40 = vadd.f32 %v12580_v25, %v15772_v62  ;;  %12806 = vmatprep.mubr.msk.bf16.mxu1 %vm555_vm1, %v15861_v48  ;;  %v15887_v23 = vadd.f32 %v4450_v4, %v4327_v18  ;;  %v12595_v3 = vpop.f32.mrf.mxu0  ;;  %v13486_v62 = vld [vmem:[%s13867_s17 + $0x34] ss:$0 sps:$4 sm:$0x77]   ;;  %v7170_v50 = vsel %vm789_vm2, %v7165_v57, %v7169_v60  ;;  %v6973_v2 = vsel %vm789_vm2, %v6969_v61, %v6972_v37 }
 0x1f4   : > { %v4296_v11 = vpop.f32.mrf.mxu1  ;;  %v6976_v9 = vor.u32 %v6974_v43, %v6972_v37  ;;  %v6979_v25 = vrot.slane %v6977_v63, 1  ;;  %v7178_v57 = vsel %vm789_vm2, %v7173_v28, %v7177_v12  ;;  %v6986_v61 = vrot.slane %v6984_v22, 1  ;;  %v15988_v28 = vld [vmem:[%s13765_s19 + $0x18] sm:$0xff]  }
 0x1f5   : > { %v4330_v13 = vadd.f32 %v4296_v11, %v15781_v47  ;;  %v15895_v14 = vadd.f32 %v12594_v7, %v4332_v40  ;;  %v4466_v59 = vpop.f32.mrf.mxu0  ;;  %v15942_v40 = vld [vmem:[%s13765_s19 + $0x14] sm:$0xf]  ;;  %v7417_v11 = vsel %vm574_vm0, %v15825_v58, 0  ;;  %v6988_v58 = vshrl.u32 %v15861_v48, 16 }
 0x1f6   : > { %v12581_v31 = vpop.f32.mrf.mxu1  ;;  %12821 = vmatmul.mubr.msk.bf16.gmra.mxu0 %vm555_vm1, %v13486_v62  ;;  %v6980_v60 = vsel %vm789_vm2, %v6976_v9, %v6979_v25  ;;  %v15969_v48 = vld [vmem:[%s17086_s4 + $0xb4] sm:$0xf] }
 0x1f7   : > { %v4333_v53 = vadd.f32 %v12581_v31, %v15785_v16  ;;  %v15906_v47 = vadd.f32 %v4463_v30, %v4330_v13  ;;  %v12598_v56 = vpop.f32.mrf.mxu0  ;;  %12840 = vmatprep.mubr.msk.bf16.mxu0 %vm555_vm1, %v7162_v39  ;;  %v7310_v30 = vld [vmem:[%s13765_s19 + $0x10] sm:$0xf]  ;;  %v7187_v13 = vshrl.u32 %v15912_v26, 16 }
 0x1f8   : > { %v4299_v20 = vpop.f32.mrf.mxu1  ;;  %v15959_v5 = vcombine.low %v7310_v30, %v15942_v40 }
 0x1f9   : > { %v4331_v16 = vadd.f32 %v4299_v20, %v15792_v51  ;;  %v15918_v35 = vadd.f32 %v12595_v3, %v4333_v53  ;;  %v4479_v54 = vpop.f32.mrf.mxu0  ;;  %v15927_v51 = vld [vmem:[%s13787_s24 + $0x38] ss:$0 sps:$4 sm:$0x77]  }
 0x1fa   : > { %v12584_v4 = vpop.f32.mrf.mxu1  ;;  %12807 = vmatmul.mubr.msk.bf16.gmra.mxu1 %vm555_vm1, %v15898_v17  ;;  %v7191_v62 = vshll.u32 %v15927_v51, 16 }
 0x1fb   : > { %v4336_v38 = vadd.f32 %v12584_v4, %v15801_v44  ;;  %12826 = vmatprep.mubr.msk.bf16.mxu1 %vm555_vm1, %v6966_v36  ;;  %v15929_v45 = vadd.f32 %v4466_v59, %v4331_v16  ;;  %v7183_v44 = vshll.u32 %v15912_v26, 16  ;;  %v12599_v7 = vpop.f32.mrf.mxu0  ;;  %v6991_v59 = vshll.u32 %v15898_v17, 16 }
 0x1fc   : > { %v4312_v24 = vpop.f32.mrf.mxu1  ;;  %v7181_v36 = vor.u32 %v7179_v1, %v7177_v12  ;;  %v7193_v4 = vrot.slane %v7191_v62, 1  ;;  %v7354_v12 = vshll.u32 %v15959_v5, 16  ;;  %v7352_v62 = vshrl.u32 %v15959_v5, 16 }
 0x1fd   : > { %v4334_v18 = vadd.f32 %v4312_v24, %v15811_v15  ;;  %v15938_v8 = vadd.f32 %v12598_v56, %v4336_v38  ;;  %v4482_v3 = vpop.f32.mrf.mxu0  ;;  %v7550_v15 = vsel %vm574_vm0, %v15835_v19, 0  ;;  %v7185_v39 = vrot.slane %v7183_v44, 1  ;;  %v15977_v56 = vld [vmem:[%s17086_s4 + $0xb8] sm:$0xf] }
 0x1fe   : > { %v12585_v41 = vpop.f32.mrf.mxu1  ;;  %12841 = vmatmul.mubr.msk.bf16.vlgmr.msra.gmra.mxu0 %vm555_vm1, %v7170_v50  ;;  %v6990_v24 = vor.u32 %v6988_v58, %v6986_v61  ;;  %v7195_v58 = vshrl.u32 %v15927_v51, 16  ;;  %v6995_v5 = vshrl.u32 %v15898_v17, 16 }
 0x1ff   : > { %v15953_v37 = vadd.f32 %v4479_v54, %v4334_v18  ;;  %v12618_v53 = vpop.f32.mrf.mxu0  ;;  %12867 = vmatpush3.bf16.msra.mxu0 %v7550_v15  ;;  %12844 = vmatprep.mubr.msk.bf16.mxu0 %vm555_vm1, %v7178_v57  ;;  %v7189_v63 = vor.u32 %v7187_v13, %v7185_v39  ;;  %v7510_v54 = vld [vmem:[%s13787_s24 + $0x10] sm:$0xe]  ;;  %v7359_v57 = vshll.u32 %v15988_v28, 16 }
 0x200   : > { %v4315_v31 = vpop.f32.mrf.mxu1  ;;  %13345 = vmatprep.subr.msk.bf16.mxu0 %vm574_vm0, %v15977_v56  ;;  %v16000_v30 = vcombine.low %v7510_v54, %v15796_v42 }
 0x201   : > { %v4335_v19 = vadd.f32 %v4315_v31, %v15839_v21  ;;  %v6983_v21 = vor.u32 %v6981_v49, %v6979_v25  ;;  %v4781_v16 = vpop.f32.mrf.mxu0  ;;  %v7186_v25 = vsel %vm789_vm2, %v7181_v36, %v7185_v39  ;;  %v7194_v22 = vsel %vm789_vm2, %v7189_v63, %v7193_v4  ;;  %v16031_v63 = vld [vmem:[%s13765_s19 + $0x28] sm:$0xff]  }
 0x202   : > { %v12604_v20 = vpop.f32.mrf.mxu1  ;;  %12827 = vmatmul.mubr.msk.bf16.vlgmr.msra.gmra.mxu1 %vm555_vm1, %v6973_v2  ;;  %v6993_v2 = vrot.slane %v6991_v59, 1  ;;  %v7356_v31 = vrot.slane %v7354_v12, 1  ;;  %v7521_v39 = vrot.slane %v15830_v33, 1 }
 0x203   : > { %v4662_v43 = vadd.f32 %v12604_v20, %v15849_v46  ;;  %12853 = vmatpush3.bf16.msra.mxu1 %v7417_v11  ;;  %v15984_v38 = vadd.f32 %v4482_v3, %v4335_v19  ;;  %12830 = vmatprep.mubr.msk.bf16.mxu1 %vm555_vm1, %v6980_v60  ;;  %v12619_v46 = vpop.f32.mrf.mxu0  ;;  %v6987_v49 = vsel %vm789_vm2, %v6983_v21, %v6986_v61  ;;  %v7520_v19 = vrot.slane %v16000_v30, 1 }
 0x204   : > { %v4614_v50 = vpop.f32.mrf.mxu1  ;;  %13344 = vmatprep.subr.msk.bf16.mxu1 %vm574_vm0, %v15969_v48  ;;  %v6994_v15 = vsel %vm789_vm2, %v6990_v24, %v6993_v2  ;;  %v7357_v21 = vor.u32 %v7356_v31, %v7352_v62  ;;  %v7361_v61 = vrot.slane %v7359_v57, 1 }
 0x205   : > { %v4660_v7 = vadd.f32 %v4614_v50, %v15868_v55  ;;  %v15994_v18 = vadd.f32 %v12618_v53, %v4662_v43  ;;  %v4784_v41 = vpop.f32.mrf.mxu0  ;;  %v7197_v43 = vor.u32 %v7195_v58, %v7193_v4  ;;  %v6997_v50 = vor.u32 %v6995_v5, %v6993_v2  ;;  %v16064_v5 = vld [vmem:[%s13765_s19 + $0x38] ss:$0 sps:$4 sm:$0x77]  }
 0x206   : > { %v12605_v9 = vpop.f32.mrf.mxu1  ;;  %12845 = vmatmul.mubr.msk.bf16.gmra.mxu0 %vm555_vm1, %v7186_v25  ;;  %v7522_v24 = vsel %vm1108_vm3, %v7520_v19, %v7521_v39  ;;  %v7362_v4 = vsel %vm789_vm2, %v7357_v21, %v7361_v61  ;;  %v7395_v33 = vshrl.u32 %v16064_v5, 16 }
 0x207   : > { %v4663_v11 = vadd.f32 %v12605_v9, %v15874_v32  ;;  %v16005_v3 = vadd.f32 %v4781_v16, %v4660_v7  ;;  %v12622_v42 = vpop.f32.mrf.mxu0  ;;  %12848 = vmatprep.mubr.msk.bf16.mxu0 %vm555_vm1, %v7194_v22  ;;  %v7363_v7 = vshrl.u32 %v15988_v28, 16 }
 0x208   : > { %v4617_v55 = vpop.f32.mrf.mxu1 }
 0x209   : > { %v4661_v32 = vadd.f32 %v4617_v55, %v15887_v23  ;;  %v16013_v59 = vadd.f32 %v12619_v46, %v4663_v11  ;;  %v4797_v60 = vpop.f32.mrf.mxu0  ;;  %v16023_v23 = vld [vmem:[%s13765_s19 + $0x20] sm:$0xff]   ;;  %v7523_v55 = vrot.slane %v15866_v29, 1 }
 0x20a   : > { %v12608_v53 = vpop.f32.mrf.mxu1  ;;  %12831 = vmatmul.mubr.msk.bf16.gmra.mxu1 %vm555_vm1, %v6987_v49  ;;  %v7367_v9 = vshll.u32 %v16023_v23, 16  ;;  %v7371_v11 = vshrl.u32 %v16023_v23, 16 }
 0x20b   : > { %v4666_v20 = vadd.f32 %v12608_v53, %v15895_v14  ;;  %12834 = vmatprep.mubr.msk.bf16.mxu1 %vm555_vm1, %v6994_v15  ;;  %v16025_v51 = vadd.f32 %v4784_v41, %v4661_v32  ;;  %v12623_v16 = vpop.f32.mrf.mxu0  ;;  %v16052_v15 = vld [vmem:[%s13765_s19 + $0x30] sm:$0xff]   ;;  %v7525_v53 = vrot.slane %v15891_v6, 1 }
 0x20c   : > { %v4630_v36 = vpop.f32.mrf.mxu1 }
 0x20d   : > { %v4664_v17 = vadd.f32 %v4630_v36, %v15906_v47  ;;  %v16033_v54 = vadd.f32 %v12622_v42, %v4666_v20  ;;  %v4800_v12 = vpop.f32.mrf.mxu0  ;;  %v7369_v42 = vrot.slane %v7367_v9, 1 }
 0x20e   : > { %v12609_v14 = vpop.f32.mrf.mxu1  ;;  %12849 = vmatmul.mubr.msk.bf16.gmra.mxu0 %vm555_vm1, %v7197_v43  ;;  %v16077_v43 = vld [vmem:[%s13787_s24 + $0x38] ss:$0 sps:$4 sm:$0xff]  }
 0x20f   : > { %v4667_v46 = vadd.f32 %v12609_v14, %v15918_v35  ;;  %v16039_v25 = vadd.f32 %v4797_v60, %v4664_v17  ;;  %v12626_v41 = vpop.f32.mrf.mxu0  ;;  %v7375_v35 = vshll.u32 %v16031_v63, 16  ;;  %12868 = vmatprep.mubr.msk.bf16.mxu0 %vm555_vm1, %v7522_v24  ;;  %v7383_v17 = vshll.u32 %v16052_v15, 16 }
 0x210   : > { %v4633_v47 = vpop.f32.mrf.mxu1 }
 0x211   : > { %v4665_v2 = vadd.f32 %v4633_v47, %v15929_v45  ;;  %v16046_v49 = vadd.f32 %v12623_v16, %v4667_v46  ;;  %v4813_v62 = vpop.f32.mrf.mxu0  ;;  %v7365_v45 = vor.u32 %v7363_v7, %v7361_v61  ;;  %v7377_v20 = vrot.slane %v7375_v35, 1 }
 0x212   : > { %v12612_v22 = vpop.f32.mrf.mxu1  ;;  %12835 = vmatmul.mubr.msk.bf16.gmra.mxu1 %vm555_vm1, %v6997_v50  ;;  %v7524_v61 = vsel %vm1108_vm3, %v7521_v39, %v7523_v55  ;;  %v7379_v16 = vshrl.u32 %v16031_v63, 16  ;;  %v7830_v50 = vsel %vm574_vm0, %v15977_v56, 0  ;;  %v7683_v46 = vsel %vm574_vm0, %v15969_v48, 0 }
 0x213   : > { %v4670_v31 = vadd.f32 %v12612_v22, %v15938_v8  ;;  %12854 = vmatprep.mubr.msk.bf16.mxu1 %vm555_vm1, %v7362_v4  ;;  %v16060_v32 = vadd.f32 %v4800_v12, %v4665_v2  ;;  %v12627_v19 = vpop.f32.mrf.mxu0  ;;  %v7373_v8 = vor.u32 %v7371_v11, %v7369_v42  ;;  %v7526_v39 = vsel %vm1108_vm3, %v7523_v55, %v7525_v53 }
 0x214   : > { %v4646_v58 = vpop.f32.mrf.mxu1  ;;  %v7387_v47 = vshrl.u32 %v16052_v15, 16  ;;  %v7391_v4 = vshll.u32 %v16064_v5, 16  ;;  %v7527_v22 = vrot.slane %v15912_v26, 1  ;;  %v7381_v55 = vor.u32 %v7379_v16, %v7377_v20 }
 0x215   : > { %v4668_v60 = vadd.f32 %v4646_v58, %v15953_v37  ;;  %v16071_v36 = vadd.f32 %v12626_v41, %v4670_v31  ;;  %v4816_v14 = vpop.f32.mrf.mxu0  ;;  %v7370_v37 = vsel %vm789_vm2, %v7365_v45, %v7369_v42  ;;  %v7378_v56 = vsel %vm789_vm2, %v7373_v8, %v7377_v20  ;;  %v16108_v42 = vld [vmem:[%s17086_s4 + $0xc0] sm:$0xf] }
 0x216   : > { %v12613_v21 = vpop.f32.mrf.mxu1  ;;  %12869 = vmatmul.mubr.msk.bf16.vlgmr.msra.gmra.mxu0 %vm555_vm1, %v7524_v61  ;;  %v7385_v31 = vrot.slane %v7383_v17, 1  ;;  %v7779_v45 = vshrl.u32 %v16000_v30, 16  ;;  %v7393_v61 = vrot.slane %v7391_v4, 1  ;;  %v7790_v5 = vrot.slane %v7171_v52, 1 }
 0x217   : > { %v16082_v24 = vadd.f32 %v4813_v62, %v4668_v60  ;;  %v12646_v41 = vpop.f32.mrf.mxu0  ;;  %v16096_v62 = vld [vmem:[%s17086_s4 + $0xbc] sm:$0xf]  ;;  %12895 = vmatpush3.bf16.msra.mxu0 %v7830_v50  ;;  %12872 = vmatprep.mubr.msk.bf16.mxu0 %vm555_vm1, %v7526_v39  ;;  %v7782_v60 = vshll.u32 %v16000_v30, 16  ;;  %v7528_v50 = vsel %vm1108_vm3, %v7525_v53, %v7527_v22  ;;  %v7795_v52 = vrot.slane %v7175_v10, 2 }
 0x218   : > { %v4649_v12 = vpop.f32.mrf.mxu1  ;;  %v7389_v21 = vor.u32 %v7387_v47, %v7385_v31  ;;  %13347 = vmatprep.subr.msk.bf16.mxu0 %vm574_vm0, %v16108_v42  ;;  %v7781_v4 = vrot.slane %v7779_v45, 1  ;;  %v7803_v10 = vshrl.u32 %v16077_v43, 16 }
 0x219   : > { %v4669_v2 = vadd.f32 %v4649_v12, %v15984_v38  ;;  %v7529_v38 = vrot.slane %v16077_v43, 1  ;;  %v5081_v58 = vpop.f32.mrf.mxu0  ;;  %v7643_v12 = vld [vmem:[%s13765_s19 + $0x10] sm:$0xe] }
 0x21a   : > { %v12632_v48 = vpop.f32.mrf.mxu1  ;;  %12855 = vmatmul.mubr.msk.bf16.vlgmr.msra.gmra.mxu1 %vm555_vm1, %v7370_v37 }
 0x21b   : > { %v4962_v19 = vadd.f32 %v12632_v48, %v15994_v18  ;;  %12881 = vmatpush3.bf16.msra.mxu1 %v7683_v46  ;;  %v16113_v8 = vadd.f32 %v4816_v14, %v4669_v2  ;;  %12858 = vmatprep.mubr.msk.bf16.mxu1 %vm555_vm1, %v7378_v56  ;;  %v12647_v37 = vpop.f32.mrf.mxu0  ;;  %v7386_v14 = vsel %vm789_vm2, %v7381_v55, %v7385_v31  ;;  %v7786_v2 = vrot.slane %v7163_v27, 1 }
 0x21c   : > { %v4914_v20 = vpop.f32.mrf.mxu1  ;;  %13346 = vmatprep.subr.msk.bf16.mxu1 %vm574_vm0, %v16096_v62  ;;  %v7530_v39 = vsel %vm1108_vm3, %v7527_v22, %v7529_v38  ;;  %v7784_v56 = vrot.slane %v7782_v60, 2  ;;  %v7394_v55 = vsel %vm789_vm2, %v7389_v21, %v7393_v61  ;;  %v16140_v31 = vcombine.low %v7643_v12, %v15942_v40 }
 0x21d   : > { %v4960_v18 = vadd.f32 %v4914_v20, %v16005_v3  ;;  %v16123_v46 = vadd.f32 %v12646_v41, %v4962_v19  ;;  %v5084_v3 = vpop.f32.mrf.mxu0  ;;  %v7787_v41 = vrot.slane %v7159_v34, 2 }
 0x21e   : > { %v12633_v30 = vpop.f32.mrf.mxu1  ;;  %12873 = vmatmul.mubr.msk.bf16.gmra.mxu0 %vm555_vm1, %v7528_v50  ;;  %v7785_v40 = vor.u32 %v7784_v56, %v7781_v4  ;;  %v7794_v56 = vrot.slane %v7179_v1, 1  ;;  %v7656_v1 = vrot.slane %v16023_v23, 1 }
 0x21f   : > { %v4963_v53 = vadd.f32 %v12633_v30, %v16013_v59  ;;  %v16136_v48 = vadd.f32 %v5081_v58, %v4960_v18  ;;  %v12650_v22 = vpop.f32.mrf.mxu0  ;;  %12876 = vmatprep.mubr.msk.bf16.mxu0 %vm555_vm1, %v7530_v39  ;;  %v7788_v60 = vor.u32 %v7787_v41, %v7786_v2 }
 0x220   : > { %v4917_v19 = vpop.f32.mrf.mxu1 }
 0x221   : > { %v4961_v27 = vadd.f32 %v4917_v19, %v16025_v51  ;;  %v16144_v45 = vadd.f32 %v12647_v37, %v4963_v53  ;;  %v5097_v34 = vpop.f32.mrf.mxu0  ;;  %v7653_v51 = vrot.slane %v16140_v31, 1  ;;  %v7654_v37 = vrot.slane %v15988_v28, 1 }
 0x222   : > { %v12636_v59 = vpop.f32.mrf.mxu1  ;;  %12859 = vmatmul.mubr.msk.bf16.gmra.mxu1 %vm555_vm1, %v7386_v14  ;;  %v7397_v14 = vor.u32 %v7395_v33, %v7393_v61  ;;  %v7789_v2 = vsel %vm1367_vm4, %v7785_v40, %v7788_v60  ;;  %v7658_v33 = vrot.slane %v16031_v63, 1 }
 0x223   : > { %v4966_v58 = vadd.f32 %v12636_v59, %v16033_v54  ;;  %12862 = vmatprep.mubr.msk.bf16.mxu1 %vm555_vm1, %v7394_v55  ;;  %v16151_v20 = vadd.f32 %v5084_v3, %v4961_v27  ;;  %v12651_v18 = vpop.f32.mrf.mxu0  ;;  %v7791_v54 = vrot.slane %v7167_v0, 2 }
 0x224   : > { %v4930_v21 = vpop.f32.mrf.mxu1 }
 0x225   : > { %v4964_v50 = vadd.f32 %v4930_v21, %v16039_v25  ;;  %v16156_v12 = vadd.f32 %v12650_v22, %v4966_v58  ;;  %v5100_v39 = vpop.f32.mrf.mxu0  ;;  %v7655_v25 = vsel %vm1108_vm3, %v7653_v51, %v7654_v37  ;;  %v7792_v61 = vor.u32 %v7791_v54, %v7790_v5  ;;  %v16199_v5 = vld [vmem:[%s13765_s19 + $0x38] ss:$0 sps:$4 sm:$0xff]   ;;  %s11726_s19 = sshll.u32 %s17146_s26, 4 }
 0x226   : > { %v12637_v30 = vpop.f32.mrf.mxu1  ;;  %12877 = vmatmul.mubr.msk.bf16.gmra.mxu0 %vm555_vm1, %v7529_v38  ;;  %v7806_v38 = vshll.u32 %v16077_v43, 16  ;;  %v7796_v22 = vor.u32 %v7795_v52, %v7794_v56  ;;  %v7657_v43 = vsel %vm1108_vm3, %v7654_v37, %v7656_v1  ;;  %v7799_v21 = vrot.slane %v7183_v44, 2  ;;  %s500_s15 = scalar_lea.vmem %s17095_s13, %s11726_s19 }
 0x227   : > { %v4967_v4 = vadd.f32 %v12637_v30, %v16046_v49  ;;  %v16164_v3 = vadd.f32 %v5097_v34, %v4964_v50  ;;  %v12654_v29 = vpop.f32.mrf.mxu0  ;;  %12896 = vmatprep.mubr.msk.bf16.mxu0 %vm555_vm1, %v7789_v2  ;;  %v7793_v40 = vsel %vm1367_vm4, %v7788_v60, %v7792_v61  ;;  %v7659_v44 = vsel %vm1108_vm3, %v7656_v1, %v7658_v33 }
 0x228   : > { %v4933_v53 = vpop.f32.mrf.mxu1  ;;  %v7808_v50 = vrot.slane %v7806_v38, 2  ;;  %v7797_v60 = vsel %vm1367_vm4, %v7792_v61, %v7796_v22  ;;  %v7926_v56 = vshrl.u32 %v16140_v31, 16  ;;  %v7929_v52 = vshll.u32 %v16140_v31, 16 }
 0x229   : > { %v4965_v0 = vadd.f32 %v4933_v53, %v16060_v32  ;;  %v16175_v49 = vadd.f32 %v12651_v18, %v4967_v4  ;;  %v5113_v19 = vpop.f32.mrf.mxu0  ;;  %v8144_v18 = vsel %vm574_vm0, %v16108_v42, 0  ;;  %v7662_v53 = vrot.slane %v16199_v5, 1 }
 0x22a   : > { %v12640_v41 = vpop.f32.mrf.mxu1  ;;  %12863 = vmatmul.mubr.msk.bf16.gmra.mxu1 %vm555_vm1, %v7397_v14 }
 0x22b   : > { %v4970_v6 = vadd.f32 %v12640_v41, %v16071_v36  ;;  %12882 = vmatprep.mubr.msk.bf16.mxu1 %vm555_vm1, %v7655_v25  ;;  %v16184_v32 = vadd.f32 %v5100_v39, %v4965_v0  ;;  %v12655_v27 = vpop.f32.mrf.mxu0  ;;  %v7798_v36 = vrot.slane %v7187_v13, 1  ;;  %v7977_v13 = vsel %vm574_vm0, %v16096_v62, 0 }
 0x22c   : > { %v4946_v55 = vpop.f32.mrf.mxu1  ;;  %v7660_v39 = vrot.slane %v16052_v15, 1  ;;  %v16229_v27 = vld [vmem:[%s13787_s24 + $0x18] sm:$0xff]  }
 0x22d   : > { %v4968_v59 = vadd.f32 %v4946_v55, %v16082_v24  ;;  %v16188_v34 = vadd.f32 %v12654_v29, %v4970_v6  ;;  %v5116_v51 = vpop.f32.mrf.mxu0  ;;  %v7805_v24 = vrot.slane %v7803_v10, 1  ;;  %v7800_v14 = vor.u32 %v7799_v21, %v7798_v36  ;;  %v13505_v55 = vld [vmem:[%s13787_s24 + $0x10] sm:$0xfc]  }
 0x22e   : > { %v12641_v58 = vpop.f32.mrf.mxu1  ;;  %12897 = vmatmul.mubr.msk.bf16.vlgmr.msra.gmra.mxu0 %vm555_vm1, %v7793_v40  ;;  %v7661_v1 = vsel %vm1108_vm3, %v7658_v33, %v7660_v39  ;;  %v7663_v38 = vsel %vm1108_vm3, %v7660_v39, %v7662_v53  ;;  %v7931_v36 = vrot.slane %v7929_v52, 2  ;;  %v7934_v33 = vrot.slane %v7359_v57, 2  ;;  %v13508_v39 = vld [vmem:[%s13787_s24 + $0x28] sm:$0xff]  }
 0x22f   : > { %v16201_v54 = vadd.f32 %v5113_v19, %v4968_v59  ;;  %v12674_v37 = vpop.f32.mrf.mxu0  ;;  %12923 = vmatpush3.bf16.msra.mxu0 %v8144_v18  ;;  %12900 = vmatprep.mubr.msk.bf16.mxu0 %vm555_vm1, %v7797_v60  ;;  %v7809_v62 = vor.u32 %v7808_v50, %v7805_v24  ;;  %v7801_v41 = vsel %vm1367_vm4, %v7796_v22, %v7800_v14  ;;  %v7928_v59 = vrot.slane %v7926_v56, 1 }
 0x230   : > { %v4949_v30 = vpop.f32.mrf.mxu1  ;;  %v7933_v22 = vrot.slane %v7363_v7, 1  ;;  %v8114_v28 = vrot.slane %v13505_v55, 2  ;;  %v8115_v57 = vrot.slane %v16229_v27, 2  ;;  %v7937_v60 = vrot.slane %v7371_v11, 1 }
 0x231   : > { %v4969_v26 = vadd.f32 %v4949_v30, %v16113_v8  ;;  %v5416_v4 = vpop.f32.mrf.mxu0  ;;  %v7810_v10 = vsel %vm1367_vm4, %v7800_v14, %v7809_v62  ;;  %v7932_v18 = vor.u32 %v7931_v36, %v7928_v59  ;;  %v7942_v11 = vrot.slane %v7375_v35, 2  ;;  %v13510_v59 = vld [vmem:[%s13787_s24 + $0x38] sm:$0x1f]  }
 0x232   : > { %v12660_v42 = vpop.f32.mrf.mxu1  ;;  %12883 = vmatmul.mubr.msk.bf16.vlgmr.msra.gmra.mxu1 %vm555_vm1, %v7657_v43  ;;  %v7935_v24 = vor.u32 %v7934_v33, %v7933_v22  ;;  %v8116_v14 = vsel %vm2998_vm5, %v8114_v28, %v8115_v57  ;;  %v8119_v63 = vrot.slane %v13508_v39, 2 }
 0x233   : > { %v5296_v2 = vadd.f32 %v12660_v42, %v16123_v46  ;;  %12909 = vmatpush3.bf16.msra.mxu1 %v7977_v13  ;;  %v16214_v8 = vadd.f32 %v5116_v51, %v4969_v26  ;;  %12886 = vmatprep.mubr.msk.bf16.mxu1 %vm555_vm1, %v7659_v44  ;;  %v12675_v29 = vpop.f32.mrf.mxu0  ;;  %v7938_v26 = vrot.slane %v7367_v9, 2 }
 0x234   : > { %v5248_v25 = vpop.f32.mrf.mxu1 }
 0x235   : > { %v5294_v46 = vadd.f32 %v5248_v25, %v16136_v48  ;;  %v16220_v0 = vadd.f32 %v12674_v37, %v5296_v2  ;;  %v5419_v19 = vpop.f32.mrf.mxu0  ;;  %v13507_v37 = vld [vmem:[%s13787_s24 + $0x20] sm:$0xff]   ;;  %v7941_v25 = vrot.slane %v7379_v16, 1 }
 0x236   : > { %v12661_v61 = vpop.f32.mrf.mxu1  ;;  %12901 = vmatmul.mubr.msk.bf16.gmra.mxu0 %vm555_vm1, %v7801_v41  ;;  %v8117_v52 = vrot.slane %v13507_v37, 2 }
 0x237   : > { %v5297_v6 = vadd.f32 %v12661_v61, %v16144_v45  ;;  %v16231_v31 = vadd.f32 %v5416_v4, %v5294_v46  ;;  %v12678_v58 = vpop.f32.mrf.mxu0  ;;  %12904 = vmatprep.mubr.msk.bf16.mxu0 %vm555_vm1, %v7810_v10  ;;  %v7950_v61 = vshrl.u32 %v16199_v5, 16 }
 0x238   : > { %v5251_v48 = vpop.f32.mrf.mxu1  ;;  %v8118_v10 = vsel %vm2998_vm5, %v8115_v57, %v8117_v52 }
 0x239   : > { %v5295_v45 = vadd.f32 %v5251_v48, %v16151_v20  ;;  %v16239_v40 = vadd.f32 %v12675_v29, %v5297_v6  ;;  %v5432_v21 = vpop.f32.mrf.mxu0  ;;  %v7939_v29 = vor.u32 %v7938_v26, %v7937_v60  ;;  %v8120_v48 = vsel %vm2998_vm5, %v8117_v52, %v8119_v63 }
 0x23a   : > { %v12664_v43 = vpop.f32.mrf.mxu1  ;;  %12887 = vmatmul.mubr.msk.bf16.gmra.mxu1 %vm555_vm1, %v7661_v1 }
 0x23b   : > { %v5300_v51 = vadd.f32 %v12664_v43, %v16156_v12  ;;  %12890 = vmatprep.mubr.msk.bf16.mxu1 %vm555_vm1, %v7663_v38  ;;  %v16246_v7 = vadd.f32 %v5419_v19, %v5295_v45  ;;  %v12679_v50 = vpop.f32.mrf.mxu0  ;;  %v13509_v38 = vld [vmem:[%s13787_s24 + $0x30] sm:$0xff]   ;;  %v7940_v27 = vsel %vm1367_vm4, %v7935_v24, %v7939_v29 }
 0x23c   : > { %v5264_v20 = vpop.f32.mrf.mxu1  ;;  %v8121_v43 = vrot.slane %v13509_v38, 2 }
 0x23d   : > { %v5298_v30 = vadd.f32 %v5264_v20, %v16164_v3  ;;  %v16249_v13 = vadd.f32 %v12678_v58, %v5300_v51  ;;  %v5435_v44 = vpop.f32.mrf.mxu0  ;;  %v7936_v3 = vsel %vm1367_vm4, %v7932_v18, %v7935_v24  ;;  %v8123_v51 = vrot.slane %v13510_v59, 2 }
 0x23e   : > { %v12665_v12 = vpop.f32.mrf.mxu1  ;;  %12905 = vmatmul.mubr.msk.bf16.gmra.mxu0 %vm555_vm1, %v7809_v62  ;;  %v7943_v62 = vor.u32 %v7942_v11, %v7941_v25 }
 0x23f   : > { %v5301_v42 = vadd.f32 %v12665_v12, %v16175_v49  ;;  %v16259_v4 = vadd.f32 %v5432_v21, %v5298_v30  ;;  %v12682_v56 = vpop.f32.mrf.mxu0  ;;  %12924 = vmatprep.mubr.msk.bf16.mxu0 %vm555_vm1, %v8116_v14  ;;  %v8122_v30 = vsel %vm2998_vm5, %v8119_v63, %v8121_v43 }
 0x240   : > { %v5267_v2 = vpop.f32.mrf.mxu1  ;;  %v7944_v22 = vsel %vm1367_vm4, %v7939_v29, %v7943_v62 }
 0x241   : > { %v5299_v23 = vadd.f32 %v5267_v2, %v16184_v32  ;;  %v16268_v9 = vadd.f32 %v12679_v50, %v5301_v42  ;;  %v5448_v46 = vpop.f32.mrf.mxu0 }
 0x242   : > { %v12668_v49 = vpop.f32.mrf.mxu1  ;;  %12891 = vmatmul.mubr.msk.bf16.gmra.mxu1 %vm555_vm1, %v7662_v53  ;;  %v7953_v53 = vshll.u32 %v16199_v5, 16  ;;  %v7946_v5 = vrot.slane %v7383_v17, 2 }
 0x243   : > { %v5304_v16 = vadd.f32 %v12668_v49, %v16188_v34  ;;  %12910 = vmatprep.mubr.msk.bf16.mxu1 %vm555_vm1, %v7936_v3  ;;  %v16274_v35 = vadd.f32 %v5435_v44, %v5299_v23  ;;  %v12683_v41 = vpop.f32.mrf.mxu0  ;;  %v7945_v34 = vrot.slane %v7387_v47, 1  ;;  %v7952_v47 = vrot.slane %v7950_v61, 1 }
 0x244   : > { %v5280_v32 = vpop.f32.mrf.mxu1  ;;  %v7955_v33 = vrot.slane %v7953_v53, 2 }
 0x245   : > { %v5302_v1 = vadd.f32 %v5280_v32, %v16201_v54  ;;  %v16279_v19 = vadd.f32 %v12682_v56, %v5304_v16  ;;  %v16285_v55 = vpop.f32.mrf.mxu0  ;;  %v7947_v17 = vor.u32 %v7946_v5, %v7945_v34 }
 0x246   : > { %v12669_v6 = vpop.f32.mrf.mxu1  ;;  %12925 = vmatmul.mubr.msk.bf16.vlgmr.msra.gmra.mxu0 %vm555_vm1, %v8118_v10  ;;  %v7956_v57 = vor.u32 %v7955_v33, %v7952_v47 }
 0x247   : > { %v5470_v54 = vadd.f32 %v5448_v46, %v5302_v1  ;;  %v12702_v58 = vpop.f32.mrf.mxu0  ;;  %12928 = vmatprep.mubr.msk.bf16.mxu0 %vm555_vm1, %v8120_v48  ;;  %v7948_v37 = vsel %vm1367_vm4, %v7943_v62, %v7947_v17 }
 0x248   : > { %v16292_v36 = vpop.f32.mrf.mxu1  ;;  %v7957_v42 = vsel %vm1367_vm4, %v7947_v17, %v7956_v57 }
 0x249   : > { %v5706_v21 = vpop.f32.mrf.mxu0 }
 0x24a   : > { %v12688_v45 = vpop.f32.mrf.mxu1  ;;  %12911 = vmatmul.mubr.msk.bf16.vlgmr.msra.gmra.mxu1 %vm555_vm1, %v7940_v27 }
 0x24b   : > { %v5631_v15 = vadd.f32 %v12688_v45, %v16220_v0  ;;  %12914 = vmatprep.mubr.msk.bf16.mxu1 %vm555_vm1, %v7944_v22  ;;  %v12703_v20 = vpop.f32.mrf.mxu0  ;;  %v8124_v0 = vsel %vm2998_vm5, %v8121_v43, %v8123_v51 }
 0x24c   : > { %v5583_v28 = vpop.f32.mrf.mxu1 }
 0x24d   : > { %v5629_v18 = vadd.f32 %v5583_v28, %v16231_v31  ;;  %v5754_v24 = vadd.f32 %v12702_v58, %v5631_v15  ;;  %v16302_v60 = vpop.f32.mrf.mxu0 }
 0x24e   : > { %v12689_v50 = vpop.f32.mrf.mxu1  ;;  %12929 = vmatmul.mubr.msk.bf16.gmra.mxu0 %vm555_vm1, %v8122_v30 }
 0x24f   : > { %v5632_v12 = vadd.f32 %v12689_v50, %v16239_v40  ;;  %v5752_v26 = vadd.f32 %v5706_v21, %v5629_v18  ;;  %v12706_v14 = vpop.f32.mrf.mxu0  ;;  %12932 = vmatprep.mubr.msk.bf16.mxu0 %vm555_vm1, %v8124_v0 }
 0x250   : > { %v16307_v44 = vpop.f32.mrf.mxu1 }
 0x251   : > { %v5755_v31 = vadd.f32 %v12703_v20, %v5632_v12  ;;  %v5722_v2 = vpop.f32.mrf.mxu0 }
 0x252   : > { %v12692_v39 = vpop.f32.mrf.mxu1  ;;  %12915 = vmatmul.mubr.msk.bf16.gmra.mxu1 %vm555_vm1, %v7948_v37 }
 0x253   : > { %v5635_v40 = vadd.f32 %v12692_v39, %v16249_v13  ;;  %12918 = vmatprep.mubr.msk.bf16.mxu1 %vm555_vm1, %v7957_v42  ;;  %v12707_v25 = vpop.f32.mrf.mxu0 }
 0x254   : > { %v5599_v3 = vpop.f32.mrf.mxu1 }
 0x255   : > { %v5633_v11 = vadd.f32 %v5599_v3, %v16259_v4  ;;  %v5758_v56 = vadd.f32 %v12706_v14, %v5635_v40  ;;  %v16316_v49 = vpop.f32.mrf.mxu0 }
 0x256   : > { %v12693_v23 = vpop.f32.mrf.mxu1  ;;  %12933 = vmatmul.mubr.msk.bf16.gmra.mxu0 %vm555_vm1, %v8123_v51 }
 0x257   : > { %v5636_v52 = vadd.f32 %v12693_v23, %v16268_v9  ;;  %v5756_v29 = vadd.f32 %v5722_v2, %v5633_v11  ;;  %v12710_v16 = vpop.f32.mrf.mxu0 }
 0x258   : > { %v16319_v46 = vpop.f32.mrf.mxu1 }
 0x259   : > { %v5759_v63 = vadd.f32 %v12707_v25, %v5636_v52  ;;  %v5738_v32 = vpop.f32.mrf.mxu0 }
 0x25a   : > { %v12696_v13 = vpop.f32.mrf.mxu1  ;;  %12919 = vmatmul.mubr.msk.bf16.gmra.mxu1 %vm555_vm1, %v7956_v57 }
 0x25b   : > { %v5639_v62 = vadd.f32 %v12696_v13, %v16279_v19  ;;  %v12711_v61 = vpop.f32.mrf.mxu0 }
 0x25c   : > { %v5615_v4 = vpop.f32.mrf.mxu1 }
 0x25d   : > { %v5637_v53 = vadd.f32 %v5615_v4, %v5470_v54  ;;  %v5762_v41 = vadd.f32 %v12710_v16, %v5639_v62  ;;  %v16324_v34 = vpop.f32.mrf.mxu0 }
 0x25e   : > { %v12697_v1 = vpop.f32.mrf.mxu1 }
 0x25f   : > { %v5760_v9 = vadd.f32 %v5738_v32, %v5637_v53  ;;  %v12730_v10 = vpop.f32.mrf.mxu0  ;;  %v5303_v53 = vadd.f32 %v16292_v36, %v16214_v8  ;;  %v5630_v36 = vadd.f32 %v16307_v44, %v16246_v7 }
 0x260   : > { %v5618_v6 = vpop.f32.mrf.mxu1 }
 0x261   : > { %v5984_v27 = vpop.f32.mrf.mxu0 }
 0x262   : > { %v12716_v38 = vpop.f32.mrf.mxu1 }
 0x263   : > { %v5877_v48 = vadd.f32 %v12716_v38, %v5754_v24  ;;  %v12731_v59 = vpop.f32.mrf.mxu0 }
 0x264   : > { %v5829_v5 = vpop.f32.mrf.mxu1 }
 0x265   : > { %v5875_v22 = vadd.f32 %v5829_v5, %v5752_v26  ;;  %v6032_v47 = vadd.f32 %v12730_v10, %v5877_v48  ;;  %v16326_v58 = vpop.f32.mrf.mxu0  ;;  %v5471_v5 = vadd.f32 %v16285_v55, %v5303_v53 }
 0x266   : > { %v12717_v33 = vpop.f32.mrf.mxu1 }
 0x267   : > { %v5878_v19 = vadd.f32 %v12717_v33, %v5755_v31  ;;  %v6030_v45 = vadd.f32 %v5984_v27, %v5875_v22  ;;  %v12734_v43 = vpop.f32.mrf.mxu0  ;;  %v5638_v33 = vadd.f32 %v5618_v6, %v5471_v5 }
 0x268   : > { %v16328_v54 = vpop.f32.mrf.mxu1 }
 0x269   : > { %v6033_v21 = vadd.f32 %v12731_v59, %v5878_v19  ;;  %v6000_v17 = vpop.f32.mrf.mxu0  ;;  %v5761_v55 = vadd.f32 %v16324_v34, %v5638_v33 }
 0x26a   : > { %v12720_v15 = vpop.f32.mrf.mxu1 }
 0x26b   : > { %v5881_v51 = vadd.f32 %v12720_v15, %v5758_v56  ;;  %v12735_v57 = vpop.f32.mrf.mxu0 }
 0x26c   : > { %v5845_v28 = vpop.f32.mrf.mxu1 }
 0x26d   : > { %v5879_v20 = vadd.f32 %v5845_v28, %v5756_v29  ;;  %v6036_v18 = vadd.f32 %v12734_v43, %v5881_v51  ;;  %v16330_v50 = vpop.f32.mrf.mxu0 }
 0x26e   : > { %v12721_v24 = vpop.f32.mrf.mxu1 }
 0x26f   : > { %v5882_v30 = vadd.f32 %v12721_v24, %v5759_v63  ;;  %v6034_v12 = vadd.f32 %v6000_v17, %v5879_v20  ;;  %v12738_v0 = vpop.f32.mrf.mxu0  ;;  %v5753_v20 = vadd.f32 %v16302_v60, %v5630_v36 }
 0x270   : > { %v16332_v37 = vpop.f32.mrf.mxu1 }
 0x271   : > { %v6037_v26 = vadd.f32 %v12735_v57, %v5882_v30  ;;  %v6016_v14 = vpop.f32.mrf.mxu0  ;;  %v5876_v7 = vadd.f32 %v16328_v54, %v5753_v20 }
 0x272   : > { %v12724_v42 = vpop.f32.mrf.mxu1 }
 0x273   : > { %v5885_v31 = vadd.f32 %v12724_v42, %v5762_v41  ;;  %v12739_v2 = vpop.f32.mrf.mxu0  ;;  %v5634_v42 = vadd.f32 %v16319_v46, %v16274_v35  ;;  %v6031_v60 = vadd.f32 %v16326_v58, %v5876_v7  ;;  %v13663_v35 = vmov 0.0  }
 0x274   : > { %v5861_v39 = vpop.f32.mrf.mxu1  ;;  %8287 = vst [vmem:[#allocation2 + $0x18] sm:$0xff] %v13663_v35  ;;  %8284 = vst [vmem:[#allocation2] sm:$0xff] %v13663_v35 }
 0x275   : > { %v5883_v40 = vadd.f32 %v5861_v39, %v5760_v9  ;;  %v6040_v3 = vadd.f32 %v12738_v0, %v5885_v31  ;;  %v6019_v11 = vpop.f32.mrf.mxu0  ;;  %8285 = vst [vmem:[#allocation2 + $0x8] sm:$0xff] %v13663_v35  ;;  %8286 = vst [vmem:[#allocation2 + $0x10] sm:$0xff] %v13663_v35 }
 0x276   : > { %v12725_v25 = vpop.f32.mrf.mxu1  ;;  %8288 = vst [vmem:[#allocation2 + $0x20] sm:$0xff] %v13663_v35  ;;  %8289 = vst [vmem:[#allocation2 + $0x28] sm:$0xff] %v13663_v35 }
 0x277   : > { %v6038_v56 = vadd.f32 %v6016_v14, %v5883_v40  ;;  %v12758_v52 = vpop.f32.mrf.mxu0  ;;  %v5757_v25 = vadd.f32 %v16316_v49, %v5634_v42  ;;  %8290 = vst [vmem:[#allocation2 + $0x30] sm:$0xff] %v13663_v35  ;;  %8291 = vst [vmem:[#allocation2 + $0x38] sm:$0xff] %v13663_v35 }
 0x278   : > { %v5864_v23 = vpop.f32.mrf.mxu1  ;;  %8292 = vst [vmem:[#allocation2 + $0x40] sm:$0xff] %v13663_v35  ;;  %8293 = vst [vmem:[#allocation2 + $0x48] sm:$0xff] %v13663_v35 }
 0x279   : > { %v6318_v16 = vpop.f32.mrf.mxu0  ;;  %8294 = vst [vmem:[#allocation2 + $0x50] sm:$0xff] %v13663_v35  ;;  %8295 = vst [vmem:[#allocation2 + $0x58] sm:$0xff] %v13663_v35  ;;  %v5880_v49 = vadd.f32 %v16332_v37, %v5757_v25 }
 0x27a   : > { %v12744_v29 = vpop.f32.mrf.mxu1  ;;  %8312 = vst [vmem:[#allocation3] sm:$0xff] %v13663_v35  ;;  %8313 = vst [vmem:[#allocation3 + $0x8] sm:$0xff] %v13663_v35 }
 0x27b   : > { %v6199_v63 = vadd.f32 %v12744_v29, %v6032_v47  ;;  %v12759_v32 = vpop.f32.mrf.mxu0  ;;  %8314 = vst [vmem:[#allocation3 + $0x10] sm:$0xff] %v13663_v35  ;;  %8315 = vst [vmem:[#allocation3 + $0x18] sm:$0xff] %v13663_v35  ;;  %v6035_v53 = vadd.f32 %v16330_v50, %v5880_v49 }
 0x27c   : > { %v6151_v13 = vpop.f32.mrf.mxu1  ;;  %8316 = vst [vmem:[#allocation3 + $0x20] sm:$0xf] %v13663_v35  ;;  %9520 = vst [vmem:[#allocation4] sm:$0xff] %v13663_v35 }
 0x27d   : > { %v6197_v62 = vadd.f32 %v6151_v13, %v6030_v45  ;;  %v6366_v4 = vadd.f32 %v12758_v52, %v6199_v63  ;;  %v16336_v41 = vpop.f32.mrf.mxu0  ;;  %9521 = vst [vmem:[#allocation4 + $0x8] sm:$0xff] %v13663_v35  ;;  %9522 = vst [vmem:[#allocation4 + $0x10] sm:$0xff] %v13663_v35 }
 0x27e   : > { %v12745_v61 = vpop.f32.mrf.mxu1  ;;  %9523 = vst [vmem:[#allocation4 + $0x18] sm:$0xff] %v13663_v35  ;;  %9524 = vst [vmem:[#allocation4 + $0x20] sm:$0xf] %v13663_v35 }
 0x27f   : > { %v6200_v1 = vadd.f32 %v12745_v61, %v6033_v21  ;;  %v16338_v9 = vadd.f32 %v6318_v16, %v6197_v62  ;;  %v12762_v38 = vpop.f32.mrf.mxu0 }
 0x280   : > { %v6154_v10 = vpop.f32.mrf.mxu1 }
 0x281   : > { %v16340_v27 = vadd.f32 %v12759_v32, %v6200_v1  ;;  %v6334_v59 = vpop.f32.mrf.mxu0 }
 0x282   : > { %v12748_v48 = vpop.f32.mrf.mxu1 }
 0x283   : > { %v6203_v22 = vadd.f32 %v12748_v48, %v6036_v18  ;;  %v12763_v19 = vpop.f32.mrf.mxu0  ;;  %v5884_v18 = vadd.f32 %v5864_v23, %v5761_v55  ;;  %v6198_v23 = vadd.f32 %v6154_v10, %v6031_v60 }
 0x284   : > { %v6167_v47 = vpop.f32.mrf.mxu1 }
 0x285   : > { %v6201_v45 = vadd.f32 %v6167_v47, %v6034_v12  ;;  %v16343_v43 = vadd.f32 %v12762_v38, %v6203_v22  ;;  %v16347_v21 = vpop.f32.mrf.mxu0  ;;  %v6039_v31 = vadd.f32 %v6019_v11, %v5884_v18  ;;  %v6365_v62 = vadd.f32 %v16336_v41, %v6198_v23 }
 0x286   : > { %v12749_v8 = vpop.f32.mrf.mxu1 }
 0x287   : > { %v6204_v15 = vadd.f32 %v12749_v8, %v6037_v26  ;;  %v16349_v17 = vadd.f32 %v6334_v59, %v6201_v45  ;;  %v12766_v28 = vpop.f32.mrf.mxu0 }
 0x288   : > { %v16351_v51 = vpop.f32.mrf.mxu1 }
 0x289   : > { %v16354_v57 = vadd.f32 %v12763_v19, %v6204_v15  ;;  %v6350_v24 = vpop.f32.mrf.mxu0  ;;  %v6202_v37 = vadd.f32 %v16351_v51, %v6035_v53 }
 0x28a   : > { %v12752_v6 = vpop.f32.mrf.mxu1 }
 0x28b   : > { %v6207_v30 = vadd.f32 %v12752_v6, %v6040_v3  ;;  %v12767_v44 = vpop.f32.mrf.mxu0  ;;  %v6369_v50 = vadd.f32 %v16347_v21, %v6202_v37  ;;  %v13519_v37 = vld [vmem:[%s17089_s7 + $0x58] sm:$0xff]  }
 0x28c   : > { %v6183_v12 = vpop.f32.mrf.mxu1 }
 0x28d   : > { %v6205_v0 = vadd.f32 %v6183_v12, %v6038_v56  ;;  %v16358_v26 = vadd.f32 %v12766_v28, %v6207_v30  ;;  %v6353_v14 = vpop.f32.mrf.mxu0  ;;  %v13511_v30 = vld [vmem:[%s17089_s7 + $0x78] sm:$0xff]  }
 0x28e   : > { %v12753_v34 = vpop.f32.mrf.mxu1  ;;  %v13512_v12 = vld [vmem:[%s17089_s7 + $0x38] sm:$0xff]   ;;  %12936 = vmatprep.subr.bf16.mxu1 %v13511_v30 }
 0x28f   : > { %v16362_v39 = vadd.f32 %v6350_v24, %v6205_v0  ;;  %v12786_v40 = vpop.f32.mrf.mxu0  ;;  %12956 = vmatprep.subr.bf16.mxu0 %v13512_v12  ;;  %12937 = vmatpush3.bf16.msra.mxu1 %v13511_v30 }
 0x290   : > { %v6186_v2 = vpop.f32.mrf.mxu1  ;;  %12957 = vmatpush3.bf16.msra.mxu0 %v13512_v12  ;;  %v13525_v12 = vld [vmem:[%s17089_s7 + $0x40] sm:$0xff]  }
 0x291   : > { %v6206_v3 = vadd.f32 %v6186_v2, %v6039_v31  ;;  %v6652_v56 = vpop.f32.mrf.mxu0  ;;  %v13514_v31 = vld [vmem:[%s17089_s7 + $0x30] sm:$0xff]  }
 0x292   : > { %v12772_v54 = vpop.f32.mrf.mxu1  ;;  %12958 = vmatprep.subr.bf16.mxu0 %v13514_v31 }
 0x293   : > { %v6533_v52 = vadd.f32 %v12772_v54, %v6366_v4  ;;  %v16366_v29 = vadd.f32 %v6353_v14, %v6206_v3  ;;  %v12787_v46 = vpop.f32.mrf.mxu0  ;;  %v13513_v14 = vld [vmem:[%s17089_s7 + $0x70] sm:$0xff]  }
 0x294   : > { %v6485_v16 = vpop.f32.mrf.mxu1  ;;  %12938 = vmatprep.subr.bf16.mxu1 %v13513_v14  ;;  %12959 = vmatpush3.bf16.msra.mxu0 %v13514_v31 }
 0x295   : > { %v6531_v58 = vadd.f32 %v6485_v16, %v16338_v9  ;;  %v6700_v11 = vadd.f32 %v12786_v40, %v6533_v52  ;;  %v6655_v13 = vpop.f32.mrf.mxu0  ;;  %12939 = vmatpush3.bf16.msra.mxu1 %v13513_v14  ;;  %v13516_v52 = vld [vmem:[%s17089_s7 + $0x28] sm:$0xff]  }
 0x296   : > { %v12773_v63 = vpop.f32.mrf.mxu1  ;;  %12960 = vmatprep.subr.bf16.mxu0 %v13516_v52 }
 0x297   : > { %v6534_v32 = vadd.f32 %v12773_v63, %v16340_v27  ;;  %v6698_v4 = vadd.f32 %v6652_v56, %v6531_v58  ;;  %v12790_v1 = vpop.f32.mrf.mxu0  ;;  %v13515_v56 = vld [vmem:[%s17089_s7 + $0x68] sm:$0xff]  }
 0x298   : > { %v6488_v61 = vpop.f32.mrf.mxu1  ;;  %12940 = vmatprep.subr.bf16.mxu1 %v13515_v56  ;;  %12961 = vmatpush3.bf16.msra.mxu0 %v13516_v52 }
 0x299   : > { %v6532_v10 = vadd.f32 %v6488_v61, %v6365_v62  ;;  %v6701_v38 = vadd.f32 %v12787_v46, %v6534_v32  ;;  %v6668_v5 = vpop.f32.mrf.mxu0  ;;  %12941 = vmatpush3.bf16.msra.mxu1 %v13515_v56  ;;  %v13518_v32 = vld [vmem:[%s17089_s7 + $0x20] sm:$0xff]  }
 0x29a   : > { %v12776_v48 = vpop.f32.mrf.mxu1  ;;  %12962 = vmatprep.subr.bf16.mxu0 %v13518_v32 }
 0x29b   : > { %v6537_v9 = vadd.f32 %v12776_v48, %v16343_v43  ;;  %v6699_v59 = vadd.f32 %v6655_v13, %v6532_v10  ;;  %v12791_v47 = vpop.f32.mrf.mxu0  ;;  %v13517_v13 = vld [vmem:[%s17089_s7 + $0x60] sm:$0xff]  }
 0x29c   : > { %v6501_v22 = vpop.f32.mrf.mxu1  ;;  %12942 = vmatprep.subr.bf16.mxu1 %v13517_v13  ;;  %12963 = vmatpush3.bf16.msra.mxu0 %v13518_v32 }
 0x29d   : > { %v6535_v27 = vadd.f32 %v6501_v22, %v16349_v17  ;;  %v6704_v33 = vadd.f32 %v12790_v1, %v6537_v9  ;;  %v6671_v19 = vpop.f32.mrf.mxu0  ;;  %12943 = vmatpush3.bf16.msra.mxu1 %v13517_v13 }
 0x29e   : > { %v12777_v41 = vpop.f32.mrf.mxu1  ;;  %12944 = vmatprep.subr.bf16.mxu1 %v13519_v37 }
 0x29f   : > { %v6538_v45 = vadd.f32 %v12777_v41, %v16354_v57  ;;  %v16378_v8 = vadd.f32 %v6668_v5, %v6535_v27  ;;  %v12794_v15 = vpop.f32.mrf.mxu0  ;;  %v13520_v5 = vld [vmem:[%s17089_s7 + $0x18] sm:$0xff]  }
 0x2a0   : > { %v6504_v36 = vpop.f32.mrf.mxu1  ;;  %12964 = vmatprep.subr.bf16.mxu0 %v13520_v5 }
 0x2a1   : > { %v6536_v51 = vadd.f32 %v6504_v36, %v6369_v50  ;;  %v16380_v55 = vadd.f32 %v12791_v47, %v6538_v45  ;;  %v6684_v28 = vpop.f32.mrf.mxu0  ;;  %12945 = vmatpush3.bf16.msra.mxu1 %v13519_v37  ;;  %12965 = vmatpush3.bf16.msra.mxu0 %v13520_v5  ;;  %v13521_v45 = vld [vmem:[%s17089_s7 + $0x50] sm:$0xff]  }
 0x2a2   : > { %v12780_v43 = vpop.f32.mrf.mxu1  ;;  %v13522_v50 = vld [vmem:[%s17089_s7 + $0x10] sm:$0xff]   ;;  %12946 = vmatprep.subr.bf16.mxu1 %v13521_v45 }
 0x2a3   : > { %v6541_v6 = vadd.f32 %v12780_v43, %v16358_v26  ;;  %v16383_v20 = vadd.f32 %v6671_v19, %v6536_v51  ;;  %v12795_v18 = vpop.f32.mrf.mxu0  ;;  %12966 = vmatprep.subr.bf16.mxu0 %v13522_v50 }
 0x2a4   : > { %v6517_v17 = vpop.f32.mrf.mxu1 }
 0x2a5   : > { %v6539_v24 = vadd.f32 %v6517_v17, %v16362_v39  ;;  %v16386_v57 = vadd.f32 %v12794_v15, %v6541_v6  ;;  %v6687_v7 = vpop.f32.mrf.mxu0  ;;  %12947 = vmatpush3.bf16.msra.mxu1 %v13521_v45  ;;  %12967 = vmatpush3.bf16.msra.mxu0 %v13522_v50  ;;  %v13524_v17 = vld [vmem:[%s17089_s7 + $0x8] sm:$0xff]  }
 0x2a6   : > { %v12781_v21 = vpop.f32.mrf.mxu1  ;;  %12968 = vmatprep.subr.bf16.mxu0 %v13524_v17 }
 0x2a7   : > { %v16394_v44 = vadd.f32 %v6684_v28, %v6539_v24  ;;  %v12814_v26 = vpop.f32.mrf.mxu0 }
 0x2a8   : > { %v6520_v0 = vpop.f32.mrf.mxu1 }
 0x2a9   : > { %v6540_v42 = vadd.f32 %v6520_v0, %v16366_v29  ;;  %v6898_v39 = vpop.f32.mrf.mxu0  ;;  %12969 = vmatpush3.bf16.msra.mxu0 %v13524_v17  ;;  %v16472_v0 = vld [vmem:[%s17089_s7 + $0xb8] sm:$0xff]  }
 0x2aa   : > { %v12800_v34 = vpop.f32.mrf.mxu1  ;;  %17129 = vst [vmem:[#allocation5_spill] sm:$0xff] %v16472_v0 }
 0x2ab   : > { %v6823_v2 = vadd.f32 %v12800_v34, %v6700_v11  ;;  %v16403_v60 = vadd.f32 %v6687_v7, %v6540_v42  ;;  %v12815_v3 = vpop.f32.mrf.mxu0  ;;  %v13526_v7 = vld [vmem:[%s17089_s7] sm:$0xff]  }
 0x2ac   : > { %v6775_v40 = vpop.f32.mrf.mxu1  ;;  %12970 = vmatprep.subr.bf16.mxu0 %v13526_v7 }
 0x2ad   : > { %v6821_v25 = vadd.f32 %v6775_v40, %v6698_v4  ;;  %v16405_v54 = vadd.f32 %v12814_v26, %v6823_v2  ;;  %v6901_v29 = vpop.f32.mrf.mxu0  ;;  %v16477_v26 = vld [vmem:[%s17089_s7 + $0xf8] sm:$0xff]   ;;  %12971 = vmatpush3.bf16.msra.mxu0 %v13526_v7 }
 0x2ae   : > { %v12801_v23 = vpop.f32.mrf.mxu1  ;;  %17130 = vst [vmem:[#allocation7_spill] sm:$0xff] %v16477_v26  ;;  %12996 = vmatprep.subr.bf16.mxu0 %v16477_v26 }
 0x2af   : > { %v6824_v16 = vadd.f32 %v12801_v23, %v6701_v38  ;;  %v16413_v35 = vadd.f32 %v6898_v39, %v6821_v25  ;;  %v12818_v46 = vpop.f32.mrf.mxu0 }
 0x2b0   : > { %v6778_v49 = vpop.f32.mrf.mxu1 }
 0x2b1   : > { %v6822_v58 = vadd.f32 %v6778_v49, %v6699_v59  ;;  %v16415_v11 = vadd.f32 %v12815_v3, %v6824_v16  ;;  %v6914_v62 = vpop.f32.mrf.mxu0 }
 0x2b2   : > { %v12804_v63 = vpop.f32.mrf.mxu1 }
 0x2b3   : > { %v6827_v4 = vadd.f32 %v12804_v63, %v6704_v33  ;;  %v16423_v61 = vadd.f32 %v6901_v29, %v6822_v58  ;;  %v12819_v1 = vpop.f32.mrf.mxu0 }
 0x2b4   : > { %v6791_v53 = vpop.f32.mrf.mxu1 }
 0x2b5   : > { %v6825_v10 = vadd.f32 %v6791_v53, %v16378_v8  ;;  %v16426_v38 = vadd.f32 %v12818_v46, %v6827_v4  ;;  %v6917_v9 = vpop.f32.mrf.mxu0 }
 0x2b6   : > { %v12805_v48 = vpop.f32.mrf.mxu1 }
 0x2b7   : > { %v6828_v59 = vadd.f32 %v12805_v48, %v16380_v55  ;;  %v16435_v22 = vadd.f32 %v6914_v62, %v6825_v10  ;;  %v12822_v27 = vpop.f32.mrf.mxu0 }
 0x2b8   : > { %v6794_v47 = vpop.f32.mrf.mxu1 }
 0x2b9   : > { %v6826_v33 = vadd.f32 %v6794_v47, %v16383_v20  ;;  %v16438_v41 = vadd.f32 %v12819_v1, %v6828_v59  ;;  %v6930_v8 = vpop.f32.mrf.mxu0  ;;  %v13523_v20 = vld [vmem:[%s17089_s7 + $0x48] sm:$0xff]  }
 0x2ba   : > { %v12808_v19 = vpop.f32.mrf.mxu1  ;;  %12948 = vmatprep.subr.bf16.mxu1 %v13523_v20 }
 0x2bb   : > { %v6831_v36 = vadd.f32 %v12808_v19, %v16386_v57  ;;  %v16447_v15 = vadd.f32 %v6917_v9, %v6826_v33  ;;  %v12823_v55 = vpop.f32.mrf.mxu0  ;;  %12949 = vmatpush3.bf16.msra.mxu1 %v13523_v20 }
 0x2bc   : > { %v6807_v51 = vpop.f32.mrf.mxu1  ;;  %12950 = vmatprep.subr.bf16.mxu1 %v13525_v12 }
 0x2bd   : > { %v6829_v43 = vadd.f32 %v6807_v51, %v16394_v44  ;;  %v6954_v28 = vadd.f32 %v12822_v27, %v6831_v36  ;;  %v6933_v18 = vpop.f32.mrf.mxu0 }
 0x2be   : > { %v12809_v6 = vpop.f32.mrf.mxu1 }
 0x2bf   : > { %v16456_v24 = vadd.f32 %v6930_v8, %v6829_v43  ;;  %v16458_v21 = vpop.f32.mrf.mxu0  ;;  %12951 = vmatpush3.bf16.msra.mxu1 %v13525_v12 }
 0x2c0   : > { %v6810_v57 = vpop.f32.mrf.mxu1  ;;  %12976 = vmatprep.subr.bf16.mxu1 %v16472_v0 }
 0x2c1   : > { %v6830_v30 = vadd.f32 %v6810_v57, %v16403_v60  ;;  %v16479_v42 = vpop.f32.mrf.mxu0 }
 0x2c2   : > { %v16467_v44 = vpop.f32.mrf.mxu1 }
 0x2c3   : > { %v6953_v34 = vadd.f32 %v6933_v18, %v6830_v30  ;;  %v16483_v31 = vpop.f32.mrf.mxu0 }
 0x2c4   : > { %v16481_v14 = vpop.f32.mrf.mxu1 }
 0x2c5   : > { %v16489_v2 = vpop.f32.mrf.mxu0 }
 0x2c6   : > { %v16485_v39 = vpop.f32.mrf.mxu1 }
 0x2c7   : > { %v12846_v40 = vpop.f32.mrf.mxu0  ;;  %v7102_v0 = vadd.f32 %v16485_v39, %v16415_v11 }
 0x2c8   : > { %v16491_v60 = vpop.f32.mrf.mxu1 }
 0x2c9   : > { %v16493_v25 = vpop.f32.mrf.mxu0 }
 0x2ca   : > { %v12832_v3 = vpop.f32.mrf.mxu1 }
 0x2cb   : > { %v7105_v23 = vadd.f32 %v12832_v3, %v16426_v38  ;;  %v16498_v52 = vpop.f32.mrf.mxu0 }
 0x2cc   : > { %v16496_v56 = vpop.f32.mrf.mxu1 }
 0x2cd   : > { %v16500_v29 = vadd.f32 %v12846_v40, %v7105_v23  ;;  %v16504_v49 = vpop.f32.mrf.mxu0 }
 0x2ce   : > { %v16502_v16 = vpop.f32.mrf.mxu1 }
 0x2cf   : > { %v12850_v58 = vpop.f32.mrf.mxu0 }
 0x2d0   : > { %v16506_v46 = vpop.f32.mrf.mxu1 }
 0x2d1   : > { %v16508_v13 = vpop.f32.mrf.mxu0 }
 0x2d2   : > { %v12836_v63 = vpop.f32.mrf.mxu1 }
 0x2d3   : > { %v7109_v32 = vadd.f32 %v12836_v63, %v6954_v28  ;;  %v12851_v4 = vpop.f32.mrf.mxu0 }
 0x2d4   : > { %v16510_v62 = vpop.f32.mrf.mxu1 }
 0x2d5   : > { %v16512_v53 = vadd.f32 %v12850_v58, %v7109_v32  ;;  %v7288_v10 = vpop.f32.mrf.mxu0 }
 0x2d6   : > { %v12837_v1 = vpop.f32.mrf.mxu1 }
 0x2d7   : > { %v12870_v48 = vpop.f32.mrf.mxu0 }
 0x2d8   : > { %v7088_v38 = vpop.f32.mrf.mxu1 }
 0x2d9   : > { %v7108_v37 = vadd.f32 %v7088_v38, %v6953_v34  ;;  %v7586_v9 = vpop.f32.mrf.mxu0 }
 0x2da   : > { %v12856_v5 = vpop.f32.mrf.mxu1 }
 0x2db   : > { %v16514_v59 = vadd.f32 %v7288_v10, %v7108_v37  ;;  %v16516_v27 = vpop.f32.mrf.mxu0  ;;  %v7101_v10 = vadd.f32 %v16467_v44, %v16405_v54  ;;  %v7100_v54 = vadd.f32 %v16491_v60, %v16423_v61 }
 0x2dc   : > { %v7453_v47 = vpop.f32.mrf.mxu1 }
 0x2dd   : > { %17131 = vst [vmem:[#allocation6_spill] sm:$0xff] %v16514_v59  ;;  %v16518_v19 = vpop.f32.mrf.mxu0  ;;  %v7300_v61 = vadd.f32 %v16489_v2, %v7100_v54  ;;  %v7107_v2 = vadd.f32 %v16510_v62, %v16456_v24 }
 0x2de   : > { %v12857_v33 = vpop.f32.mrf.mxu1 }
 0x2df   : > { %v16520_v50 = vpop.f32.mrf.mxu0 }
 0x2e0   : > { %v7456_v45 = vpop.f32.mrf.mxu1 }
 0x2e1   : > { %v16522_v36 = vpop.f32.mrf.mxu0 }
 0x2e2   : > { %v12860_v8 = vpop.f32.mrf.mxu1 }
 0x2e3   : > { %v16524_v55 = vpop.f32.mrf.mxu0 }
 0x2e4   : > { %v7469_v51 = vpop.f32.mrf.mxu1 }
 0x2e5   : > { %v16528_v28 = vpop.f32.mrf.mxu0 }
 0x2e6   : > { %v16526_v43 = vpop.f32.mrf.mxu1 }
 0x2e7   : > { %v16532_v20 = vpop.f32.mrf.mxu0 }
 0x2e8   : > { %v16530_v6 = vpop.f32.mrf.mxu1 }
 0x2e9   : > { %v16536_v18 = vpop.f32.mrf.mxu0 }
 0x2ea   : > { %v16534_v17 = vpop.f32.mrf.mxu1  ;;  %17132 = vst [vmem:[#allocation10_spill] sm:$0xff] %v16536_v18 }
 0x2eb   : > { %v12879_v30 = vpop.f32.mrf.mxu0 }
 0x2ec   : > { %v16538_v57 = vpop.f32.mrf.mxu1  ;;  %v7099_v30 = vadd.f32 %v16481_v14, %v16413_v35 }
 0x2ed   : > { %v16540_v7 = vpop.f32.mrf.mxu0 }
 0x2ee   : > { %v12865_v12 = vpop.f32.mrf.mxu1  ;;  %17133 = vst [vmem:[#allocation9_spill] sm:$0xff] %v16540_v7  ;;  %v7301_v7 = vadd.f32 %v16458_v21, %v7101_v10  ;;  %v7103_v21 = vadd.f32 %v16496_v56, %v16435_v22  ;;  %v7104_v22 = vadd.f32 %v16506_v46, %v16447_v15 }
 0x2ef   : > { %v12898_v40 = vpop.f32.mrf.mxu0 }
 0x2f0   : > { %v16542_v34 = vpop.f32.mrf.mxu1  ;;  %v7501_v44 = vadd.f32 %v12856_v5, %v7301_v7  ;;  %v7303_v56 = vadd.f32 %v16493_v25, %v7103_v21  ;;  %v7304_v24 = vadd.f32 %v16504_v49, %v7104_v22  ;;  %v16608_v49 = vld [vmem:[%s17087_s5] ss:$0 sm:$0xff] }
 0x2f1   : > { %17134 = vst [vmem:[#allocation12_spill] sm:$0xff] %v16542_v34  ;;  %v7866_v23 = vpop.f32.mrf.mxu0 }
 0x2f2   : > { %v12884_v3 = vpop.f32.mrf.mxu1  ;;  %v7634_v60 = vadd.f32 %v12870_v48, %v7501_v44 }
 0x2f3   : > { %v16544_v63 = vpop.f32.mrf.mxu0 }
 0x2f4   : > { %v7719_v58 = vpop.f32.mrf.mxu1 }
 0x2f5   : > { %v16546_v4 = vpop.f32.mrf.mxu0 }
 0x2f6   : > { %v12885_v32 = vpop.f32.mrf.mxu1 }
 0x2f7   : > { %v16550_v38 = vpop.f32.mrf.mxu0 }
 0x2f8   : > { %v7722_v1 = vpop.f32.mrf.mxu1  ;;  %17135 = vst [vmem:[#allocation8_spill] sm:$0xff] %v16550_v38  ;;  %v7299_v38 = vadd.f32 %v16479_v42, %v7099_v30  ;;  %v7106_v42 = vadd.f32 %v16502_v16, %v16438_v41  ;;  %v7505_v41 = vadd.f32 %v12860_v8, %v16500_v29  ;;  %v7503_v16 = vadd.f32 %v7469_v51, %v7303_v56  ;;  %v17137_v56 = vld [vmem:[#allocation10_spill] sm:$0xff] }
 0x2f9   : > { %v16554_v12 = vpop.f32.mrf.mxu0  ;;  %v7509_v51 = vadd.f32 %v16534_v17, %v16512_v53 }
 0x2fa   : > { %v12888_v37 = vpop.f32.mrf.mxu1  ;;  %17136 = vst [vmem:[#allocation13_spill] sm:$0xff] %v16554_v12  ;;  %v7499_v14 = vadd.f32 %v7453_v47, %v7299_v38  ;;  %v7302_v12 = vadd.f32 %v16483_v31, %v7102_v0  ;;  %v7500_v47 = vadd.f32 %v7456_v45, %v7300_v61  ;;  %v7767_v0 = vadd.f32 %v12884_v3, %v7634_v60 }
 0x2fb   : > { %v16559_v34 = vpop.f32.mrf.mxu0 }
 0x2fc   : > { %v7735_v26 = vpop.f32.mrf.mxu1  ;;  %v7502_v10 = vadd.f32 %v12857_v33, %v7302_v12  ;;  %v7632_v31 = vadd.f32 %v7586_v9, %v7499_v14  ;;  %v7306_v9 = vadd.f32 %v16498_v52, %v7106_v42  ;;  %v7633_v15 = vadd.f32 %v16518_v19, %v7500_v47 }
 0x2fd   : > { %v16566_v18 = vpop.f32.mrf.mxu0  ;;  %v7914_v46 = vadd.f32 %v12898_v40, %v7767_v0  ;;  %v7504_v52 = vadd.f32 %v16530_v6, %v7304_v24  ;;  %v7638_v19 = vadd.f32 %v16520_v50, %v7505_v41  ;;  %v7636_v40 = vadd.f32 %v16522_v36, %v7503_v16  ;;  %v16616_v50 = vld [vmem:[%s17088_s6] ss:$0 sm:$0xff]  ;;  %v8319_v16 = vld [vmem:[#allocation2 + $0x1] ss:$2 sm:$0xf] }
 0x2fe   : > { %v16561_v59 = vpop.f32.mrf.mxu1  ;;  %v7765_v48 = vadd.f32 %v7719_v58, %v7632_v31  ;;  %v7635_v30 = vadd.f32 %v16516_v27, %v7502_v10  ;;  %v7506_v54 = vadd.f32 %v16526_v43, %v7306_v9  ;;  %v7307_v27 = vadd.f32 %v16508_v13, %v7107_v2  ;;  %v8317_v2 = vld [vmem:[#allocation2] ss:$2 sm:$0xf] }
 0x2ff   : > { %v16571_v11 = vpop.f32.mrf.mxu0  ;;  %v7766_v58 = vadd.f32 %v7722_v1, %v7633_v15  ;;  %v7771_v14 = vadd.f32 %v12888_v37, %v7638_v19  ;;  %v7769_v21 = vadd.f32 %v7735_v26, %v7636_v40  ;;  %v7642_v26 = vadd.f32 %v16532_v20, %v7509_v51 }
 0x300   : > { %v16568_v35 = vpop.f32.mrf.mxu1  ;;  %v7768_v3 = vadd.f32 %v12885_v32, %v7635_v30  ;;  %v7912_v8 = vadd.f32 %v7866_v23, %v7765_v48  ;;  %v7507_v6 = vadd.f32 %v16538_v57, %v7307_v27  ;;  %v7639_v53 = vadd.f32 %v16524_v55, %v7506_v54 }
 0x301   : > { %v16578_v5 = vpop.f32.mrf.mxu0  ;;  %v7913_v42 = vadd.f32 %v16546_v4, %v7766_v58  ;;  %v7637_v57 = vadd.f32 %v16528_v28, %v7504_v52  ;;  %v17138_v4 = vld [vmem:[#allocation8_spill] sm:$0xff]  ;;  %v17139_v30 = vld [vmem:[#allocation13_spill] sm:$0xff]  ;;  %v8320_v19 = vmax.f32 %v8317_v2, %v8319_v16 }
 0x302   : > { %v16575_v39 = vpop.f32.mrf.mxu1  ;;  %v7915_v23 = vadd.f32 %v16544_v63, %v7768_v3  ;;  %v7772_v63 = vadd.f32 %v16561_v59, %v7639_v53  ;;  %v7918_v48 = vadd.f32 %v17138_v4, %v7771_v14  ;;  %v7916_v28 = vadd.f32 %v17139_v30, %v7769_v21  ;;  %v17142_v14 = vld [vmem:[#allocation9_spill] sm:$0xff] }
 0x303   : > { %v12907_v38 = vpop.f32.mrf.mxu0  ;;  %v7770_v22 = vadd.f32 %v16568_v35, %v7637_v57  ;;  %v7775_v35 = vadd.f32 %v16575_v39, %v7642_v26 }
 0x304   : > { %v16582_v7 = vpop.f32.mrf.mxu1  ;;  %v7919_v27 = vadd.f32 %v16559_v34, %v7772_v63 }
 0x305   : > { %v16590_v12 = vpop.f32.mrf.mxu0  ;;  %v7917_v39 = vadd.f32 %v16566_v18, %v7770_v22 }
 0x306   : > { %v12893_v33 = vpop.f32.mrf.mxu1 }
 0x307   : > { %v12926_v25 = vpop.f32.mrf.mxu0  ;;  %v7640_v33 = vadd.f32 %v17137_v56, %v7507_v6 }
 0x308   : > { %v16594_v45 = vpop.f32.mrf.mxu1 }
 0x309   : > { %v8180_v44 = vpop.f32.mrf.mxu0  ;;  %v7773_v51 = vadd.f32 %v16582_v7, %v7640_v33  ;;  %v7922_v7 = vadd.f32 %v16571_v11, %v7775_v35 }
 0x30a   : > { %v12912_v62 = vpop.f32.mrf.mxu1 }
 0x30b   : > { %v8061_v29 = vadd.f32 %v12912_v62, %v7914_v46  ;;  %v12927_v32 = vpop.f32.mrf.mxu0  ;;  %v17141_v46 = vld [vmem:[#allocation12_spill] sm:$0xff] }
 0x30c   : > { %v8013_v43 = vpop.f32.mrf.mxu1 }
 0x30d   : > { %v8228_v13 = vadd.f32 %v12926_v25, %v8061_v29  ;;  %v8059_v1 = vadd.f32 %v8013_v43, %v7912_v8  ;;  %v8183_v61 = vpop.f32.mrf.mxu0  ;;  %v17140_v25 = vld [vmem:[#allocation6_spill] sm:$0xff] }
 0x30e   : > { %v12913_v36 = vpop.f32.mrf.mxu1  ;;  %v7508_v54 = vadd.f32 %v17141_v46, %v17140_v25 }
 0x30f   : > { %v8246_v17 = vmul.f32 %v16608_v49, %v8228_v13  ;;  %v8226_v10 = vadd.f32 %v8180_v44, %v8059_v1  ;;  %v8062_v60 = vadd.f32 %v12913_v36, %v7915_v23  ;;  %v12930_v31 = vpop.f32.mrf.mxu0  ;;  %v8322_v13 = vld [vmem:[#allocation2 + $0x2] ss:$2 sm:$0xf] }
 0x310   : > { %v8016_v55 = vpop.f32.mrf.mxu1  ;;  %v7641_v21 = vadd.f32 %v17142_v14, %v7508_v54  ;;  %v8323_v63 = vmax.f32 %v8320_v19, %v8322_v13 }
 0x311   : > { %v8264_v37 = vadd.f32 %v16616_v50, %v8246_v17  ;;  %v8244_v47 = vmul.f32 %v16608_v49, %v8226_v10  ;;  %v8229_v0 = vadd.f32 %v12927_v32, %v8062_v60  ;;  %v8060_v38 = vadd.f32 %v8016_v55, %v7913_v42  ;;  %v8196_v15 = vpop.f32.mrf.mxu0 }
 0x312   : > { %v12916_v59 = vpop.f32.mrf.mxu1  ;;  %v7774_v42 = vadd.f32 %v16594_v45, %v7641_v21  ;;  %v7920_v55 = vadd.f32 %v16578_v5, %v7773_v51 }
 0x313   : > { %v8275_v41 = vmax.f32 %v8264_v37, 0.0  ;;  %v8262_v20 = vadd.f32 %v16616_v50, %v8244_v47  ;;  %v8247_v9 = vmul.f32 %v16608_v49, %v8229_v0  ;;  %v8227_v3 = vadd.f32 %v8183_v61, %v8060_v38  ;;  %v12931_v8 = vpop.f32.mrf.mxu0 }
 0x314   : > { %v8065_v24 = vadd.f32 %v12916_v59, %v7918_v48  ;;  %v8029_v62 = vpop.f32.mrf.mxu1  ;;  %v7921_v30 = vadd.f32 %v16590_v12, %v7774_v42 }
 0x315   : > { %8299 = vst [vmem:[#allocation2 + $0x1a] sm:$0x7] %v8275_v41  ;;  %8300 = vst [vmem:[#allocation2 + $0x19] sm:$0xc0] %v8275_v41  ;;  %v8273_v58 = vmax.f32 %v8262_v20, 0.0  ;;  %v8265_v44 = vadd.f32 %v16616_v50, %v8247_v9  ;;  %v8245_v29 = vmul.f32 %v16608_v49, %v8227_v3  ;;  %v8063_v52 = vadd.f32 %v8029_v62, %v7916_v28  ;;  %v8199_v23 = vpop.f32.mrf.mxu0 }
 0x316   : > { %v8232_v40 = vadd.f32 %v12930_v31, %v8065_v24  ;;  %v12917_v43 = vpop.f32.mrf.mxu1 }
 0x317   : > { %8297 = vst [vmem:[#allocation2 + $0xb] sm:$0xff] %v8273_v58  ;;  %v8276_v32 = vmax.f32 %v8265_v44, 0.0  ;;  %v8263_v34 = vadd.f32 %v16616_v50, %v8245_v29  ;;  %v8230_v1 = vadd.f32 %v8196_v15, %v8063_v52  ;;  %v8066_v6 = vadd.f32 %v12917_v43, %v7919_v27  ;;  %v12934_v60 = vpop.f32.mrf.mxu0 }
 0x318   : > { %v8250_v53 = vmul.f32 %v16608_v49, %v8232_v40  ;;  %v8032_v36 = vpop.f32.mrf.mxu1 }
 0x319   : > { %8301 = vst [vmem:[#allocation2 + $0x21] sm:$0x3f] %v8276_v32  ;;  %v8274_v17 = vmax.f32 %v8263_v34, 0.0  ;;  %v8248_v10 = vmul.f32 %v16608_v49, %v8230_v1  ;;  %v8233_v18 = vadd.f32 %v12931_v8, %v8066_v6  ;;  %v8064_v61 = vadd.f32 %v8032_v36, %v7917_v39  ;;  %v8212_v31 = vpop.f32.mrf.mxu0 }
 0x31a   : > { %v8268_v57 = vadd.f32 %v16616_v50, %v8250_v53  ;;  %v12920_v26 = vpop.f32.mrf.mxu1 }
 0x31b   : > { %8298 = vst [vmem:[#allocation2 + $0x12] sm:$0xf8] %v8274_v17  ;;  %v8266_v37 = vadd.f32 %v16616_v50, %v8248_v10  ;;  %v8251_v11 = vmul.f32 %v16608_v49, %v8233_v18  ;;  %v8231_v47 = vadd.f32 %v8199_v23, %v8064_v61  ;;  %v8069_v0 = vadd.f32 %v12920_v26, %v7922_v7  ;;  %v12935_v4 = vpop.f32.mrf.mxu0 }
 0x31c   : > { %v8279_v38 = vmax.f32 %v8268_v57, 0.0  ;;  %v8045_v22 = vpop.f32.mrf.mxu1 }
 0x31d   : > { %v8277_v56 = vmax.f32 %v8266_v37, 0.0  ;;  %v8269_v33 = vadd.f32 %v16616_v50, %v8251_v11  ;;  %v8249_v45 = vmul.f32 %v16608_v49, %v8231_v47  ;;  %v8067_v2 = vadd.f32 %v8045_v22, %v7920_v55  ;;  %v8215_v25 = vpop.f32.mrf.mxu0 }
 0x31e   : > { %v8325_v48 = vld [vmem:[#allocation2 + $0xa] ss:$2 sm:$0xf]  ;;  %8305 = vst [vmem:[#allocation2 + $0x37] sm:$0xf] %v8279_v38  ;;  %v8236_v5 = vadd.f32 %v12934_v60, %v8069_v0  ;;  %v12921_v59 = vpop.f32.mrf.mxu1 }
 0x31f   : > { %8306 = vst [vmem:[#allocation2 + $0x36] sm:$0x80] %v8279_v38  ;;  %v8326_v28 = vmax.f32 %v8323_v63, %v8325_v48  ;;  %8302 = vst [vmem:[#allocation2 + $0x28] sm:$0xfe] %v8277_v56  ;;  %v8280_v41 = vmax.f32 %v8269_v33, 0.0  ;;  %v8267_v20 = vadd.f32 %v16616_v50, %v8249_v45  ;;  %v8234_v16 = vadd.f32 %v8212_v31, %v8067_v2 }
 0x320   : > { %v8328_v9 = vld [vmem:[#allocation2 + $0xb] ss:$2 sm:$0xf]  ;;  %v8254_v3 = vmul.f32 %v16608_v49, %v8236_v5  ;;  %v8048_v15 = vpop.f32.mrf.mxu1  ;;  %v8331_v62 = vld [vmem:[#allocation2 + $0xc] ss:$2 sm:$0xf] }
 0x321   : > { %v8329_v46 = vmax.f32 %v8326_v28, %v8328_v9  ;;  %8307 = vst [vmem:[#allocation2 + $0x3e] sm:$0x7f] %v8280_v41  ;;  %v8278_v54 = vmax.f32 %v8267_v20, 0.0  ;;  %v8252_v35 = vmul.f32 %v16608_v49, %v8234_v16  ;;  %v8068_v24 = vadd.f32 %v8048_v15, %v7921_v30  ;;  %v8349_v32 = vld [vmem:[#allocation2 + $0x1e] ss:$2 sm:$0xf] }
 0x322   : > { %v8272_v12 = vadd.f32 %v16616_v50, %v8254_v3  ;;  %v8343_v58 = vld [vmem:[#allocation2 + $0x14] ss:$2 sm:$0xf]  ;;  %v8344_v44 = vld [vmem:[#allocation2 + $0x15] ss:$2 sm:$0xf] }
 0x323   : > { %v8332_v27 = vmax.f32 %v8329_v46, %v8331_v62  ;;  %8303 = vst [vmem:[#allocation2 + $0x30] sm:$0x1] %v8278_v54  ;;  %8304 = vst [vmem:[#allocation2 + $0x2f] sm:$0xf0] %v8278_v54  ;;  %v8270_v29 = vadd.f32 %v16616_v50, %v8252_v35  ;;  %v8235_v8 = vadd.f32 %v8215_v25, %v8068_v24 }
 0x324   : > { %v8334_v52 = vld [vmem:[#allocation2 + $0x14] ss:$2 sm:$0xf]  ;;  %v8345_v51 = vmax.f32 %v8343_v58, %v8344_v44  ;;  %v8283_v19 = vmax.f32 %v8272_v12, 0.0 }
 0x325   : > { %v8335_v40 = vmax.f32 %v8332_v27, %v8334_v52  ;;  %v8346_v43 = vld [vmem:[#allocation2 + $0x16] ss:$2 sm:$0xf]  ;;  %v8281_v39 = vmax.f32 %v8270_v29, 0.0  ;;  %v8253_v13 = vmul.f32 %v16608_v49, %v8235_v8 }
 0x326   : > { %v8337_v34 = vld [vmem:[#allocation2 + $0x15] ss:$2 sm:$0xf]  ;;  %v8347_v1 = vmax.f32 %v8345_v51, %v8346_v43  ;;  %8311 = vst [vmem:[#allocation2 + $0x54] sm:$0x1f] %v8283_v19 }
 0x327   : > { %v8367_v23 = vld [vmem:[#allocation2 + $0x28] ss:$2 sm:$0xf]  ;;  %v8368_v6 = vld [vmem:[#allocation2 + $0x29] ss:$2 sm:$0xf]  ;;  %v8338_v14 = vmax.f32 %v8335_v40, %v8337_v34  ;;  %v8271_v7 = vadd.f32 %v16616_v50, %v8253_v13 }
 0x328   : > { %8308 = vst [vmem:[#allocation2 + $0x45] sm:$0xfc] %v8281_v39  ;;  %v8350_v21 = vmax.f32 %v8347_v1, %v8349_v32  ;;  %v8340_v53 = vld [vmem:[#allocation2 + $0x16] ss:$2 sm:$0xf]  ;;  %v8369_v61 = vmax.f32 %v8367_v23, %v8368_v6 }
 0x329   : > { %v8352_v36 = vld [vmem:[#allocation2 + $0x1f] ss:$2 sm:$0xf]  ;;  %v8341_v17 = vmax.f32 %v8338_v14, %v8340_v53  ;;  %v8355_v10 = vld [vmem:[#allocation2 + $0x20] ss:$2 sm:$0xf] }
 0x32a   : > { %v8353_v18 = vmax.f32 %v8350_v21, %v8352_v36  ;;  %v8358_v60 = vld [vmem:[#allocation2 + $0x28] ss:$2 sm:$0xf]  ;;  %v8391_v63 = vld [vmem:[#allocation2 + $0x3c] ss:$2 sm:$0xf] }
 0x32b   : > { %v8370_v42 = vld [vmem:[#allocation2 + $0x2a] ss:$2 sm:$0xf]  ;;  %8342 = vst [vmem:[#allocation3 + $0x7] sm:$0xf] %v8341_v17  ;;  %v8282_v37 = vmax.f32 %v8271_v7, 0.0 }
 0x32c   : > { %v8356_v49 = vmax.f32 %v8353_v18, %v8355_v10  ;;  %v8392_v57 = vld [vmem:[#allocation2 + $0x3d] ss:$2 sm:$0xf]  ;;  %v8371_v26 = vmax.f32 %v8369_v61, %v8370_v42  ;;  %v8373_v55 = vld [vmem:[#allocation2 + $0x32] ss:$2 sm:$0xf] }
 0x32d   : > { %v8361_v0 = vld [vmem:[#allocation2 + $0x29] ss:$2 sm:$0xf]  ;;  %v8393_v31 = vmax.f32 %v8391_v63, %v8392_v57  ;;  %v8376_v38 = vld [vmem:[#allocation2 + $0x33] ss:$2 sm:$0xf] }
 0x32e   : > { %v8359_v11 = vmax.f32 %v8356_v49, %v8358_v60  ;;  %v8374_v47 = vmax.f32 %v8371_v26, %v8373_v55  ;;  %8309 = vst [vmem:[#allocation2 + $0x4d] sm:$0x3] %v8282_v37  ;;  %8310 = vst [vmem:[#allocation2 + $0x4c] sm:$0xe0] %v8282_v37  ;;  %v13529_v6 = vld [vmem:[%s17089_s7 + $0xb0] sm:$0xff]   ;;  %v17143_v53 = vld [vmem:[#allocation5_spill] sm:$0xff] }
 0x32f   : > { %v8364_v56 = vld [vmem:[#allocation2 + $0x2a] ss:$2 sm:$0xf]  ;;  %v8379_v33 = vld [vmem:[#allocation2 + $0x34] ss:$2 sm:$0xf] }
 0x330   : > { %v8362_v50 = vmax.f32 %v8359_v11, %v8361_v0  ;;  %v8377_v22 = vmax.f32 %v8374_v47, %v8376_v38  ;;  %v8394_v45 = vld [vmem:[#allocation2 + $0x3e] ss:$2 sm:$0xf]  ;;  %v8397_v4 = vld [vmem:[#allocation2 + $0x46] ss:$2 sm:$0xf] }
 0x331   : > { %v8382_v5 = vld [vmem:[#allocation2 + $0x3c] ss:$2 sm:$0xf]  ;;  %v8395_v59 = vmax.f32 %v8393_v31, %v8394_v45  ;;  %v8385_v28 = vld [vmem:[#allocation2 + $0x3d] ss:$2 sm:$0xf] }
 0x332   : > { %v8380_v2 = vmax.f32 %v8377_v22, %v8379_v33  ;;  %v8365_v48 = vmax.f32 %v8362_v50, %v8364_v56  ;;  %v8388_v9 = vld [vmem:[#allocation2 + $0x3e] ss:$2 sm:$0xf]  ;;  %v8436_v35 = vld [vmem:[#allocation3 + $0x1] sm:$0xff] }
 0x333   : > { %v8398_v41 = vmax.f32 %v8395_v59, %v8397_v4  ;;  %v8415_v12 = vld [vmem:[#allocation3] sm:$0xff]  ;;  %v13530_v14 = vld [vmem:[%s17089_s7 + $0xf0] sm:$0xff]   ;;  %v13533_v10 = vld [vmem:[%s17089_s7 + $0xa0] sm:$0xff]  }
 0x334   : > { %v8383_v30 = vmax.f32 %v8380_v2, %v8382_v5  ;;  %8366 = vst [vmem:[#allocation3 + $0xd] sm:$0xf] %v8365_v48  ;;  %v8650_v23 = vld [vmem:[#allocation3 + $0x2] sm:$0xff]  ;;  %v13534_v18 = vld [vmem:[%s17089_s7 + $0xe0] sm:$0xff]   ;;  %v13535_v61 = vld [vmem:[%s17089_s7 + $0x98] sm:$0xff]  }
 0x335   : > { %v8400_v16 = vld [vmem:[#allocation2 + $0x47] ss:$2 sm:$0xf]  ;;  %v8403_v25 = vld [vmem:[#allocation2 + $0x48] ss:$2 sm:$0xf] }
 0x336   : > { %v8386_v20 = vmax.f32 %v8383_v30, %v8385_v28  ;;  %v8401_v3 = vmax.f32 %v8398_v41, %v8400_v16  ;;  %v8406_v54 = vld [vmem:[#allocation2 + $0x50] ss:$2 sm:$0xf]  ;;  %v8409_v58 = vld [vmem:[#allocation2 + $0x51] ss:$2 sm:$0xf] }
 0x337   : > { %v8412_v52 = vld [vmem:[#allocation2 + $0x52] ss:$2 sm:$0xf]  ;;  %v17144_v36 = vld [vmem:[#allocation7_spill] sm:$0xff]  ;;  %v13541_v26 = vld [vmem:[%s17089_s7 + $0x80] sm:$0xff]  }
 0x338   : > { %v8389_v15 = vmax.f32 %v8386_v20, %v8388_v9  ;;  %v8404_v46 = vmax.f32 %v8401_v3, %v8403_v25  ;;  %v13531_v7 = vld [vmem:[%s17089_s7 + $0xa8] sm:$0xff]   ;;  %v13536_v60 = vld [vmem:[%s17089_s7 + $0xd8] sm:$0xff]   ;;  %v13537_v42 = vld [vmem:[%s17089_s7 + $0x90] sm:$0xff]  }
 0x339   : > { %v13532_v17 = vld [vmem:[%s17089_s7 + $0xe8] sm:$0xff]   ;;  %v13538_v49 = vld [vmem:[%s17089_s7 + $0xd0] sm:$0xff]   ;;  %v13542_v55 = vld [vmem:[%s17089_s7 + $0xc0] sm:$0xff]  }
 0x33a   : > { %8390 = vst [vmem:[#allocation3 + $0x13] sm:$0xf] %v8389_v15  ;;  %v8407_v24 = vmax.f32 %v8404_v46, %v8406_v54  ;;  %v13539_v63 = vld [vmem:[%s17089_s7 + $0x88] sm:$0xff]   ;;  %v13543_v37 = vld [vmem:[%s17089_s7 + $0x138] sm:$0xff]   ;;  %v13545_v45 = vld [vmem:[%s17089_s7 + $0x130] sm:$0xff]  }
 0x33b   : > { %v8437_v62 = vld [vmem:[#allocation3 + $0x9] sm:$0xff]  ;;  %v13540_v57 = vld [vmem:[%s17089_s7 + $0xc8] sm:$0xff]   ;;  %v13549_v59 = vld [vmem:[%s17089_s7 + $0x120] sm:$0xff]  }
 0x33c   : > { %v16659_v27 = vld [vmem:[#allocation3 + $0x8] sm:$0xff]  ;;  %v8439_v44 = vpack.c.bf16 %v8437_v62, %v8436_v35  ;;  %v8410_v8 = vmax.f32 %v8407_v24, %v8409_v58  ;;  %v13544_v11 = vld [vmem:[%s17089_s7 + $0x178] sm:$0xff]   ;;  %v13547_v48 = vld [vmem:[%s17089_s7 + $0x128] sm:$0xff]  }
 0x33d   : > { %v8418_v29 = vpack.c.bf16 %v16659_v27, %v8415_v12  ;;  %v8651_v19 = vld [vmem:[#allocation3 + $0xa] sm:$0xff]  ;;  %v13548_v5 = vld [vmem:[%s17089_s7 + $0x168] sm:$0xff]   ;;  %v13550_v30 = vld [vmem:[%s17089_s7 + $0x160] sm:$0xff]  }
 0x33e   : > { %12952 = vmatprep.mubr.bf16.mxu1 %v8439_v44  ;;  %v8413_v51 = vmax.f32 %v8410_v8, %v8412_v52  ;;  %v8771_v40 = vld [vmem:[#allocation3 + $0x6] sm:$0xff]  ;;  %v8653_v21 = vpack.c.bf16 %v8651_v19, %v8650_v23  ;;  %v13551_v28 = vld [vmem:[%s17089_s7 + $0x118] sm:$0xff]   ;;  %v13557_v15 = vld [vmem:[%s17089_s7 + $0x100] sm:$0xff]  }
 0x33f   : > { %12972 = vmatprep.mubr.bf16.mxu0 %v8418_v29  ;;  %v8892_v56 = vld [vmem:[#allocation3 + $0x7] sm:$0xff]  ;;  %v13552_v41 = vld [vmem:[%s17089_s7 + $0x158] sm:$0xff]   ;;  %v13558_v25 = vld [vmem:[%s17089_s7 + $0x140] sm:$0xff]  }
 0x340   : > { %8414 = vst [vmem:[#allocation3 + $0x19] sm:$0xf] %v8413_v51  ;;  %v13546_v2 = vld [vmem:[%s17089_s7 + $0x170] sm:$0xff]   ;;  %v13555_v9 = vld [vmem:[%s17089_s7 + $0x108] sm:$0xff]   ;;  %v13559_v46 = vld [vmem:[%s17089_s7 + $0x1b8] sm:$0xff]  }
 0x341   : > { %v8438_v43 = vld [vmem:[#allocation3 + $0x11] sm:$0x3f]  ;;  %v13553_v20 = vld [vmem:[%s17089_s7 + $0x110] sm:$0xff]   ;;  %v13556_v3 = vld [vmem:[%s17089_s7 + $0x148] sm:$0xff]  }
 0x342   : > { %v8417_v39 = vld [vmem:[#allocation3 + $0x10] sm:$0x3f]  ;;  %v8440_v32 = vpack.c.bf16 %v8438_v43, %v8438_v43  ;;  %v13554_v16 = vld [vmem:[%s17089_s7 + $0x150] sm:$0xff]   ;;  %v13564_v43 = vld [vmem:[%s17089_s7 + $0x1e8] sm:$0xff]  }
 0x343   : > { %v16662_v13 = vld [vmem:[#allocation3 + $0xe] sm:$0xff]  ;;  %v8419_v34 = vpack.c.bf16 %v8417_v39, %v8417_v39  ;;  %v13565_v39 = vld [vmem:[%s17089_s7 + $0x1a0] sm:$0xff]  }
 0x344   : > { %v8774_v1 = vpack.c.bf16 %v16662_v13, %v8771_v40  ;;  %12953 = vmatmul.mubr.bf16.vlgmr.msra.gmra.mxu1 %v8440_v32  ;;  %v8652_v47 = vld [vmem:[#allocation3 + $0x12] sm:$0x3f]  ;;  %v13561_v8 = vld [vmem:[%s17089_s7 + $0x1b0] sm:$0xff]   ;;  %v13563_v40 = vld [vmem:[%s17089_s7 + $0x1a8] sm:$0xff]  }
 0x345   : > { %12973 = vmatmul.mubr.bf16.vlgmr.msra.gmra.mxu0 %v8419_v34  ;;  %12977 = vmatpush3.bf16.msra.mxu1 %v17143_v53  ;;  %v8893_v31 = vld [vmem:[#allocation3 + $0xf] sm:$0xff]  ;;  %v8654_v50 = vpack.c.bf16 %v8652_v47, %v8652_v47  ;;  %v13566_v32 = vld [vmem:[%s17089_s7 + $0x1e0] sm:$0xff]  }
 0x346   : > { %12997 = vmatpush3.bf16.msra.mxu0 %v17144_v36  ;;  %12992 = vmatprep.mubr.bf16.mxu1 %v8653_v21  ;;  %v9014_v38 = vld [vmem:[#allocation3 + $0x10] sm:$0xff]  ;;  %v8895_v33 = vpack.c.bf16 %v8893_v31, %v8892_v56  ;;  %v13562_v19 = vld [vmem:[%s17089_s7 + $0x1f0] sm:$0xff]   ;;  %v13572_v21 = vld [vmem:[%s17089_s7 + $0x1c8] sm:$0xff]  }
 0x347   : > { %13012 = vmatprep.mubr.bf16.mxu0 %v8774_v1  ;;  %12978 = vmatprep.subr.bf16.mxu1 %v13529_v6  ;;  %v8773_v0 = vld [vmem:[#allocation3 + $0x16] sm:$0x3f]  ;;  %v9016_v4 = vpack.c.bf16 %v9014_v38, %v16659_v27  ;;  %v9134_v44 = vld [vmem:[#allocation3 + $0xc] sm:$0xff] }
 0x348   : > { %12998 = vmatprep.subr.bf16.mxu0 %v13530_v14  ;;  %v8775_v22 = vpack.c.bf16 %v8773_v0, %v8773_v0  ;;  %v8894_v54 = vld [vmem:[#allocation3 + $0x17] sm:$0x3f]  ;;  %v9255_v29 = vld [vmem:[#allocation3 + $0xd] sm:$0xff] }
 0x349   : > { %12979 = vmatpush3.bf16.msra.mxu1 %v13529_v6  ;;  %v13560_v35 = vld [vmem:[%s17089_s7 + $0x1f8] sm:$0xff]   ;;  %v9015_v24 = vld [vmem:[#allocation3 + $0x18] sm:$0x3f]  ;;  %v8896_v27 = vpack.c.bf16 %v8894_v54, %v8894_v54  ;;  %v13569_v23 = vld [vmem:[%s17089_s7 + $0x190] sm:$0xff]  }
 0x34a   : > { %12999 = vmatpush3.bf16.msra.mxu0 %v13530_v14  ;;  %12980 = vmatprep.subr.bf16.mxu1 %v13531_v7  ;;  %v9135_v62 = vld [vmem:[#allocation3 + $0x14] sm:$0xff]  ;;  %v9017_v58 = vpack.c.bf16 %v9015_v24, %v9015_v24  ;;  %v13570_v6 = vld [vmem:[%s17089_s7 + $0x1d0] sm:$0xff]   ;;  %v13571_v14 = vld [vmem:[%s17089_s7 + $0x188] sm:$0xff]  }
 0x34b   : > { %13000 = vmatprep.subr.bf16.mxu0 %v13532_v17  ;;  %v9256_v12 = vld [vmem:[#allocation3 + $0x15] sm:$0xff]  ;;  %v9137_v52 = vpack.c.bf16 %v9135_v62, %v9134_v44  ;;  %v13585_v38 = vld [vmem:[%s17092_s10 + $0x70] sm:$0xff]   ;;  %v13595_v54 = vld [vmem:[%s17092_s10 + $0x48] sm:$0xff]  }
 0x34c   : > { %v9258_v51 = vpack.c.bf16 %v9256_v12, %v9255_v29  ;;  %v13567_v34 = vld [vmem:[%s17089_s7 + $0x198] sm:$0xff]   ;;  %v13573_v53 = vld [vmem:[%s17089_s7 + $0x180] sm:$0xff]  }
 0x34d   : > { %12981 = vmatpush3.bf16.msra.mxu1 %v13531_v7  ;;  %v13568_v1 = vld [vmem:[%s17089_s7 + $0x1d8] sm:$0xff]   ;;  %v13574_v36 = vld [vmem:[%s17089_s7 + $0x1c0] sm:$0xff]  }
 0x34e   : > { %13001 = vmatpush3.bf16.msra.mxu0 %v13532_v17  ;;  %12982 = vmatprep.subr.bf16.mxu1 %v13533_v10  ;;  %v13575_v7 = vld [vmem:[%s17089_s7 + $0x238] sm:$0xff]   ;;  %v9136_v17 = vld [vmem:[#allocation3 + $0x1c] sm:$0x3f] }
 0x34f   : > { %13002 = vmatprep.subr.bf16.mxu0 %v13534_v18  ;;  %v13583_v0 = vld [vmem:[%s17092_s10 + $0x78] sm:$0xff]   ;;  %v13597_v24 = vld [vmem:[%s17092_s10 + $0x40] sm:$0xff]  }
 0x350   : > { %v13584_v31 = vld [vmem:[%s17092_s10 + $0x38] sm:$0xff]   ;;  %v13598_v62 = vld [vmem:[%s17092_s10] sm:$0xff]  }
 0x351   : > { %12983 = vmatpush3.bf16.msra.mxu1 %v13533_v10  ;;  %v9257_v10 = vld [vmem:[#allocation3 + $0x1d] sm:$0x3f]  ;;  %v16882_v12 = vld [vmem:[%s17092_s10 + $0xb8] sm:$0xff]  }
 0x352   : > { %13003 = vmatpush3.bf16.msra.mxu0 %v13534_v18  ;;  %12984 = vmatprep.subr.bf16.mxu1 %v13535_v61  ;;  %v9377_v18 = vld [vmem:[#allocation3 + $0x16] sm:$0xff] }
 0x353   : > { %13004 = vmatprep.subr.bf16.mxu0 %v13536_v60 }
 0x355   : > { %12985 = vmatpush3.bf16.msra.mxu1 %v13535_v61  ;;  %v9138_v61 = vpack.c.bf16 %v9136_v17, %v9136_v17 }
 0x356   : > { %13005 = vmatpush3.bf16.msra.mxu0 %v13536_v60  ;;  %12986 = vmatprep.subr.bf16.mxu1 %v13537_v42  ;;  %v9259_v60 = vpack.c.bf16 %v9257_v10, %v9257_v10 }
 0x357   : > { %13006 = vmatprep.subr.bf16.mxu0 %v13538_v49 }
 0x359   : > { %12987 = vmatpush3.bf16.msra.mxu1 %v13537_v42  ;;  %v13576_v42 = vld [vmem:[%s17089_s7 + $0x230] sm:$0xff]  }
 0x35a   : > { %13007 = vmatpush3.bf16.msra.mxu0 %v13538_v49  ;;  %12988 = vmatprep.subr.bf16.mxu1 %v13539_v63  ;;  %v9379_v49 = vpack.c.bf16 %v9377_v18, %v16662_v13  ;;  %v13579_v13 = vld [vmem:[%s17089_s7 + $0x218] sm:$0xff]  }
 0x35b   : > { %13008 = vmatprep.subr.bf16.mxu0 %v13540_v57 }
 0x35d   : > { %12989 = vmatpush3.bf16.msra.mxu1 %v13539_v63  ;;  %v13577_v63 = vld [vmem:[%s17089_s7 + $0x228] sm:$0xff]  }
 0x35e   : > { %13009 = vmatpush3.bf16.msra.mxu0 %v13540_v57  ;;  %12990 = vmatprep.subr.bf16.mxu1 %v13541_v26  ;;  %v13578_v57 = vld [vmem:[%s17089_s7 + $0x220] sm:$0xff]  }
 0x35f   : > { %13010 = vmatprep.subr.bf16.mxu0 %v13542_v55 }
 0x361   : > { %12991 = vmatpush3.bf16.msra.mxu1 %v13541_v26  ;;  %v13580_v26 = vld [vmem:[%s17089_s7 + $0x210] sm:$0xff]  }
 0x362   : > { %13011 = vmatpush3.bf16.msra.mxu0 %v13542_v55  ;;  %13016 = vmatprep.subr.bf16.mxu1 %v13543_v37  ;;  %v13581_v55 = vld [vmem:[%s17089_s7 + $0x208] sm:$0xff]  }
 0x363   : > { %13036 = vmatprep.subr.bf16.mxu0 %v13544_v11 }
 0x364   : > { %12993 = vmatmul.mubr.bf16.vlgmr.msra.gmra.mxu1 %v8654_v50  ;;  %v13586_v50 = vld [vmem:[%s17092_s10 + $0x30] sm:$0xff]  }
 0x365   : > { %13013 = vmatmul.mubr.bf16.vlgmr.msra.gmra.mxu0 %v8775_v22  ;;  %13017 = vmatpush3.bf16.msra.mxu1 %v13543_v37  ;;  %v13582_v37 = vld [vmem:[%s17089_s7 + $0x200] sm:$0xff]  }
 0x366   : > { %13032 = vmatprep.mubr.bf16.mxu1 %v8895_v33  ;;  %13037 = vmatpush3.bf16.msra.mxu0 %v13544_v11  ;;  %v9378_v11 = vld [vmem:[#allocation3 + $0x1e] sm:$0x3f] }
 0x367   : > { %13052 = vmatprep.mubr.bf16.mxu0 %v9016_v4  ;;  %13018 = vmatprep.subr.bf16.mxu1 %v13545_v45  ;;  %v9380_v47 = vpack.c.bf16 %v9378_v11, %v9378_v11 }
 0x368   : > { %13038 = vmatprep.subr.bf16.mxu0 %v13546_v2 }
 0x369   : > { %13019 = vmatpush3.bf16.msra.mxu1 %v13545_v45 }
 0x36a   : > { %13039 = vmatpush3.bf16.msra.mxu0 %v13546_v2  ;;  %13020 = vmatprep.subr.bf16.mxu1 %v13547_v48 }
 0x36b   : > { %13040 = vmatprep.subr.bf16.mxu0 %v13548_v5 }
 0x36d   : > { %13021 = vmatpush3.bf16.msra.mxu1 %v13547_v48  ;;  %v13587_v48 = vld [vmem:[%s17092_s10 + $0x68] sm:$0xff]  }
 0x36e   : > { %13041 = vmatpush3.bf16.msra.mxu0 %v13548_v5  ;;  %13022 = vmatprep.subr.bf16.mxu1 %v13549_v59  ;;  %v13588_v5 = vld [vmem:[%s17092_s10 + $0x28] sm:$0xff]  }
 0x36f   : > { %13042 = vmatprep.subr.bf16.mxu0 %v13550_v30 }
 0x371   : > { %13023 = vmatpush3.bf16.msra.mxu1 %v13549_v59 }
 0x372   : > { %13043 = vmatpush3.bf16.msra.mxu0 %v13550_v30  ;;  %13024 = vmatprep.subr.bf16.mxu1 %v13551_v28 }
 0x373   : > { %13044 = vmatprep.subr.bf16.mxu0 %v13552_v41 }
 0x375   : > { %13025 = vmatpush3.bf16.msra.mxu1 %v13551_v28 }
 0x376   : > { %13045 = vmatpush3.bf16.msra.mxu0 %v13552_v41  ;;  %13026 = vmatprep.subr.bf16.mxu1 %v13553_v20 }
 0x377   : > { %13046 = vmatprep.subr.bf16.mxu0 %v13554_v16 }
 0x379   : > { %13027 = vmatpush3.bf16.msra.mxu1 %v13553_v20 }
 0x37a   : > { %13047 = vmatpush3.bf16.msra.mxu0 %v13554_v16  ;;  %13028 = vmatprep.subr.bf16.mxu1 %v13555_v9  ;;  %v13589_v16 = vld [vmem:[%s17092_s10 + $0x60] sm:$0xff]  }
 0x37b   : > { %13048 = vmatprep.subr.bf16.mxu0 %v13556_v3 }
 0x37d   : > { %13029 = vmatpush3.bf16.msra.mxu1 %v13555_v9  ;;  %v13590_v9 = vld [vmem:[%s17092_s10 + $0x20] sm:$0xff]  }
 0x37e   : > { %13049 = vmatpush3.bf16.msra.mxu0 %v13556_v3  ;;  %13030 = vmatprep.subr.bf16.mxu1 %v13557_v15  ;;  %v13591_v3 = vld [vmem:[%s17092_s10 + $0x58] sm:$0xff]  }
 0x37f   : > { %13050 = vmatprep.subr.bf16.mxu0 %v13558_v25 }
 0x381   : > { %13031 = vmatpush3.bf16.msra.mxu1 %v13557_v15  ;;  %v13592_v15 = vld [vmem:[%s17092_s10 + $0x18] sm:$0xff]  }
 0x382   : > { %13051 = vmatpush3.bf16.msra.mxu0 %v13558_v25  ;;  %13056 = vmatprep.subr.bf16.mxu1 %v13559_v46  ;;  %v13593_v25 = vld [vmem:[%s17092_s10 + $0x50] sm:$0xff]  }
 0x383   : > { %13076 = vmatprep.subr.bf16.mxu0 %v13560_v35 }
 0x384   : > { %13033 = vmatmul.mubr.bf16.vlgmr.msra.gmra.mxu1 %v8896_v27  ;;  %v16887_v27 = vld [vmem:[%s17092_s10 + $0xf8] sm:$0xff]  }
 0x385   : > { %13053 = vmatmul.mubr.bf16.vlgmr.msra.gmra.mxu0 %v9017_v58  ;;  %13057 = vmatpush3.bf16.msra.mxu1 %v13559_v46  ;;  %v13594_v46 = vld [vmem:[%s17092_s10 + $0x10] sm:$0xff]  }
 0x386   : > { %13072 = vmatprep.mubr.bf16.mxu1 %v9137_v52  ;;  %13092 = vmatprep.mubr.bf16.mxu0 %v9258_v51 }
 0x387   : > { %13077 = vmatpush3.bf16.msra.mxu0 %v13560_v35  ;;  %13058 = vmatprep.subr.bf16.mxu1 %v13561_v8  ;;  %v13596_v35 = vld [vmem:[%s17092_s10 + $0x8] sm:$0xff]  }
 0x388   : > { %13078 = vmatprep.subr.bf16.mxu0 %v13562_v19 }
 0x389   : > { %13059 = vmatpush3.bf16.msra.mxu1 %v13561_v8 }
 0x38a   : > { %13060 = vmatprep.subr.bf16.mxu1 %v13563_v40 }
 0x38b   : > { %13079 = vmatpush3.bf16.msra.mxu0 %v13562_v19 }
 0x38c   : > { %13080 = vmatprep.subr.bf16.mxu0 %v13564_v43 }
 0x38d   : > { %13061 = vmatpush3.bf16.msra.mxu1 %v13563_v40 }
 0x38e   : > { %13062 = vmatprep.subr.bf16.mxu1 %v13565_v39 }
 0x38f   : > { %13081 = vmatpush3.bf16.msra.mxu0 %v13564_v43 }
 0x390   : > { %13082 = vmatprep.subr.bf16.mxu0 %v13566_v32 }
 0x391   : > { %13063 = vmatpush3.bf16.msra.mxu1 %v13565_v39 }
 0x392   : > { %13064 = vmatprep.subr.bf16.mxu1 %v13567_v34 }
 0x393   : > { %13083 = vmatpush3.bf16.msra.mxu0 %v13566_v32 }
 0x394   : > { %13084 = vmatprep.subr.bf16.mxu0 %v13568_v1 }
 0x395   : > { %13065 = vmatpush3.bf16.msra.mxu1 %v13567_v34 }
 0x396   : > { %13066 = vmatprep.subr.bf16.mxu1 %v13569_v23 }
 0x397   : > { %13085 = vmatpush3.bf16.msra.mxu0 %v13568_v1 }
 0x398   : > { %13086 = vmatprep.subr.bf16.mxu0 %v13570_v6 }
 0x399   : > { %13067 = vmatpush3.bf16.msra.mxu1 %v13569_v23 }
 0x39a   : > { %13068 = vmatprep.subr.bf16.mxu1 %v13571_v14 }
 0x39b   : > { %13087 = vmatpush3.bf16.msra.mxu0 %v13570_v6 }
 0x39c   : > { %13088 = vmatprep.subr.bf16.mxu0 %v13572_v21 }
 0x39d   : > { %13069 = vmatpush3.bf16.msra.mxu1 %v13571_v14 }
 0x39e   : > { %13070 = vmatprep.subr.bf16.mxu1 %v13573_v53 }
 0x39f   : > { %13089 = vmatpush3.bf16.msra.mxu0 %v13572_v21 }
 0x3a0   : > { %13090 = vmatprep.subr.bf16.mxu0 %v13574_v36 }
 0x3a1   : > { %13071 = vmatpush3.bf16.msra.mxu1 %v13573_v53 }
 0x3a2   : > { %13096 = vmatprep.subr.bf16.mxu1 %v13575_v7 }
 0x3a3   : > { %13091 = vmatpush3.bf16.msra.mxu0 %v13574_v36 }
 0x3a4   : > { %13073 = vmatmul.mubr.bf16.vlgmr.msra.gmra.mxu1 %v9138_v61  ;;  %13116 = vmatprep.subr.bf16.mxu0 %v13583_v0 }
 0x3a5   : > { %13097 = vmatpush3.bf16.msra.mxu1 %v13575_v7  ;;  %13112 = vmatprep.mubr.bf16.mxu1 %v9379_v49 }
 0x3a6   : > { %13093 = vmatmul.mubr.bf16.vlgmr.msra.gmra.mxu0 %v9259_v60  ;;  %13098 = vmatprep.subr.bf16.mxu1 %v13576_v42 }
 0x3a7   : > { %13117 = vmatpush3.bf16.msra.mxu0 %v13583_v0 }
 0x3a8   : > { %13118 = vmatprep.subr.bf16.mxu0 %v13585_v38 }
 0x3a9   : > { %13099 = vmatpush3.bf16.msra.mxu1 %v13576_v42 }
 0x3aa   : > { %13100 = vmatprep.subr.bf16.mxu1 %v13577_v63 }
 0x3ab   : > { %13119 = vmatpush3.bf16.msra.mxu0 %v13585_v38 }
 0x3ac   : > { %13120 = vmatprep.subr.bf16.mxu0 %v13587_v48 }
 0x3ad   : > { %13101 = vmatpush3.bf16.msra.mxu1 %v13577_v63 }
 0x3ae   : > { %13102 = vmatprep.subr.bf16.mxu1 %v13578_v57 }
 0x3af   : > { %13121 = vmatpush3.bf16.msra.mxu0 %v13587_v48 }
 0x3b0   : > { %13122 = vmatprep.subr.bf16.mxu0 %v13589_v16 }
 0x3b1   : > { %13103 = vmatpush3.bf16.msra.mxu1 %v13578_v57 }
 0x3b2   : > { %13104 = vmatprep.subr.bf16.mxu1 %v13579_v13 }
 0x3b3   : > { %13123 = vmatpush3.bf16.msra.mxu0 %v13589_v16 }
 0x3b4   : > { %13124 = vmatprep.subr.bf16.mxu0 %v13591_v3 }
 0x3b5   : > { %13105 = vmatpush3.bf16.msra.mxu1 %v13579_v13 }
 0x3b6   : > { %13106 = vmatprep.subr.bf16.mxu1 %v13580_v26 }
 0x3b7   : > { %13125 = vmatpush3.bf16.msra.mxu0 %v13591_v3 }
 0x3b8   : > { %13126 = vmatprep.subr.bf16.mxu0 %v13593_v25 }
 0x3b9   : > { %13107 = vmatpush3.bf16.msra.mxu1 %v13580_v26 }
 0x3ba   : > { %13108 = vmatprep.subr.bf16.mxu1 %v13581_v55 }
 0x3bb   : > { %13127 = vmatpush3.bf16.msra.mxu0 %v13593_v25 }
 0x3bc   : > { %13128 = vmatprep.subr.bf16.mxu0 %v13595_v54 }
 0x3bd   : > { %13109 = vmatpush3.bf16.msra.mxu1 %v13581_v55 }
 0x3be   : > { %13110 = vmatprep.subr.bf16.mxu1 %v13582_v37 }
 0x3bf   : > { %13129 = vmatpush3.bf16.msra.mxu0 %v13595_v54 }
 0x3c0   : > { %13130 = vmatprep.subr.bf16.mxu0 %v13597_v24 }
 0x3c1   : > { %13111 = vmatpush3.bf16.msra.mxu1 %v13582_v37 }
 0x3c2   : > { %13136 = vmatprep.subr.bf16.mxu1 %v13584_v31 }
 0x3c3   : > { %13131 = vmatpush3.bf16.msra.mxu0 %v13597_v24 }
 0x3c4   : > { %13113 = vmatmul.mubr.bf16.vlgmr.msra.gmra.mxu1 %v9380_v47  ;;  %13156 = vmatprep.subr.bf16.mxu0 %v16882_v12 }
 0x3c5   : > { %13137 = vmatpush3.bf16.msra.mxu1 %v13584_v31 }
 0x3c6   : > { %13138 = vmatprep.subr.bf16.mxu1 %v13586_v50 }
 0x3c9   : > { %13139 = vmatpush3.bf16.msra.mxu1 %v13586_v50 }
 0x3ca   : > { %13140 = vmatprep.subr.bf16.mxu1 %v13588_v5 }
 0x3cd   : > { %13141 = vmatpush3.bf16.msra.mxu1 %v13588_v5 }
 0x3ce   : > { %13142 = vmatprep.subr.bf16.mxu1 %v13590_v9 }
 0x3d1   : > { %13143 = vmatpush3.bf16.msra.mxu1 %v13590_v9 }
 0x3d2   : > { %13144 = vmatprep.subr.bf16.mxu1 %v13592_v15 }
 0x3d5   : > { %13145 = vmatpush3.bf16.msra.mxu1 %v13592_v15 }
 0x3d6   : > { %13146 = vmatprep.subr.bf16.mxu1 %v13594_v46 }
 0x3d9   : > { %13147 = vmatpush3.bf16.msra.mxu1 %v13594_v46 }
 0x3da   : > { %13148 = vmatprep.subr.bf16.mxu1 %v13596_v35 }
 0x3dd   : > { %13149 = vmatpush3.bf16.msra.mxu1 %v13596_v35 }
 0x3de   : > { %13150 = vmatprep.subr.bf16.mxu1 %v13598_v62 }
 0x3e1   : > { %13151 = vmatpush3.bf16.msra.mxu1 %v13598_v62 }
 0x3e2   : > { %13176 = vmatprep.subr.bf16.mxu1 %v16887_v27 }
 0x404   : > { %v12954_v22 = vpop.f32.mrf.mxu1 }
 0x405   : > { %v12974_v56 = vpop.f32.mrf.mxu0 }
 0x406   : > { %v8645_v33 = vadd.f32 %v12974_v56, %v12954_v22  ;;  %v8540_v45 = vpop.f32.mrf.mxu1  ;;  %v11510_v22 = vld [vmem:[%s17090_s8] ss:$0 sm:$0xff] }
 0x407   : > { %v8636_v2 = vpop.f32.mrf.mxu0 }
 0x408   : > { %v8637_v4 = vadd.f32 %v8636_v2, %v8540_v45  ;;  %v12955_v59 = vpop.f32.mrf.mxu1 }
 0x409   : > { %v12975_v30 = vpop.f32.mrf.mxu0 }
 0x40a   : > { %v8543_v28 = vpop.f32.mrf.mxu1 }
 0x40b   : > { %v8639_v41 = vpop.f32.mrf.mxu0 }
 0x40c   : > { %v8640_v20 = vadd.f32 %v8639_v41, %v8543_v28 }
 0x424   : > { %v12994_v58 = vpop.f32.mrf.mxu1 }
 0x425   : > { %v13014_v44 = vpop.f32.mrf.mxu0  ;;  %v8770_v29 = vadd.f32 %v12994_v58, %v8645_v33 }
 0x426   : > { %v8754_v8 = vpop.f32.mrf.mxu1 }
 0x427   : > { %v8875_v52 = vpop.f32.mrf.mxu0  ;;  %v8891_v51 = vadd.f32 %v13014_v44, %v8770_v29  ;;  %v8768_v19 = vadd.f32 %v8754_v8, %v8637_v4  ;;  %v11511_v4 = vld [vmem:[%s17091_s9] ss:$0 sm:$0xff] }
 0x428   : > { %v12995_v40 = vpop.f32.mrf.mxu1 }
 0x429   : > { %v13015_v43 = vpop.f32.mrf.mxu0  ;;  %v8889_v39 = vadd.f32 %v8875_v52, %v8768_v19 }
 0x42a   : > { %v8757_v32 = vpop.f32.mrf.mxu1 }
 0x42b   : > { %v8878_v34 = vpop.f32.mrf.mxu0  ;;  %v8769_v49 = vadd.f32 %v8757_v32, %v8640_v20  ;;  %v13601_v32 = vld [vmem:[%s17092_s10 + $0xb0] sm:$0xff]  }
 0x42d   : > { %v8890_v13 = vadd.f32 %v8878_v34, %v8769_v49  ;;  %v13615_v49 = vld [vmem:[%s17092_s10 + $0x138] sm:$0xff]  }
 0x444   : > { %v13034_v1 = vpop.f32.mrf.mxu1 }
 0x445   : > { %v13054_v23 = vpop.f32.mrf.mxu0  ;;  %v9012_v63 = vadd.f32 %v13034_v1, %v8891_v51 }
 0x446   : > { %v8996_v6 = vpop.f32.mrf.mxu1 }
 0x447   : > { %v9117_v14 = vpop.f32.mrf.mxu0  ;;  %v9010_v57 = vadd.f32 %v8996_v6, %v8889_v39  ;;  %v9133_v26 = vadd.f32 %v13054_v23, %v9012_v63  ;;  %v13602_v23 = vld [vmem:[%s17092_s10 + $0xf0] sm:$0xff]   ;;  %v13616_v63 = vld [vmem:[%s17092_s10 + $0x178] sm:$0xff]  }
 0x448   : > { %v13035_v21 = vpop.f32.mrf.mxu1 }
 0x449   : > { %v13055_v53 = vpop.f32.mrf.mxu0  ;;  %v9131_v55 = vadd.f32 %v9117_v14, %v9010_v57  ;;  %v13603_v21 = vld [vmem:[%s17092_s10 + $0xa8] sm:$0xff]  }
 0x44a   : > { %v8999_v36 = vpop.f32.mrf.mxu1  ;;  %v13604_v53 = vld [vmem:[%s17092_s10 + $0xe8] sm:$0xff]  }
 0x44b   : > { %v9120_v7 = vpop.f32.mrf.mxu0  ;;  %v9011_v37 = vadd.f32 %v8999_v36, %v8890_v13  ;;  %v13607_v36 = vld [vmem:[%s17092_s10 + $0x98] sm:$0xff]  }
 0x44d   : > { %v9132_v31 = vadd.f32 %v9120_v7, %v9011_v37  ;;  %v13608_v7 = vld [vmem:[%s17092_s10 + $0xd8] sm:$0xff]  }
 0x464   : > { %v13074_v17 = vpop.f32.mrf.mxu1 }
 0x465   : > { %v9254_v11 = vadd.f32 %v13074_v17, %v9133_v26  ;;  %v13609_v17 = vld [vmem:[%s17092_s10 + $0x90] sm:$0xff]  }
 0x466   : > { %v9238_v10 = vpop.f32.mrf.mxu1  ;;  %v13094_v18 = vpop.f32.mrf.mxu0 }
 0x467   : > { %v9252_v47 = vadd.f32 %v9238_v10, %v9131_v55  ;;  %v9375_v38 = vadd.f32 %v13094_v18, %v9254_v11  ;;  %v13610_v10 = vld [vmem:[%s17092_s10 + $0xd0] sm:$0xff]   ;;  %v13611_v18 = vld [vmem:[%s17092_s10 + $0x88] sm:$0xff]  }
 0x468   : > { %v13075_v61 = vpop.f32.mrf.mxu1  ;;  %v9359_v60 = vpop.f32.mrf.mxu0 }
 0x469   : > { %v9373_v56 = vadd.f32 %v9359_v60, %v9252_v47  ;;  %v13612_v61 = vld [vmem:[%s17092_s10 + $0xc8] sm:$0xff]   ;;  %v13613_v60 = vld [vmem:[%s17092_s10 + $0x80] sm:$0xff]  }
 0x46a   : > { %v13095_v42 = vpop.f32.mrf.mxu0  ;;  %v9241_v0 = vpop.f32.mrf.mxu1 }
 0x46b   : > { %v9253_v33 = vadd.f32 %v9241_v0, %v9132_v31  ;;  %v13614_v42 = vld [vmem:[%s17092_s10 + $0xc0] sm:$0xff]   ;;  %v13617_v31 = vld [vmem:[%s17092_s10 + $0x130] sm:$0xff]  }
 0x46c   : > { %v9362_v2 = vpop.f32.mrf.mxu0 }
 0x46d   : > { %v9374_v28 = vadd.f32 %v9362_v2, %v9253_v33  ;;  %v13621_v33 = vld [vmem:[%s17092_s10 + $0x120] sm:$0xff]   ;;  %v13623_v2 = vld [vmem:[%s17092_s10 + $0x118] sm:$0xff]  }
 0x484   : > { %v13114_v50 = vpop.f32.mrf.mxu1 }
 0x485   : > { %v9496_v45 = vadd.f32 %v13114_v50, %v9375_v38  ;;  %v13618_v38 = vld [vmem:[%s17092_s10 + $0x170] sm:$0xff]  }
 0x486   : > { %v9480_v48 = vpop.f32.mrf.mxu1 }
 0x487   : > { %v9506_v5 = vmul.f32 %v11510_v22, %v9496_v45  ;;  %v9494_v59 = vadd.f32 %v9480_v48, %v9373_v56  ;;  %v13620_v56 = vld [vmem:[%s17092_s10 + $0x168] sm:$0xff]   ;;  %v13622_v45 = vld [vmem:[%s17092_s10 + $0x160] sm:$0xff]   ;;  %v13625_v48 = vld [vmem:[%s17092_s10 + $0x110] sm:$0xff]  }
 0x488   : > { %v13115_v30 = vpop.f32.mrf.mxu1 }
 0x489   : > { %v9516_v41 = vadd.f32 %v11511_v4, %v9506_v5  ;;  %v9504_v20 = vmul.f32 %v11510_v22, %v9494_v59  ;;  %v13626_v5 = vld [vmem:[%s17092_s10 + $0x150] sm:$0xff]   ;;  %v13627_v59 = vld [vmem:[%s17092_s10 + $0x108] sm:$0xff]  }
 0x48a   : > { %v9483_v16 = vpop.f32.mrf.mxu1  ;;  %v13628_v30 = vld [vmem:[%s17092_s10 + $0x148] sm:$0xff]  }
 0x48b   : > { %v9519_v9 = vmax.f32 %v9516_v41, 0.0  ;;  %v9514_v3 = vadd.f32 %v11511_v4, %v9504_v20  ;;  %v9495_v15 = vadd.f32 %v9483_v16, %v9374_v28  ;;  %v13629_v28 = vld [vmem:[%s17092_s10 + $0x100] sm:$0xff]   ;;  %v13631_v20 = vld [vmem:[%s17092_s10 + $0x1b8] sm:$0xff]  }
 0x48c   : > { %v13630_v41 = vld [vmem:[%s17092_s10 + $0x140] sm:$0xff]  }
 0x48d   : > { %9529 = vst [vmem:[#allocation4 + $0x17] sm:$0x3c] %v9519_v9  ;;  %v9517_v25 = vmax.f32 %v9514_v3, 0.0  ;;  %v9505_v46 = vmul.f32 %v11510_v22, %v9495_v15  ;;  %v13619_v22 = vld [vmem:[%s17092_s10 + $0x128] sm:$0xff]   ;;  %v13632_v9 = vld [vmem:[%s17092_s10 + $0x1f8] sm:$0xff]  }
 0x48f   : > { %9525 = vst [vmem:[#allocation4 + $0x7] sm:$0xcf] %v9517_v25   ;;  %v9515_v54 = vadd.f32 %v11511_v4, %v9505_v46  ;;  %v13624_v4 = vld [vmem:[%s17092_s10 + $0x158] sm:$0xff]  }
 0x491   : > { %v9518_v35 = vmax.f32 %v9515_v54, 0.0 }
 0x493   : > { %9527 = vst [vmem:[#allocation4 + $0xf] sm:$0xf3] %v9518_v35  }
 0x494   : > { %v10009_v16 = vld [vmem:[#allocation4 + $0x17] sm:$0x3f] }
 0x495   : > { %v10130_v3 = vld [vmem:[#allocation4 + $0x18] sm:$0x3f]  ;;  %v10011_v35 = vpack.c.bf16 %v10009_v16, %v10009_v16 }
 0x496   : > { %v9551_v24 = vld [vmem:[#allocation4 + $0x1] sm:$0xff] }
 0x497   : > { %v9530_v62 = vld [vmem:[#allocation4] sm:$0xff] }
 0x498   : > { %v9765_v34 = vld [vmem:[#allocation4 + $0x2] sm:$0xff] }
 0x499   : > { %v9886_v1 = vld [vmem:[#allocation4 + $0x6] sm:$0xff] }
 0x49a   : > { %v9552_v58 = vld [vmem:[#allocation4 + $0x9] sm:$0xff]  ;;  %v9553_v29 = vld [vmem:[#allocation4 + $0x11] sm:$0x3f] }
 0x49b   : > { %v16897_v44 = vld [vmem:[#allocation4 + $0x8] sm:$0xff]  ;;  %v9554_v8 = vpack.c.bf16 %v9552_v58, %v9551_v24  ;;  %v9555_v51 = vpack.c.bf16 %v9553_v29, %v9553_v29  ;;  %v9532_v19 = vld [vmem:[#allocation4 + $0x10] sm:$0x3f]  ;;  %v9888_v13 = vld [vmem:[#allocation4 + $0x16] sm:$0x3f]  ;;  %v10132_v24 = vpack.c.bf16 %v10130_v3, %v10130_v3 }
 0x49c   : > { %v9533_v52 = vpack.c.bf16 %v16897_v44, %v9530_v62  ;;  %v9766_v40 = vld [vmem:[#allocation4 + $0xa] sm:$0xff]  ;;  %v9534_v39 = vpack.c.bf16 %v9532_v19, %v9532_v19  ;;  %v9767_v57 = vld [vmem:[#allocation4 + $0x12] sm:$0x3f]  ;;  %v9890_v11 = vpack.c.bf16 %v9888_v13, %v9888_v13  ;;  %v13633_v62 = vld [vmem:[%s17092_s10 + $0x1b0] sm:$0xff]  }
 0x49d   : > { %v16900_v43 = vld [vmem:[#allocation4 + $0xe] sm:$0xff]  ;;  %13132 = vmatprep.mubr.bf16.mxu0 %v9554_v8  ;;  %v9768_v6 = vpack.c.bf16 %v9766_v40, %v9765_v34  ;;  %v9769_v37 = vpack.c.bf16 %v9767_v57, %v9767_v57  ;;  %v13634_v29 = vld [vmem:[%s17092_s10 + $0x1f0] sm:$0xff]   ;;  %v13635_v8 = vld [vmem:[%s17092_s10 + $0x1a8] sm:$0xff]  }
 0x49e   : > { %13152 = vmatprep.mubr.bf16.mxu1 %v9533_v52  ;;  %13133 = vmatmul.mubr.bf16.vlgmr.msra.gmra.mxu0 %v9555_v51  ;;  %v9889_v14 = vpack.c.bf16 %v16900_v43, %v9886_v1  ;;  %v10008_v26 = vld [vmem:[#allocation4 + $0xf] sm:$0xff]  ;;  %v10007_v47 = vld [vmem:[#allocation4 + $0x7] sm:$0xff]  ;;  %v13636_v52 = vld [vmem:[%s17092_s10 + $0x1e8] sm:$0xff]  }
 0x49f   : > { %13153 = vmatmul.mubr.bf16.vlgmr.msra.gmra.mxu1 %v9534_v39  ;;  %13157 = vmatpush3.bf16.msra.mxu0 %v16882_v12  ;;  %v13605_v12 = vld [vmem:[%s17092_s10 + $0xa0] sm:$0xff]   ;;  %v10010_v0 = vpack.c.bf16 %v10008_v26, %v10007_v47  ;;  %v13639_v40 = vld [vmem:[%s17092_s10 + $0x198] sm:$0xff]   ;;  %v13642_v34 = vld [vmem:[%s17092_s10 + $0x1d0] sm:$0xff]  }
 0x4a0   : > { %13177 = vmatpush3.bf16.msra.mxu1 %v16887_v27  ;;  %13172 = vmatprep.mubr.bf16.mxu0 %v9768_v6  ;;  %v13606_v27 = vld [vmem:[%s17092_s10 + $0xe0] sm:$0xff]   ;;  %v13640_v39 = vld [vmem:[%s17092_s10 + $0x1d8] sm:$0xff]   ;;  %v13643_v1 = vld [vmem:[%s17092_s10 + $0x188] sm:$0xff]  }
 0x4a1   : > { %13192 = vmatprep.mubr.bf16.mxu1 %v9889_v14  ;;  %13158 = vmatprep.subr.bf16.mxu0 %v13601_v32  ;;  %v10129_v55 = vld [vmem:[#allocation4 + $0x10] sm:$0xff] }
 0x4a2   : > { %13178 = vmatprep.subr.bf16.mxu1 %v13602_v23  ;;  %v10131_v50 = vpack.c.bf16 %v10129_v55, %v16897_v44  ;;  %v10249_v15 = vld [vmem:[#allocation4 + $0xc] sm:$0xff]  ;;  %v10250_v25 = vld [vmem:[#allocation4 + $0x14] sm:$0xff] }
 0x4a3   : > { %13159 = vmatpush3.bf16.msra.mxu0 %v13601_v32  ;;  %v10370_v46 = vld [vmem:[#allocation4 + $0xd] sm:$0xff]  ;;  %v10371_v54 = vld [vmem:[#allocation4 + $0x15] sm:$0xff]  ;;  %v10252_v58 = vpack.c.bf16 %v10250_v25, %v10249_v15  ;;  %v13641_v32 = vld [vmem:[%s17092_s10 + $0x190] sm:$0xff]  }
 0x4a4   : > { %13179 = vmatpush3.bf16.msra.mxu1 %v13602_v23  ;;  %13160 = vmatprep.subr.bf16.mxu0 %v13603_v21  ;;  %v10373_v44 = vpack.c.bf16 %v10371_v54, %v10370_v46  ;;  %v13637_v51 = vld [vmem:[%s17092_s10 + $0x1a0] sm:$0xff]   ;;  %v13644_v23 = vld [vmem:[%s17092_s10 + $0x1c8] sm:$0xff]  }
 0x4a5   : > { %13180 = vmatprep.subr.bf16.mxu1 %v13604_v53  ;;  %v13638_v19 = vld [vmem:[%s17092_s10 + $0x1e0] sm:$0xff]  }
 0x4a6   : > { %v13645_v6 = vld [vmem:[%s17092_s10 + $0x180] sm:$0xff]  }
 0x4a7   : > { %13161 = vmatpush3.bf16.msra.mxu0 %v13603_v21  ;;  %v13646_v14 = vld [vmem:[%s17092_s10 + $0x1c0] sm:$0xff]   ;;  %v13647_v21 = vld [vmem:[%s17092_s10 + $0x238] sm:$0xff]  }
 0x4a8   : > { %13181 = vmatpush3.bf16.msra.mxu1 %v13604_v53  ;;  %13162 = vmatprep.subr.bf16.mxu0 %v13605_v12  ;;  %v10251_v53 = vld [vmem:[#allocation4 + $0x1c] sm:$0x3f] }
 0x4a9   : > { %13182 = vmatprep.subr.bf16.mxu1 %v13606_v27 }
 0x4ab   : > { %13163 = vmatpush3.bf16.msra.mxu0 %v13605_v12  ;;  %v10372_v12 = vld [vmem:[#allocation4 + $0x1d] sm:$0x3f] }
 0x4ac   : > { %13183 = vmatpush3.bf16.msra.mxu1 %v13606_v27  ;;  %13164 = vmatprep.subr.bf16.mxu0 %v13607_v36  ;;  %v10492_v27 = vld [vmem:[#allocation4 + $0x16] sm:$0xff] }
 0x4ad   : > { %13184 = vmatprep.subr.bf16.mxu1 %v13608_v7 }
 0x4af   : > { %13165 = vmatpush3.bf16.msra.mxu0 %v13607_v36  ;;  %v10253_v36 = vpack.c.bf16 %v10251_v53, %v10251_v53 }
 0x4b0   : > { %13185 = vmatpush3.bf16.msra.mxu1 %v13608_v7  ;;  %13166 = vmatprep.subr.bf16.mxu0 %v13609_v17  ;;  %v10374_v7 = vpack.c.bf16 %v10372_v12, %v10372_v12  ;;  %v11718_v12 = vld [vmem:[%s17093_s11] ss:$0 sm:$0xff] }
 0x4b1   : > { %13186 = vmatprep.subr.bf16.mxu1 %v13610_v10 }
 0x4b3   : > { %13167 = vmatpush3.bf16.msra.mxu0 %v13609_v17  ;;  %v13648_v17 = vld [vmem:[%s17092_s10 + $0x230] sm:$0xff]  }
 0x4b4   : > { %13187 = vmatpush3.bf16.msra.mxu1 %v13610_v10  ;;  %13168 = vmatprep.subr.bf16.mxu0 %v13611_v18  ;;  %v10494_v10 = vpack.c.bf16 %v10492_v27, %v16900_v43  ;;  %v13651_v43 = vld [vmem:[%s17092_s10 + $0x218] sm:$0xff]  }
 0x4b5   : > { %13188 = vmatprep.subr.bf16.mxu1 %v13612_v61 }
 0x4b7   : > { %13169 = vmatpush3.bf16.msra.mxu0 %v13611_v18  ;;  %v13649_v18 = vld [vmem:[%s17092_s10 + $0x228] sm:$0xff]  }
 0x4b8   : > { %13189 = vmatpush3.bf16.msra.mxu1 %v13612_v61  ;;  %13170 = vmatprep.subr.bf16.mxu0 %v13613_v60  ;;  %v13650_v61 = vld [vmem:[%s17092_s10 + $0x220] sm:$0xff]  }
 0x4b9   : > { %13190 = vmatprep.subr.bf16.mxu1 %v13614_v42 }
 0x4bb   : > { %13171 = vmatpush3.bf16.msra.mxu0 %v13613_v60  ;;  %v13652_v60 = vld [vmem:[%s17092_s10 + $0x210] sm:$0xff]  }
 0x4bc   : > { %13191 = vmatpush3.bf16.msra.mxu1 %v13614_v42  ;;  %13196 = vmatprep.subr.bf16.mxu0 %v13615_v49  ;;  %v13653_v42 = vld [vmem:[%s17092_s10 + $0x208] sm:$0xff]  }
 0x4bd   : > { %13216 = vmatprep.subr.bf16.mxu1 %v13616_v63 }
 0x4be   : > { %13173 = vmatmul.mubr.bf16.vlgmr.msra.gmra.mxu0 %v9769_v37 }
 0x4bf   : > { %13193 = vmatmul.mubr.bf16.vlgmr.msra.gmra.mxu1 %v9890_v11  ;;  %13197 = vmatpush3.bf16.msra.mxu0 %v13615_v49  ;;  %v13654_v49 = vld [vmem:[%s17092_s10 + $0x200] sm:$0xff]  }
 0x4c0   : > { %13212 = vmatprep.mubr.bf16.mxu0 %v10010_v0  ;;  %13217 = vmatpush3.bf16.msra.mxu1 %v13616_v63  ;;  %v10493_v63 = vld [vmem:[#allocation4 + $0x1e] sm:$0x3f] }
 0x4c1   : > { %13232 = vmatprep.mubr.bf16.mxu1 %v10131_v50  ;;  %13198 = vmatprep.subr.bf16.mxu0 %v13617_v31  ;;  %v10495_v57 = vpack.c.bf16 %v10493_v63, %v10493_v63 }
 0x4c2   : > { %13218 = vmatprep.subr.bf16.mxu1 %v13618_v38 }
 0x4c3   : > { %13199 = vmatpush3.bf16.msra.mxu0 %v13617_v31 }
 0x4c4   : > { %13219 = vmatpush3.bf16.msra.mxu1 %v13618_v38  ;;  %13200 = vmatprep.subr.bf16.mxu0 %v13619_v22 }
 0x4c5   : > { %13220 = vmatprep.subr.bf16.mxu1 %v13620_v56 }
 0x4c7   : > { %13201 = vmatpush3.bf16.msra.mxu0 %v13619_v22 }
 0x4c8   : > { %13221 = vmatpush3.bf16.msra.mxu1 %v13620_v56  ;;  %13202 = vmatprep.subr.bf16.mxu0 %v13621_v33 }
 0x4c9   : > { %13222 = vmatprep.subr.bf16.mxu1 %v13622_v45 }
 0x4cb   : > { %13203 = vmatpush3.bf16.msra.mxu0 %v13621_v33 }
 0x4cc   : > { %13223 = vmatpush3.bf16.msra.mxu1 %v13622_v45  ;;  %13204 = vmatprep.subr.bf16.mxu0 %v13623_v2 }
 0x4cd   : > { %13224 = vmatprep.subr.bf16.mxu1 %v13624_v4 }
 0x4cf   : > { %13205 = vmatpush3.bf16.msra.mxu0 %v13623_v2 }
 0x4d0   : > { %13225 = vmatpush3.bf16.msra.mxu1 %v13624_v4  ;;  %13206 = vmatprep.subr.bf16.mxu0 %v13625_v48 }
 0x4d1   : > { %13226 = vmatprep.subr.bf16.mxu1 %v13626_v5 }
 0x4d3   : > { %13207 = vmatpush3.bf16.msra.mxu0 %v13625_v48 }
 0x4d4   : > { %13227 = vmatpush3.bf16.msra.mxu1 %v13626_v5  ;;  %13208 = vmatprep.subr.bf16.mxu0 %v13627_v59 }
 0x4d5   : > { %13228 = vmatprep.subr.bf16.mxu1 %v13628_v30 }
 0x4d7   : > { %13209 = vmatpush3.bf16.msra.mxu0 %v13627_v59 }
 0x4d8   : > { %13229 = vmatpush3.bf16.msra.mxu1 %v13628_v30  ;;  %13210 = vmatprep.subr.bf16.mxu0 %v13629_v28 }
 0x4d9   : > { %13230 = vmatprep.subr.bf16.mxu1 %v13630_v41 }
 0x4db   : > { %13211 = vmatpush3.bf16.msra.mxu0 %v13629_v28 }
 0x4dc   : > { %13231 = vmatpush3.bf16.msra.mxu1 %v13630_v41  ;;  %13236 = vmatprep.subr.bf16.mxu0 %v13631_v20 }
 0x4dd   : > { %13256 = vmatprep.subr.bf16.mxu1 %v13632_v9 }
 0x4de   : > { %13213 = vmatmul.mubr.bf16.vlgmr.msra.gmra.mxu0 %v10011_v35 }
 0x4df   : > { %13233 = vmatmul.mubr.bf16.vlgmr.msra.gmra.mxu1 %v10132_v24  ;;  %13237 = vmatpush3.bf16.msra.mxu0 %v13631_v20 }
 0x4e0   : > { %13252 = vmatprep.mubr.bf16.mxu0 %v10252_v58  ;;  %13272 = vmatprep.mubr.bf16.mxu1 %v10373_v44 }
 0x4e1   : > { %13257 = vmatpush3.bf16.msra.mxu1 %v13632_v9  ;;  %13238 = vmatprep.subr.bf16.mxu0 %v13633_v62 }
 0x4e2   : > { %13258 = vmatprep.subr.bf16.mxu1 %v13634_v29 }
 0x4e3   : > { %13239 = vmatpush3.bf16.msra.mxu0 %v13633_v62 }
 0x4e4   : > { %13240 = vmatprep.subr.bf16.mxu0 %v13635_v8 }
 0x4e5   : > { %13259 = vmatpush3.bf16.msra.mxu1 %v13634_v29 }
 0x4e6   : > { %13260 = vmatprep.subr.bf16.mxu1 %v13636_v52 }
 0x4e7   : > { %13241 = vmatpush3.bf16.msra.mxu0 %v13635_v8 }
 0x4e8   : > { %13242 = vmatprep.subr.bf16.mxu0 %v13637_v51 }
 0x4e9   : > { %13261 = vmatpush3.bf16.msra.mxu1 %v13636_v52 }
 0x4ea   : > { %13262 = vmatprep.subr.bf16.mxu1 %v13638_v19 }
 0x4eb   : > { %13243 = vmatpush3.bf16.msra.mxu0 %v13637_v51 }
 0x4ec   : > { %13244 = vmatprep.subr.bf16.mxu0 %v13639_v40 }
 0x4ed   : > { %13263 = vmatpush3.bf16.msra.mxu1 %v13638_v19 }
 0x4ee   : > { %13264 = vmatprep.subr.bf16.mxu1 %v13640_v39 }
 0x4ef   : > { %13245 = vmatpush3.bf16.msra.mxu0 %v13639_v40 }
 0x4f0   : > { %13246 = vmatprep.subr.bf16.mxu0 %v13641_v32 }
 0x4f1   : > { %13265 = vmatpush3.bf16.msra.mxu1 %v13640_v39 }
 0x4f2   : > { %13266 = vmatprep.subr.bf16.mxu1 %v13642_v34 }
 0x4f3   : > { %13247 = vmatpush3.bf16.msra.mxu0 %v13641_v32 }
 0x4f4   : > { %13248 = vmatprep.subr.bf16.mxu0 %v13643_v1 }
 0x4f5   : > { %13267 = vmatpush3.bf16.msra.mxu1 %v13642_v34 }
 0x4f6   : > { %13268 = vmatprep.subr.bf16.mxu1 %v13644_v23 }
 0x4f7   : > { %13249 = vmatpush3.bf16.msra.mxu0 %v13643_v1 }
 0x4f8   : > { %13250 = vmatprep.subr.bf16.mxu0 %v13645_v6 }
 0x4f9   : > { %13269 = vmatpush3.bf16.msra.mxu1 %v13644_v23 }
 0x4fa   : > { %13270 = vmatprep.subr.bf16.mxu1 %v13646_v14 }
 0x4fb   : > { %13251 = vmatpush3.bf16.msra.mxu0 %v13645_v6 }
 0x4fc   : > { %13276 = vmatprep.subr.bf16.mxu0 %v13647_v21 }
 0x4fd   : > { %13271 = vmatpush3.bf16.msra.mxu1 %v13646_v14 }
 0x4fe   : > { %13253 = vmatmul.mubr.bf16.vlgmr.msra.gmra.mxu0 %v10253_v36 }
 0x4ff   : > { %13277 = vmatpush3.bf16.msra.mxu0 %v13647_v21  ;;  %13292 = vmatprep.mubr.bf16.mxu0 %v10494_v10  ;;  %v11719_v10 = vld [vmem:[%s17094_s12] ss:$0 sm:$0xff] }
 0x500   : > { %13273 = vmatmul.mubr.bf16.vlgmr.msra.gmra.mxu1 %v10374_v7  ;;  %13278 = vmatprep.subr.bf16.mxu0 %v13648_v17 }
 0x503   : > { %13279 = vmatpush3.bf16.msra.mxu0 %v13648_v17 }
 0x504   : > { %13280 = vmatprep.subr.bf16.mxu0 %v13649_v18 }
 0x507   : > { %13281 = vmatpush3.bf16.msra.mxu0 %v13649_v18  ;;  %v10699_v18 = vld [vmem:[#allocation3 + $0x19] sm:$0xf] }
 0x508   : > { %13282 = vmatprep.subr.bf16.mxu0 %v13650_v61 }
 0x50b   : > { %13283 = vmatpush3.bf16.msra.mxu0 %v13650_v61 }
 0x50c   : > { %13284 = vmatprep.subr.bf16.mxu0 %v13651_v43 }
 0x50f   : > { %13285 = vmatpush3.bf16.msra.mxu0 %v13651_v43 }
 0x510   : > { %13286 = vmatprep.subr.bf16.mxu0 %v13652_v60 }
 0x513   : > { %13287 = vmatpush3.bf16.msra.mxu0 %v13652_v60 }
 0x514   : > { %13288 = vmatprep.subr.bf16.mxu0 %v13653_v42 }
 0x517   : > { %13289 = vmatpush3.bf16.msra.mxu0 %v13653_v42  ;;  %v10650_v42 = vld [vmem:[#allocation3 + $0xd] sm:$0xf] }
 0x518   : > { %13290 = vmatprep.subr.bf16.mxu0 %v13654_v49 }
 0x51b   : > { %13291 = vmatpush3.bf16.msra.mxu0 %v13654_v49 }
 0x51e   : > { %13293 = vmatmul.mubr.bf16.vlgmr.msra.gmra.mxu0 %v10495_v57 }
 0x55e   : > { %v13134_v13 = vpop.f32.mrf.mxu0 }
 0x55f   : > { %v13154_v26 = vpop.f32.mrf.mxu1 }
 0x560   : > { %v9760_v55 = vadd.f32 %v13154_v26, %v13134_v13  ;;  %v9655_v37 = vpop.f32.mrf.mxu0  ;;  %v10701_v13 = vrot.slane %v10699_v18, 6 }
 0x561   : > { %v9751_v11 = vpop.f32.mrf.mxu1 }
 0x562   : > { %v9752_v47 = vadd.f32 %v9751_v11, %v9655_v37  ;;  %v13135_v0 = vpop.f32.mrf.mxu0 }
 0x563   : > { %v13155_v31 = vpop.f32.mrf.mxu1 }
 0x564   : > { %v9658_v38 = vpop.f32.mrf.mxu0  ;;  %v10628_v31 = vld [vmem:[#allocation3 + $0x7] sm:$0xf] }
 0x565   : > { %v9754_v50 = vpop.f32.mrf.mxu1 }
 0x566   : > { %v9755_v22 = vadd.f32 %v9754_v50, %v9658_v38  ;;  %v10676_v38 = vld [vmem:[#allocation3 + $0x13] sm:$0xf] }
 0x57e   : > { %v13174_v56 = vpop.f32.mrf.mxu0 }
 0x57f   : > { %v13194_v33 = vpop.f32.mrf.mxu1  ;;  %v9885_v45 = vadd.f32 %v13174_v56, %v9760_v55 }
 0x580   : > { %v9869_v2 = vpop.f32.mrf.mxu0 }
 0x581   : > { %v9990_v4 = vpop.f32.mrf.mxu1  ;;  %v10006_v48 = vadd.f32 %v13194_v33, %v9885_v45  ;;  %v9883_v5 = vadd.f32 %v9869_v2, %v9752_v47  ;;  %v10652_v47 = vrot.slane %v10650_v42, 2 }
 0x582   : > { %v13175_v59 = vpop.f32.mrf.mxu0 }
 0x583   : > { %v13195_v30 = vpop.f32.mrf.mxu1  ;;  %v10004_v28 = vadd.f32 %v9990_v4, %v9883_v5 }
 0x584   : > { %v9872_v41 = vpop.f32.mrf.mxu0 }
 0x585   : > { %v9993_v20 = vpop.f32.mrf.mxu1  ;;  %v9884_v52 = vadd.f32 %v9872_v41, %v9755_v22 }
 0x587   : > { %v10005_v40 = vadd.f32 %v9993_v20, %v9884_v52 }
 0x59e   : > { %v13214_v16 = vpop.f32.mrf.mxu0 }
 0x59f   : > { %v13234_v9 = vpop.f32.mrf.mxu1  ;;  %v10127_v51 = vadd.f32 %v13214_v16, %v10006_v48  ;;  %v10678_v48 = vrot.slane %v10676_v38, 4 }
 0x5a0   : > { %v10111_v3 = vpop.f32.mrf.mxu0 }
 0x5a1   : > { %v10232_v15 = vpop.f32.mrf.mxu1  ;;  %v10125_v19 = vadd.f32 %v10111_v3, %v10004_v28  ;;  %v10248_v39 = vadd.f32 %v13234_v9, %v10127_v51 }
 0x5a2   : > { %v13215_v25 = vpop.f32.mrf.mxu0 }
 0x5a3   : > { %v13235_v46 = vpop.f32.mrf.mxu1  ;;  %v10246_v32 = vadd.f32 %v10232_v15, %v10125_v19 }
 0x5a4   : > { %v10114_v54 = vpop.f32.mrf.mxu0 }
 0x5a5   : > { %v10235_v35 = vpop.f32.mrf.mxu1  ;;  %v10126_v34 = vadd.f32 %v10114_v54, %v10005_v40 }
 0x5a7   : > { %v10247_v14 = vadd.f32 %v10235_v35, %v10126_v34 }
 0x5be   : > { %v13254_v24 = vpop.f32.mrf.mxu0 }
 0x5bf   : > { %v10369_v1 = vadd.f32 %v13254_v24, %v10248_v39 }
 0x5c0   : > { %v10353_v62 = vpop.f32.mrf.mxu0  ;;  %v13274_v58 = vpop.f32.mrf.mxu1 }
 0x5c1   : > { %v10367_v23 = vadd.f32 %v10353_v62, %v10246_v32  ;;  %v10490_v21 = vadd.f32 %v13274_v58, %v10369_v1 }
 0x5c2   : > { %v13255_v44 = vpop.f32.mrf.mxu0  ;;  %v10474_v29 = vpop.f32.mrf.mxu1 }
 0x5c3   : > { %v10488_v27 = vadd.f32 %v10474_v29, %v10367_v23 }
 0x5c4   : > { %v13275_v8 = vpop.f32.mrf.mxu1  ;;  %v10356_v6 = vpop.f32.mrf.mxu0 }
 0x5c5   : > { %v10368_v36 = vadd.f32 %v10356_v6, %v10247_v14 }
 0x5c6   : > { %v10477_v17 = vpop.f32.mrf.mxu1 }
 0x5c7   : > { %v10489_v63 = vadd.f32 %v10477_v17, %v10368_v36 }
 0x5de   : > { %v13294_v53 = vpop.f32.mrf.mxu0 }
 0x5df   : > { %v10611_v7 = vadd.f32 %v13294_v53, %v10490_v21 }
 0x5e0   : > { %v10595_v61 = vpop.f32.mrf.mxu0 }
 0x5e1   : > { %v10690_v43 = vmul.f32 %v11718_v12, %v10611_v7  ;;  %v10609_v60 = vadd.f32 %v10595_v61, %v10488_v27 }
 0x5e2   : > { %v13295_v49 = vpop.f32.mrf.mxu0 }
 0x5e3   : > { %v10698_v57 = vadd.f32 %v11719_v10, %v10690_v43  ;;  %v10619_v26 = vmul.f32 %v11718_v12, %v10609_v60 }
 0x5e4   : > { %v10598_v55 = vpop.f32.mrf.mxu0 }
 0x5e5   : > { %v10703_v37 = vadd.f32 %v10701_v13, %v10698_v57  ;;  %v10627_v11 = vadd.f32 %v11719_v10, %v10619_v26  ;;  %v10610_v0 = vadd.f32 %v10598_v55, %v10489_v63 }
 0x5e7   : > { %v10704_v50 = vmax.f32 %v10703_v37, 0.0  ;;  %v10629_v22 = vadd.f32 %v10628_v31, %v10627_v11  ;;  %v10654_v56 = vadd.f32 %v10652_v47, %v10627_v11  ;;  %v10640_v33 = vmul.f32 %v11718_v12, %v10610_v0 }
 0x5e9   : > { %10705 = vst [vmem:[%s500_s15 + $0xa] sm:$0x3c] %v10704_v50  ;;  %v10630_v45 = vmax.f32 %v10629_v22, 0.0  ;;  %v10656_v2 = vmax.f32 %v10654_v56, 0.0  ;;  %v10649_v4 = vadd.f32 %v11719_v10, %v10640_v33 }
 0x5eb   : > { %10631 = vst [vmem:[%s500_s15] sm:$0xf] %v10630_v45  ;;  %10658 = vst [vmem:[%s500_s15 - $0x2] sm:$0xc0] %v10656_v2  ;;  %v10655_v5 = vadd.f32 %v10652_v47, %v10649_v4  ;;  %v10680_v59 = vadd.f32 %v10678_v48, %v10649_v4 }
 0x5ed   : > { %v10657_v30 = vmax.f32 %v10655_v5, 0.0  ;;  %v10681_v28 = vmax.f32 %v10680_v59, 0.0 }
 0x5ef   : > { %10659 = vst [vmem:[%s500_s15 + $0x6] sm:$0x3] %v10657_v30  ;;  %10682 = vst [vmem:[%s500_s15 + $0x4] sm:$0xf0] %v10681_v28 }
 0x5f0 PF: > { %s23_s25 = sadd.s32 1, %s13661_s25  }
 0x5f1   : > { %p20_p4 = scmp.ge.s32.totalorder %s23_s25, 4  }
 0x5f3   :  { %22 = sbr.rel (!%p20_p4) target bundleno = 1 (0x1), region = 201 }

</bundles_post_ra>
